<compile_context>
chip_gen: v5e
topology: v5e:2x2
jax: 0.10.0
libtpu: 0.0.40
codegen_flags: <defaults>
</compile_context>

<pallas_src>
import functools

import jax
import jax.numpy as jnp
import numpy as np
from jax import lax
from jax.experimental import pallas as pl
from jax.experimental.pallas import tpu as pltpu


# ---------------------------------------------------------------------------
# Pallas kernel: whole CompositeModel.forward in one kernel (weights in VMEM)
# ---------------------------------------------------------------------------
def composite_kernel(x_ref,
                     e_w0x_ref, e_w0h_ref, e_b0_ref, e_wf_ref, e_bf_ref,
                     d_w0x_ref, d_w0h_ref, d_b0_ref, d_wf_ref, d_bf_ref,
                     d_fcw_ref, d_fcb_ref,
                     f_w0x_ref, f_w0h_ref, f_b0_ref, f_wf_ref, f_bf_ref,
                     f_fcw_ref, f_fcb_ref,
                     enc_out_ref, dec_out_ref, fut_out_ref,
                     gx_ref, hs_ref,
                     *, num_layers):
    B, T, I = x_ref.shape
    H = e_w0h_ref.shape[0]
    G4 = 4 * H
    S = hs_ref.shape[0]
    L = num_layers

    def gate_update(gates, c_prev):
        # Full-width activations (one sigmoid + one tanh over (B, 4H)), then slice.
        sg = jax.nn.sigmoid(gates)
        tg = jnp.tanh(gates)
        i_g = sg[:, 0 * H:1 * H]
        f_g = sg[:, 1 * H:2 * H]
        o_g = sg[:, 3 * H:4 * H]
        g_g = tg[:, 2 * H:3 * H]
        c_new = f_g * c_prev + i_g * g_g
        h_new = o_g * jnp.tanh(c_new)
        return h_new, c_new

    def lstm_step(gx_t, h, c, w0h, wf, bf):
        # Layer 0: input-gate contribution (incl. bias) was precomputed in gx_t.
        g0 = gx_t + jnp.dot(h[0], w0h, preferred_element_type=jnp.float32)
        h0, c0 = gate_update(g0, c[0])
        new_h = [h0]
        new_c = [c0]
        x_t = h0
        # Layers >= 1: fused [x_t, h_l] @ [W_ih^T; W_hh^T].
        for l in range(1, L):
            xh = jnp.concatenate([x_t, h[l]], axis=1)            # (B, 2H)
            g = (jnp.dot(xh, wf[l - 1], preferred_element_type=jnp.float32)
                 + bf[l - 1])
            hl, cl = gate_update(g, c[l])
            new_h.append(hl)
            new_c.append(cl)
            x_t = hl
        return tuple(new_h), tuple(new_c)

    # ---------------- Encoder ----------------
    # Hoisted layer-0 input projection over all T timesteps: one batched matmul.
    x_all = x_ref[...]                                           # (B, T, I)
    gx_all = (jnp.dot(x_all.reshape(B * T, I), e_w0x_ref[...],
                      preferred_element_type=jnp.float32)
              + e_b0_ref[...])                                   # (B*T, 4H)
    gx_all = gx_all.reshape(B, T, G4)
    for t in range(T):                                           # static re-layout stores
        gx_ref[t] = gx_all[:, t, :]                              # (T, B, 4H) scratch

    e_w0h = e_w0h_ref[...]
    e_wf = [e_wf_ref[l - 1] for l in range(1, L)]
    e_bf = [e_bf_ref[l - 1] for l in range(1, L)]

    zeros = jnp.zeros((B, H), jnp.float32)
    h = tuple(zeros for _ in range(L))
    c = tuple(zeros for _ in range(L))

    def enc_body(t, carry):
        hh, cc = carry
        return lstm_step(gx_ref[t], hh, cc, e_w0h, e_wf, e_bf)

    h, c = lax.fori_loop(0, T, enc_body, (h, c), unroll=True)
    enc = h[L - 1]                                               # (B, H)
    enc_out_ref[...] = enc.reshape(B, 1, H)

    # --------- Decoder / future predictor (same structure) ---------
    def run_decoder(h, c, w0x_ref, w0h_ref, b0_ref, wf_ref, bf_ref,
                    fcw_ref, fcb_ref, out_ref):
        # Layer-0 input is `enc` every step -> loop-invariant projection.
        gx0 = (jnp.dot(enc, w0x_ref[...], preferred_element_type=jnp.float32)
               + b0_ref[...])                                    # (B, 4H)
        w0h = w0h_ref[...]
        wf = [wf_ref[l - 1] for l in range(1, L)]
        bf = [bf_ref[l - 1] for l in range(1, L)]

        def body(s, carry):
            hh, cc = carry
            hh, cc = lstm_step(gx0, hh, cc, w0h, wf, bf)
            hs_ref[s] = hh[L - 1]                                # top-layer hidden
            return (hh, cc)

        h, c = lax.fori_loop(0, S, body, (h, c), unroll=True)

        # Batched FC head over all S steps at once.
        hs = hs_ref[...]                                         # (S, B, H)
        y = (jnp.dot(hs.reshape(S * B, H), fcw_ref[...],
                     preferred_element_type=jnp.float32)
             + fcb_ref[...])                                     # (S*B, I)
        y = y.reshape(S, B, I)
        for s in range(S):                                       # static stores
            out_ref[:, s, :] = y[s]
        return h, c

    h, c = run_decoder(h, c, d_w0x_ref, d_w0h_ref, d_b0_ref, d_wf_ref, d_bf_ref,
                       d_fcw_ref, d_fcb_ref, dec_out_ref)
    h, c = run_decoder(h, c, f_w0x_ref, f_w0h_ref, f_b0_ref, f_wf_ref, f_bf_ref,
                       f_fcw_ref, f_fcb_ref, fut_out_ref)


# ---------------------------------------------------------------------------
# Parameter packing (pre-transpose & fuse in the wrapper)
# ---------------------------------------------------------------------------
def pack_lstm(layers, H):
    L = len(layers)
    w0x = layers[0]["wih"].T                                     # (din, 4H)
    w0h = layers[0]["whh"].T                                     # (H,   4H)
    b0 = layers[0]["b"].reshape(1, 4 * H)
    if L > 1:
        wf = jnp.stack([jnp.concatenate([layers[l]["wih"].T, layers[l]["whh"].T],
                                        axis=0) for l in range(1, L)])   # (L-1, 2H, 4H)
        bf = jnp.stack([layers[l]["b"].reshape(1, 4 * H) for l in range(1, L)])
    else:  # keep a fixed kernel signature; unused when L == 1
        wf = jnp.zeros((1, 2 * H, 4 * H), jnp.float32)
        bf = jnp.zeros((1, 1, 4 * H), jnp.float32)
    return w0x, w0h, b0, wf, bf


def pack_params(params, H):
    e = pack_lstm(params["enc"], H)
    d = pack_lstm(params["dec"]["layers"], H)
    f = pack_lstm(params["fut"]["layers"], H)
    d_fc = (params["dec"]["fcw"].T, params["dec"]["fcb"].reshape(1, -1))
    f_fc = (params["fut"]["fcw"].T, params["fut"]["fcb"].reshape(1, -1))
    return e + d + d_fc + f + f_fc


# ---------------------------------------------------------------------------
# Wrapper
# ---------------------------------------------------------------------------
def composite_forward(x, params, sequence_length, *, num_batch_blocks=1):
    B, T, I = x.shape
    enc_layers = params["enc"]
    H = enc_layers[0]["whh"].shape[1]
    L = len(enc_layers)
    S = sequence_length
    assert B % num_batch_blocks == 0
    Bblk = B // num_batch_blocks

    packed = pack_params(params, H)
    inputs = (x,) + packed

    def full_spec(a):
        nd = a.ndim
        return pl.BlockSpec(a.shape, lambda b, _nd=nd: (0,) * _nd)

    in_specs = ([pl.BlockSpec((Bblk, T, I), lambda b: (b, 0, 0))]
                + [full_spec(a) for a in packed])
    out_specs = (pl.BlockSpec((Bblk, 1, H), lambda b: (b, 0, 0)),
                 pl.BlockSpec((Bblk, S, I), lambda b: (b, 0, 0)),
                 pl.BlockSpec((Bblk, S, I), lambda b: (b, 0, 0)))
    out_shape = (jax.ShapeDtypeStruct((B, 1, H), jnp.float32),
                 jax.ShapeDtypeStruct((B, S, I), jnp.float32),
                 jax.ShapeDtypeStruct((B, S, I), jnp.float32))

    grid_spec = pltpu.PrefetchScalarGridSpec(
        num_scalar_prefetch=0,
        grid=(num_batch_blocks,),
        in_specs=in_specs,
        out_specs=out_specs,
        scratch_shapes=[pltpu.VMEM((T, Bblk, 4 * H), jnp.float32),   # gx_ref
                        pltpu.VMEM((S, Bblk, H), jnp.float32)])      # hs_ref

    fn = pl.pallas_call(
        functools.partial(composite_kernel, num_layers=L),
        out_shape=out_shape,
        grid_spec=grid_spec,
        compiler_params=pltpu.CompilerParams(
            dimension_semantics=("parallel",)))
    return fn(*inputs)


# ---------------------------------------------------------------------------
# Deterministic parameter init (PyTorch-style uniform(-1/sqrt(H), 1/sqrt(H)))
# ---------------------------------------------------------------------------
def init_lstm(key, num_layers, in_size, H):
    k = 1.0 / np.sqrt(H)
    layers = []
    for l in range(num_layers):
        key, k1, k2, k3, k4 = jax.random.split(key, 5)
        din = in_size if l == 0 else H
        wih = jax.random.uniform(k1, (4 * H, din), jnp.float32, -k, k)
        whh = jax.random.uniform(k2, (4 * H, H), jnp.float32, -k, k)
        b = (jax.random.uniform(k3, (4 * H,), jnp.float32, -k, k)
             + jax.random.uniform(k4, (4 * H,), jnp.float32, -k, k))  # b_ih + b_hh
        layers.append({"wih": wih, "whh": whh, "b": b})
    return key, layers


def init_params(key, input_size, hidden_size, num_layers):
    I, H, L = input_size, hidden_size, num_layers
    kfc = 1.0 / np.sqrt(H)
    p = {}
    key, p["enc"] = init_lstm(key, L, I, H)
    key, dec_layers = init_lstm(key, L, H, H)
    key, k1, k2 = jax.random.split(key, 3)
    p["dec"] = {"layers": dec_layers,
                "fcw": jax.random.uniform(k1, (I, H), jnp.float32, -kfc, kfc),
                "fcb": jax.random.uniform(k2, (I,), jnp.float32, -kfc, kfc)}
    key, fut_layers = init_lstm(key, L, H, H)
    key, k1, k2 = jax.random.split(key, 3)
    p["fut"] = {"layers": fut_layers,
                "fcw": jax.random.uniform(k1, (I, H), jnp.float32, -kfc, kfc),
                "fcb": jax.random.uniform(k2, (I,), jnp.float32, -kfc, kfc)}
    return p


# ---------------------------------------------------------------------------
# Pure-JAX reference (PyTorch-layout math) for the correctness check
# ---------------------------------------------------------------------------
def composite_ref(x, params, sequence_length):
    B, T, I = x.shape
    enc_layers = params["enc"]
    H = enc_layers[0]["whh"].shape[1]
    L = len(enc_layers)
    S = sequence_length

    def cell(x_t, h, c, layer):
        gates = x_t @ layer["wih"].T + h @ layer["whh"].T + layer["b"][None, :]
        i = jax.nn.sigmoid(gates[:, :H])
        f = jax.nn.sigmoid(gates[:, H:2 * H])
        g = jnp.tanh(gates[:, 2 * H:3 * H])
        o = jax.nn.sigmoid(gates[:, 3 * H:])
        c_n = f * c + i * g
        return o * jnp.tanh(c_n), c_n

    h = [jnp.zeros((B, H), jnp.float32) for _ in range(L)]
    c = [jnp.zeros((B, H), jnp.float32) for _ in range(L)]
    for t in range(T):
        x_t = x[:, t, :]
        for l in range(L):
            h[l], c[l] = cell(x_t, h[l], c[l], enc_layers[l])
            x_t = h[l]
    enc = h[-1]

    def run(h, c, dec):
        h = list(h); c = list(c); outs = []
        for _ in range(S):
            x_t = enc
            for l in range(L):
                h[l], c[l] = cell(x_t, h[l], c[l], dec["layers"][l])
                x_t = h[l]
            outs.append(x_t @ dec["fcw"].T + dec["fcb"][None, :])
        return jnp.stack(outs, axis=1), h, c

    dec_out, h, c = run(h, c, params["dec"])
    fut_out, h, c = run(h, c, params["fut"])
    return enc[:, None, :], dec_out, fut_out


# ---------------------------------------------------------------------------
if __name__ == "__main__":
    # B=8 matches the f32 sublane tile; 4H = 128 is lane-aligned.
    B, T, I, H, S, L = 8, 8, 4, 32, 8, 2

    key = jax.random.PRNGKey(0)
    key, xkey = jax.random.split(key)
    x = jax.random.normal(xkey, (B, T, I), dtype=jnp.float32)
    params = init_params(key, input_size=I, hidden_size=H, num_layers=L)

    enc, dec, fut = composite_forward(x, params, sequence_length=S)
    jax.block_until_ready((enc, dec, fut))

    enc_r, dec_r, fut_r = composite_ref(x, params, sequence_length=S)
    assert enc.shape == (B, 1, H) and dec.shape == (B, S, I) and fut.shape == (B, S, I)
    np.testing.assert_allclose(np.asarray(enc), np.asarray(enc_r), atol=1e-4, rtol=1e-4)
    np.testing.assert_allclose(np.asarray(dec), np.asarray(dec_r), atol=1e-4, rtol=1e-4)
    np.testing.assert_allclose(np.asarray(fut), np.asarray(fut_r), atol=1e-4, rtol=1e-4)

    # Same kernel with the batch split over a parallel grid (uses v7x's 2nd TC;
    # sequential but still correct on single-core v5e/v6e).
    enc2, dec2, fut2 = composite_forward(x, params, sequence_length=S,
                                         num_batch_blocks=2)
    jax.block_until_ready((enc2, dec2, fut2))
    np.testing.assert_allclose(np.asarray(enc2), np.asarray(enc_r), atol=1e-4, rtol=1e-4)
    np.testing.assert_allclose(np.asarray(dec2), np.asarray(dec_r), atol=1e-4, rtol=1e-4)
    np.testing.assert_allclose(np.asarray(fut2), np.asarray(fut_r), atol=1e-4, rtol=1e-4)

    print("KERNEL_OK")
</pallas_src>

<mosaic_0001>
module attributes {stable_mosaic.version = 11 : i64} {
  func.func @composite_kernel(%arg0: i32, %arg1: memref<8x8x4xf32, #tpu.memory_space<vmem>>, %arg2: memref<4x128xf32, #tpu.memory_space<vmem>>, %arg3: memref<32x128xf32, #tpu.memory_space<vmem>>, %arg4: memref<1x128xf32, #tpu.memory_space<vmem>>, %arg5: memref<1x64x128xf32, #tpu.memory_space<vmem>>, %arg6: memref<1x1x128xf32, #tpu.memory_space<vmem>>, %arg7: memref<32x128xf32, #tpu.memory_space<vmem>>, %arg8: memref<32x128xf32, #tpu.memory_space<vmem>>, %arg9: memref<1x128xf32, #tpu.memory_space<vmem>>, %arg10: memref<1x64x128xf32, #tpu.memory_space<vmem>>, %arg11: memref<1x1x128xf32, #tpu.memory_space<vmem>>, %arg12: memref<32x4xf32, #tpu.memory_space<vmem>>, %arg13: memref<1x4xf32, #tpu.memory_space<vmem>>, %arg14: memref<32x128xf32, #tpu.memory_space<vmem>>, %arg15: memref<32x128xf32, #tpu.memory_space<vmem>>, %arg16: memref<1x128xf32, #tpu.memory_space<vmem>>, %arg17: memref<1x64x128xf32, #tpu.memory_space<vmem>>, %arg18: memref<1x1x128xf32, #tpu.memory_space<vmem>>, %arg19: memref<32x4xf32, #tpu.memory_space<vmem>>, %arg20: memref<1x4xf32, #tpu.memory_space<vmem>>, %arg21: memref<8x1x32xf32, #tpu.memory_space<vmem>>, %arg22: memref<8x8x4xf32, #tpu.memory_space<vmem>>, %arg23: memref<8x8x4xf32, #tpu.memory_space<vmem>>, %arg24: memref<8x8x128xf32, #tpu.memory_space<vmem>>, %arg25: memref<8x8x32xf32, #tpu.memory_space<vmem>>) attributes {dimension_semantics = [#tpu.dimension_semantics<parallel>], iteration_bounds = array<i64: 1>, scalar_prefetch = 0 : i64, scratch_operands = 2 : i64, tpu.core_type = #tpu.core_type<tc>, window_params = [{transform_indices = @transform_0, window_bounds = array<i64: 8, 8, 4>}, {pipeline_mode = #tpu.pipeline_mode<synchronous>, transform_indices = @transform_1, window_bounds = array<i64: 4, 128>}, {pipeline_mode = #tpu.pipeline_mode<synchronous>, transform_indices = @transform_2, window_bounds = array<i64: 32, 128>}, {pipeline_mode = #tpu.pipeline_mode<synchronous>, transform_indices = @transform_3, window_bounds = array<i64: 1, 128>}, {pipeline_mode = #tpu.pipeline_mode<synchronous>, transform_indices = @transform_4, window_bounds = array<i64: 1, 64, 128>}, {pipeline_mode = #tpu.pipeline_mode<synchronous>, transform_indices = @transform_5, window_bounds = array<i64: 1, 1, 128>}, {pipeline_mode = #tpu.pipeline_mode<synchronous>, transform_indices = @transform_6, window_bounds = array<i64: 32, 128>}, {pipeline_mode = #tpu.pipeline_mode<synchronous>, transform_indices = @transform_7, window_bounds = array<i64: 32, 128>}, {pipeline_mode = #tpu.pipeline_mode<synchronous>, transform_indices = @transform_8, window_bounds = array<i64: 1, 128>}, {pipeline_mode = #tpu.pipeline_mode<synchronous>, transform_indices = @transform_9, window_bounds = array<i64: 1, 64, 128>}, {pipeline_mode = #tpu.pipeline_mode<synchronous>, transform_indices = @transform_10, window_bounds = array<i64: 1, 1, 128>}, {pipeline_mode = #tpu.pipeline_mode<synchronous>, transform_indices = @transform_11, window_bounds = array<i64: 32, 4>}, {pipeline_mode = #tpu.pipeline_mode<synchronous>, transform_indices = @transform_12, window_bounds = array<i64: 1, 4>}, {pipeline_mode = #tpu.pipeline_mode<synchronous>, transform_indices = @transform_13, window_bounds = array<i64: 32, 128>}, {pipeline_mode = #tpu.pipeline_mode<synchronous>, transform_indices = @transform_14, window_bounds = array<i64: 32, 128>}, {pipeline_mode = #tpu.pipeline_mode<synchronous>, transform_indices = @transform_15, window_bounds = array<i64: 1, 128>}, {pipeline_mode = #tpu.pipeline_mode<synchronous>, transform_indices = @transform_16, window_bounds = array<i64: 1, 64, 128>}, {pipeline_mode = #tpu.pipeline_mode<synchronous>, transform_indices = @transform_17, window_bounds = array<i64: 1, 1, 128>}, {pipeline_mode = #tpu.pipeline_mode<synchronous>, transform_indices = @transform_18, window_bounds = array<i64: 32, 4>}, {pipeline_mode = #tpu.pipeline_mode<synchronous>, transform_indices = @transform_19, window_bounds = array<i64: 1, 4>}, {transform_indices = @transform_20, window_bounds = array<i64: 8, 1, 32>}, {transform_indices = @transform_21, window_bounds = array<i64: 8, 8, 4>}, {transform_indices = @transform_22, window_bounds = array<i64: 8, 8, 4>}]} {
    %c0 = arith.constant 0 : index
    %c0_0 = arith.constant 0 : index
    %c0_1 = arith.constant 0 : index
    %0 = vector.load %arg1[%c0, %c0_0, %c0_1] : memref<8x8x4xf32, #tpu.memory_space<vmem>>, vector<8x8x4xf32>
    %1 = vector.shape_cast %0 : vector<8x8x4xf32> to vector<64x4xf32>
    %c0_2 = arith.constant 0 : index
    %c0_3 = arith.constant 0 : index
    %2 = vector.load %arg2[%c0_2, %c0_3] : memref<4x128xf32, #tpu.memory_space<vmem>>, vector<4x128xf32>
    %cst = arith.constant dense<0.000000e+00> : vector<64x128xf32>
    %3 = tpu.matmul %1, %2, %cst {dimension_numbers = #tpu.dot_dimension_numbers<[1], [0], [0], [1], [0, 0, 1, 1], [], []>} : vector<64x4xf32>, vector<4x128xf32>, vector<64x128xf32> -> vector<64x128xf32>
    %c0_4 = arith.constant 0 : index
    %c0_5 = arith.constant 0 : index
    %4 = vector.load %arg4[%c0_4, %c0_5] : memref<1x128xf32, #tpu.memory_space<vmem>>, vector<1x128xf32>
    %5 = vector.broadcast %4 : vector<1x128xf32> to vector<64x128xf32>
    %6 = arith.addf %3, %5 : vector<64x128xf32>
    %7 = vector.shape_cast %6 : vector<64x128xf32> to vector<8x8x128xf32>
    %8 = vector.extract_strided_slice %7 {offsets = [0, 0, 0], sizes = [8, 1, 128], strides = [1, 1, 1]} : vector<8x8x128xf32> to vector<8x1x128xf32>
    %9 = vector.shape_cast %8 : vector<8x1x128xf32> to vector<8x128xf32>
    %c0_6 = arith.constant 0 : index
    %c0_7 = arith.constant 0 : index
    %c0_8 = arith.constant 0 : index
    %10 = vector.load %arg24[%c0_6, %c0_7, %c0_8] : memref<8x8x128xf32, #tpu.memory_space<vmem>>, vector<1x8x128xf32>
    %11 = vector.shape_cast %10 : vector<1x8x128xf32> to vector<8x128xf32>
    %12 = vector.shape_cast %9 : vector<8x128xf32> to vector<1x8x128xf32>
    tpu.vector_store %arg24[%c0_6, %c0_7, %c0_8], %12 {strides = array<i32>} : memref<8x8x128xf32, #tpu.memory_space<vmem>>, vector<1x8x128xf32>,
    %13 = vector.extract_strided_slice %7 {offsets = [0, 1, 0], sizes = [8, 1, 128], strides = [1, 1, 1]} : vector<8x8x128xf32> to vector<8x1x128xf32>
    %14 = vector.shape_cast %13 : vector<8x1x128xf32> to vector<8x128xf32>
    %c1 = arith.constant 1 : index
    %c0_9 = arith.constant 0 : index
    %c0_10 = arith.constant 0 : index
    %15 = vector.load %arg24[%c1, %c0_9, %c0_10] : memref<8x8x128xf32, #tpu.memory_space<vmem>>, vector<1x8x128xf32>
    %16 = vector.shape_cast %15 : vector<1x8x128xf32> to vector<8x128xf32>
    %17 = vector.shape_cast %14 : vector<8x128xf32> to vector<1x8x128xf32>
    tpu.vector_store %arg24[%c1, %c0_9, %c0_10], %17 {strides = array<i32>} : memref<8x8x128xf32, #tpu.memory_space<vmem>>, vector<1x8x128xf32>,
    %18 = vector.extract_strided_slice %7 {offsets = [0, 2, 0], sizes = [8, 1, 128], strides = [1, 1, 1]} : vector<8x8x128xf32> to vector<8x1x128xf32>
    %19 = vector.shape_cast %18 : vector<8x1x128xf32> to vector<8x128xf32>
    %c2 = arith.constant 2 : index
    %c0_11 = arith.constant 0 : index
    %c0_12 = arith.constant 0 : index
    %20 = vector.load %arg24[%c2, %c0_11, %c0_12] : memref<8x8x128xf32, #tpu.memory_space<vmem>>, vector<1x8x128xf32>
    %21 = vector.shape_cast %20 : vector<1x8x128xf32> to vector<8x128xf32>
    %22 = vector.shape_cast %19 : vector<8x128xf32> to vector<1x8x128xf32>
    tpu.vector_store %arg24[%c2, %c0_11, %c0_12], %22 {strides = array<i32>} : memref<8x8x128xf32, #tpu.memory_space<vmem>>, vector<1x8x128xf32>,
    %23 = vector.extract_strided_slice %7 {offsets = [0, 3, 0], sizes = [8, 1, 128], strides = [1, 1, 1]} : vector<8x8x128xf32> to vector<8x1x128xf32>
    %24 = vector.shape_cast %23 : vector<8x1x128xf32> to vector<8x128xf32>
    %c3 = arith.constant 3 : index
    %c0_13 = arith.constant 0 : index
    %c0_14 = arith.constant 0 : index
    %25 = vector.load %arg24[%c3, %c0_13, %c0_14] : memref<8x8x128xf32, #tpu.memory_space<vmem>>, vector<1x8x128xf32>
    %26 = vector.shape_cast %25 : vector<1x8x128xf32> to vector<8x128xf32>
    %27 = vector.shape_cast %24 : vector<8x128xf32> to vector<1x8x128xf32>
    tpu.vector_store %arg24[%c3, %c0_13, %c0_14], %27 {strides = array<i32>} : memref<8x8x128xf32, #tpu.memory_space<vmem>>, vector<1x8x128xf32>,
    %28 = vector.extract_strided_slice %7 {offsets = [0, 4, 0], sizes = [8, 1, 128], strides = [1, 1, 1]} : vector<8x8x128xf32> to vector<8x1x128xf32>
    %29 = vector.shape_cast %28 : vector<8x1x128xf32> to vector<8x128xf32>
    %c4 = arith.constant 4 : index
    %c0_15 = arith.constant 0 : index
    %c0_16 = arith.constant 0 : index
    %30 = vector.load %arg24[%c4, %c0_15, %c0_16] : memref<8x8x128xf32, #tpu.memory_space<vmem>>, vector<1x8x128xf32>
    %31 = vector.shape_cast %30 : vector<1x8x128xf32> to vector<8x128xf32>
    %32 = vector.shape_cast %29 : vector<8x128xf32> to vector<1x8x128xf32>
    tpu.vector_store %arg24[%c4, %c0_15, %c0_16], %32 {strides = array<i32>} : memref<8x8x128xf32, #tpu.memory_space<vmem>>, vector<1x8x128xf32>,
    %33 = vector.extract_strided_slice %7 {offsets = [0, 5, 0], sizes = [8, 1, 128], strides = [1, 1, 1]} : vector<8x8x128xf32> to vector<8x1x128xf32>
    %34 = vector.shape_cast %33 : vector<8x1x128xf32> to vector<8x128xf32>
    %c5 = arith.constant 5 : index
    %c0_17 = arith.constant 0 : index
    %c0_18 = arith.constant 0 : index
    %35 = vector.load %arg24[%c5, %c0_17, %c0_18] : memref<8x8x128xf32, #tpu.memory_space<vmem>>, vector<1x8x128xf32>
    %36 = vector.shape_cast %35 : vector<1x8x128xf32> to vector<8x128xf32>
    %37 = vector.shape_cast %34 : vector<8x128xf32> to vector<1x8x128xf32>
    tpu.vector_store %arg24[%c5, %c0_17, %c0_18], %37 {strides = array<i32>} : memref<8x8x128xf32, #tpu.memory_space<vmem>>, vector<1x8x128xf32>,
    %38 = vector.extract_strided_slice %7 {offsets = [0, 6, 0], sizes = [8, 1, 128], strides = [1, 1, 1]} : vector<8x8x128xf32> to vector<8x1x128xf32>
    %39 = vector.shape_cast %38 : vector<8x1x128xf32> to vector<8x128xf32>
    %c6 = arith.constant 6 : index
    %c0_19 = arith.constant 0 : index
    %c0_20 = arith.constant 0 : index
    %40 = vector.load %arg24[%c6, %c0_19, %c0_20] : memref<8x8x128xf32, #tpu.memory_space<vmem>>, vector<1x8x128xf32>
    %41 = vector.shape_cast %40 : vector<1x8x128xf32> to vector<8x128xf32>
    %42 = vector.shape_cast %39 : vector<8x128xf32> to vector<1x8x128xf32>
    tpu.vector_store %arg24[%c6, %c0_19, %c0_20], %42 {strides = array<i32>} : memref<8x8x128xf32, #tpu.memory_space<vmem>>, vector<1x8x128xf32>,
    %43 = vector.extract_strided_slice %7 {offsets = [0, 7, 0], sizes = [8, 1, 128], strides = [1, 1, 1]} : vector<8x8x128xf32> to vector<8x1x128xf32>
    %44 = vector.shape_cast %43 : vector<8x1x128xf32> to vector<8x128xf32>
    %c7 = arith.constant 7 : index
    %c0_21 = arith.constant 0 : index
    %c0_22 = arith.constant 0 : index
    %45 = vector.load %arg24[%c7, %c0_21, %c0_22] : memref<8x8x128xf32, #tpu.memory_space<vmem>>, vector<1x8x128xf32>
    %46 = vector.shape_cast %45 : vector<1x8x128xf32> to vector<8x128xf32>
    %47 = vector.shape_cast %44 : vector<8x128xf32> to vector<1x8x128xf32>
    tpu.vector_store %arg24[%c7, %c0_21, %c0_22], %47 {strides = array<i32>} : memref<8x8x128xf32, #tpu.memory_space<vmem>>, vector<1x8x128xf32>,
    %c0_23 = arith.constant 0 : index
    %c0_24 = arith.constant 0 : index
    %48 = vector.load %arg3[%c0_23, %c0_24] : memref<32x128xf32, #tpu.memory_space<vmem>>, vector<32x128xf32>
    %c0_25 = arith.constant 0 : index
    %c0_26 = arith.constant 0 : index
    %c0_27 = arith.constant 0 : index
    %49 = vector.load %arg5[%c0_25, %c0_26, %c0_27] : memref<1x64x128xf32, #tpu.memory_space<vmem>>, vector<1x64x128xf32>
    %50 = vector.shape_cast %49 : vector<1x64x128xf32> to vector<64x128xf32>
    %c0_28 = arith.constant 0 : index
    %c0_29 = arith.constant 0 : index
    %c0_30 = arith.constant 0 : index
    %51 = vector.load %arg6[%c0_28, %c0_29, %c0_30] : memref<1x1x128xf32, #tpu.memory_space<vmem>>, vector<1x1x128xf32>
    %52 = vector.shape_cast %51 : vector<1x1x128xf32> to vector<1x128xf32>
    %cst_31 = arith.constant 0.000000e+00 : f32
    %53 = vector.broadcast %cst_31 : f32 to vector<8x32xf32>
    %c0_i32 = arith.constant 0 : i32
    %54 = arith.index_cast %c0_i32 : i32 to index
    %c0_32 = arith.constant 0 : index
    %c0_33 = arith.constant 0 : index
    %55 = vector.load %arg24[%54, %c0_32, %c0_33] : memref<8x8x128xf32, #tpu.memory_space<vmem>>, vector<1x8x128xf32>
    %56 = vector.shape_cast %55 : vector<1x8x128xf32> to vector<8x128xf32>
    %cst_34 = arith.constant dense<0.000000e+00> : vector<8x128xf32>
    %57 = tpu.matmul %53, %48, %cst_34 {dimension_numbers = #tpu.dot_dimension_numbers<[1], [0], [0], [1], [0, 0, 1, 1], [], []>} : vector<8x32xf32>, vector<32x128xf32>, vector<8x128xf32> -> vector<8x128xf32>
    %58 = arith.addf %56, %57 : vector<8x128xf32>
    %59 = arith.negf %58 : vector<8x128xf32>
    %60 = math.exp %59 : vector<8x128xf32>
    %cst_35 = arith.constant 1.000000e+00 : f32
    %61 = vector.broadcast %cst_35 : f32 to vector<8x128xf32>
    %62 = arith.addf %61, %60 : vector<8x128xf32>
    %63 = arith.divf %61, %62 : vector<8x128xf32>
    %64 = math.tanh %58 : vector<8x128xf32>
    %65 = vector.extract_strided_slice %63 {offsets = [0, 0], sizes = [8, 32], strides = [1, 1]} : vector<8x128xf32> to vector<8x32xf32>
    %66 = vector.extract_strided_slice %63 {offsets = [0, 32], sizes = [8, 32], strides = [1, 1]} : vector<8x128xf32> to vector<8x32xf32>
    %67 = vector.extract_strided_slice %63 {offsets = [0, 96], sizes = [8, 32], strides = [1, 1]} : vector<8x128xf32> to vector<8x32xf32>
    %68 = vector.extract_strided_slice %64 {offsets = [0, 64], sizes = [8, 32], strides = [1, 1]} : vector<8x128xf32> to vector<8x32xf32>
    %69 = arith.mulf %66, %53 : vector<8x32xf32>
    %70 = arith.mulf %65, %68 : vector<8x32xf32>
    %71 = arith.addf %69, %70 : vector<8x32xf32>
    %72 = math.tanh %71 : vector<8x32xf32>
    %73 = arith.mulf %67, %72 : vector<8x32xf32>
    %74 = tpu.concatenate %73, %53 in 1 : vector<8x32xf32>, vector<8x32xf32> -> vector<8x64xf32>
    %cst_36 = arith.constant dense<0.000000e+00> : vector<8x128xf32>
    %75 = tpu.matmul %74, %50, %cst_36 {dimension_numbers = #tpu.dot_dimension_numbers<[1], [0], [0], [1], [0, 0, 1, 1], [], []>} : vector<8x64xf32>, vector<64x128xf32>, vector<8x128xf32> -> vector<8x128xf32>
    %76 = vector.broadcast %52 : vector<1x128xf32> to vector<8x128xf32>
    %77 = arith.addf %75, %76 : vector<8x128xf32>
    %78 = arith.negf %77 : vector<8x128xf32>
    %79 = math.exp %78 : vector<8x128xf32>
    %cst_37 = arith.constant 1.000000e+00 : f32
    %80 = vector.broadcast %cst_37 : f32 to vector<8x128xf32>
    %81 = arith.addf %80, %79 : vector<8x128xf32>
    %82 = arith.divf %80, %81 : vector<8x128xf32>
    %83 = math.tanh %77 : vector<8x128xf32>
    %84 = vector.extract_strided_slice %82 {offsets = [0, 0], sizes = [8, 32], strides = [1, 1]} : vector<8x128xf32> to vector<8x32xf32>
    %85 = vector.extract_strided_slice %82 {offsets = [0, 32], sizes = [8, 32], strides = [1, 1]} : vector<8x128xf32> to vector<8x32xf32>
    %86 = vector.extract_strided_slice %82 {offsets = [0, 96], sizes = [8, 32], strides = [1, 1]} : vector<8x128xf32> to vector<8x32xf32>
    %87 = vector.extract_strided_slice %83 {offsets = [0, 64], sizes = [8, 32], strides = [1, 1]} : vector<8x128xf32> to vector<8x32xf32>
    %88 = arith.mulf %85, %53 : vector<8x32xf32>
    %89 = arith.mulf %84, %87 : vector<8x32xf32>
    %90 = arith.addf %88, %89 : vector<8x32xf32>
    %91 = math.tanh %90 : vector<8x32xf32>
    %92 = arith.mulf %86, %91 : vector<8x32xf32>
    %c1_i32 = arith.constant 1 : i32
    %93 = arith.index_cast %c1_i32 : i32 to index
    %c0_38 = arith.constant 0 : index
    %c0_39 = arith.constant 0 : index
    %94 = vector.load %arg24[%93, %c0_38, %c0_39] : memref<8x8x128xf32, #tpu.memory_space<vmem>>, vector<1x8x128xf32>
    %95 = vector.shape_cast %94 : vector<1x8x128xf32> to vector<8x128xf32>
    %cst_40 = arith.constant dense<0.000000e+00> : vector<8x128xf32>
    %96 = tpu.matmul %73, %48, %cst_40 {dimension_numbers = #tpu.dot_dimension_numbers<[1], [0], [0], [1], [0, 0, 1, 1], [], []>} : vector<8x32xf32>, vector<32x128xf32>, vector<8x128xf32> -> vector<8x128xf32>
    %97 = arith.addf %95, %96 : vector<8x128xf32>
    %98 = arith.negf %97 : vector<8x128xf32>
    %99 = math.exp %98 : vector<8x128xf32>
    %cst_41 = arith.constant 1.000000e+00 : f32
    %100 = vector.broadcast %cst_41 : f32 to vector<8x128xf32>
    %101 = arith.addf %100, %99 : vector<8x128xf32>
    %102 = arith.divf %100, %101 : vector<8x128xf32>
    %103 = math.tanh %97 : vector<8x128xf32>
    %104 = vector.extract_strided_slice %102 {offsets = [0, 0], sizes = [8, 32], strides = [1, 1]} : vector<8x128xf32> to vector<8x32xf32>
    %105 = vector.extract_strided_slice %102 {offsets = [0, 32], sizes = [8, 32], strides = [1, 1]} : vector<8x128xf32> to vector<8x32xf32>
    %106 = vector.extract_strided_slice %102 {offsets = [0, 96], sizes = [8, 32], strides = [1, 1]} : vector<8x128xf32> to vector<8x32xf32>
    %107 = vector.extract_strided_slice %103 {offsets = [0, 64], sizes = [8, 32], strides = [1, 1]} : vector<8x128xf32> to vector<8x32xf32>
    %108 = arith.mulf %105, %71 : vector<8x32xf32>
    %109 = arith.mulf %104, %107 : vector<8x32xf32>
    %110 = arith.addf %108, %109 : vector<8x32xf32>
    %111 = math.tanh %110 : vector<8x32xf32>
    %112 = arith.mulf %106, %111 : vector<8x32xf32>
    %113 = tpu.concatenate %112, %92 in 1 : vector<8x32xf32>, vector<8x32xf32> -> vector<8x64xf32>
    %cst_42 = arith.constant dense<0.000000e+00> : vector<8x128xf32>
    %114 = tpu.matmul %113, %50, %cst_42 {dimension_numbers = #tpu.dot_dimension_numbers<[1], [0], [0], [1], [0, 0, 1, 1], [], []>} : vector<8x64xf32>, vector<64x128xf32>, vector<8x128xf32> -> vector<8x128xf32>
    %115 = vector.broadcast %52 : vector<1x128xf32> to vector<8x128xf32>
    %116 = arith.addf %114, %115 : vector<8x128xf32>
    %117 = arith.negf %116 : vector<8x128xf32>
    %118 = math.exp %117 : vector<8x128xf32>
    %cst_43 = arith.constant 1.000000e+00 : f32
    %119 = vector.broadcast %cst_43 : f32 to vector<8x128xf32>
    %120 = arith.addf %119, %118 : vector<8x128xf32>
    %121 = arith.divf %119, %120 : vector<8x128xf32>
    %122 = math.tanh %116 : vector<8x128xf32>
    %123 = vector.extract_strided_slice %121 {offsets = [0, 0], sizes = [8, 32], strides = [1, 1]} : vector<8x128xf32> to vector<8x32xf32>
    %124 = vector.extract_strided_slice %121 {offsets = [0, 32], sizes = [8, 32], strides = [1, 1]} : vector<8x128xf32> to vector<8x32xf32>
    %125 = vector.extract_strided_slice %121 {offsets = [0, 96], sizes = [8, 32], strides = [1, 1]} : vector<8x128xf32> to vector<8x32xf32>
    %126 = vector.extract_strided_slice %122 {offsets = [0, 64], sizes = [8, 32], strides = [1, 1]} : vector<8x128xf32> to vector<8x32xf32>
    %127 = arith.mulf %124, %90 : vector<8x32xf32>
    %128 = arith.mulf %123, %126 : vector<8x32xf32>
    %129 = arith.addf %127, %128 : vector<8x32xf32>
    %130 = math.tanh %129 : vector<8x32xf32>
    %131 = arith.mulf %125, %130 : vector<8x32xf32>
    %c2_i32 = arith.constant 2 : i32
    %132 = arith.index_cast %c2_i32 : i32 to index
    %c0_44 = arith.constant 0 : index
    %c0_45 = arith.constant 0 : index
    %133 = vector.load %arg24[%132, %c0_44, %c0_45] : memref<8x8x128xf32, #tpu.memory_space<vmem>>, vector<1x8x128xf32>
    %134 = vector.shape_cast %133 : vector<1x8x128xf32> to vector<8x128xf32>
    %cst_46 = arith.constant dense<0.000000e+00> : vector<8x128xf32>
    %135 = tpu.matmul %112, %48, %cst_46 {dimension_numbers = #tpu.dot_dimension_numbers<[1], [0], [0], [1], [0, 0, 1, 1], [], []>} : vector<8x32xf32>, vector<32x128xf32>, vector<8x128xf32> -> vector<8x128xf32>
    %136 = arith.addf %134, %135 : vector<8x128xf32>
    %137 = arith.negf %136 : vector<8x128xf32>
    %138 = math.exp %137 : vector<8x128xf32>
    %cst_47 = arith.constant 1.000000e+00 : f32
    %139 = vector.broadcast %cst_47 : f32 to vector<8x128xf32>
    %140 = arith.addf %139, %138 : vector<8x128xf32>
    %141 = arith.divf %139, %140 : vector<8x128xf32>
    %142 = math.tanh %136 : vector<8x128xf32>
    %143 = vector.extract_strided_slice %141 {offsets = [0, 0], sizes = [8, 32], strides = [1, 1]} : vector<8x128xf32> to vector<8x32xf32>
    %144 = vector.extract_strided_slice %141 {offsets = [0, 32], sizes = [8, 32], strides = [1, 1]} : vector<8x128xf32> to vector<8x32xf32>
    %145 = vector.extract_strided_slice %141 {offsets = [0, 96], sizes = [8, 32], strides = [1, 1]} : vector<8x128xf32> to vector<8x32xf32>
    %146 = vector.extract_strided_slice %142 {offsets = [0, 64], sizes = [8, 32], strides = [1, 1]} : vector<8x128xf32> to vector<8x32xf32>
    %147 = arith.mulf %144, %110 : vector<8x32xf32>
    %148 = arith.mulf %143, %146 : vector<8x32xf32>
    %149 = arith.addf %147, %148 : vector<8x32xf32>
    %150 = math.tanh %149 : vector<8x32xf32>
    %151 = arith.mulf %145, %150 : vector<8x32xf32>
    %152 = tpu.concatenate %151, %131 in 1 : vector<8x32xf32>, vector<8x32xf32> -> vector<8x64xf32>
    %cst_48 = arith.constant dense<0.000000e+00> : vector<8x128xf32>
    %153 = tpu.matmul %152, %50, %cst_48 {dimension_numbers = #tpu.dot_dimension_numbers<[1], [0], [0], [1], [0, 0, 1, 1], [], []>} : vector<8x64xf32>, vector<64x128xf32>, vector<8x128xf32> -> vector<8x128xf32>
    %154 = vector.broadcast %52 : vector<1x128xf32> to vector<8x128xf32>
    %155 = arith.addf %153, %154 : vector<8x128xf32>
    %156 = arith.negf %155 : vector<8x128xf32>
    %157 = math.exp %156 : vector<8x128xf32>
    %cst_49 = arith.constant 1.000000e+00 : f32
    %158 = vector.broadcast %cst_49 : f32 to vector<8x128xf32>
    %159 = arith.addf %158, %157 : vector<8x128xf32>
    %160 = arith.divf %158, %159 : vector<8x128xf32>
    %161 = math.tanh %155 : vector<8x128xf32>
    %162 = vector.extract_strided_slice %160 {offsets = [0, 0], sizes = [8, 32], strides = [1, 1]} : vector<8x128xf32> to vector<8x32xf32>
    %163 = vector.extract_strided_slice %160 {offsets = [0, 32], sizes = [8, 32], strides = [1, 1]} : vector<8x128xf32> to vector<8x32xf32>
    %164 = vector.extract_strided_slice %160 {offsets = [0, 96], sizes = [8, 32], strides = [1, 1]} : vector<8x128xf32> to vector<8x32xf32>
    %165 = vector.extract_strided_slice %161 {offsets = [0, 64], sizes = [8, 32], strides = [1, 1]} : vector<8x128xf32> to vector<8x32xf32>
    %166 = arith.mulf %163, %129 : vector<8x32xf32>
    %167 = arith.mulf %162, %165 : vector<8x32xf32>
    %168 = arith.addf %166, %167 : vector<8x32xf32>
    %169 = math.tanh %168 : vector<8x32xf32>
    %170 = arith.mulf %164, %169 : vector<8x32xf32>
    %c3_i32 = arith.constant 3 : i32
    %171 = arith.index_cast %c3_i32 : i32 to index
    %c0_50 = arith.constant 0 : index
    %c0_51 = arith.constant 0 : index
    %172 = vector.load %arg24[%171, %c0_50, %c0_51] : memref<8x8x128xf32, #tpu.memory_space<vmem>>, vector<1x8x128xf32>
    %173 = vector.shape_cast %172 : vector<1x8x128xf32> to vector<8x128xf32>
    %cst_52 = arith.constant dense<0.000000e+00> : vector<8x128xf32>
    %174 = tpu.matmul %151, %48, %cst_52 {dimension_numbers = #tpu.dot_dimension_numbers<[1], [0], [0], [1], [0, 0, 1, 1], [], []>} : vector<8x32xf32>, vector<32x128xf32>, vector<8x128xf32> -> vector<8x128xf32>
    %175 = arith.addf %173, %174 : vector<8x128xf32>
    %176 = arith.negf %175 : vector<8x128xf32>
    %177 = math.exp %176 : vector<8x128xf32>
    %cst_53 = arith.constant 1.000000e+00 : f32
    %178 = vector.broadcast %cst_53 : f32 to vector<8x128xf32>
    %179 = arith.addf %178, %177 : vector<8x128xf32>
    %180 = arith.divf %178, %179 : vector<8x128xf32>
    %181 = math.tanh %175 : vector<8x128xf32>
    %182 = vector.extract_strided_slice %180 {offsets = [0, 0], sizes = [8, 32], strides = [1, 1]} : vector<8x128xf32> to vector<8x32xf32>
    %183 = vector.extract_strided_slice %180 {offsets = [0, 32], sizes = [8, 32], strides = [1, 1]} : vector<8x128xf32> to vector<8x32xf32>
    %184 = vector.extract_strided_slice %180 {offsets = [0, 96], sizes = [8, 32], strides = [1, 1]} : vector<8x128xf32> to vector<8x32xf32>
    %185 = vector.extract_strided_slice %181 {offsets = [0, 64], sizes = [8, 32], strides = [1, 1]} : vector<8x128xf32> to vector<8x32xf32>
    %186 = arith.mulf %183, %149 : vector<8x32xf32>
    %187 = arith.mulf %182, %185 : vector<8x32xf32>
    %188 = arith.addf %186, %187 : vector<8x32xf32>
    %189 = math.tanh %188 : vector<8x32xf32>
    %190 = arith.mulf %184, %189 : vector<8x32xf32>
    %191 = tpu.concatenate %190, %170 in 1 : vector<8x32xf32>, vector<8x32xf32> -> vector<8x64xf32>
    %cst_54 = arith.constant dense<0.000000e+00> : vector<8x128xf32>
    %192 = tpu.matmul %191, %50, %cst_54 {dimension_numbers = #tpu.dot_dimension_numbers<[1], [0], [0], [1], [0, 0, 1, 1], [], []>} : vector<8x64xf32>, vector<64x128xf32>, vector<8x128xf32> -> vector<8x128xf32>
    %193 = vector.broadcast %52 : vector<1x128xf32> to vector<8x128xf32>
    %194 = arith.addf %192, %193 : vector<8x128xf32>
    %195 = arith.negf %194 : vector<8x128xf32>
    %196 = math.exp %195 : vector<8x128xf32>
    %cst_55 = arith.constant 1.000000e+00 : f32
    %197 = vector.broadcast %cst_55 : f32 to vector<8x128xf32>
    %198 = arith.addf %197, %196 : vector<8x128xf32>
    %199 = arith.divf %197, %198 : vector<8x128xf32>
    %200 = math.tanh %194 : vector<8x128xf32>
    %201 = vector.extract_strided_slice %199 {offsets = [0, 0], sizes = [8, 32], strides = [1, 1]} : vector<8x128xf32> to vector<8x32xf32>
    %202 = vector.extract_strided_slice %199 {offsets = [0, 32], sizes = [8, 32], strides = [1, 1]} : vector<8x128xf32> to vector<8x32xf32>
    %203 = vector.extract_strided_slice %199 {offsets = [0, 96], sizes = [8, 32], strides = [1, 1]} : vector<8x128xf32> to vector<8x32xf32>
    %204 = vector.extract_strided_slice %200 {offsets = [0, 64], sizes = [8, 32], strides = [1, 1]} : vector<8x128xf32> to vector<8x32xf32>
    %205 = arith.mulf %202, %168 : vector<8x32xf32>
    %206 = arith.mulf %201, %204 : vector<8x32xf32>
    %207 = arith.addf %205, %206 : vector<8x32xf32>
    %208 = math.tanh %207 : vector<8x32xf32>
    %209 = arith.mulf %203, %208 : vector<8x32xf32>
    %c4_i32 = arith.constant 4 : i32
    %210 = arith.index_cast %c4_i32 : i32 to index
    %c0_56 = arith.constant 0 : index
    %c0_57 = arith.constant 0 : index
    %211 = vector.load %arg24[%210, %c0_56, %c0_57] : memref<8x8x128xf32, #tpu.memory_space<vmem>>, vector<1x8x128xf32>
    %212 = vector.shape_cast %211 : vector<1x8x128xf32> to vector<8x128xf32>
    %cst_58 = arith.constant dense<0.000000e+00> : vector<8x128xf32>
    %213 = tpu.matmul %190, %48, %cst_58 {dimension_numbers = #tpu.dot_dimension_numbers<[1], [0], [0], [1], [0, 0, 1, 1], [], []>} : vector<8x32xf32>, vector<32x128xf32>, vector<8x128xf32> -> vector<8x128xf32>
    %214 = arith.addf %212, %213 : vector<8x128xf32>
    %215 = arith.negf %214 : vector<8x128xf32>
    %216 = math.exp %215 : vector<8x128xf32>
    %cst_59 = arith.constant 1.000000e+00 : f32
    %217 = vector.broadcast %cst_59 : f32 to vector<8x128xf32>
    %218 = arith.addf %217, %216 : vector<8x128xf32>
    %219 = arith.divf %217, %218 : vector<8x128xf32>
    %220 = math.tanh %214 : vector<8x128xf32>
    %221 = vector.extract_strided_slice %219 {offsets = [0, 0], sizes = [8, 32], strides = [1, 1]} : vector<8x128xf32> to vector<8x32xf32>
    %222 = vector.extract_strided_slice %219 {offsets = [0, 32], sizes = [8, 32], strides = [1, 1]} : vector<8x128xf32> to vector<8x32xf32>
    %223 = vector.extract_strided_slice %219 {offsets = [0, 96], sizes = [8, 32], strides = [1, 1]} : vector<8x128xf32> to vector<8x32xf32>
    %224 = vector.extract_strided_slice %220 {offsets = [0, 64], sizes = [8, 32], strides = [1, 1]} : vector<8x128xf32> to vector<8x32xf32>
    %225 = arith.mulf %222, %188 : vector<8x32xf32>
    %226 = arith.mulf %221, %224 : vector<8x32xf32>
    %227 = arith.addf %225, %226 : vector<8x32xf32>
    %228 = math.tanh %227 : vector<8x32xf32>
    %229 = arith.mulf %223, %228 : vector<8x32xf32>
    %230 = tpu.concatenate %229, %209 in 1 : vector<8x32xf32>, vector<8x32xf32> -> vector<8x64xf32>
    %cst_60 = arith.constant dense<0.000000e+00> : vector<8x128xf32>
    %231 = tpu.matmul %230, %50, %cst_60 {dimension_numbers = #tpu.dot_dimension_numbers<[1], [0], [0], [1], [0, 0, 1, 1], [], []>} : vector<8x64xf32>, vector<64x128xf32>, vector<8x128xf32> -> vector<8x128xf32>
    %232 = vector.broadcast %52 : vector<1x128xf32> to vector<8x128xf32>
    %233 = arith.addf %231, %232 : vector<8x128xf32>
    %234 = arith.negf %233 : vector<8x128xf32>
    %235 = math.exp %234 : vector<8x128xf32>
    %cst_61 = arith.constant 1.000000e+00 : f32
    %236 = vector.broadcast %cst_61 : f32 to vector<8x128xf32>
    %237 = arith.addf %236, %235 : vector<8x128xf32>
    %238 = arith.divf %236, %237 : vector<8x128xf32>
    %239 = math.tanh %233 : vector<8x128xf32>
    %240 = vector.extract_strided_slice %238 {offsets = [0, 0], sizes = [8, 32], strides = [1, 1]} : vector<8x128xf32> to vector<8x32xf32>
    %241 = vector.extract_strided_slice %238 {offsets = [0, 32], sizes = [8, 32], strides = [1, 1]} : vector<8x128xf32> to vector<8x32xf32>
    %242 = vector.extract_strided_slice %238 {offsets = [0, 96], sizes = [8, 32], strides = [1, 1]} : vector<8x128xf32> to vector<8x32xf32>
    %243 = vector.extract_strided_slice %239 {offsets = [0, 64], sizes = [8, 32], strides = [1, 1]} : vector<8x128xf32> to vector<8x32xf32>
    %244 = arith.mulf %241, %207 : vector<8x32xf32>
    %245 = arith.mulf %240, %243 : vector<8x32xf32>
    %246 = arith.addf %244, %245 : vector<8x32xf32>
    %247 = math.tanh %246 : vector<8x32xf32>
    %248 = arith.mulf %242, %247 : vector<8x32xf32>
    %c5_i32 = arith.constant 5 : i32
    %249 = arith.index_cast %c5_i32 : i32 to index
    %c0_62 = arith.constant 0 : index
    %c0_63 = arith.constant 0 : index
    %250 = vector.load %arg24[%249, %c0_62, %c0_63] : memref<8x8x128xf32, #tpu.memory_space<vmem>>, vector<1x8x128xf32>
    %251 = vector.shape_cast %250 : vector<1x8x128xf32> to vector<8x128xf32>
    %cst_64 = arith.constant dense<0.000000e+00> : vector<8x128xf32>
    %252 = tpu.matmul %229, %48, %cst_64 {dimension_numbers = #tpu.dot_dimension_numbers<[1], [0], [0], [1], [0, 0, 1, 1], [], []>} : vector<8x32xf32>, vector<32x128xf32>, vector<8x128xf32> -> vector<8x128xf32>
    %253 = arith.addf %251, %252 : vector<8x128xf32>
    %254 = arith.negf %253 : vector<8x128xf32>
    %255 = math.exp %254 : vector<8x128xf32>
    %cst_65 = arith.constant 1.000000e+00 : f32
    %256 = vector.broadcast %cst_65 : f32 to vector<8x128xf32>
    %257 = arith.addf %256, %255 : vector<8x128xf32>
    %258 = arith.divf %256, %257 : vector<8x128xf32>
    %259 = math.tanh %253 : vector<8x128xf32>
    %260 = vector.extract_strided_slice %258 {offsets = [0, 0], sizes = [8, 32], strides = [1, 1]} : vector<8x128xf32> to vector<8x32xf32>
    %261 = vector.extract_strided_slice %258 {offsets = [0, 32], sizes = [8, 32], strides = [1, 1]} : vector<8x128xf32> to vector<8x32xf32>
    %262 = vector.extract_strided_slice %258 {offsets = [0, 96], sizes = [8, 32], strides = [1, 1]} : vector<8x128xf32> to vector<8x32xf32>
    %263 = vector.extract_strided_slice %259 {offsets = [0, 64], sizes = [8, 32], strides = [1, 1]} : vector<8x128xf32> to vector<8x32xf32>
    %264 = arith.mulf %261, %227 : vector<8x32xf32>
    %265 = arith.mulf %260, %263 : vector<8x32xf32>
    %266 = arith.addf %264, %265 : vector<8x32xf32>
    %267 = math.tanh %266 : vector<8x32xf32>
    %268 = arith.mulf %262, %267 : vector<8x32xf32>
    %269 = tpu.concatenate %268, %248 in 1 : vector<8x32xf32>, vector<8x32xf32> -> vector<8x64xf32>
    %cst_66 = arith.constant dense<0.000000e+00> : vector<8x128xf32>
    %270 = tpu.matmul %269, %50, %cst_66 {dimension_numbers = #tpu.dot_dimension_numbers<[1], [0], [0], [1], [0, 0, 1, 1], [], []>} : vector<8x64xf32>, vector<64x128xf32>, vector<8x128xf32> -> vector<8x128xf32>
    %271 = vector.broadcast %52 : vector<1x128xf32> to vector<8x128xf32>
    %272 = arith.addf %270, %271 : vector<8x128xf32>
    %273 = arith.negf %272 : vector<8x128xf32>
    %274 = math.exp %273 : vector<8x128xf32>
    %cst_67 = arith.constant 1.000000e+00 : f32
    %275 = vector.broadcast %cst_67 : f32 to vector<8x128xf32>
    %276 = arith.addf %275, %274 : vector<8x128xf32>
    %277 = arith.divf %275, %276 : vector<8x128xf32>
    %278 = math.tanh %272 : vector<8x128xf32>
    %279 = vector.extract_strided_slice %277 {offsets = [0, 0], sizes = [8, 32], strides = [1, 1]} : vector<8x128xf32> to vector<8x32xf32>
    %280 = vector.extract_strided_slice %277 {offsets = [0, 32], sizes = [8, 32], strides = [1, 1]} : vector<8x128xf32> to vector<8x32xf32>
    %281 = vector.extract_strided_slice %277 {offsets = [0, 96], sizes = [8, 32], strides = [1, 1]} : vector<8x128xf32> to vector<8x32xf32>
    %282 = vector.extract_strided_slice %278 {offsets = [0, 64], sizes = [8, 32], strides = [1, 1]} : vector<8x128xf32> to vector<8x32xf32>
    %283 = arith.mulf %280, %246 : vector<8x32xf32>
    %284 = arith.mulf %279, %282 : vector<8x32xf32>
    %285 = arith.addf %283, %284 : vector<8x32xf32>
    %286 = math.tanh %285 : vector<8x32xf32>
    %287 = arith.mulf %281, %286 : vector<8x32xf32>
    %c6_i32 = arith.constant 6 : i32
    %288 = arith.index_cast %c6_i32 : i32 to index
    %c0_68 = arith.constant 0 : index
    %c0_69 = arith.constant 0 : index
    %289 = vector.load %arg24[%288, %c0_68, %c0_69] : memref<8x8x128xf32, #tpu.memory_space<vmem>>, vector<1x8x128xf32>
    %290 = vector.shape_cast %289 : vector<1x8x128xf32> to vector<8x128xf32>
    %cst_70 = arith.constant dense<0.000000e+00> : vector<8x128xf32>
    %291 = tpu.matmul %268, %48, %cst_70 {dimension_numbers = #tpu.dot_dimension_numbers<[1], [0], [0], [1], [0, 0, 1, 1], [], []>} : vector<8x32xf32>, vector<32x128xf32>, vector<8x128xf32> -> vector<8x128xf32>
    %292 = arith.addf %290, %291 : vector<8x128xf32>
    %293 = arith.negf %292 : vector<8x128xf32>
    %294 = math.exp %293 : vector<8x128xf32>
    %cst_71 = arith.constant 1.000000e+00 : f32
    %295 = vector.broadcast %cst_71 : f32 to vector<8x128xf32>
    %296 = arith.addf %295, %294 : vector<8x128xf32>
    %297 = arith.divf %295, %296 : vector<8x128xf32>
    %298 = math.tanh %292 : vector<8x128xf32>
    %299 = vector.extract_strided_slice %297 {offsets = [0, 0], sizes = [8, 32], strides = [1, 1]} : vector<8x128xf32> to vector<8x32xf32>
    %300 = vector.extract_strided_slice %297 {offsets = [0, 32], sizes = [8, 32], strides = [1, 1]} : vector<8x128xf32> to vector<8x32xf32>
    %301 = vector.extract_strided_slice %297 {offsets = [0, 96], sizes = [8, 32], strides = [1, 1]} : vector<8x128xf32> to vector<8x32xf32>
    %302 = vector.extract_strided_slice %298 {offsets = [0, 64], sizes = [8, 32], strides = [1, 1]} : vector<8x128xf32> to vector<8x32xf32>
    %303 = arith.mulf %300, %266 : vector<8x32xf32>
    %304 = arith.mulf %299, %302 : vector<8x32xf32>
    %305 = arith.addf %303, %304 : vector<8x32xf32>
    %306 = math.tanh %305 : vector<8x32xf32>
    %307 = arith.mulf %301, %306 : vector<8x32xf32>
    %308 = tpu.concatenate %307, %287 in 1 : vector<8x32xf32>, vector<8x32xf32> -> vector<8x64xf32>
    %cst_72 = arith.constant dense<0.000000e+00> : vector<8x128xf32>
    %309 = tpu.matmul %308, %50, %cst_72 {dimension_numbers = #tpu.dot_dimension_numbers<[1], [0], [0], [1], [0, 0, 1, 1], [], []>} : vector<8x64xf32>, vector<64x128xf32>, vector<8x128xf32> -> vector<8x128xf32>
    %310 = vector.broadcast %52 : vector<1x128xf32> to vector<8x128xf32>
    %311 = arith.addf %309, %310 : vector<8x128xf32>
    %312 = arith.negf %311 : vector<8x128xf32>
    %313 = math.exp %312 : vector<8x128xf32>
    %cst_73 = arith.constant 1.000000e+00 : f32
    %314 = vector.broadcast %cst_73 : f32 to vector<8x128xf32>
    %315 = arith.addf %314, %313 : vector<8x128xf32>
    %316 = arith.divf %314, %315 : vector<8x128xf32>
    %317 = math.tanh %311 : vector<8x128xf32>
    %318 = vector.extract_strided_slice %316 {offsets = [0, 0], sizes = [8, 32], strides = [1, 1]} : vector<8x128xf32> to vector<8x32xf32>
    %319 = vector.extract_strided_slice %316 {offsets = [0, 32], sizes = [8, 32], strides = [1, 1]} : vector<8x128xf32> to vector<8x32xf32>
    %320 = vector.extract_strided_slice %316 {offsets = [0, 96], sizes = [8, 32], strides = [1, 1]} : vector<8x128xf32> to vector<8x32xf32>
    %321 = vector.extract_strided_slice %317 {offsets = [0, 64], sizes = [8, 32], strides = [1, 1]} : vector<8x128xf32> to vector<8x32xf32>
    %322 = arith.mulf %319, %285 : vector<8x32xf32>
    %323 = arith.mulf %318, %321 : vector<8x32xf32>
    %324 = arith.addf %322, %323 : vector<8x32xf32>
    %325 = math.tanh %324 : vector<8x32xf32>
    %326 = arith.mulf %320, %325 : vector<8x32xf32>
    %c7_i32 = arith.constant 7 : i32
    %327 = arith.index_cast %c7_i32 : i32 to index
    %c0_74 = arith.constant 0 : index
    %c0_75 = arith.constant 0 : index
    %328 = vector.load %arg24[%327, %c0_74, %c0_75] : memref<8x8x128xf32, #tpu.memory_space<vmem>>, vector<1x8x128xf32>
    %329 = vector.shape_cast %328 : vector<1x8x128xf32> to vector<8x128xf32>
    %cst_76 = arith.constant dense<0.000000e+00> : vector<8x128xf32>
    %330 = tpu.matmul %307, %48, %cst_76 {dimension_numbers = #tpu.dot_dimension_numbers<[1], [0], [0], [1], [0, 0, 1, 1], [], []>} : vector<8x32xf32>, vector<32x128xf32>, vector<8x128xf32> -> vector<8x128xf32>
    %331 = arith.addf %329, %330 : vector<8x128xf32>
    %332 = arith.negf %331 : vector<8x128xf32>
    %333 = math.exp %332 : vector<8x128xf32>
    %cst_77 = arith.constant 1.000000e+00 : f32
    %334 = vector.broadcast %cst_77 : f32 to vector<8x128xf32>
    %335 = arith.addf %334, %333 : vector<8x128xf32>
    %336 = arith.divf %334, %335 : vector<8x128xf32>
    %337 = math.tanh %331 : vector<8x128xf32>
    %338 = vector.extract_strided_slice %336 {offsets = [0, 0], sizes = [8, 32], strides = [1, 1]} : vector<8x128xf32> to vector<8x32xf32>
    %339 = vector.extract_strided_slice %336 {offsets = [0, 32], sizes = [8, 32], strides = [1, 1]} : vector<8x128xf32> to vector<8x32xf32>
    %340 = vector.extract_strided_slice %336 {offsets = [0, 96], sizes = [8, 32], strides = [1, 1]} : vector<8x128xf32> to vector<8x32xf32>
    %341 = vector.extract_strided_slice %337 {offsets = [0, 64], sizes = [8, 32], strides = [1, 1]} : vector<8x128xf32> to vector<8x32xf32>
    %342 = arith.mulf %339, %305 : vector<8x32xf32>
    %343 = arith.mulf %338, %341 : vector<8x32xf32>
    %344 = arith.addf %342, %343 : vector<8x32xf32>
    %345 = math.tanh %344 : vector<8x32xf32>
    %346 = arith.mulf %340, %345 : vector<8x32xf32>
    %347 = tpu.concatenate %346, %326 in 1 : vector<8x32xf32>, vector<8x32xf32> -> vector<8x64xf32>
    %cst_78 = arith.constant dense<0.000000e+00> : vector<8x128xf32>
    %348 = tpu.matmul %347, %50, %cst_78 {dimension_numbers = #tpu.dot_dimension_numbers<[1], [0], [0], [1], [0, 0, 1, 1], [], []>} : vector<8x64xf32>, vector<64x128xf32>, vector<8x128xf32> -> vector<8x128xf32>
    %349 = vector.broadcast %52 : vector<1x128xf32> to vector<8x128xf32>
    %350 = arith.addf %348, %349 : vector<8x128xf32>
    %351 = arith.negf %350 : vector<8x128xf32>
    %352 = math.exp %351 : vector<8x128xf32>
    %cst_79 = arith.constant 1.000000e+00 : f32
    %353 = vector.broadcast %cst_79 : f32 to vector<8x128xf32>
    %354 = arith.addf %353, %352 : vector<8x128xf32>
    %355 = arith.divf %353, %354 : vector<8x128xf32>
    %356 = math.tanh %350 : vector<8x128xf32>
    %357 = vector.extract_strided_slice %355 {offsets = [0, 0], sizes = [8, 32], strides = [1, 1]} : vector<8x128xf32> to vector<8x32xf32>
    %358 = vector.extract_strided_slice %355 {offsets = [0, 32], sizes = [8, 32], strides = [1, 1]} : vector<8x128xf32> to vector<8x32xf32>
    %359 = vector.extract_strided_slice %355 {offsets = [0, 96], sizes = [8, 32], strides = [1, 1]} : vector<8x128xf32> to vector<8x32xf32>
    %360 = vector.extract_strided_slice %356 {offsets = [0, 64], sizes = [8, 32], strides = [1, 1]} : vector<8x128xf32> to vector<8x32xf32>
    %361 = arith.mulf %358, %324 : vector<8x32xf32>
    %362 = arith.mulf %357, %360 : vector<8x32xf32>
    %363 = arith.addf %361, %362 : vector<8x32xf32>
    %364 = math.tanh %363 : vector<8x32xf32>
    %365 = arith.mulf %359, %364 : vector<8x32xf32>
    %c8_i32 = arith.constant 8 : i32
    %366 = vector.shape_cast %365 : vector<8x32xf32> to vector<8x1x32xf32>
    %c0_80 = arith.constant 0 : index
    %c0_81 = arith.constant 0 : index
    %c0_82 = arith.constant 0 : index
    %367 = vector.load %arg21[%c0_80, %c0_81, %c0_82] : memref<8x1x32xf32, #tpu.memory_space<vmem>>, vector<8x1x32xf32>
    tpu.vector_store %arg21[%c0_80, %c0_81, %c0_82], %366 {strides = array<i32>} : memref<8x1x32xf32, #tpu.memory_space<vmem>>, vector<8x1x32xf32>,
    %c0_83 = arith.constant 0 : index
    %c0_84 = arith.constant 0 : index
    %368 = vector.load %arg7[%c0_83, %c0_84] : memref<32x128xf32, #tpu.memory_space<vmem>>, vector<32x128xf32>
    %cst_85 = arith.constant dense<0.000000e+00> : vector<8x128xf32>
    %369 = tpu.matmul %365, %368, %cst_85 {dimension_numbers = #tpu.dot_dimension_numbers<[1], [0], [0], [1], [0, 0, 1, 1], [], []>} : vector<8x32xf32>, vector<32x128xf32>, vector<8x128xf32> -> vector<8x128xf32>
    %c0_86 = arith.constant 0 : index
    %c0_87 = arith.constant 0 : index
    %370 = vector.load %arg9[%c0_86, %c0_87] : memref<1x128xf32, #tpu.memory_space<vmem>>, vector<1x128xf32>
    %371 = vector.broadcast %370 : vector<1x128xf32> to vector<8x128xf32>
    %372 = arith.addf %369, %371 : vector<8x128xf32>
    %c0_88 = arith.constant 0 : index
    %c0_89 = arith.constant 0 : index
    %373 = vector.load %arg8[%c0_88, %c0_89] : memref<32x128xf32, #tpu.memory_space<vmem>>, vector<32x128xf32>
    %c0_90 = arith.constant 0 : index
    %c0_91 = arith.constant 0 : index
    %c0_92 = arith.constant 0 : index
    %374 = vector.load %arg10[%c0_90, %c0_91, %c0_92] : memref<1x64x128xf32, #tpu.memory_space<vmem>>, vector<1x64x128xf32>
    %375 = vector.shape_cast %374 : vector<1x64x128xf32> to vector<64x128xf32>
    %c0_93 = arith.constant 0 : index
    %c0_94 = arith.constant 0 : index
    %c0_95 = arith.constant 0 : index
    %376 = vector.load %arg11[%c0_93, %c0_94, %c0_95] : memref<1x1x128xf32, #tpu.memory_space<vmem>>, vector<1x1x128xf32>
    %377 = vector.shape_cast %376 : vector<1x1x128xf32> to vector<1x128xf32>
    %c0_i32_96 = arith.constant 0 : i32
    %cst_97 = arith.constant dense<0.000000e+00> : vector<8x128xf32>
    %378 = tpu.matmul %346, %373, %cst_97 {dimension_numbers = #tpu.dot_dimension_numbers<[1], [0], [0], [1], [0, 0, 1, 1], [], []>} : vector<8x32xf32>, vector<32x128xf32>, vector<8x128xf32> -> vector<8x128xf32>
    %379 = arith.addf %372, %378 : vector<8x128xf32>
    %380 = arith.negf %379 : vector<8x128xf32>
    %381 = math.exp %380 : vector<8x128xf32>
    %cst_98 = arith.constant 1.000000e+00 : f32
    %382 = vector.broadcast %cst_98 : f32 to vector<8x128xf32>
    %383 = arith.addf %382, %381 : vector<8x128xf32>
    %384 = arith.divf %382, %383 : vector<8x128xf32>
    %385 = math.tanh %379 : vector<8x128xf32>
    %386 = vector.extract_strided_slice %384 {offsets = [0, 0], sizes = [8, 32], strides = [1, 1]} : vector<8x128xf32> to vector<8x32xf32>
    %387 = vector.extract_strided_slice %384 {offsets = [0, 32], sizes = [8, 32], strides = [1, 1]} : vector<8x128xf32> to vector<8x32xf32>
    %388 = vector.extract_strided_slice %384 {offsets = [0, 96], sizes = [8, 32], strides = [1, 1]} : vector<8x128xf32> to vector<8x32xf32>
    %389 = vector.extract_strided_slice %385 {offsets = [0, 64], sizes = [8, 32], strides = [1, 1]} : vector<8x128xf32> to vector<8x32xf32>
    %390 = arith.mulf %387, %344 : vector<8x32xf32>
    %391 = arith.mulf %386, %389 : vector<8x32xf32>
    %392 = arith.addf %390, %391 : vector<8x32xf32>
    %393 = math.tanh %392 : vector<8x32xf32>
    %394 = arith.mulf %388, %393 : vector<8x32xf32>
    %395 = tpu.concatenate %394, %365 in 1 : vector<8x32xf32>, vector<8x32xf32> -> vector<8x64xf32>
    %cst_99 = arith.constant dense<0.000000e+00> : vector<8x128xf32>
    %396 = tpu.matmul %395, %375, %cst_99 {dimension_numbers = #tpu.dot_dimension_numbers<[1], [0], [0], [1], [0, 0, 1, 1], [], []>} : vector<8x64xf32>, vector<64x128xf32>, vector<8x128xf32> -> vector<8x128xf32>
    %397 = vector.broadcast %377 : vector<1x128xf32> to vector<8x128xf32>
    %398 = arith.addf %396, %397 : vector<8x128xf32>
    %399 = arith.negf %398 : vector<8x128xf32>
    %400 = math.exp %399 : vector<8x128xf32>
    %cst_100 = arith.constant 1.000000e+00 : f32
    %401 = vector.broadcast %cst_100 : f32 to vector<8x128xf32>
    %402 = arith.addf %401, %400 : vector<8x128xf32>
    %403 = arith.divf %401, %402 : vector<8x128xf32>
    %404 = math.tanh %398 : vector<8x128xf32>
    %405 = vector.extract_strided_slice %403 {offsets = [0, 0], sizes = [8, 32], strides = [1, 1]} : vector<8x128xf32> to vector<8x32xf32>
    %406 = vector.extract_strided_slice %403 {offsets = [0, 32], sizes = [8, 32], strides = [1, 1]} : vector<8x128xf32> to vector<8x32xf32>
    %407 = vector.extract_strided_slice %403 {offsets = [0, 96], sizes = [8, 32], strides = [1, 1]} : vector<8x128xf32> to vector<8x32xf32>
    %408 = vector.extract_strided_slice %404 {offsets = [0, 64], sizes = [8, 32], strides = [1, 1]} : vector<8x128xf32> to vector<8x32xf32>
    %409 = arith.mulf %406, %363 : vector<8x32xf32>
    %410 = arith.mulf %405, %408 : vector<8x32xf32>
    %411 = arith.addf %409, %410 : vector<8x32xf32>
    %412 = math.tanh %411 : vector<8x32xf32>
    %413 = arith.mulf %407, %412 : vector<8x32xf32>
    %414 = arith.index_cast %c0_i32_96 : i32 to index
    %c0_101 = arith.constant 0 : index
    %c0_102 = arith.constant 0 : index
    %415 = vector.load %arg25[%414, %c0_101, %c0_102] : memref<8x8x32xf32, #tpu.memory_space<vmem>>, vector<1x8x32xf32>
    %416 = vector.shape_cast %415 : vector<1x8x32xf32> to vector<8x32xf32>
    %417 = vector.shape_cast %413 : vector<8x32xf32> to vector<1x8x32xf32>
    tpu.vector_store %arg25[%414, %c0_101, %c0_102], %417 {strides = array<i32>} : memref<8x8x32xf32, #tpu.memory_space<vmem>>, vector<1x8x32xf32>,
    %c1_i32_103 = arith.constant 1 : i32
    %cst_104 = arith.constant dense<0.000000e+00> : vector<8x128xf32>
    %418 = tpu.matmul %394, %373, %cst_104 {dimension_numbers = #tpu.dot_dimension_numbers<[1], [0], [0], [1], [0, 0, 1, 1], [], []>} : vector<8x32xf32>, vector<32x128xf32>, vector<8x128xf32> -> vector<8x128xf32>
    %419 = arith.addf %372, %418 : vector<8x128xf32>
    %420 = arith.negf %419 : vector<8x128xf32>
    %421 = math.exp %420 : vector<8x128xf32>
    %cst_105 = arith.constant 1.000000e+00 : f32
    %422 = vector.broadcast %cst_105 : f32 to vector<8x128xf32>
    %423 = arith.addf %422, %421 : vector<8x128xf32>
    %424 = arith.divf %422, %423 : vector<8x128xf32>
    %425 = math.tanh %419 : vector<8x128xf32>
    %426 = vector.extract_strided_slice %424 {offsets = [0, 0], sizes = [8, 32], strides = [1, 1]} : vector<8x128xf32> to vector<8x32xf32>
    %427 = vector.extract_strided_slice %424 {offsets = [0, 32], sizes = [8, 32], strides = [1, 1]} : vector<8x128xf32> to vector<8x32xf32>
    %428 = vector.extract_strided_slice %424 {offsets = [0, 96], sizes = [8, 32], strides = [1, 1]} : vector<8x128xf32> to vector<8x32xf32>
    %429 = vector.extract_strided_slice %425 {offsets = [0, 64], sizes = [8, 32], strides = [1, 1]} : vector<8x128xf32> to vector<8x32xf32>
    %430 = arith.mulf %427, %392 : vector<8x32xf32>
    %431 = arith.mulf %426, %429 : vector<8x32xf32>
    %432 = arith.addf %430, %431 : vector<8x32xf32>
    %433 = math.tanh %432 : vector<8x32xf32>
    %434 = arith.mulf %428, %433 : vector<8x32xf32>
    %435 = tpu.concatenate %434, %413 in 1 : vector<8x32xf32>, vector<8x32xf32> -> vector<8x64xf32>
    %cst_106 = arith.constant dense<0.000000e+00> : vector<8x128xf32>
    %436 = tpu.matmul %435, %375, %cst_106 {dimension_numbers = #tpu.dot_dimension_numbers<[1], [0], [0], [1], [0, 0, 1, 1], [], []>} : vector<8x64xf32>, vector<64x128xf32>, vector<8x128xf32> -> vector<8x128xf32>
    %437 = vector.broadcast %377 : vector<1x128xf32> to vector<8x128xf32>
    %438 = arith.addf %436, %437 : vector<8x128xf32>
    %439 = arith.negf %438 : vector<8x128xf32>
    %440 = math.exp %439 : vector<8x128xf32>
    %cst_107 = arith.constant 1.000000e+00 : f32
    %441 = vector.broadcast %cst_107 : f32 to vector<8x128xf32>
    %442 = arith.addf %441, %440 : vector<8x128xf32>
    %443 = arith.divf %441, %442 : vector<8x128xf32>
    %444 = math.tanh %438 : vector<8x128xf32>
    %445 = vector.extract_strided_slice %443 {offsets = [0, 0], sizes = [8, 32], strides = [1, 1]} : vector<8x128xf32> to vector<8x32xf32>
    %446 = vector.extract_strided_slice %443 {offsets = [0, 32], sizes = [8, 32], strides = [1, 1]} : vector<8x128xf32> to vector<8x32xf32>
    %447 = vector.extract_strided_slice %443 {offsets = [0, 96], sizes = [8, 32], strides = [1, 1]} : vector<8x128xf32> to vector<8x32xf32>
    %448 = vector.extract_strided_slice %444 {offsets = [0, 64], sizes = [8, 32], strides = [1, 1]} : vector<8x128xf32> to vector<8x32xf32>
    %449 = arith.mulf %446, %411 : vector<8x32xf32>
    %450 = arith.mulf %445, %448 : vector<8x32xf32>
    %451 = arith.addf %449, %450 : vector<8x32xf32>
    %452 = math.tanh %451 : vector<8x32xf32>
    %453 = arith.mulf %447, %452 : vector<8x32xf32>
    %454 = arith.index_cast %c1_i32_103 : i32 to index
    %c0_108 = arith.constant 0 : index
    %c0_109 = arith.constant 0 : index
    %455 = vector.load %arg25[%454, %c0_108, %c0_109] : memref<8x8x32xf32, #tpu.memory_space<vmem>>, vector<1x8x32xf32>
    %456 = vector.shape_cast %455 : vector<1x8x32xf32> to vector<8x32xf32>
    %457 = vector.shape_cast %453 : vector<8x32xf32> to vector<1x8x32xf32>
    tpu.vector_store %arg25[%454, %c0_108, %c0_109], %457 {strides = array<i32>} : memref<8x8x32xf32, #tpu.memory_space<vmem>>, vector<1x8x32xf32>,
    %c2_i32_110 = arith.constant 2 : i32
    %cst_111 = arith.constant dense<0.000000e+00> : vector<8x128xf32>
    %458 = tpu.matmul %434, %373, %cst_111 {dimension_numbers = #tpu.dot_dimension_numbers<[1], [0], [0], [1], [0, 0, 1, 1], [], []>} : vector<8x32xf32>, vector<32x128xf32>, vector<8x128xf32> -> vector<8x128xf32>
    %459 = arith.addf %372, %458 : vector<8x128xf32>
    %460 = arith.negf %459 : vector<8x128xf32>
    %461 = math.exp %460 : vector<8x128xf32>
    %cst_112 = arith.constant 1.000000e+00 : f32
    %462 = vector.broadcast %cst_112 : f32 to vector<8x128xf32>
    %463 = arith.addf %462, %461 : vector<8x128xf32>
    %464 = arith.divf %462, %463 : vector<8x128xf32>
    %465 = math.tanh %459 : vector<8x128xf32>
    %466 = vector.extract_strided_slice %464 {offsets = [0, 0], sizes = [8, 32], strides = [1, 1]} : vector<8x128xf32> to vector<8x32xf32>
    %467 = vector.extract_strided_slice %464 {offsets = [0, 32], sizes = [8, 32], strides = [1, 1]} : vector<8x128xf32> to vector<8x32xf32>
    %468 = vector.extract_strided_slice %464 {offsets = [0, 96], sizes = [8, 32], strides = [1, 1]} : vector<8x128xf32> to vector<8x32xf32>
    %469 = vector.extract_strided_slice %465 {offsets = [0, 64], sizes = [8, 32], strides = [1, 1]} : vector<8x128xf32> to vector<8x32xf32>
    %470 = arith.mulf %467, %432 : vector<8x32xf32>
    %471 = arith.mulf %466, %469 : vector<8x32xf32>
    %472 = arith.addf %470, %471 : vector<8x32xf32>
    %473 = math.tanh %472 : vector<8x32xf32>
    %474 = arith.mulf %468, %473 : vector<8x32xf32>
    %475 = tpu.concatenate %474, %453 in 1 : vector<8x32xf32>, vector<8x32xf32> -> vector<8x64xf32>
    %cst_113 = arith.constant dense<0.000000e+00> : vector<8x128xf32>
    %476 = tpu.matmul %475, %375, %cst_113 {dimension_numbers = #tpu.dot_dimension_numbers<[1], [0], [0], [1], [0, 0, 1, 1], [], []>} : vector<8x64xf32>, vector<64x128xf32>, vector<8x128xf32> -> vector<8x128xf32>
    %477 = vector.broadcast %377 : vector<1x128xf32> to vector<8x128xf32>
    %478 = arith.addf %476, %477 : vector<8x128xf32>
    %479 = arith.negf %478 : vector<8x128xf32>
    %480 = math.exp %479 : vector<8x128xf32>
    %cst_114 = arith.constant 1.000000e+00 : f32
    %481 = vector.broadcast %cst_114 : f32 to vector<8x128xf32>
    %482 = arith.addf %481, %480 : vector<8x128xf32>
    %483 = arith.divf %481, %482 : vector<8x128xf32>
    %484 = math.tanh %478 : vector<8x128xf32>
    %485 = vector.extract_strided_slice %483 {offsets = [0, 0], sizes = [8, 32], strides = [1, 1]} : vector<8x128xf32> to vector<8x32xf32>
    %486 = vector.extract_strided_slice %483 {offsets = [0, 32], sizes = [8, 32], strides = [1, 1]} : vector<8x128xf32> to vector<8x32xf32>
    %487 = vector.extract_strided_slice %483 {offsets = [0, 96], sizes = [8, 32], strides = [1, 1]} : vector<8x128xf32> to vector<8x32xf32>
    %488 = vector.extract_strided_slice %484 {offsets = [0, 64], sizes = [8, 32], strides = [1, 1]} : vector<8x128xf32> to vector<8x32xf32>
    %489 = arith.mulf %486, %451 : vector<8x32xf32>
    %490 = arith.mulf %485, %488 : vector<8x32xf32>
    %491 = arith.addf %489, %490 : vector<8x32xf32>
    %492 = math.tanh %491 : vector<8x32xf32>
    %493 = arith.mulf %487, %492 : vector<8x32xf32>
    %494 = arith.index_cast %c2_i32_110 : i32 to index
    %c0_115 = arith.constant 0 : index
    %c0_116 = arith.constant 0 : index
    %495 = vector.load %arg25[%494, %c0_115, %c0_116] : memref<8x8x32xf32, #tpu.memory_space<vmem>>, vector<1x8x32xf32>
    %496 = vector.shape_cast %495 : vector<1x8x32xf32> to vector<8x32xf32>
    %497 = vector.shape_cast %493 : vector<8x32xf32> to vector<1x8x32xf32>
    tpu.vector_store %arg25[%494, %c0_115, %c0_116], %497 {strides = array<i32>} : memref<8x8x32xf32, #tpu.memory_space<vmem>>, vector<1x8x32xf32>,
    %c3_i32_117 = arith.constant 3 : i32
    %cst_118 = arith.constant dense<0.000000e+00> : vector<8x128xf32>
    %498 = tpu.matmul %474, %373, %cst_118 {dimension_numbers = #tpu.dot_dimension_numbers<[1], [0], [0], [1], [0, 0, 1, 1], [], []>} : vector<8x32xf32>, vector<32x128xf32>, vector<8x128xf32> -> vector<8x128xf32>
    %499 = arith.addf %372, %498 : vector<8x128xf32>
    %500 = arith.negf %499 : vector<8x128xf32>
    %501 = math.exp %500 : vector<8x128xf32>
    %cst_119 = arith.constant 1.000000e+00 : f32
    %502 = vector.broadcast %cst_119 : f32 to vector<8x128xf32>
    %503 = arith.addf %502, %501 : vector<8x128xf32>
    %504 = arith.divf %502, %503 : vector<8x128xf32>
    %505 = math.tanh %499 : vector<8x128xf32>
    %506 = vector.extract_strided_slice %504 {offsets = [0, 0], sizes = [8, 32], strides = [1, 1]} : vector<8x128xf32> to vector<8x32xf32>
    %507 = vector.extract_strided_slice %504 {offsets = [0, 32], sizes = [8, 32], strides = [1, 1]} : vector<8x128xf32> to vector<8x32xf32>
    %508 = vector.extract_strided_slice %504 {offsets = [0, 96], sizes = [8, 32], strides = [1, 1]} : vector<8x128xf32> to vector<8x32xf32>
    %509 = vector.extract_strided_slice %505 {offsets = [0, 64], sizes = [8, 32], strides = [1, 1]} : vector<8x128xf32> to vector<8x32xf32>
    %510 = arith.mulf %507, %472 : vector<8x32xf32>
    %511 = arith.mulf %506, %509 : vector<8x32xf32>
    %512 = arith.addf %510, %511 : vector<8x32xf32>
    %513 = math.tanh %512 : vector<8x32xf32>
    %514 = arith.mulf %508, %513 : vector<8x32xf32>
    %515 = tpu.concatenate %514, %493 in 1 : vector<8x32xf32>, vector<8x32xf32> -> vector<8x64xf32>
    %cst_120 = arith.constant dense<0.000000e+00> : vector<8x128xf32>
    %516 = tpu.matmul %515, %375, %cst_120 {dimension_numbers = #tpu.dot_dimension_numbers<[1], [0], [0], [1], [0, 0, 1, 1], [], []>} : vector<8x64xf32>, vector<64x128xf32>, vector<8x128xf32> -> vector<8x128xf32>
    %517 = vector.broadcast %377 : vector<1x128xf32> to vector<8x128xf32>
    %518 = arith.addf %516, %517 : vector<8x128xf32>
    %519 = arith.negf %518 : vector<8x128xf32>
    %520 = math.exp %519 : vector<8x128xf32>
    %cst_121 = arith.constant 1.000000e+00 : f32
    %521 = vector.broadcast %cst_121 : f32 to vector<8x128xf32>
    %522 = arith.addf %521, %520 : vector<8x128xf32>
    %523 = arith.divf %521, %522 : vector<8x128xf32>
    %524 = math.tanh %518 : vector<8x128xf32>
    %525 = vector.extract_strided_slice %523 {offsets = [0, 0], sizes = [8, 32], strides = [1, 1]} : vector<8x128xf32> to vector<8x32xf32>
    %526 = vector.extract_strided_slice %523 {offsets = [0, 32], sizes = [8, 32], strides = [1, 1]} : vector<8x128xf32> to vector<8x32xf32>
    %527 = vector.extract_strided_slice %523 {offsets = [0, 96], sizes = [8, 32], strides = [1, 1]} : vector<8x128xf32> to vector<8x32xf32>
    %528 = vector.extract_strided_slice %524 {offsets = [0, 64], sizes = [8, 32], strides = [1, 1]} : vector<8x128xf32> to vector<8x32xf32>
    %529 = arith.mulf %526, %491 : vector<8x32xf32>
    %530 = arith.mulf %525, %528 : vector<8x32xf32>
    %531 = arith.addf %529, %530 : vector<8x32xf32>
    %532 = math.tanh %531 : vector<8x32xf32>
    %533 = arith.mulf %527, %532 : vector<8x32xf32>
    %534 = arith.index_cast %c3_i32_117 : i32 to index
    %c0_122 = arith.constant 0 : index
    %c0_123 = arith.constant 0 : index
    %535 = vector.load %arg25[%534, %c0_122, %c0_123] : memref<8x8x32xf32, #tpu.memory_space<vmem>>, vector<1x8x32xf32>
    %536 = vector.shape_cast %535 : vector<1x8x32xf32> to vector<8x32xf32>
    %537 = vector.shape_cast %533 : vector<8x32xf32> to vector<1x8x32xf32>
    tpu.vector_store %arg25[%534, %c0_122, %c0_123], %537 {strides = array<i32>} : memref<8x8x32xf32, #tpu.memory_space<vmem>>, vector<1x8x32xf32>,
    %c4_i32_124 = arith.constant 4 : i32
    %cst_125 = arith.constant dense<0.000000e+00> : vector<8x128xf32>
    %538 = tpu.matmul %514, %373, %cst_125 {dimension_numbers = #tpu.dot_dimension_numbers<[1], [0], [0], [1], [0, 0, 1, 1], [], []>} : vector<8x32xf32>, vector<32x128xf32>, vector<8x128xf32> -> vector<8x128xf32>
    %539 = arith.addf %372, %538 : vector<8x128xf32>
    %540 = arith.negf %539 : vector<8x128xf32>
    %541 = math.exp %540 : vector<8x128xf32>
    %cst_126 = arith.constant 1.000000e+00 : f32
    %542 = vector.broadcast %cst_126 : f32 to vector<8x128xf32>
    %543 = arith.addf %542, %541 : vector<8x128xf32>
    %544 = arith.divf %542, %543 : vector<8x128xf32>
    %545 = math.tanh %539 : vector<8x128xf32>
    %546 = vector.extract_strided_slice %544 {offsets = [0, 0], sizes = [8, 32], strides = [1, 1]} : vector<8x128xf32> to vector<8x32xf32>
    %547 = vector.extract_strided_slice %544 {offsets = [0, 32], sizes = [8, 32], strides = [1, 1]} : vector<8x128xf32> to vector<8x32xf32>
    %548 = vector.extract_strided_slice %544 {offsets = [0, 96], sizes = [8, 32], strides = [1, 1]} : vector<8x128xf32> to vector<8x32xf32>
    %549 = vector.extract_strided_slice %545 {offsets = [0, 64], sizes = [8, 32], strides = [1, 1]} : vector<8x128xf32> to vector<8x32xf32>
    %550 = arith.mulf %547, %512 : vector<8x32xf32>
    %551 = arith.mulf %546, %549 : vector<8x32xf32>
    %552 = arith.addf %550, %551 : vector<8x32xf32>
    %553 = math.tanh %552 : vector<8x32xf32>
    %554 = arith.mulf %548, %553 : vector<8x32xf32>
    %555 = tpu.concatenate %554, %533 in 1 : vector<8x32xf32>, vector<8x32xf32> -> vector<8x64xf32>
    %cst_127 = arith.constant dense<0.000000e+00> : vector<8x128xf32>
    %556 = tpu.matmul %555, %375, %cst_127 {dimension_numbers = #tpu.dot_dimension_numbers<[1], [0], [0], [1], [0, 0, 1, 1], [], []>} : vector<8x64xf32>, vector<64x128xf32>, vector<8x128xf32> -> vector<8x128xf32>
    %557 = vector.broadcast %377 : vector<1x128xf32> to vector<8x128xf32>
    %558 = arith.addf %556, %557 : vector<8x128xf32>
    %559 = arith.negf %558 : vector<8x128xf32>
    %560 = math.exp %559 : vector<8x128xf32>
    %cst_128 = arith.constant 1.000000e+00 : f32
    %561 = vector.broadcast %cst_128 : f32 to vector<8x128xf32>
    %562 = arith.addf %561, %560 : vector<8x128xf32>
    %563 = arith.divf %561, %562 : vector<8x128xf32>
    %564 = math.tanh %558 : vector<8x128xf32>
    %565 = vector.extract_strided_slice %563 {offsets = [0, 0], sizes = [8, 32], strides = [1, 1]} : vector<8x128xf32> to vector<8x32xf32>
    %566 = vector.extract_strided_slice %563 {offsets = [0, 32], sizes = [8, 32], strides = [1, 1]} : vector<8x128xf32> to vector<8x32xf32>
    %567 = vector.extract_strided_slice %563 {offsets = [0, 96], sizes = [8, 32], strides = [1, 1]} : vector<8x128xf32> to vector<8x32xf32>
    %568 = vector.extract_strided_slice %564 {offsets = [0, 64], sizes = [8, 32], strides = [1, 1]} : vector<8x128xf32> to vector<8x32xf32>
    %569 = arith.mulf %566, %531 : vector<8x32xf32>
    %570 = arith.mulf %565, %568 : vector<8x32xf32>
    %571 = arith.addf %569, %570 : vector<8x32xf32>
    %572 = math.tanh %571 : vector<8x32xf32>
    %573 = arith.mulf %567, %572 : vector<8x32xf32>
    %574 = arith.index_cast %c4_i32_124 : i32 to index
    %c0_129 = arith.constant 0 : index
    %c0_130 = arith.constant 0 : index
    %575 = vector.load %arg25[%574, %c0_129, %c0_130] : memref<8x8x32xf32, #tpu.memory_space<vmem>>, vector<1x8x32xf32>
    %576 = vector.shape_cast %575 : vector<1x8x32xf32> to vector<8x32xf32>
    %577 = vector.shape_cast %573 : vector<8x32xf32> to vector<1x8x32xf32>
    tpu.vector_store %arg25[%574, %c0_129, %c0_130], %577 {strides = array<i32>} : memref<8x8x32xf32, #tpu.memory_space<vmem>>, vector<1x8x32xf32>,
    %c5_i32_131 = arith.constant 5 : i32
    %cst_132 = arith.constant dense<0.000000e+00> : vector<8x128xf32>
    %578 = tpu.matmul %554, %373, %cst_132 {dimension_numbers = #tpu.dot_dimension_numbers<[1], [0], [0], [1], [0, 0, 1, 1], [], []>} : vector<8x32xf32>, vector<32x128xf32>, vector<8x128xf32> -> vector<8x128xf32>
    %579 = arith.addf %372, %578 : vector<8x128xf32>
    %580 = arith.negf %579 : vector<8x128xf32>
    %581 = math.exp %580 : vector<8x128xf32>
    %cst_133 = arith.constant 1.000000e+00 : f32
    %582 = vector.broadcast %cst_133 : f32 to vector<8x128xf32>
    %583 = arith.addf %582, %581 : vector<8x128xf32>
    %584 = arith.divf %582, %583 : vector<8x128xf32>
    %585 = math.tanh %579 : vector<8x128xf32>
    %586 = vector.extract_strided_slice %584 {offsets = [0, 0], sizes = [8, 32], strides = [1, 1]} : vector<8x128xf32> to vector<8x32xf32>
    %587 = vector.extract_strided_slice %584 {offsets = [0, 32], sizes = [8, 32], strides = [1, 1]} : vector<8x128xf32> to vector<8x32xf32>
    %588 = vector.extract_strided_slice %584 {offsets = [0, 96], sizes = [8, 32], strides = [1, 1]} : vector<8x128xf32> to vector<8x32xf32>
    %589 = vector.extract_strided_slice %585 {offsets = [0, 64], sizes = [8, 32], strides = [1, 1]} : vector<8x128xf32> to vector<8x32xf32>
    %590 = arith.mulf %587, %552 : vector<8x32xf32>
    %591 = arith.mulf %586, %589 : vector<8x32xf32>
    %592 = arith.addf %590, %591 : vector<8x32xf32>
    %593 = math.tanh %592 : vector<8x32xf32>
    %594 = arith.mulf %588, %593 : vector<8x32xf32>
    %595 = tpu.concatenate %594, %573 in 1 : vector<8x32xf32>, vector<8x32xf32> -> vector<8x64xf32>
    %cst_134 = arith.constant dense<0.000000e+00> : vector<8x128xf32>
    %596 = tpu.matmul %595, %375, %cst_134 {dimension_numbers = #tpu.dot_dimension_numbers<[1], [0], [0], [1], [0, 0, 1, 1], [], []>} : vector<8x64xf32>, vector<64x128xf32>, vector<8x128xf32> -> vector<8x128xf32>
    %597 = vector.broadcast %377 : vector<1x128xf32> to vector<8x128xf32>
    %598 = arith.addf %596, %597 : vector<8x128xf32>
    %599 = arith.negf %598 : vector<8x128xf32>
    %600 = math.exp %599 : vector<8x128xf32>
    %cst_135 = arith.constant 1.000000e+00 : f32
    %601 = vector.broadcast %cst_135 : f32 to vector<8x128xf32>
    %602 = arith.addf %601, %600 : vector<8x128xf32>
    %603 = arith.divf %601, %602 : vector<8x128xf32>
    %604 = math.tanh %598 : vector<8x128xf32>
    %605 = vector.extract_strided_slice %603 {offsets = [0, 0], sizes = [8, 32], strides = [1, 1]} : vector<8x128xf32> to vector<8x32xf32>
    %606 = vector.extract_strided_slice %603 {offsets = [0, 32], sizes = [8, 32], strides = [1, 1]} : vector<8x128xf32> to vector<8x32xf32>
    %607 = vector.extract_strided_slice %603 {offsets = [0, 96], sizes = [8, 32], strides = [1, 1]} : vector<8x128xf32> to vector<8x32xf32>
    %608 = vector.extract_strided_slice %604 {offsets = [0, 64], sizes = [8, 32], strides = [1, 1]} : vector<8x128xf32> to vector<8x32xf32>
    %609 = arith.mulf %606, %571 : vector<8x32xf32>
    %610 = arith.mulf %605, %608 : vector<8x32xf32>
    %611 = arith.addf %609, %610 : vector<8x32xf32>
    %612 = math.tanh %611 : vector<8x32xf32>
    %613 = arith.mulf %607, %612 : vector<8x32xf32>
    %614 = arith.index_cast %c5_i32_131 : i32 to index
    %c0_136 = arith.constant 0 : index
    %c0_137 = arith.constant 0 : index
    %615 = vector.load %arg25[%614, %c0_136, %c0_137] : memref<8x8x32xf32, #tpu.memory_space<vmem>>, vector<1x8x32xf32>
    %616 = vector.shape_cast %615 : vector<1x8x32xf32> to vector<8x32xf32>
    %617 = vector.shape_cast %613 : vector<8x32xf32> to vector<1x8x32xf32>
    tpu.vector_store %arg25[%614, %c0_136, %c0_137], %617 {strides = array<i32>} : memref<8x8x32xf32, #tpu.memory_space<vmem>>, vector<1x8x32xf32>,
    %c6_i32_138 = arith.constant 6 : i32
    %cst_139 = arith.constant dense<0.000000e+00> : vector<8x128xf32>
    %618 = tpu.matmul %594, %373, %cst_139 {dimension_numbers = #tpu.dot_dimension_numbers<[1], [0], [0], [1], [0, 0, 1, 1], [], []>} : vector<8x32xf32>, vector<32x128xf32>, vector<8x128xf32> -> vector<8x128xf32>
    %619 = arith.addf %372, %618 : vector<8x128xf32>
    %620 = arith.negf %619 : vector<8x128xf32>
    %621 = math.exp %620 : vector<8x128xf32>
    %cst_140 = arith.constant 1.000000e+00 : f32
    %622 = vector.broadcast %cst_140 : f32 to vector<8x128xf32>
    %623 = arith.addf %622, %621 : vector<8x128xf32>
    %624 = arith.divf %622, %623 : vector<8x128xf32>
    %625 = math.tanh %619 : vector<8x128xf32>
    %626 = vector.extract_strided_slice %624 {offsets = [0, 0], sizes = [8, 32], strides = [1, 1]} : vector<8x128xf32> to vector<8x32xf32>
    %627 = vector.extract_strided_slice %624 {offsets = [0, 32], sizes = [8, 32], strides = [1, 1]} : vector<8x128xf32> to vector<8x32xf32>
    %628 = vector.extract_strided_slice %624 {offsets = [0, 96], sizes = [8, 32], strides = [1, 1]} : vector<8x128xf32> to vector<8x32xf32>
    %629 = vector.extract_strided_slice %625 {offsets = [0, 64], sizes = [8, 32], strides = [1, 1]} : vector<8x128xf32> to vector<8x32xf32>
    %630 = arith.mulf %627, %592 : vector<8x32xf32>
    %631 = arith.mulf %626, %629 : vector<8x32xf32>
    %632 = arith.addf %630, %631 : vector<8x32xf32>
    %633 = math.tanh %632 : vector<8x32xf32>
    %634 = arith.mulf %628, %633 : vector<8x32xf32>
    %635 = tpu.concatenate %634, %613 in 1 : vector<8x32xf32>, vector<8x32xf32> -> vector<8x64xf32>
    %cst_141 = arith.constant dense<0.000000e+00> : vector<8x128xf32>
    %636 = tpu.matmul %635, %375, %cst_141 {dimension_numbers = #tpu.dot_dimension_numbers<[1], [0], [0], [1], [0, 0, 1, 1], [], []>} : vector<8x64xf32>, vector<64x128xf32>, vector<8x128xf32> -> vector<8x128xf32>
    %637 = vector.broadcast %377 : vector<1x128xf32> to vector<8x128xf32>
    %638 = arith.addf %636, %637 : vector<8x128xf32>
    %639 = arith.negf %638 : vector<8x128xf32>
    %640 = math.exp %639 : vector<8x128xf32>
    %cst_142 = arith.constant 1.000000e+00 : f32
    %641 = vector.broadcast %cst_142 : f32 to vector<8x128xf32>
    %642 = arith.addf %641, %640 : vector<8x128xf32>
    %643 = arith.divf %641, %642 : vector<8x128xf32>
    %644 = math.tanh %638 : vector<8x128xf32>
    %645 = vector.extract_strided_slice %643 {offsets = [0, 0], sizes = [8, 32], strides = [1, 1]} : vector<8x128xf32> to vector<8x32xf32>
    %646 = vector.extract_strided_slice %643 {offsets = [0, 32], sizes = [8, 32], strides = [1, 1]} : vector<8x128xf32> to vector<8x32xf32>
    %647 = vector.extract_strided_slice %643 {offsets = [0, 96], sizes = [8, 32], strides = [1, 1]} : vector<8x128xf32> to vector<8x32xf32>
    %648 = vector.extract_strided_slice %644 {offsets = [0, 64], sizes = [8, 32], strides = [1, 1]} : vector<8x128xf32> to vector<8x32xf32>
    %649 = arith.mulf %646, %611 : vector<8x32xf32>
    %650 = arith.mulf %645, %648 : vector<8x32xf32>
    %651 = arith.addf %649, %650 : vector<8x32xf32>
    %652 = math.tanh %651 : vector<8x32xf32>
    %653 = arith.mulf %647, %652 : vector<8x32xf32>
    %654 = arith.index_cast %c6_i32_138 : i32 to index
    %c0_143 = arith.constant 0 : index
    %c0_144 = arith.constant 0 : index
    %655 = vector.load %arg25[%654, %c0_143, %c0_144] : memref<8x8x32xf32, #tpu.memory_space<vmem>>, vector<1x8x32xf32>
    %656 = vector.shape_cast %655 : vector<1x8x32xf32> to vector<8x32xf32>
    %657 = vector.shape_cast %653 : vector<8x32xf32> to vector<1x8x32xf32>
    tpu.vector_store %arg25[%654, %c0_143, %c0_144], %657 {strides = array<i32>} : memref<8x8x32xf32, #tpu.memory_space<vmem>>, vector<1x8x32xf32>,
    %c7_i32_145 = arith.constant 7 : i32
    %cst_146 = arith.constant dense<0.000000e+00> : vector<8x128xf32>
    %658 = tpu.matmul %634, %373, %cst_146 {dimension_numbers = #tpu.dot_dimension_numbers<[1], [0], [0], [1], [0, 0, 1, 1], [], []>} : vector<8x32xf32>, vector<32x128xf32>, vector<8x128xf32> -> vector<8x128xf32>
    %659 = arith.addf %372, %658 : vector<8x128xf32>
    %660 = arith.negf %659 : vector<8x128xf32>
    %661 = math.exp %660 : vector<8x128xf32>
    %cst_147 = arith.constant 1.000000e+00 : f32
    %662 = vector.broadcast %cst_147 : f32 to vector<8x128xf32>
    %663 = arith.addf %662, %661 : vector<8x128xf32>
    %664 = arith.divf %662, %663 : vector<8x128xf32>
    %665 = math.tanh %659 : vector<8x128xf32>
    %666 = vector.extract_strided_slice %664 {offsets = [0, 0], sizes = [8, 32], strides = [1, 1]} : vector<8x128xf32> to vector<8x32xf32>
    %667 = vector.extract_strided_slice %664 {offsets = [0, 32], sizes = [8, 32], strides = [1, 1]} : vector<8x128xf32> to vector<8x32xf32>
    %668 = vector.extract_strided_slice %664 {offsets = [0, 96], sizes = [8, 32], strides = [1, 1]} : vector<8x128xf32> to vector<8x32xf32>
    %669 = vector.extract_strided_slice %665 {offsets = [0, 64], sizes = [8, 32], strides = [1, 1]} : vector<8x128xf32> to vector<8x32xf32>
    %670 = arith.mulf %667, %632 : vector<8x32xf32>
    %671 = arith.mulf %666, %669 : vector<8x32xf32>
    %672 = arith.addf %670, %671 : vector<8x32xf32>
    %673 = math.tanh %672 : vector<8x32xf32>
    %674 = arith.mulf %668, %673 : vector<8x32xf32>
    %675 = tpu.concatenate %674, %653 in 1 : vector<8x32xf32>, vector<8x32xf32> -> vector<8x64xf32>
    %cst_148 = arith.constant dense<0.000000e+00> : vector<8x128xf32>
    %676 = tpu.matmul %675, %375, %cst_148 {dimension_numbers = #tpu.dot_dimension_numbers<[1], [0], [0], [1], [0, 0, 1, 1], [], []>} : vector<8x64xf32>, vector<64x128xf32>, vector<8x128xf32> -> vector<8x128xf32>
    %677 = vector.broadcast %377 : vector<1x128xf32> to vector<8x128xf32>
    %678 = arith.addf %676, %677 : vector<8x128xf32>
    %679 = arith.negf %678 : vector<8x128xf32>
    %680 = math.exp %679 : vector<8x128xf32>
    %cst_149 = arith.constant 1.000000e+00 : f32
    %681 = vector.broadcast %cst_149 : f32 to vector<8x128xf32>
    %682 = arith.addf %681, %680 : vector<8x128xf32>
    %683 = arith.divf %681, %682 : vector<8x128xf32>
    %684 = math.tanh %678 : vector<8x128xf32>
    %685 = vector.extract_strided_slice %683 {offsets = [0, 0], sizes = [8, 32], strides = [1, 1]} : vector<8x128xf32> to vector<8x32xf32>
    %686 = vector.extract_strided_slice %683 {offsets = [0, 32], sizes = [8, 32], strides = [1, 1]} : vector<8x128xf32> to vector<8x32xf32>
    %687 = vector.extract_strided_slice %683 {offsets = [0, 96], sizes = [8, 32], strides = [1, 1]} : vector<8x128xf32> to vector<8x32xf32>
    %688 = vector.extract_strided_slice %684 {offsets = [0, 64], sizes = [8, 32], strides = [1, 1]} : vector<8x128xf32> to vector<8x32xf32>
    %689 = arith.mulf %686, %651 : vector<8x32xf32>
    %690 = arith.mulf %685, %688 : vector<8x32xf32>
    %691 = arith.addf %689, %690 : vector<8x32xf32>
    %692 = math.tanh %691 : vector<8x32xf32>
    %693 = arith.mulf %687, %692 : vector<8x32xf32>
    %694 = arith.index_cast %c7_i32_145 : i32 to index
    %c0_150 = arith.constant 0 : index
    %c0_151 = arith.constant 0 : index
    %695 = vector.load %arg25[%694, %c0_150, %c0_151] : memref<8x8x32xf32, #tpu.memory_space<vmem>>, vector<1x8x32xf32>
    %696 = vector.shape_cast %695 : vector<1x8x32xf32> to vector<8x32xf32>
    %697 = vector.shape_cast %693 : vector<8x32xf32> to vector<1x8x32xf32>
    tpu.vector_store %arg25[%694, %c0_150, %c0_151], %697 {strides = array<i32>} : memref<8x8x32xf32, #tpu.memory_space<vmem>>, vector<1x8x32xf32>,
    %c8_i32_152 = arith.constant 8 : i32
    %c0_153 = arith.constant 0 : index
    %c0_154 = arith.constant 0 : index
    %c0_155 = arith.constant 0 : index
    %698 = vector.load %arg25[%c0_153, %c0_154, %c0_155] : memref<8x8x32xf32, #tpu.memory_space<vmem>>, vector<8x8x32xf32>
    %699 = vector.shape_cast %698 : vector<8x8x32xf32> to vector<64x32xf32>
    %c0_156 = arith.constant 0 : index
    %c0_157 = arith.constant 0 : index
    %700 = vector.load %arg12[%c0_156, %c0_157] : memref<32x4xf32, #tpu.memory_space<vmem>>, vector<32x4xf32>
    %cst_158 = arith.constant dense<0.000000e+00> : vector<64x4xf32>
    %701 = tpu.matmul %699, %700, %cst_158 {dimension_numbers = #tpu.dot_dimension_numbers<[1], [0], [0], [1], [0, 0, 1, 1], [], []>} : vector<64x32xf32>, vector<32x4xf32>, vector<64x4xf32> -> vector<64x4xf32>
    %c0_159 = arith.constant 0 : index
    %c0_160 = arith.constant 0 : index
    %702 = vector.load %arg13[%c0_159, %c0_160] : memref<1x4xf32, #tpu.memory_space<vmem>>, vector<1x4xf32>
    %703 = vector.broadcast %702 : vector<1x4xf32> to vector<64x4xf32>
    %704 = arith.addf %701, %703 : vector<64x4xf32>
    %705 = vector.shape_cast %704 : vector<64x4xf32> to vector<8x8x4xf32>
    %706 = vector.extract_strided_slice %705 {offsets = [0, 0, 0], sizes = [1, 8, 4], strides = [1, 1, 1]} : vector<8x8x4xf32> to vector<1x8x4xf32>
    %707 = vector.shape_cast %706 : vector<1x8x4xf32> to vector<8x4xf32>
    %c0_161 = arith.constant 0 : index
    %c0_162 = arith.constant 0 : index
    %c0_163 = arith.constant 0 : index
    %708 = vector.load %arg22[%c0_161, %c0_162, %c0_163] : memref<8x8x4xf32, #tpu.memory_space<vmem>>, vector<8x1x4xf32>
    %709 = vector.shape_cast %708 : vector<8x1x4xf32> to vector<8x4xf32>
    %710 = vector.shape_cast %707 : vector<8x4xf32> to vector<8x1x4xf32>
    tpu.vector_store %arg22[%c0_161, %c0_162, %c0_163], %710 {strides = array<i32>} : memref<8x8x4xf32, #tpu.memory_space<vmem>>, vector<8x1x4xf32>,
    %711 = vector.extract_strided_slice %705 {offsets = [1, 0, 0], sizes = [1, 8, 4], strides = [1, 1, 1]} : vector<8x8x4xf32> to vector<1x8x4xf32>
    %712 = vector.shape_cast %711 : vector<1x8x4xf32> to vector<8x4xf32>
    %c0_164 = arith.constant 0 : index
    %c1_165 = arith.constant 1 : index
    %c0_166 = arith.constant 0 : index
    %713 = vector.load %arg22[%c0_164, %c1_165, %c0_166] : memref<8x8x4xf32, #tpu.memory_space<vmem>>, vector<8x1x4xf32>
    %714 = vector.shape_cast %713 : vector<8x1x4xf32> to vector<8x4xf32>
    %715 = vector.shape_cast %712 : vector<8x4xf32> to vector<8x1x4xf32>
    tpu.vector_store %arg22[%c0_164, %c1_165, %c0_166], %715 {strides = array<i32>} : memref<8x8x4xf32, #tpu.memory_space<vmem>>, vector<8x1x4xf32>,
    %716 = vector.extract_strided_slice %705 {offsets = [2, 0, 0], sizes = [1, 8, 4], strides = [1, 1, 1]} : vector<8x8x4xf32> to vector<1x8x4xf32>
    %717 = vector.shape_cast %716 : vector<1x8x4xf32> to vector<8x4xf32>
    %c0_167 = arith.constant 0 : index
    %c2_168 = arith.constant 2 : index
    %c0_169 = arith.constant 0 : index
    %718 = vector.load %arg22[%c0_167, %c2_168, %c0_169] : memref<8x8x4xf32, #tpu.memory_space<vmem>>, vector<8x1x4xf32>
    %719 = vector.shape_cast %718 : vector<8x1x4xf32> to vector<8x4xf32>
    %720 = vector.shape_cast %717 : vector<8x4xf32> to vector<8x1x4xf32>
    tpu.vector_store %arg22[%c0_167, %c2_168, %c0_169], %720 {strides = array<i32>} : memref<8x8x4xf32, #tpu.memory_space<vmem>>, vector<8x1x4xf32>,
    %721 = vector.extract_strided_slice %705 {offsets = [3, 0, 0], sizes = [1, 8, 4], strides = [1, 1, 1]} : vector<8x8x4xf32> to vector<1x8x4xf32>
    %722 = vector.shape_cast %721 : vector<1x8x4xf32> to vector<8x4xf32>
    %c0_170 = arith.constant 0 : index
    %c3_171 = arith.constant 3 : index
    %c0_172 = arith.constant 0 : index
    %723 = vector.load %arg22[%c0_170, %c3_171, %c0_172] : memref<8x8x4xf32, #tpu.memory_space<vmem>>, vector<8x1x4xf32>
    %724 = vector.shape_cast %723 : vector<8x1x4xf32> to vector<8x4xf32>
    %725 = vector.shape_cast %722 : vector<8x4xf32> to vector<8x1x4xf32>
    tpu.vector_store %arg22[%c0_170, %c3_171, %c0_172], %725 {strides = array<i32>} : memref<8x8x4xf32, #tpu.memory_space<vmem>>, vector<8x1x4xf32>,
    %726 = vector.extract_strided_slice %705 {offsets = [4, 0, 0], sizes = [1, 8, 4], strides = [1, 1, 1]} : vector<8x8x4xf32> to vector<1x8x4xf32>
    %727 = vector.shape_cast %726 : vector<1x8x4xf32> to vector<8x4xf32>
    %c0_173 = arith.constant 0 : index
    %c4_174 = arith.constant 4 : index
    %c0_175 = arith.constant 0 : index
    %728 = vector.load %arg22[%c0_173, %c4_174, %c0_175] : memref<8x8x4xf32, #tpu.memory_space<vmem>>, vector<8x1x4xf32>
    %729 = vector.shape_cast %728 : vector<8x1x4xf32> to vector<8x4xf32>
    %730 = vector.shape_cast %727 : vector<8x4xf32> to vector<8x1x4xf32>
    tpu.vector_store %arg22[%c0_173, %c4_174, %c0_175], %730 {strides = array<i32>} : memref<8x8x4xf32, #tpu.memory_space<vmem>>, vector<8x1x4xf32>,
    %731 = vector.extract_strided_slice %705 {offsets = [5, 0, 0], sizes = [1, 8, 4], strides = [1, 1, 1]} : vector<8x8x4xf32> to vector<1x8x4xf32>
    %732 = vector.shape_cast %731 : vector<1x8x4xf32> to vector<8x4xf32>
    %c0_176 = arith.constant 0 : index
    %c5_177 = arith.constant 5 : index
    %c0_178 = arith.constant 0 : index
    %733 = vector.load %arg22[%c0_176, %c5_177, %c0_178] : memref<8x8x4xf32, #tpu.memory_space<vmem>>, vector<8x1x4xf32>
    %734 = vector.shape_cast %733 : vector<8x1x4xf32> to vector<8x4xf32>
    %735 = vector.shape_cast %732 : vector<8x4xf32> to vector<8x1x4xf32>
    tpu.vector_store %arg22[%c0_176, %c5_177, %c0_178], %735 {strides = array<i32>} : memref<8x8x4xf32, #tpu.memory_space<vmem>>, vector<8x1x4xf32>,
    %736 = vector.extract_strided_slice %705 {offsets = [6, 0, 0], sizes = [1, 8, 4], strides = [1, 1, 1]} : vector<8x8x4xf32> to vector<1x8x4xf32>
    %737 = vector.shape_cast %736 : vector<1x8x4xf32> to vector<8x4xf32>
    %c0_179 = arith.constant 0 : index
    %c6_180 = arith.constant 6 : index
    %c0_181 = arith.constant 0 : index
    %738 = vector.load %arg22[%c0_179, %c6_180, %c0_181] : memref<8x8x4xf32, #tpu.memory_space<vmem>>, vector<8x1x4xf32>
    %739 = vector.shape_cast %738 : vector<8x1x4xf32> to vector<8x4xf32>
    %740 = vector.shape_cast %737 : vector<8x4xf32> to vector<8x1x4xf32>
    tpu.vector_store %arg22[%c0_179, %c6_180, %c0_181], %740 {strides = array<i32>} : memref<8x8x4xf32, #tpu.memory_space<vmem>>, vector<8x1x4xf32>,
    %741 = vector.extract_strided_slice %705 {offsets = [7, 0, 0], sizes = [1, 8, 4], strides = [1, 1, 1]} : vector<8x8x4xf32> to vector<1x8x4xf32>
    %742 = vector.shape_cast %741 : vector<1x8x4xf32> to vector<8x4xf32>
    %c0_182 = arith.constant 0 : index
    %c7_183 = arith.constant 7 : index
    %c0_184 = arith.constant 0 : index
    %743 = vector.load %arg22[%c0_182, %c7_183, %c0_184] : memref<8x8x4xf32, #tpu.memory_space<vmem>>, vector<8x1x4xf32>
    %744 = vector.shape_cast %743 : vector<8x1x4xf32> to vector<8x4xf32>
    %745 = vector.shape_cast %742 : vector<8x4xf32> to vector<8x1x4xf32>
    tpu.vector_store %arg22[%c0_182, %c7_183, %c0_184], %745 {strides = array<i32>} : memref<8x8x4xf32, #tpu.memory_space<vmem>>, vector<8x1x4xf32>,
    %c0_185 = arith.constant 0 : index
    %c0_186 = arith.constant 0 : index
    %746 = vector.load %arg14[%c0_185, %c0_186] : memref<32x128xf32, #tpu.memory_space<vmem>>, vector<32x128xf32>
    %cst_187 = arith.constant dense<0.000000e+00> : vector<8x128xf32>
    %747 = tpu.matmul %365, %746, %cst_187 {dimension_numbers = #tpu.dot_dimension_numbers<[1], [0], [0], [1], [0, 0, 1, 1], [], []>} : vector<8x32xf32>, vector<32x128xf32>, vector<8x128xf32> -> vector<8x128xf32>
    %c0_188 = arith.constant 0 : index
    %c0_189 = arith.constant 0 : index
    %748 = vector.load %arg16[%c0_188, %c0_189] : memref<1x128xf32, #tpu.memory_space<vmem>>, vector<1x128xf32>
    %749 = vector.broadcast %748 : vector<1x128xf32> to vector<8x128xf32>
    %750 = arith.addf %747, %749 : vector<8x128xf32>
    %c0_190 = arith.constant 0 : index
    %c0_191 = arith.constant 0 : index
    %751 = vector.load %arg15[%c0_190, %c0_191] : memref<32x128xf32, #tpu.memory_space<vmem>>, vector<32x128xf32>
    %c0_192 = arith.constant 0 : index
    %c0_193 = arith.constant 0 : index
    %c0_194 = arith.constant 0 : index
    %752 = vector.load %arg17[%c0_192, %c0_193, %c0_194] : memref<1x64x128xf32, #tpu.memory_space<vmem>>, vector<1x64x128xf32>
    %753 = vector.shape_cast %752 : vector<1x64x128xf32> to vector<64x128xf32>
    %c0_195 = arith.constant 0 : index
    %c0_196 = arith.constant 0 : index
    %c0_197 = arith.constant 0 : index
    %754 = vector.load %arg18[%c0_195, %c0_196, %c0_197] : memref<1x1x128xf32, #tpu.memory_space<vmem>>, vector<1x1x128xf32>
    %755 = vector.shape_cast %754 : vector<1x1x128xf32> to vector<1x128xf32>
    %c0_i32_198 = arith.constant 0 : i32
    %cst_199 = arith.constant dense<0.000000e+00> : vector<8x128xf32>
    %756 = tpu.matmul %674, %751, %cst_199 {dimension_numbers = #tpu.dot_dimension_numbers<[1], [0], [0], [1], [0, 0, 1, 1], [], []>} : vector<8x32xf32>, vector<32x128xf32>, vector<8x128xf32> -> vector<8x128xf32>
    %757 = arith.addf %750, %756 : vector<8x128xf32>
    %758 = arith.negf %757 : vector<8x128xf32>
    %759 = math.exp %758 : vector<8x128xf32>
    %cst_200 = arith.constant 1.000000e+00 : f32
    %760 = vector.broadcast %cst_200 : f32 to vector<8x128xf32>
    %761 = arith.addf %760, %759 : vector<8x128xf32>
    %762 = arith.divf %760, %761 : vector<8x128xf32>
    %763 = math.tanh %757 : vector<8x128xf32>
    %764 = vector.extract_strided_slice %762 {offsets = [0, 0], sizes = [8, 32], strides = [1, 1]} : vector<8x128xf32> to vector<8x32xf32>
    %765 = vector.extract_strided_slice %762 {offsets = [0, 32], sizes = [8, 32], strides = [1, 1]} : vector<8x128xf32> to vector<8x32xf32>
    %766 = vector.extract_strided_slice %762 {offsets = [0, 96], sizes = [8, 32], strides = [1, 1]} : vector<8x128xf32> to vector<8x32xf32>
    %767 = vector.extract_strided_slice %763 {offsets = [0, 64], sizes = [8, 32], strides = [1, 1]} : vector<8x128xf32> to vector<8x32xf32>
    %768 = arith.mulf %765, %672 : vector<8x32xf32>
    %769 = arith.mulf %764, %767 : vector<8x32xf32>
    %770 = arith.addf %768, %769 : vector<8x32xf32>
    %771 = math.tanh %770 : vector<8x32xf32>
    %772 = arith.mulf %766, %771 : vector<8x32xf32>
    %773 = tpu.concatenate %772, %693 in 1 : vector<8x32xf32>, vector<8x32xf32> -> vector<8x64xf32>
    %cst_201 = arith.constant dense<0.000000e+00> : vector<8x128xf32>
    %774 = tpu.matmul %773, %753, %cst_201 {dimension_numbers = #tpu.dot_dimension_numbers<[1], [0], [0], [1], [0, 0, 1, 1], [], []>} : vector<8x64xf32>, vector<64x128xf32>, vector<8x128xf32> -> vector<8x128xf32>
    %775 = vector.broadcast %755 : vector<1x128xf32> to vector<8x128xf32>
    %776 = arith.addf %774, %775 : vector<8x128xf32>
    %777 = arith.negf %776 : vector<8x128xf32>
    %778 = math.exp %777 : vector<8x128xf32>
    %cst_202 = arith.constant 1.000000e+00 : f32
    %779 = vector.broadcast %cst_202 : f32 to vector<8x128xf32>
    %780 = arith.addf %779, %778 : vector<8x128xf32>
    %781 = arith.divf %779, %780 : vector<8x128xf32>
    %782 = math.tanh %776 : vector<8x128xf32>
    %783 = vector.extract_strided_slice %781 {offsets = [0, 0], sizes = [8, 32], strides = [1, 1]} : vector<8x128xf32> to vector<8x32xf32>
    %784 = vector.extract_strided_slice %781 {offsets = [0, 32], sizes = [8, 32], strides = [1, 1]} : vector<8x128xf32> to vector<8x32xf32>
    %785 = vector.extract_strided_slice %781 {offsets = [0, 96], sizes = [8, 32], strides = [1, 1]} : vector<8x128xf32> to vector<8x32xf32>
    %786 = vector.extract_strided_slice %782 {offsets = [0, 64], sizes = [8, 32], strides = [1, 1]} : vector<8x128xf32> to vector<8x32xf32>
    %787 = arith.mulf %784, %691 : vector<8x32xf32>
    %788 = arith.mulf %783, %786 : vector<8x32xf32>
    %789 = arith.addf %787, %788 : vector<8x32xf32>
    %790 = math.tanh %789 : vector<8x32xf32>
    %791 = arith.mulf %785, %790 : vector<8x32xf32>
    %792 = arith.index_cast %c0_i32_198 : i32 to index
    %c0_203 = arith.constant 0 : index
    %c0_204 = arith.constant 0 : index
    %793 = vector.load %arg25[%792, %c0_203, %c0_204] : memref<8x8x32xf32, #tpu.memory_space<vmem>>, vector<1x8x32xf32>
    %794 = vector.shape_cast %793 : vector<1x8x32xf32> to vector<8x32xf32>
    %795 = vector.shape_cast %791 : vector<8x32xf32> to vector<1x8x32xf32>
    tpu.vector_store %arg25[%792, %c0_203, %c0_204], %795 {strides = array<i32>} : memref<8x8x32xf32, #tpu.memory_space<vmem>>, vector<1x8x32xf32>,
    %c1_i32_205 = arith.constant 1 : i32
    %cst_206 = arith.constant dense<0.000000e+00> : vector<8x128xf32>
    %796 = tpu.matmul %772, %751, %cst_206 {dimension_numbers = #tpu.dot_dimension_numbers<[1], [0], [0], [1], [0, 0, 1, 1], [], []>} : vector<8x32xf32>, vector<32x128xf32>, vector<8x128xf32> -> vector<8x128xf32>
    %797 = arith.addf %750, %796 : vector<8x128xf32>
    %798 = arith.negf %797 : vector<8x128xf32>
    %799 = math.exp %798 : vector<8x128xf32>
    %cst_207 = arith.constant 1.000000e+00 : f32
    %800 = vector.broadcast %cst_207 : f32 to vector<8x128xf32>
    %801 = arith.addf %800, %799 : vector<8x128xf32>
    %802 = arith.divf %800, %801 : vector<8x128xf32>
    %803 = math.tanh %797 : vector<8x128xf32>
    %804 = vector.extract_strided_slice %802 {offsets = [0, 0], sizes = [8, 32], strides = [1, 1]} : vector<8x128xf32> to vector<8x32xf32>
    %805 = vector.extract_strided_slice %802 {offsets = [0, 32], sizes = [8, 32], strides = [1, 1]} : vector<8x128xf32> to vector<8x32xf32>
    %806 = vector.extract_strided_slice %802 {offsets = [0, 96], sizes = [8, 32], strides = [1, 1]} : vector<8x128xf32> to vector<8x32xf32>
    %807 = vector.extract_strided_slice %803 {offsets = [0, 64], sizes = [8, 32], strides = [1, 1]} : vector<8x128xf32> to vector<8x32xf32>
    %808 = arith.mulf %805, %770 : vector<8x32xf32>
    %809 = arith.mulf %804, %807 : vector<8x32xf32>
    %810 = arith.addf %808, %809 : vector<8x32xf32>
    %811 = math.tanh %810 : vector<8x32xf32>
    %812 = arith.mulf %806, %811 : vector<8x32xf32>
    %813 = tpu.concatenate %812, %791 in 1 : vector<8x32xf32>, vector<8x32xf32> -> vector<8x64xf32>
    %cst_208 = arith.constant dense<0.000000e+00> : vector<8x128xf32>
    %814 = tpu.matmul %813, %753, %cst_208 {dimension_numbers = #tpu.dot_dimension_numbers<[1], [0], [0], [1], [0, 0, 1, 1], [], []>} : vector<8x64xf32>, vector<64x128xf32>, vector<8x128xf32> -> vector<8x128xf32>
    %815 = vector.broadcast %755 : vector<1x128xf32> to vector<8x128xf32>
    %816 = arith.addf %814, %815 : vector<8x128xf32>
    %817 = arith.negf %816 : vector<8x128xf32>
    %818 = math.exp %817 : vector<8x128xf32>
    %cst_209 = arith.constant 1.000000e+00 : f32
    %819 = vector.broadcast %cst_209 : f32 to vector<8x128xf32>
    %820 = arith.addf %819, %818 : vector<8x128xf32>
    %821 = arith.divf %819, %820 : vector<8x128xf32>
    %822 = math.tanh %816 : vector<8x128xf32>
    %823 = vector.extract_strided_slice %821 {offsets = [0, 0], sizes = [8, 32], strides = [1, 1]} : vector<8x128xf32> to vector<8x32xf32>
    %824 = vector.extract_strided_slice %821 {offsets = [0, 32], sizes = [8, 32], strides = [1, 1]} : vector<8x128xf32> to vector<8x32xf32>
    %825 = vector.extract_strided_slice %821 {offsets = [0, 96], sizes = [8, 32], strides = [1, 1]} : vector<8x128xf32> to vector<8x32xf32>
    %826 = vector.extract_strided_slice %822 {offsets = [0, 64], sizes = [8, 32], strides = [1, 1]} : vector<8x128xf32> to vector<8x32xf32>
    %827 = arith.mulf %824, %789 : vector<8x32xf32>
    %828 = arith.mulf %823, %826 : vector<8x32xf32>
    %829 = arith.addf %827, %828 : vector<8x32xf32>
    %830 = math.tanh %829 : vector<8x32xf32>
    %831 = arith.mulf %825, %830 : vector<8x32xf32>
    %832 = arith.index_cast %c1_i32_205 : i32 to index
    %c0_210 = arith.constant 0 : index
    %c0_211 = arith.constant 0 : index
    %833 = vector.load %arg25[%832, %c0_210, %c0_211] : memref<8x8x32xf32, #tpu.memory_space<vmem>>, vector<1x8x32xf32>
    %834 = vector.shape_cast %833 : vector<1x8x32xf32> to vector<8x32xf32>
    %835 = vector.shape_cast %831 : vector<8x32xf32> to vector<1x8x32xf32>
    tpu.vector_store %arg25[%832, %c0_210, %c0_211], %835 {strides = array<i32>} : memref<8x8x32xf32, #tpu.memory_space<vmem>>, vector<1x8x32xf32>,
    %c2_i32_212 = arith.constant 2 : i32
    %cst_213 = arith.constant dense<0.000000e+00> : vector<8x128xf32>
    %836 = tpu.matmul %812, %751, %cst_213 {dimension_numbers = #tpu.dot_dimension_numbers<[1], [0], [0], [1], [0, 0, 1, 1], [], []>} : vector<8x32xf32>, vector<32x128xf32>, vector<8x128xf32> -> vector<8x128xf32>
    %837 = arith.addf %750, %836 : vector<8x128xf32>
    %838 = arith.negf %837 : vector<8x128xf32>
    %839 = math.exp %838 : vector<8x128xf32>
    %cst_214 = arith.constant 1.000000e+00 : f32
    %840 = vector.broadcast %cst_214 : f32 to vector<8x128xf32>
    %841 = arith.addf %840, %839 : vector<8x128xf32>
    %842 = arith.divf %840, %841 : vector<8x128xf32>
    %843 = math.tanh %837 : vector<8x128xf32>
    %844 = vector.extract_strided_slice %842 {offsets = [0, 0], sizes = [8, 32], strides = [1, 1]} : vector<8x128xf32> to vector<8x32xf32>
    %845 = vector.extract_strided_slice %842 {offsets = [0, 32], sizes = [8, 32], strides = [1, 1]} : vector<8x128xf32> to vector<8x32xf32>
    %846 = vector.extract_strided_slice %842 {offsets = [0, 96], sizes = [8, 32], strides = [1, 1]} : vector<8x128xf32> to vector<8x32xf32>
    %847 = vector.extract_strided_slice %843 {offsets = [0, 64], sizes = [8, 32], strides = [1, 1]} : vector<8x128xf32> to vector<8x32xf32>
    %848 = arith.mulf %845, %810 : vector<8x32xf32>
    %849 = arith.mulf %844, %847 : vector<8x32xf32>
    %850 = arith.addf %848, %849 : vector<8x32xf32>
    %851 = math.tanh %850 : vector<8x32xf32>
    %852 = arith.mulf %846, %851 : vector<8x32xf32>
    %853 = tpu.concatenate %852, %831 in 1 : vector<8x32xf32>, vector<8x32xf32> -> vector<8x64xf32>
    %cst_215 = arith.constant dense<0.000000e+00> : vector<8x128xf32>
    %854 = tpu.matmul %853, %753, %cst_215 {dimension_numbers = #tpu.dot_dimension_numbers<[1], [0], [0], [1], [0, 0, 1, 1], [], []>} : vector<8x64xf32>, vector<64x128xf32>, vector<8x128xf32> -> vector<8x128xf32>
    %855 = vector.broadcast %755 : vector<1x128xf32> to vector<8x128xf32>
    %856 = arith.addf %854, %855 : vector<8x128xf32>
    %857 = arith.negf %856 : vector<8x128xf32>
    %858 = math.exp %857 : vector<8x128xf32>
    %cst_216 = arith.constant 1.000000e+00 : f32
    %859 = vector.broadcast %cst_216 : f32 to vector<8x128xf32>
    %860 = arith.addf %859, %858 : vector<8x128xf32>
    %861 = arith.divf %859, %860 : vector<8x128xf32>
    %862 = math.tanh %856 : vector<8x128xf32>
    %863 = vector.extract_strided_slice %861 {offsets = [0, 0], sizes = [8, 32], strides = [1, 1]} : vector<8x128xf32> to vector<8x32xf32>
    %864 = vector.extract_strided_slice %861 {offsets = [0, 32], sizes = [8, 32], strides = [1, 1]} : vector<8x128xf32> to vector<8x32xf32>
    %865 = vector.extract_strided_slice %861 {offsets = [0, 96], sizes = [8, 32], strides = [1, 1]} : vector<8x128xf32> to vector<8x32xf32>
    %866 = vector.extract_strided_slice %862 {offsets = [0, 64], sizes = [8, 32], strides = [1, 1]} : vector<8x128xf32> to vector<8x32xf32>
    %867 = arith.mulf %864, %829 : vector<8x32xf32>
    %868 = arith.mulf %863, %866 : vector<8x32xf32>
    %869 = arith.addf %867, %868 : vector<8x32xf32>
    %870 = math.tanh %869 : vector<8x32xf32>
    %871 = arith.mulf %865, %870 : vector<8x32xf32>
    %872 = arith.index_cast %c2_i32_212 : i32 to index
    %c0_217 = arith.constant 0 : index
    %c0_218 = arith.constant 0 : index
    %873 = vector.load %arg25[%872, %c0_217, %c0_218] : memref<8x8x32xf32, #tpu.memory_space<vmem>>, vector<1x8x32xf32>
    %874 = vector.shape_cast %873 : vector<1x8x32xf32> to vector<8x32xf32>
    %875 = vector.shape_cast %871 : vector<8x32xf32> to vector<1x8x32xf32>
    tpu.vector_store %arg25[%872, %c0_217, %c0_218], %875 {strides = array<i32>} : memref<8x8x32xf32, #tpu.memory_space<vmem>>, vector<1x8x32xf32>,
    %c3_i32_219 = arith.constant 3 : i32
    %cst_220 = arith.constant dense<0.000000e+00> : vector<8x128xf32>
    %876 = tpu.matmul %852, %751, %cst_220 {dimension_numbers = #tpu.dot_dimension_numbers<[1], [0], [0], [1], [0, 0, 1, 1], [], []>} : vector<8x32xf32>, vector<32x128xf32>, vector<8x128xf32> -> vector<8x128xf32>
    %877 = arith.addf %750, %876 : vector<8x128xf32>
    %878 = arith.negf %877 : vector<8x128xf32>
    %879 = math.exp %878 : vector<8x128xf32>
    %cst_221 = arith.constant 1.000000e+00 : f32
    %880 = vector.broadcast %cst_221 : f32 to vector<8x128xf32>
    %881 = arith.addf %880, %879 : vector<8x128xf32>
    %882 = arith.divf %880, %881 : vector<8x128xf32>
    %883 = math.tanh %877 : vector<8x128xf32>
    %884 = vector.extract_strided_slice %882 {offsets = [0, 0], sizes = [8, 32], strides = [1, 1]} : vector<8x128xf32> to vector<8x32xf32>
    %885 = vector.extract_strided_slice %882 {offsets = [0, 32], sizes = [8, 32], strides = [1, 1]} : vector<8x128xf32> to vector<8x32xf32>
    %886 = vector.extract_strided_slice %882 {offsets = [0, 96], sizes = [8, 32], strides = [1, 1]} : vector<8x128xf32> to vector<8x32xf32>
    %887 = vector.extract_strided_slice %883 {offsets = [0, 64], sizes = [8, 32], strides = [1, 1]} : vector<8x128xf32> to vector<8x32xf32>
    %888 = arith.mulf %885, %850 : vector<8x32xf32>
    %889 = arith.mulf %884, %887 : vector<8x32xf32>
    %890 = arith.addf %888, %889 : vector<8x32xf32>
    %891 = math.tanh %890 : vector<8x32xf32>
    %892 = arith.mulf %886, %891 : vector<8x32xf32>
    %893 = tpu.concatenate %892, %871 in 1 : vector<8x32xf32>, vector<8x32xf32> -> vector<8x64xf32>
    %cst_222 = arith.constant dense<0.000000e+00> : vector<8x128xf32>
    %894 = tpu.matmul %893, %753, %cst_222 {dimension_numbers = #tpu.dot_dimension_numbers<[1], [0], [0], [1], [0, 0, 1, 1], [], []>} : vector<8x64xf32>, vector<64x128xf32>, vector<8x128xf32> -> vector<8x128xf32>
    %895 = vector.broadcast %755 : vector<1x128xf32> to vector<8x128xf32>
    %896 = arith.addf %894, %895 : vector<8x128xf32>
    %897 = arith.negf %896 : vector<8x128xf32>
    %898 = math.exp %897 : vector<8x128xf32>
    %cst_223 = arith.constant 1.000000e+00 : f32
    %899 = vector.broadcast %cst_223 : f32 to vector<8x128xf32>
    %900 = arith.addf %899, %898 : vector<8x128xf32>
    %901 = arith.divf %899, %900 : vector<8x128xf32>
    %902 = math.tanh %896 : vector<8x128xf32>
    %903 = vector.extract_strided_slice %901 {offsets = [0, 0], sizes = [8, 32], strides = [1, 1]} : vector<8x128xf32> to vector<8x32xf32>
    %904 = vector.extract_strided_slice %901 {offsets = [0, 32], sizes = [8, 32], strides = [1, 1]} : vector<8x128xf32> to vector<8x32xf32>
    %905 = vector.extract_strided_slice %901 {offsets = [0, 96], sizes = [8, 32], strides = [1, 1]} : vector<8x128xf32> to vector<8x32xf32>
    %906 = vector.extract_strided_slice %902 {offsets = [0, 64], sizes = [8, 32], strides = [1, 1]} : vector<8x128xf32> to vector<8x32xf32>
    %907 = arith.mulf %904, %869 : vector<8x32xf32>
    %908 = arith.mulf %903, %906 : vector<8x32xf32>
    %909 = arith.addf %907, %908 : vector<8x32xf32>
    %910 = math.tanh %909 : vector<8x32xf32>
    %911 = arith.mulf %905, %910 : vector<8x32xf32>
    %912 = arith.index_cast %c3_i32_219 : i32 to index
    %c0_224 = arith.constant 0 : index
    %c0_225 = arith.constant 0 : index
    %913 = vector.load %arg25[%912, %c0_224, %c0_225] : memref<8x8x32xf32, #tpu.memory_space<vmem>>, vector<1x8x32xf32>
    %914 = vector.shape_cast %913 : vector<1x8x32xf32> to vector<8x32xf32>
    %915 = vector.shape_cast %911 : vector<8x32xf32> to vector<1x8x32xf32>
    tpu.vector_store %arg25[%912, %c0_224, %c0_225], %915 {strides = array<i32>} : memref<8x8x32xf32, #tpu.memory_space<vmem>>, vector<1x8x32xf32>,
    %c4_i32_226 = arith.constant 4 : i32
    %cst_227 = arith.constant dense<0.000000e+00> : vector<8x128xf32>
    %916 = tpu.matmul %892, %751, %cst_227 {dimension_numbers = #tpu.dot_dimension_numbers<[1], [0], [0], [1], [0, 0, 1, 1], [], []>} : vector<8x32xf32>, vector<32x128xf32>, vector<8x128xf32> -> vector<8x128xf32>
    %917 = arith.addf %750, %916 : vector<8x128xf32>
    %918 = arith.negf %917 : vector<8x128xf32>
    %919 = math.exp %918 : vector<8x128xf32>
    %cst_228 = arith.constant 1.000000e+00 : f32
    %920 = vector.broadcast %cst_228 : f32 to vector<8x128xf32>
    %921 = arith.addf %920, %919 : vector<8x128xf32>
    %922 = arith.divf %920, %921 : vector<8x128xf32>
    %923 = math.tanh %917 : vector<8x128xf32>
    %924 = vector.extract_strided_slice %922 {offsets = [0, 0], sizes = [8, 32], strides = [1, 1]} : vector<8x128xf32> to vector<8x32xf32>
    %925 = vector.extract_strided_slice %922 {offsets = [0, 32], sizes = [8, 32], strides = [1, 1]} : vector<8x128xf32> to vector<8x32xf32>
    %926 = vector.extract_strided_slice %922 {offsets = [0, 96], sizes = [8, 32], strides = [1, 1]} : vector<8x128xf32> to vector<8x32xf32>
    %927 = vector.extract_strided_slice %923 {offsets = [0, 64], sizes = [8, 32], strides = [1, 1]} : vector<8x128xf32> to vector<8x32xf32>
    %928 = arith.mulf %925, %890 : vector<8x32xf32>
    %929 = arith.mulf %924, %927 : vector<8x32xf32>
    %930 = arith.addf %928, %929 : vector<8x32xf32>
    %931 = math.tanh %930 : vector<8x32xf32>
    %932 = arith.mulf %926, %931 : vector<8x32xf32>
    %933 = tpu.concatenate %932, %911 in 1 : vector<8x32xf32>, vector<8x32xf32> -> vector<8x64xf32>
    %cst_229 = arith.constant dense<0.000000e+00> : vector<8x128xf32>
    %934 = tpu.matmul %933, %753, %cst_229 {dimension_numbers = #tpu.dot_dimension_numbers<[1], [0], [0], [1], [0, 0, 1, 1], [], []>} : vector<8x64xf32>, vector<64x128xf32>, vector<8x128xf32> -> vector<8x128xf32>
    %935 = vector.broadcast %755 : vector<1x128xf32> to vector<8x128xf32>
    %936 = arith.addf %934, %935 : vector<8x128xf32>
    %937 = arith.negf %936 : vector<8x128xf32>
    %938 = math.exp %937 : vector<8x128xf32>
    %cst_230 = arith.constant 1.000000e+00 : f32
    %939 = vector.broadcast %cst_230 : f32 to vector<8x128xf32>
    %940 = arith.addf %939, %938 : vector<8x128xf32>
    %941 = arith.divf %939, %940 : vector<8x128xf32>
    %942 = math.tanh %936 : vector<8x128xf32>
    %943 = vector.extract_strided_slice %941 {offsets = [0, 0], sizes = [8, 32], strides = [1, 1]} : vector<8x128xf32> to vector<8x32xf32>
    %944 = vector.extract_strided_slice %941 {offsets = [0, 32], sizes = [8, 32], strides = [1, 1]} : vector<8x128xf32> to vector<8x32xf32>
    %945 = vector.extract_strided_slice %941 {offsets = [0, 96], sizes = [8, 32], strides = [1, 1]} : vector<8x128xf32> to vector<8x32xf32>
    %946 = vector.extract_strided_slice %942 {offsets = [0, 64], sizes = [8, 32], strides = [1, 1]} : vector<8x128xf32> to vector<8x32xf32>
    %947 = arith.mulf %944, %909 : vector<8x32xf32>
    %948 = arith.mulf %943, %946 : vector<8x32xf32>
    %949 = arith.addf %947, %948 : vector<8x32xf32>
    %950 = math.tanh %949 : vector<8x32xf32>
    %951 = arith.mulf %945, %950 : vector<8x32xf32>
    %952 = arith.index_cast %c4_i32_226 : i32 to index
    %c0_231 = arith.constant 0 : index
    %c0_232 = arith.constant 0 : index
    %953 = vector.load %arg25[%952, %c0_231, %c0_232] : memref<8x8x32xf32, #tpu.memory_space<vmem>>, vector<1x8x32xf32>
    %954 = vector.shape_cast %953 : vector<1x8x32xf32> to vector<8x32xf32>
    %955 = vector.shape_cast %951 : vector<8x32xf32> to vector<1x8x32xf32>
    tpu.vector_store %arg25[%952, %c0_231, %c0_232], %955 {strides = array<i32>} : memref<8x8x32xf32, #tpu.memory_space<vmem>>, vector<1x8x32xf32>,
    %c5_i32_233 = arith.constant 5 : i32
    %cst_234 = arith.constant dense<0.000000e+00> : vector<8x128xf32>
    %956 = tpu.matmul %932, %751, %cst_234 {dimension_numbers = #tpu.dot_dimension_numbers<[1], [0], [0], [1], [0, 0, 1, 1], [], []>} : vector<8x32xf32>, vector<32x128xf32>, vector<8x128xf32> -> vector<8x128xf32>
    %957 = arith.addf %750, %956 : vector<8x128xf32>
    %958 = arith.negf %957 : vector<8x128xf32>
    %959 = math.exp %958 : vector<8x128xf32>
    %cst_235 = arith.constant 1.000000e+00 : f32
    %960 = vector.broadcast %cst_235 : f32 to vector<8x128xf32>
    %961 = arith.addf %960, %959 : vector<8x128xf32>
    %962 = arith.divf %960, %961 : vector<8x128xf32>
    %963 = math.tanh %957 : vector<8x128xf32>
    %964 = vector.extract_strided_slice %962 {offsets = [0, 0], sizes = [8, 32], strides = [1, 1]} : vector<8x128xf32> to vector<8x32xf32>
    %965 = vector.extract_strided_slice %962 {offsets = [0, 32], sizes = [8, 32], strides = [1, 1]} : vector<8x128xf32> to vector<8x32xf32>
    %966 = vector.extract_strided_slice %962 {offsets = [0, 96], sizes = [8, 32], strides = [1, 1]} : vector<8x128xf32> to vector<8x32xf32>
    %967 = vector.extract_strided_slice %963 {offsets = [0, 64], sizes = [8, 32], strides = [1, 1]} : vector<8x128xf32> to vector<8x32xf32>
    %968 = arith.mulf %965, %930 : vector<8x32xf32>
    %969 = arith.mulf %964, %967 : vector<8x32xf32>
    %970 = arith.addf %968, %969 : vector<8x32xf32>
    %971 = math.tanh %970 : vector<8x32xf32>
    %972 = arith.mulf %966, %971 : vector<8x32xf32>
    %973 = tpu.concatenate %972, %951 in 1 : vector<8x32xf32>, vector<8x32xf32> -> vector<8x64xf32>
    %cst_236 = arith.constant dense<0.000000e+00> : vector<8x128xf32>
    %974 = tpu.matmul %973, %753, %cst_236 {dimension_numbers = #tpu.dot_dimension_numbers<[1], [0], [0], [1], [0, 0, 1, 1], [], []>} : vector<8x64xf32>, vector<64x128xf32>, vector<8x128xf32> -> vector<8x128xf32>
    %975 = vector.broadcast %755 : vector<1x128xf32> to vector<8x128xf32>
    %976 = arith.addf %974, %975 : vector<8x128xf32>
    %977 = arith.negf %976 : vector<8x128xf32>
    %978 = math.exp %977 : vector<8x128xf32>
    %cst_237 = arith.constant 1.000000e+00 : f32
    %979 = vector.broadcast %cst_237 : f32 to vector<8x128xf32>
    %980 = arith.addf %979, %978 : vector<8x128xf32>
    %981 = arith.divf %979, %980 : vector<8x128xf32>
    %982 = math.tanh %976 : vector<8x128xf32>
    %983 = vector.extract_strided_slice %981 {offsets = [0, 0], sizes = [8, 32], strides = [1, 1]} : vector<8x128xf32> to vector<8x32xf32>
    %984 = vector.extract_strided_slice %981 {offsets = [0, 32], sizes = [8, 32], strides = [1, 1]} : vector<8x128xf32> to vector<8x32xf32>
    %985 = vector.extract_strided_slice %981 {offsets = [0, 96], sizes = [8, 32], strides = [1, 1]} : vector<8x128xf32> to vector<8x32xf32>
    %986 = vector.extract_strided_slice %982 {offsets = [0, 64], sizes = [8, 32], strides = [1, 1]} : vector<8x128xf32> to vector<8x32xf32>
    %987 = arith.mulf %984, %949 : vector<8x32xf32>
    %988 = arith.mulf %983, %986 : vector<8x32xf32>
    %989 = arith.addf %987, %988 : vector<8x32xf32>
    %990 = math.tanh %989 : vector<8x32xf32>
    %991 = arith.mulf %985, %990 : vector<8x32xf32>
    %992 = arith.index_cast %c5_i32_233 : i32 to index
    %c0_238 = arith.constant 0 : index
    %c0_239 = arith.constant 0 : index
    %993 = vector.load %arg25[%992, %c0_238, %c0_239] : memref<8x8x32xf32, #tpu.memory_space<vmem>>, vector<1x8x32xf32>
    %994 = vector.shape_cast %993 : vector<1x8x32xf32> to vector<8x32xf32>
    %995 = vector.shape_cast %991 : vector<8x32xf32> to vector<1x8x32xf32>
    tpu.vector_store %arg25[%992, %c0_238, %c0_239], %995 {strides = array<i32>} : memref<8x8x32xf32, #tpu.memory_space<vmem>>, vector<1x8x32xf32>,
    %c6_i32_240 = arith.constant 6 : i32
    %cst_241 = arith.constant dense<0.000000e+00> : vector<8x128xf32>
    %996 = tpu.matmul %972, %751, %cst_241 {dimension_numbers = #tpu.dot_dimension_numbers<[1], [0], [0], [1], [0, 0, 1, 1], [], []>} : vector<8x32xf32>, vector<32x128xf32>, vector<8x128xf32> -> vector<8x128xf32>
    %997 = arith.addf %750, %996 : vector<8x128xf32>
    %998 = arith.negf %997 : vector<8x128xf32>
    %999 = math.exp %998 : vector<8x128xf32>
    %cst_242 = arith.constant 1.000000e+00 : f32
    %1000 = vector.broadcast %cst_242 : f32 to vector<8x128xf32>
    %1001 = arith.addf %1000, %999 : vector<8x128xf32>
    %1002 = arith.divf %1000, %1001 : vector<8x128xf32>
    %1003 = math.tanh %997 : vector<8x128xf32>
    %1004 = vector.extract_strided_slice %1002 {offsets = [0, 0], sizes = [8, 32], strides = [1, 1]} : vector<8x128xf32> to vector<8x32xf32>
    %1005 = vector.extract_strided_slice %1002 {offsets = [0, 32], sizes = [8, 32], strides = [1, 1]} : vector<8x128xf32> to vector<8x32xf32>
    %1006 = vector.extract_strided_slice %1002 {offsets = [0, 96], sizes = [8, 32], strides = [1, 1]} : vector<8x128xf32> to vector<8x32xf32>
    %1007 = vector.extract_strided_slice %1003 {offsets = [0, 64], sizes = [8, 32], strides = [1, 1]} : vector<8x128xf32> to vector<8x32xf32>
    %1008 = arith.mulf %1005, %970 : vector<8x32xf32>
    %1009 = arith.mulf %1004, %1007 : vector<8x32xf32>
    %1010 = arith.addf %1008, %1009 : vector<8x32xf32>
    %1011 = math.tanh %1010 : vector<8x32xf32>
    %1012 = arith.mulf %1006, %1011 : vector<8x32xf32>
    %1013 = tpu.concatenate %1012, %991 in 1 : vector<8x32xf32>, vector<8x32xf32> -> vector<8x64xf32>
    %cst_243 = arith.constant dense<0.000000e+00> : vector<8x128xf32>
    %1014 = tpu.matmul %1013, %753, %cst_243 {dimension_numbers = #tpu.dot_dimension_numbers<[1], [0], [0], [1], [0, 0, 1, 1], [], []>} : vector<8x64xf32>, vector<64x128xf32>, vector<8x128xf32> -> vector<8x128xf32>
    %1015 = vector.broadcast %755 : vector<1x128xf32> to vector<8x128xf32>
    %1016 = arith.addf %1014, %1015 : vector<8x128xf32>
    %1017 = arith.negf %1016 : vector<8x128xf32>
    %1018 = math.exp %1017 : vector<8x128xf32>
    %cst_244 = arith.constant 1.000000e+00 : f32
    %1019 = vector.broadcast %cst_244 : f32 to vector<8x128xf32>
    %1020 = arith.addf %1019, %1018 : vector<8x128xf32>
    %1021 = arith.divf %1019, %1020 : vector<8x128xf32>
    %1022 = math.tanh %1016 : vector<8x128xf32>
    %1023 = vector.extract_strided_slice %1021 {offsets = [0, 0], sizes = [8, 32], strides = [1, 1]} : vector<8x128xf32> to vector<8x32xf32>
    %1024 = vector.extract_strided_slice %1021 {offsets = [0, 32], sizes = [8, 32], strides = [1, 1]} : vector<8x128xf32> to vector<8x32xf32>
    %1025 = vector.extract_strided_slice %1021 {offsets = [0, 96], sizes = [8, 32], strides = [1, 1]} : vector<8x128xf32> to vector<8x32xf32>
    %1026 = vector.extract_strided_slice %1022 {offsets = [0, 64], sizes = [8, 32], strides = [1, 1]} : vector<8x128xf32> to vector<8x32xf32>
    %1027 = arith.mulf %1024, %989 : vector<8x32xf32>
    %1028 = arith.mulf %1023, %1026 : vector<8x32xf32>
    %1029 = arith.addf %1027, %1028 : vector<8x32xf32>
    %1030 = math.tanh %1029 : vector<8x32xf32>
    %1031 = arith.mulf %1025, %1030 : vector<8x32xf32>
    %1032 = arith.index_cast %c6_i32_240 : i32 to index
    %c0_245 = arith.constant 0 : index
    %c0_246 = arith.constant 0 : index
    %1033 = vector.load %arg25[%1032, %c0_245, %c0_246] : memref<8x8x32xf32, #tpu.memory_space<vmem>>, vector<1x8x32xf32>
    %1034 = vector.shape_cast %1033 : vector<1x8x32xf32> to vector<8x32xf32>
    %1035 = vector.shape_cast %1031 : vector<8x32xf32> to vector<1x8x32xf32>
    tpu.vector_store %arg25[%1032, %c0_245, %c0_246], %1035 {strides = array<i32>} : memref<8x8x32xf32, #tpu.memory_space<vmem>>, vector<1x8x32xf32>,
    %c7_i32_247 = arith.constant 7 : i32
    %cst_248 = arith.constant dense<0.000000e+00> : vector<8x128xf32>
    %1036 = tpu.matmul %1012, %751, %cst_248 {dimension_numbers = #tpu.dot_dimension_numbers<[1], [0], [0], [1], [0, 0, 1, 1], [], []>} : vector<8x32xf32>, vector<32x128xf32>, vector<8x128xf32> -> vector<8x128xf32>
    %1037 = arith.addf %750, %1036 : vector<8x128xf32>
    %1038 = arith.negf %1037 : vector<8x128xf32>
    %1039 = math.exp %1038 : vector<8x128xf32>
    %cst_249 = arith.constant 1.000000e+00 : f32
    %1040 = vector.broadcast %cst_249 : f32 to vector<8x128xf32>
    %1041 = arith.addf %1040, %1039 : vector<8x128xf32>
    %1042 = arith.divf %1040, %1041 : vector<8x128xf32>
    %1043 = math.tanh %1037 : vector<8x128xf32>
    %1044 = vector.extract_strided_slice %1042 {offsets = [0, 0], sizes = [8, 32], strides = [1, 1]} : vector<8x128xf32> to vector<8x32xf32>
    %1045 = vector.extract_strided_slice %1042 {offsets = [0, 32], sizes = [8, 32], strides = [1, 1]} : vector<8x128xf32> to vector<8x32xf32>
    %1046 = vector.extract_strided_slice %1042 {offsets = [0, 96], sizes = [8, 32], strides = [1, 1]} : vector<8x128xf32> to vector<8x32xf32>
    %1047 = vector.extract_strided_slice %1043 {offsets = [0, 64], sizes = [8, 32], strides = [1, 1]} : vector<8x128xf32> to vector<8x32xf32>
    %1048 = arith.mulf %1045, %1010 : vector<8x32xf32>
    %1049 = arith.mulf %1044, %1047 : vector<8x32xf32>
    %1050 = arith.addf %1048, %1049 : vector<8x32xf32>
    %1051 = math.tanh %1050 : vector<8x32xf32>
    %1052 = arith.mulf %1046, %1051 : vector<8x32xf32>
    %1053 = tpu.concatenate %1052, %1031 in 1 : vector<8x32xf32>, vector<8x32xf32> -> vector<8x64xf32>
    %cst_250 = arith.constant dense<0.000000e+00> : vector<8x128xf32>
    %1054 = tpu.matmul %1053, %753, %cst_250 {dimension_numbers = #tpu.dot_dimension_numbers<[1], [0], [0], [1], [0, 0, 1, 1], [], []>} : vector<8x64xf32>, vector<64x128xf32>, vector<8x128xf32> -> vector<8x128xf32>
    %1055 = vector.broadcast %755 : vector<1x128xf32> to vector<8x128xf32>
    %1056 = arith.addf %1054, %1055 : vector<8x128xf32>
    %1057 = arith.negf %1056 : vector<8x128xf32>
    %1058 = math.exp %1057 : vector<8x128xf32>
    %cst_251 = arith.constant 1.000000e+00 : f32
    %1059 = vector.broadcast %cst_251 : f32 to vector<8x128xf32>
    %1060 = arith.addf %1059, %1058 : vector<8x128xf32>
    %1061 = arith.divf %1059, %1060 : vector<8x128xf32>
    %1062 = math.tanh %1056 : vector<8x128xf32>
    %1063 = vector.extract_strided_slice %1061 {offsets = [0, 0], sizes = [8, 32], strides = [1, 1]} : vector<8x128xf32> to vector<8x32xf32>
    %1064 = vector.extract_strided_slice %1061 {offsets = [0, 32], sizes = [8, 32], strides = [1, 1]} : vector<8x128xf32> to vector<8x32xf32>
    %1065 = vector.extract_strided_slice %1061 {offsets = [0, 96], sizes = [8, 32], strides = [1, 1]} : vector<8x128xf32> to vector<8x32xf32>
    %1066 = vector.extract_strided_slice %1062 {offsets = [0, 64], sizes = [8, 32], strides = [1, 1]} : vector<8x128xf32> to vector<8x32xf32>
    %1067 = arith.mulf %1064, %1029 : vector<8x32xf32>
    %1068 = arith.mulf %1063, %1066 : vector<8x32xf32>
    %1069 = arith.addf %1067, %1068 : vector<8x32xf32>
    %1070 = math.tanh %1069 : vector<8x32xf32>
    %1071 = arith.mulf %1065, %1070 : vector<8x32xf32>
    %1072 = arith.index_cast %c7_i32_247 : i32 to index
    %c0_252 = arith.constant 0 : index
    %c0_253 = arith.constant 0 : index
    %1073 = vector.load %arg25[%1072, %c0_252, %c0_253] : memref<8x8x32xf32, #tpu.memory_space<vmem>>, vector<1x8x32xf32>
    %1074 = vector.shape_cast %1073 : vector<1x8x32xf32> to vector<8x32xf32>
    %1075 = vector.shape_cast %1071 : vector<8x32xf32> to vector<1x8x32xf32>
    tpu.vector_store %arg25[%1072, %c0_252, %c0_253], %1075 {strides = array<i32>} : memref<8x8x32xf32, #tpu.memory_space<vmem>>, vector<1x8x32xf32>,
    %c8_i32_254 = arith.constant 8 : i32
    %c0_255 = arith.constant 0 : index
    %c0_256 = arith.constant 0 : index
    %c0_257 = arith.constant 0 : index
    %1076 = vector.load %arg25[%c0_255, %c0_256, %c0_257] : memref<8x8x32xf32, #tpu.memory_space<vmem>>, vector<8x8x32xf32>
    %1077 = vector.shape_cast %1076 : vector<8x8x32xf32> to vector<64x32xf32>
    %c0_258 = arith.constant 0 : index
    %c0_259 = arith.constant 0 : index
    %1078 = vector.load %arg19[%c0_258, %c0_259] : memref<32x4xf32, #tpu.memory_space<vmem>>, vector<32x4xf32>
    %cst_260 = arith.constant dense<0.000000e+00> : vector<64x4xf32>
    %1079 = tpu.matmul %1077, %1078, %cst_260 {dimension_numbers = #tpu.dot_dimension_numbers<[1], [0], [0], [1], [0, 0, 1, 1], [], []>} : vector<64x32xf32>, vector<32x4xf32>, vector<64x4xf32> -> vector<64x4xf32>
    %c0_261 = arith.constant 0 : index
    %c0_262 = arith.constant 0 : index
    %1080 = vector.load %arg20[%c0_261, %c0_262] : memref<1x4xf32, #tpu.memory_space<vmem>>, vector<1x4xf32>
    %1081 = vector.broadcast %1080 : vector<1x4xf32> to vector<64x4xf32>
    %1082 = arith.addf %1079, %1081 : vector<64x4xf32>
    %1083 = vector.shape_cast %1082 : vector<64x4xf32> to vector<8x8x4xf32>
    %1084 = vector.extract_strided_slice %1083 {offsets = [0, 0, 0], sizes = [1, 8, 4], strides = [1, 1, 1]} : vector<8x8x4xf32> to vector<1x8x4xf32>
    %1085 = vector.shape_cast %1084 : vector<1x8x4xf32> to vector<8x4xf32>
    %c0_263 = arith.constant 0 : index
    %c0_264 = arith.constant 0 : index
    %c0_265 = arith.constant 0 : index
    %1086 = vector.load %arg23[%c0_263, %c0_264, %c0_265] : memref<8x8x4xf32, #tpu.memory_space<vmem>>, vector<8x1x4xf32>
    %1087 = vector.shape_cast %1086 : vector<8x1x4xf32> to vector<8x4xf32>
    %1088 = vector.shape_cast %1085 : vector<8x4xf32> to vector<8x1x4xf32>
    tpu.vector_store %arg23[%c0_263, %c0_264, %c0_265], %1088 {strides = array<i32>} : memref<8x8x4xf32, #tpu.memory_space<vmem>>, vector<8x1x4xf32>,
    %1089 = vector.extract_strided_slice %1083 {offsets = [1, 0, 0], sizes = [1, 8, 4], strides = [1, 1, 1]} : vector<8x8x4xf32> to vector<1x8x4xf32>
    %1090 = vector.shape_cast %1089 : vector<1x8x4xf32> to vector<8x4xf32>
    %c0_266 = arith.constant 0 : index
    %c1_267 = arith.constant 1 : index
    %c0_268 = arith.constant 0 : index
    %1091 = vector.load %arg23[%c0_266, %c1_267, %c0_268] : memref<8x8x4xf32, #tpu.memory_space<vmem>>, vector<8x1x4xf32>
    %1092 = vector.shape_cast %1091 : vector<8x1x4xf32> to vector<8x4xf32>
    %1093 = vector.shape_cast %1090 : vector<8x4xf32> to vector<8x1x4xf32>
    tpu.vector_store %arg23[%c0_266, %c1_267, %c0_268], %1093 {strides = array<i32>} : memref<8x8x4xf32, #tpu.memory_space<vmem>>, vector<8x1x4xf32>,
    %1094 = vector.extract_strided_slice %1083 {offsets = [2, 0, 0], sizes = [1, 8, 4], strides = [1, 1, 1]} : vector<8x8x4xf32> to vector<1x8x4xf32>
    %1095 = vector.shape_cast %1094 : vector<1x8x4xf32> to vector<8x4xf32>
    %c0_269 = arith.constant 0 : index
    %c2_270 = arith.constant 2 : index
    %c0_271 = arith.constant 0 : index
    %1096 = vector.load %arg23[%c0_269, %c2_270, %c0_271] : memref<8x8x4xf32, #tpu.memory_space<vmem>>, vector<8x1x4xf32>
    %1097 = vector.shape_cast %1096 : vector<8x1x4xf32> to vector<8x4xf32>
    %1098 = vector.shape_cast %1095 : vector<8x4xf32> to vector<8x1x4xf32>
    tpu.vector_store %arg23[%c0_269, %c2_270, %c0_271], %1098 {strides = array<i32>} : memref<8x8x4xf32, #tpu.memory_space<vmem>>, vector<8x1x4xf32>,
    %1099 = vector.extract_strided_slice %1083 {offsets = [3, 0, 0], sizes = [1, 8, 4], strides = [1, 1, 1]} : vector<8x8x4xf32> to vector<1x8x4xf32>
    %1100 = vector.shape_cast %1099 : vector<1x8x4xf32> to vector<8x4xf32>
    %c0_272 = arith.constant 0 : index
    %c3_273 = arith.constant 3 : index
    %c0_274 = arith.constant 0 : index
    %1101 = vector.load %arg23[%c0_272, %c3_273, %c0_274] : memref<8x8x4xf32, #tpu.memory_space<vmem>>, vector<8x1x4xf32>
    %1102 = vector.shape_cast %1101 : vector<8x1x4xf32> to vector<8x4xf32>
    %1103 = vector.shape_cast %1100 : vector<8x4xf32> to vector<8x1x4xf32>
    tpu.vector_store %arg23[%c0_272, %c3_273, %c0_274], %1103 {strides = array<i32>} : memref<8x8x4xf32, #tpu.memory_space<vmem>>, vector<8x1x4xf32>,
    %1104 = vector.extract_strided_slice %1083 {offsets = [4, 0, 0], sizes = [1, 8, 4], strides = [1, 1, 1]} : vector<8x8x4xf32> to vector<1x8x4xf32>
    %1105 = vector.shape_cast %1104 : vector<1x8x4xf32> to vector<8x4xf32>
    %c0_275 = arith.constant 0 : index
    %c4_276 = arith.constant 4 : index
    %c0_277 = arith.constant 0 : index
    %1106 = vector.load %arg23[%c0_275, %c4_276, %c0_277] : memref<8x8x4xf32, #tpu.memory_space<vmem>>, vector<8x1x4xf32>
    %1107 = vector.shape_cast %1106 : vector<8x1x4xf32> to vector<8x4xf32>
    %1108 = vector.shape_cast %1105 : vector<8x4xf32> to vector<8x1x4xf32>
    tpu.vector_store %arg23[%c0_275, %c4_276, %c0_277], %1108 {strides = array<i32>} : memref<8x8x4xf32, #tpu.memory_space<vmem>>, vector<8x1x4xf32>,
    %1109 = vector.extract_strided_slice %1083 {offsets = [5, 0, 0], sizes = [1, 8, 4], strides = [1, 1, 1]} : vector<8x8x4xf32> to vector<1x8x4xf32>
    %1110 = vector.shape_cast %1109 : vector<1x8x4xf32> to vector<8x4xf32>
    %c0_278 = arith.constant 0 : index
    %c5_279 = arith.constant 5 : index
    %c0_280 = arith.constant 0 : index
    %1111 = vector.load %arg23[%c0_278, %c5_279, %c0_280] : memref<8x8x4xf32, #tpu.memory_space<vmem>>, vector<8x1x4xf32>
    %1112 = vector.shape_cast %1111 : vector<8x1x4xf32> to vector<8x4xf32>
    %1113 = vector.shape_cast %1110 : vector<8x4xf32> to vector<8x1x4xf32>
    tpu.vector_store %arg23[%c0_278, %c5_279, %c0_280], %1113 {strides = array<i32>} : memref<8x8x4xf32, #tpu.memory_space<vmem>>, vector<8x1x4xf32>,
    %1114 = vector.extract_strided_slice %1083 {offsets = [6, 0, 0], sizes = [1, 8, 4], strides = [1, 1, 1]} : vector<8x8x4xf32> to vector<1x8x4xf32>
    %1115 = vector.shape_cast %1114 : vector<1x8x4xf32> to vector<8x4xf32>
    %c0_281 = arith.constant 0 : index
    %c6_282 = arith.constant 6 : index
    %c0_283 = arith.constant 0 : index
    %1116 = vector.load %arg23[%c0_281, %c6_282, %c0_283] : memref<8x8x4xf32, #tpu.memory_space<vmem>>, vector<8x1x4xf32>
    %1117 = vector.shape_cast %1116 : vector<8x1x4xf32> to vector<8x4xf32>
    %1118 = vector.shape_cast %1115 : vector<8x4xf32> to vector<8x1x4xf32>
    tpu.vector_store %arg23[%c0_281, %c6_282, %c0_283], %1118 {strides = array<i32>} : memref<8x8x4xf32, #tpu.memory_space<vmem>>, vector<8x1x4xf32>,
    %1119 = vector.extract_strided_slice %1083 {offsets = [7, 0, 0], sizes = [1, 8, 4], strides = [1, 1, 1]} : vector<8x8x4xf32> to vector<1x8x4xf32>
    %1120 = vector.shape_cast %1119 : vector<1x8x4xf32> to vector<8x4xf32>
    %c0_284 = arith.constant 0 : index
    %c7_285 = arith.constant 7 : index
    %c0_286 = arith.constant 0 : index
    %1121 = vector.load %arg23[%c0_284, %c7_285, %c0_286] : memref<8x8x4xf32, #tpu.memory_space<vmem>>, vector<8x1x4xf32>
    %1122 = vector.shape_cast %1121 : vector<8x1x4xf32> to vector<8x4xf32>
    %1123 = vector.shape_cast %1120 : vector<8x4xf32> to vector<8x1x4xf32>
    tpu.vector_store %arg23[%c0_284, %c7_285, %c0_286], %1123 {strides = array<i32>} : memref<8x8x4xf32, #tpu.memory_space<vmem>>, vector<8x1x4xf32>,
    return
  }
  func.func @transform_0(%arg0: i32) -> (i32, i32, i32) {
    %c0_i32 = arith.constant 0 : i32
    %c0_i32_0 = arith.constant 0 : i32
    %c0_i32_1 = arith.constant 0 : i32
    return %arg0, %c0_i32, %c0_i32_0 : i32, i32, i32
  }
  func.func @transform_1(%arg0: i32) -> (i32, i32) {
    %c0_i32 = arith.constant 0 : i32
    %c0_i32_0 = arith.constant 0 : i32
    %c0_i32_1 = arith.constant 0 : i32
    return %c0_i32, %c0_i32_0 : i32, i32
  }
  func.func @transform_2(%arg0: i32) -> (i32, i32) {
    %c0_i32 = arith.constant 0 : i32
    %c0_i32_0 = arith.constant 0 : i32
    %c0_i32_1 = arith.constant 0 : i32
    return %c0_i32, %c0_i32_0 : i32, i32
  }
  func.func @transform_3(%arg0: i32) -> (i32, i32) {
    %c0_i32 = arith.constant 0 : i32
    %c0_i32_0 = arith.constant 0 : i32
    %c0_i32_1 = arith.constant 0 : i32
    return %c0_i32, %c0_i32_0 : i32, i32
  }
  func.func @transform_4(%arg0: i32) -> (i32, i32, i32) {
    %c0_i32 = arith.constant 0 : i32
    %c0_i32_0 = arith.constant 0 : i32
    %c0_i32_1 = arith.constant 0 : i32
    %c0_i32_2 = arith.constant 0 : i32
    return %c0_i32, %c0_i32_0, %c0_i32_1 : i32, i32, i32
  }
  func.func @transform_5(%arg0: i32) -> (i32, i32, i32) {
    %c0_i32 = arith.constant 0 : i32
    %c0_i32_0 = arith.constant 0 : i32
    %c0_i32_1 = arith.constant 0 : i32
    %c0_i32_2 = arith.constant 0 : i32
    return %c0_i32, %c0_i32_0, %c0_i32_1 : i32, i32, i32
  }
  func.func @transform_6(%arg0: i32) -> (i32, i32) {
    %c0_i32 = arith.constant 0 : i32
    %c0_i32_0 = arith.constant 0 : i32
    %c0_i32_1 = arith.constant 0 : i32
    return %c0_i32, %c0_i32_0 : i32, i32
  }
  func.func @transform_7(%arg0: i32) -> (i32, i32) {
    %c0_i32 = arith.constant 0 : i32
    %c0_i32_0 = arith.constant 0 : i32
    %c0_i32_1 = arith.constant 0 : i32
    return %c0_i32, %c0_i32_0 : i32, i32
  }
  func.func @transform_8(%arg0: i32) -> (i32, i32) {
    %c0_i32 = arith.constant 0 : i32
    %c0_i32_0 = arith.constant 0 : i32
    %c0_i32_1 = arith.constant 0 : i32
    return %c0_i32, %c0_i32_0 : i32, i32
  }
  func.func @transform_9(%arg0: i32) -> (i32, i32, i32) {
    %c0_i32 = arith.constant 0 : i32
    %c0_i32_0 = arith.constant 0 : i32
    %c0_i32_1 = arith.constant 0 : i32
    %c0_i32_2 = arith.constant 0 : i32
    return %c0_i32, %c0_i32_0, %c0_i32_1 : i32, i32, i32
  }
  func.func @transform_10(%arg0: i32) -> (i32, i32, i32) {
    %c0_i32 = arith.constant 0 : i32
    %c0_i32_0 = arith.constant 0 : i32
    %c0_i32_1 = arith.constant 0 : i32
    %c0_i32_2 = arith.constant 0 : i32
    return %c0_i32, %c0_i32_0, %c0_i32_1 : i32, i32, i32
  }
  func.func @transform_11(%arg0: i32) -> (i32, i32) {
    %c0_i32 = arith.constant 0 : i32
    %c0_i32_0 = arith.constant 0 : i32
    %c0_i32_1 = arith.constant 0 : i32
    return %c0_i32, %c0_i32_0 : i32, i32
  }
  func.func @transform_12(%arg0: i32) -> (i32, i32) {
    %c0_i32 = arith.constant 0 : i32
    %c0_i32_0 = arith.constant 0 : i32
    %c0_i32_1 = arith.constant 0 : i32
    return %c0_i32, %c0_i32_0 : i32, i32
  }
  func.func @transform_13(%arg0: i32) -> (i32, i32) {
    %c0_i32 = arith.constant 0 : i32
    %c0_i32_0 = arith.constant 0 : i32
    %c0_i32_1 = arith.constant 0 : i32
    return %c0_i32, %c0_i32_0 : i32, i32
  }
  func.func @transform_14(%arg0: i32) -> (i32, i32) {
    %c0_i32 = arith.constant 0 : i32
    %c0_i32_0 = arith.constant 0 : i32
    %c0_i32_1 = arith.constant 0 : i32
    return %c0_i32, %c0_i32_0 : i32, i32
  }
  func.func @transform_15(%arg0: i32) -> (i32, i32) {
    %c0_i32 = arith.constant 0 : i32
    %c0_i32_0 = arith.constant 0 : i32
    %c0_i32_1 = arith.constant 0 : i32
    return %c0_i32, %c0_i32_0 : i32, i32
  }
  func.func @transform_16(%arg0: i32) -> (i32, i32, i32) {
    %c0_i32 = arith.constant 0 : i32
    %c0_i32_0 = arith.constant 0 : i32
    %c0_i32_1 = arith.constant 0 : i32
    %c0_i32_2 = arith.constant 0 : i32
    return %c0_i32, %c0_i32_0, %c0_i32_1 : i32, i32, i32
  }
  func.func @transform_17(%arg0: i32) -> (i32, i32, i32) {
    %c0_i32 = arith.constant 0 : i32
    %c0_i32_0 = arith.constant 0 : i32
    %c0_i32_1 = arith.constant 0 : i32
    %c0_i32_2 = arith.constant 0 : i32
    return %c0_i32, %c0_i32_0, %c0_i32_1 : i32, i32, i32
  }
  func.func @transform_18(%arg0: i32) -> (i32, i32) {
    %c0_i32 = arith.constant 0 : i32
    %c0_i32_0 = arith.constant 0 : i32
    %c0_i32_1 = arith.constant 0 : i32
    return %c0_i32, %c0_i32_0 : i32, i32
  }
  func.func @transform_19(%arg0: i32) -> (i32, i32) {
    %c0_i32 = arith.constant 0 : i32
    %c0_i32_0 = arith.constant 0 : i32
    %c0_i32_1 = arith.constant 0 : i32
    return %c0_i32, %c0_i32_0 : i32, i32
  }
  func.func @transform_20(%arg0: i32) -> (i32, i32, i32) {
    %c0_i32 = arith.constant 0 : i32
    %c0_i32_0 = arith.constant 0 : i32
    %c0_i32_1 = arith.constant 0 : i32
    return %arg0, %c0_i32, %c0_i32_0 : i32, i32, i32
  }
  func.func @transform_21(%arg0: i32) -> (i32, i32, i32) {
    %c0_i32 = arith.constant 0 : i32
    %c0_i32_0 = arith.constant 0 : i32
    %c0_i32_1 = arith.constant 0 : i32
    return %arg0, %c0_i32, %c0_i32_0 : i32, i32, i32
  }
  func.func @transform_22(%arg0: i32) -> (i32, i32, i32) {
    %c0_i32 = arith.constant 0 : i32
    %c0_i32_0 = arith.constant 0 : i32
    %c0_i32_1 = arith.constant 0 : i32
    return %arg0, %c0_i32, %c0_i32_0 : i32, i32, i32
  }
}

</mosaic_0001>

<bundles_post_ra>
// kernel: tpu_custom_call.1
= control target key start
LH: loop header
LB: loop body
LE: loop exit
PB: predicated region body
PF: predicated region fallthrough
CT: control target
= control target key end

     0   :  { %s6875_s0 = inlined_call_operand.vmem [shape: f32[8,8,4], index: 0, kind: input, shape index: {}]   ;;  %s6876_s1 = inlined_call_operand.vmem [shape: f32[4,128], index: 1, kind: input, shape index: {}]   ;;  %s6877_s2 = inlined_call_operand.hbm [shape: f32[32,128], index: 2, kind: input, shape index: {}]   ;;  %s6878_s3 = inlined_call_operand.vmem [shape: f32[1,128], index: 3, kind: input, shape index: {}]   ;;  %s6879_s4 = inlined_call_operand.vmem [shape: f32[1,64,128], index: 4, kind: input, shape index: {}]   ;;  %s6880_s5 = inlined_call_operand.vmem [shape: f32[1,1,128], index: 5, kind: input, shape index: {}]   ;;  %s6881_s6 = inlined_call_operand.hbm [shape: f32[32,128], index: 6, kind: input, shape index: {}]   ;;  %s6882_s7 = inlined_call_operand.hbm [shape: f32[32,128], index: 7, kind: input, shape index: {}]   ;;  %s6883_s8 = inlined_call_operand.vmem [shape: f32[1,128], index: 8, kind: input, shape index: {}]   ;;  %s6884_s9 = inlined_call_operand.vmem [shape: f32[1,64,128], index: 9, kind: input, shape index: {}]   ;;  %s6885_s10 = inlined_call_operand.vmem [shape: f32[1,1,128], index: 10, kind: input, shape index: {}]   ;;  %s6886_s11 = inlined_call_operand.vmem [shape: f32[32,4], index: 11, kind: input, shape index: {}]   ;;  %s6887_s12 = inlined_call_operand.vmem [shape: f32[1,4], index: 12, kind: input, shape index: {}]   ;;  %s6888_s13 = inlined_call_operand.hbm [shape: f32[32,128], index: 13, kind: input, shape index: {}]   ;;  %s6889_s14 = inlined_call_operand.hbm [shape: f32[32,128], index: 14, kind: input, shape index: {}]   ;;  %s6890_s15 = inlined_call_operand.vmem [shape: f32[1,128], index: 15, kind: input, shape index: {}]   ;;  %s6891_s16 = inlined_call_operand.hbm [shape: f32[1,64,128], index: 16, kind: input, shape index: {}]   ;;  %s6892_s17 = inlined_call_operand.vmem [shape: f32[1,1,128], index: 17, kind: input, shape index: {}]   ;;  %s6893_s18 = inlined_call_operand.vmem [shape: f32[32,4], index: 18, kind: input, shape index: {}]   ;;  %s6894_s19 = inlined_call_operand.vmem [shape: f32[1,4], index: 19, kind: input, shape index: {}]   ;;  %s6895_s20 = inlined_call_operand.hbm [shape: f32[8,1,32], index: 20, kind: output, shape index: {0}]   ;;  %s6896_s21 = inlined_call_operand.vmem [shape: f32[8,8,4], index: 21, kind: output, shape index: {1}]   ;;  %s6897_s22 = inlined_call_operand.vmem [shape: f32[8,8,4], index: 22, kind: output, shape index: {2}]  }
   0x1   :  { %6901 = sst [smem:[#allocation21_spill]] %s6875_s0 }
   0x2   :  { %6902 = sst [smem:[#allocation22_spill]] %s6876_s1 }
   0x3   :  { %6903 = sst [smem:[#allocation23_spill]] %s6877_s2 }
   0x4   :  { %6904 = sst [smem:[#allocation24_spill]] %s6878_s3 }
   0x5   :  { %6905 = sst [smem:[#allocation25_spill]] %s6879_s4 }
   0x6   :  { %6906 = sst [smem:[#allocation26_spill]] %s6880_s5 }
   0x7   :  { %6907 = sst [smem:[#allocation27_spill]] %s6881_s6 }
   0x8   :  { %28 = vsyncpa [#allocation5], 0 }
   0x9   :  { %29 = vsyncpa [#allocation8], 0 }
   0xa   :  { %30 = vsyncpa [#allocation11], 0 }
   0xb   :  { %31 = vsyncpa [#allocation14], 0 }
   0xc   :  { %32 = vsyncpa [#allocation6], 0  ;;  %s6908_s29 = sld [smem:[#allocation27_spill]]  ;;  %s4965_s4 = smov [#allocation7]  }
   0xd   :  { %s62_s0 = sshll.u32 %s4965_s4, 4  ;;  %s96_s5 = sshll.u32 %s6888_s13, 4  ;;  %s63_s0 = int_to_ptr.vmem [resolvable:$true] %s62_s0  ;;  %s97_s5 = int_to_ptr.hbm [resolvable:$true] %s96_s5 }
   0xe   :  { %s4966_s24 = smov 128   ;;  %s4967_s6 = smov 8  }
   0xf   :  { %s4968_s25 = smov [#allocation10]   ;;  %s6909_s3 = sld [smem:[#allocation23_spill]] }
  0x10   :  { %s98_s26 = sshll.u32 %s4968_s25, 4  ;;  %s73_s4 = sshll.u32 %s6882_s7, 4  ;;  %s99_s26 = int_to_ptr.vmem [resolvable:$true] %s98_s26  ;;  %s74_s4 = int_to_ptr.hbm [resolvable:$true] %s73_s4 }
  0x11   :  { %104 = dma.hbm_to_vmem [thread:$0]  %s97_s5, 512, %s99_s26, [#allocation11], %s4966_s24, %s4966_s24, %s4967_s6  }
  0x12   :  { %s60_s30 = sshll.u32 %s6908_s29, 4  ;;  %s4969_s23 = smov [#allocation4]   ;;  %s61_s30 = int_to_ptr.hbm [resolvable:$true] %s60_s30 }
  0x13   :  { %68 = dma.hbm_to_vmem [thread:$0]  %s61_s30, 512, %s63_s0, [#allocation8], %s4966_s24, %s4966_s24, %s4967_s6  }
  0x14   :  { %s43_s1 = sshll.u32 %s4969_s23, 4  ;;  %s4970_s30 = smov [#allocation9]   ;;  %s44_s1 = int_to_ptr.vmem [resolvable:$true] %s43_s1 }
  0x15   :  { %s41_s28 = sshll.u32 %s6909_s3, 4  ;;  %s75_s0 = sshll.u32 %s4970_s30, 4  ;;  %s42_s28 = int_to_ptr.hbm [resolvable:$true] %s41_s28  ;;  %s76_s0 = int_to_ptr.vmem [resolvable:$true] %s75_s0 }
  0x16   :  { %49 = dma.hbm_to_vmem [thread:$0]  %s42_s28, 512, %s44_s1, [#allocation5], %s4966_s24, %s4966_s24, %s4967_s6  }
  0x17   :  { %s109_s27 = sshll.u32 %s6889_s14, 4  ;;  %s124_s26 = sshll.u32 %s6891_s16, 4  ;;  %s110_s27 = int_to_ptr.hbm [resolvable:$true] %s109_s27  ;;  %s125_s26 = int_to_ptr.hbm [resolvable:$true] %s124_s26 }
  0x18   :  { %81 = dma.hbm_to_vmem [thread:$0]  %s74_s4, 512, %s76_s0, [#allocation8], %s4966_s24, %s4966_s24, %s4967_s6  }
  0x19   :  { %s4971_s3 = smov [#allocation12]   ;;  %s4972_s28 = smov [#allocation13]  }
  0x1a   :  { %s111_s13 = sshll.u32 %s4971_s3, 4  ;;  %s126_s14 = sshll.u32 %s4972_s28, 4  ;;  %s112_s13 = int_to_ptr.vmem [resolvable:$true] %s111_s13  ;;  %s127_s14 = int_to_ptr.vmem [resolvable:$true] %s126_s14 }
  0x1b   :  { %117 = dma.hbm_to_vmem [thread:$0]  %s110_s27, 512, %s112_s13, [#allocation11], %s4966_s24, %s4966_s24, %s4967_s6  }
  0x1c   :  { %132 = dma.hbm_to_vmem [thread:$0]  %s125_s26, 1024, %s127_s14, [#allocation14], %s4966_s24, %s4966_s24, %s4967_s6  }
  0x1d   :  { %4955 = dma.done.wait [#allocation5], 512  }
  0x1e   :  { %4956 = vsyncadd [#allocation5], 4294966784 }
  0x1f   :  { %4957 = dma.done.wait [#allocation8], 1024  }
  0x20   :  { %4958 = vsyncadd [#allocation8], 4294966272 }
  0x21   :  { %4959 = dma.done.wait [#allocation11], 1024  }
  0x22   :  { %4960 = vsyncadd [#allocation11], 4294966272 }
  0x23   :  { %4961 = dma.done.wait [#allocation14], 1024  }
  0x24   :  { %4962 = vsyncadd [#allocation14], 4294966272  ;;  %vm201_vm0 = vcmask 1043456   ;;  %vm176_vm1 = vcmask 31744   ;;  %s6910_s4 = sld [smem:[#allocation22_spill]]  ;;  %v5147_v5 = vld [vmem:[#allocation4 + $0x18] sm:$0xff] }
  0x25   :  { %s6911_s30 = sld [smem:[#allocation21_spill]]  ;;  %v5151_v6 = vld [vmem:[#allocation4 + $0x10] sm:$0xff]  ;;  %384 = vmatpush.msra.mxu1 %v5147_v5  ;;  %v5155_v7 = vld [vmem:[#allocation4 + $0x8] sm:$0xff]  ;;  %v5159_v8 = vld [vmem:[#allocation4] sm:$0xff]  ;;  %v4973_v10 = vmov 0.0   ;;  %vm273_vm2 = vcmask 1047559  }
  0x26   :  { %s6912_s23 = sld [smem:[#allocation24_spill]]  ;;  %vm255_vm3 = vcmask 1041409   ;;  %vm270_vm4 = vcmask 1046534   ;;  %vm267_vm5 = vcmask 1045509   ;;  %vm264_vm6 = vcmask 1044484   ;;  %s4974_s1 = smov 64  }
  0x27   :  { %385 = vmatpush.msra.mxu1 %v5151_v6  ;;  %vm258_vm7 = vcmask 1042434   ;;  %vm261_vm8 = vcmask 1043459   ;;  %s6913_s0 = sld [smem:[#allocation25_spill]]  ;;  %vm368_vm13 = vcmask 261120   ;;  %vm438_vm14 = vcmask 523264   ;;  %s4222_s14 = sshll.u32 %s6895_s20, 4  ;;  %s4223_s14 = int_to_ptr.hbm [resolvable:$true] %s4222_s14 }
  0x28   :  { %s4976_s16 = smov [#allocation15]  }
  0x29   :  { %386 = vmatpush.msra.mxu1 %v5155_v7  ;;  %s4220_s29 = sshll.u32 %s4976_s16, 4  ;;  %s4221_s29 = int_to_ptr.vmem [resolvable:$true] %s4220_s29 }
  0x2a   :  { %v171_v0 = vld [vmem:[%s6910_s4] sm:$0xf]  ;;  %s4977_s4 = smov 16  }
  0x2b   :  { %v163_v1 = vld [vmem:[%s6911_s30] sm:$0xff]  ;;  %4246 = vmatpush.msk.msra.mxu0 %vm201_vm0, %v171_v0  ;;  %4368 = vmatpush.msk.msra.mxu3 %vm201_vm0, %v171_v0  ;;  %v169_v2 = vld [vmem:[%s6911_s30 + $0x30] sm:$0xff]  ;;  %v164_v3 = vld [vmem:[%s6911_s30 + $0x8] sm:$0xff] }
  0x2c   :  { %4247 = vmatmul.msk.f32.vlgmr.msra.gmra.mxu0 %vm176_vm1, %v163_v1  ;;  %4253 = vmatmul.msk.f32.vlgmr.msra.gmra.mxu3 %vm176_vm1, %v169_v2  ;;  %v170_v4 = vld [vmem:[%s6911_s30 + $0x38] sm:$0xff]  ;;  %v165_v9 = vld [vmem:[%s6911_s30 + $0x10] sm:$0xff]  ;;  %v167_v12 = vld [vmem:[%s6911_s30 + $0x20] sm:$0xff] }
  0x2d   :  { %514 = vmatpush.msrb.mxu3 %v5147_v5  ;;  %387 = vmatpush.msra.mxu1 %v5159_v8  ;;  %v166_v11 = vld [vmem:[%s6911_s30 + $0x18] sm:$0xff]  ;;  %v168_v13 = vld [vmem:[%s6911_s30 + $0x28] sm:$0xff]  ;;  %v4387_v14 = vld [vmem:[%s6912_s23] ss:$0 sm:$0xff]  ;;  %s4975_s30 = smov 32   ;;  %s4978_s23 = smov 1  }
  0x2e   :  { %388 = vmatmul.f32.vlgmr.msra.gmra.mxu1 %v4973_v10 }
  0x2f   :  { %515 = vmatpush.msrb.mxu3 %v5151_v6 }
  0x31   :  { %516 = vmatpush.msrb.mxu3 %v5155_v7 }
  0x33   :  { %517 = vmatpush.msrb.mxu3 %v5159_v8 }
  0x34   :  { %4248 = vmatmul.msk.f32.gmra.mxu0 %vm176_vm1, %v164_v3  ;;  %4254 = vmatmul.msk.f32.gmra.mxu3 %vm176_vm1, %v170_v4 }
  0x35   :  { %644 = vmatpush.msra.mxu3 %v5147_v5 }
  0x37   :  { %645 = vmatpush.msra.mxu3 %v5151_v6 }
  0x39   :  { %646 = vmatpush.msra.mxu3 %v5155_v7 }
  0x3b   :  { %647 = vmatpush.msra.mxu3 %v5159_v8 }
  0x3c   :  { %4249 = vmatmul.msk.f32.gmra.mxu0 %vm176_vm1, %v165_v9 }
  0x44   :  { %4250 = vmatmul.msk.f32.gmra.mxu0 %vm176_vm1, %v166_v11 }
  0x4c   :  { %4251 = vmatmul.msk.f32.gmra.mxu0 %vm176_vm1, %v167_v12 }
  0x54   :  { %4252 = vmatmul.msk.f32.gmra.mxu0 %vm176_vm1, %v168_v13 }
  0xa9   :  { %v222_v15 = vpop.f32.mrf.mxu0 }
  0xaa   :  { %v223_v16 = vadd.f32 %v4387_v14, %v222_v15 }
  0xab   :  { %v389_v15 = vpop.f32.mrf.mxu1 }
  0xac   :  { %352 = vst [vmem:[#allocation2 + $0x31] sm:$0x80] %v223_v16 }
  0xaf   :  { %v240_v17 = vpop.f32.mrf.mxu3 }
  0xb0   :  { %v241_v21 = vadd.f32 %v4387_v14, %v240_v17 }
  0xb1   :  { %v225_v18 = vpop.f32.mrf.mxu0 }
  0xb2   :  { %v226_v19 = vadd.f32 %v4387_v14, %v225_v18  ;;  %v5189_v24 = vrot.slane %v241_v21, 2 }
  0xb4   :  { %v254_v20 = vrot.slane %v226_v19, 7 }
  0xb6   :  { %v332_v22 = vsel %vm273_vm2, %v254_v20, %v223_v16  ;;  %v321_v31 = vsel %vm270_vm4, %v254_v20, %v223_v16  ;;  %v310_v36 = vsel %vm267_vm5, %v254_v20, %v223_v16  ;;  %v299_v41 = vsel %vm264_vm6, %v254_v20, %v223_v16 }
  0xb7   :  { %v243_v23 = vpop.f32.mrf.mxu3  ;;  %341 = vst [vmem:[#allocation2 + $0x2a] sm:$0xc0] %v332_v22  ;;  %v256_v46 = vsel %vm255_vm3, %v254_v20, %v223_v16  ;;  %v277_v47 = vsel %vm258_vm7, %v254_v20, %v223_v16  ;;  %v288_v48 = vsel %vm261_vm8, %v254_v20, %v223_v16 }
  0xb8   :  { %v244_v25 = vadd.f32 %v4387_v14, %v243_v23 }
  0xb9   :  { %v228_v26 = vpop.f32.mrf.mxu0 }
  0xba   :  { %v229_v27 = vadd.f32 %v4387_v14, %v228_v26  ;;  %v5191_v28 = vrot.slane %v244_v25, 1 }
  0xbc   :  { %v257_v29 = vrot.slane %v229_v27, 6  ;;  %287 = vst [vmem:[#allocation2 + $0xf] sm:$0x1] %v5191_v28  ;;  %v293_v30 = vsel %vm255_vm3, %v5191_v28, %v5189_v24 }
  0xbd   :  { %298 = vst [vmem:[#allocation2 + $0x16] sm:$0x3] %v293_v30 }
  0xbe   :  { %v322_v32 = vsel %vm273_vm2, %v257_v29, %v321_v31  ;;  %v311_v37 = vsel %vm270_vm4, %v257_v29, %v310_v36  ;;  %v300_v42 = vsel %vm267_vm5, %v257_v29, %v299_v41  ;;  %v259_v49 = vsel %vm258_vm7, %v257_v29, %v256_v46 }
  0xbf   :  { %330 = vst [vmem:[#allocation2 + $0x23] sm:$0xe0] %v322_v32  ;;  %v278_v51 = vsel %vm261_vm8, %v257_v29, %v277_v47  ;;  %v289_v52 = vsel %vm264_vm6, %v257_v29, %v288_v48  ;;  %v343_v53 = vsel %vm255_vm3, %v257_v29, %v254_v20 }
  0xc1   :  { %v231_v33 = vpop.f32.mrf.mxu0 }
  0xc2   :  { %v232_v34 = vadd.f32 %v4387_v14, %v231_v33 }
  0xc4   :  { %v260_v35 = vrot.slane %v232_v34, 5 }
  0xc6   :  { %v312_v38 = vsel %vm273_vm2, %v260_v35, %v311_v37  ;;  %v301_v44 = vsel %vm270_vm4, %v260_v35, %v300_v42  ;;  %v262_v55 = vsel %vm261_vm8, %v260_v35, %v259_v49  ;;  %v279_v56 = vsel %vm264_vm6, %v260_v35, %v278_v51  ;;  %v5266_v49 = vld [vmem:[%s6913_s0 + $0x38] sm:$0xff]  ;;  %v5278_v51 = vld [vmem:[%s6913_s0 + $0x28] sm:$0xff] }
  0xc7   :  { %319 = vst [vmem:[#allocation2 + $0x1c] sm:$0xf0] %v312_v38  ;;  %v290_v57 = vsel %vm267_vm5, %v260_v35, %v289_v52  ;;  %v333_v58 = vsel %vm255_vm3, %v260_v35, %v257_v29  ;;  %v344_v59 = vsel %vm258_vm7, %v260_v35, %v343_v53  ;;  %450 = vmatpush.msra.mxu2 %v5266_v49  ;;  %v5286_v52 = vld [vmem:[%s6913_s0 + $0x20] sm:$0xff]  ;;  %v5294_v53 = vld [vmem:[%s6913_s0 + $0x18] sm:$0xff] }
  0xc8   :  { %580 = vmatpush.msrb.mxu1 %v5266_v49  ;;  %1360 = vmatpush.msrb.mxu0 %v5266_v49 }
  0xc9   :  { %v234_v39 = vpop.f32.mrf.mxu0 }
  0xca   :  { %v235_v40 = vadd.f32 %v4387_v14, %v234_v39 }
  0xcc   :  { %v263_v43 = vrot.slane %v235_v40, 4 }
  0xce   :  { %v302_v45 = vsel %vm273_vm2, %v263_v43, %v301_v44  ;;  %v265_v60 = vsel %vm264_vm6, %v263_v43, %v262_v55  ;;  %v280_v61 = vsel %vm267_vm5, %v263_v43, %v279_v56  ;;  %v291_v63 = vsel %vm270_vm4, %v263_v43, %v290_v57  ;;  %v5310_v55 = vld [vmem:[%s6913_s0 + $0x8] sm:$0xff] }
  0xcf   :  { %308 = vst [vmem:[#allocation2 + $0x15] sm:$0xf8] %v302_v45  ;;  %v323_v0 = vsel %vm255_vm3, %v263_v43, %v260_v35  ;;  %v334_v1 = vsel %vm258_vm7, %v263_v43, %v333_v58  ;;  %v345_v2 = vsel %vm261_vm8, %v263_v43, %v344_v59  ;;  %v5323_v58 = vld [vmem:[%s6913_s0] sm:$0xff] }
  0xd1   :  { %v237_v50 = vpop.f32.mrf.mxu0 }
  0xd2   :  { %v238_v54 = vadd.f32 %v4387_v14, %v237_v50  ;;  %v5271_v50 = vld [vmem:[%s6913_s0 + $0x30] sm:$0xff] }
  0xd3   :  { %451 = vmatpush.msra.mxu2 %v5271_v50  ;;  %581 = vmatpush.msrb.mxu1 %v5271_v50 }
  0xd4   :  { %v266_v62 = vrot.slane %v238_v54, 3  ;;  %1361 = vmatpush.msrb.mxu0 %v5271_v50  ;;  %v5302_v54 = vld [vmem:[%s6913_s0 + $0x10] sm:$0xff]  ;;  %s6914_s0 = sld [smem:[#allocation26_spill]] }
  0xd5   :  { %452 = vmatpush.msra.mxu2 %v5278_v51  ;;  %582 = vmatpush.msrb.mxu1 %v5278_v51 }
  0xd6   :  { %v268_v3 = vsel %vm267_vm5, %v266_v62, %v265_v60  ;;  %v281_v4 = vsel %vm270_vm4, %v266_v62, %v280_v61  ;;  %v292_v9 = vsel %vm273_vm2, %v266_v62, %v291_v63  ;;  %v303_v10 = vsel %vm255_vm3, %v5189_v24, %v266_v62  ;;  %1362 = vmatpush.msrb.mxu0 %v5278_v51 }
  0xd7   :  { %v271_v11 = vsel %vm270_vm4, %v5189_v24, %v268_v3  ;;  %v313_v12 = vsel %vm255_vm3, %v266_v62, %v263_v43  ;;  %v324_v13 = vsel %vm258_vm7, %v266_v62, %v323_v0  ;;  %v335_v14 = vsel %vm261_vm8, %v266_v62, %v334_v1  ;;  %297 = vst [vmem:[#allocation2 + $0xe] sm:$0xfc] %v292_v9 }
  0xd8   :  { %v314_v16 = vsel %vm258_vm7, %v5189_v24, %v313_v12  ;;  %v325_v17 = vsel %vm261_vm8, %v5189_v24, %v324_v13  ;;  %v346_v18 = vsel %vm264_vm6, %v266_v62, %v345_v2  ;;  %v336_v19 = vsel %vm264_vm6, %v5189_v24, %v335_v14  ;;  %453 = vmatpush.msra.mxu2 %v5286_v52 }
  0xd9   :  { %v274_v20 = vsel %vm273_vm2, %v5191_v28, %v271_v11  ;;  %v282_v21 = vsel %vm273_vm2, %v5189_v24, %v281_v4  ;;  %v304_v22 = vsel %vm258_vm7, %v5191_v28, %v303_v10  ;;  %v347_v23 = vsel %vm267_vm5, %v5189_v24, %v346_v18  ;;  %583 = vmatpush.msrb.mxu1 %v5286_v52 }
  0xda   :  { %v392_v25 = vadd.f32 %v389_v15, %v274_v20  ;;  %v315_v26 = vsel %vm261_vm8, %v5191_v28, %v314_v16  ;;  %286 = vst [vmem:[#allocation2 + $0x7] sm:$0xfe] %v282_v21  ;;  %v326_v27 = vsel %vm264_vm6, %v5191_v28, %v325_v17  ;;  %v337_v29 = vsel %vm267_vm5, %v5191_v28, %v336_v19  ;;  %v5362_v0 = vld [vmem:[%s6914_s0] ss:$0 sm:$0xff] }
  0xdb   :  { %309 = vst [vmem:[#allocation2 + $0x1d] sm:$0x7] %v304_v22  ;;  %v348_v30 = vsel %vm270_vm4, %v5191_v28, %v347_v23  ;;  %1363 = vmatpush.msrb.mxu0 %v5286_v52  ;;  %454 = vmatpush.msra.mxu2 %v5294_v53 }
  0xdc   :  { %4395 = vtanh.f32 %v392_v25  ;;  %320 = vst [vmem:[#allocation2 + $0x24] sm:$0xf] %v315_v26  ;;  %v4255_v31 = vmul.f32 -1.442695, %v392_v25  ;;  %584 = vmatpush.msrb.mxu1 %v5294_v53 }
  0xdd   :  { %331 = vst [vmem:[#allocation2 + $0x2b] sm:$0x1f] %v326_v27  ;;  %1364 = vmatpush.msrb.mxu0 %v5294_v53  ;;  %455 = vmatpush.msra.mxu2 %v5302_v54 }
  0xde   :  { %342 = vst [vmem:[#allocation2 + $0x32] sm:$0x3f] %v337_v29  ;;  %4397 = vpow2.f32 %v4255_v31  ;;  %585 = vmatpush.msrb.mxu1 %v5302_v54 }
  0xdf   :  { %353 = vst [vmem:[#allocation2 + $0x39] sm:$0x7f] %v348_v30  ;;  %1365 = vmatpush.msrb.mxu0 %v5302_v54  ;;  %456 = vmatpush.msra.mxu2 %v5310_v55 }
  0xe0   :  { %586 = vmatpush.msrb.mxu1 %v5310_v55 }
  0xe1   :  { %1366 = vmatpush.msrb.mxu0 %v5310_v55  ;;  %457 = vmatpush.msra.mxu2 %v5323_v58  ;;  %v499_v61 = vld [vmem:[#allocation2 + $0x8] sm:$0xff] }
  0xe2   :  { %v4396_v24 = vpop.eup %4395  ;;  %587 = vmatpush.msrb.mxu1 %v5323_v58 }
  0xe3   :  { %415 = vrot.lane.b32.xlu0 %v4396_v24, %s4974_s1  ;;  %710 = vmatpush.msrb.mxu2 %v5266_v49 }
  0xe4   :  { %v4398_v32 = vpop.eup %4397  ;;  %840 = vmatpush.msra.mxu1 %v5266_v49  ;;  %1367 = vmatpush.msrb.mxu0 %v5323_v58 }
  0xe5   :  { %v396_v33 = vadd.f32 1.0, %v4398_v32  ;;  %711 = vmatpush.msrb.mxu2 %v5271_v50 }
  0xe6   :  { %841 = vmatpush.msra.mxu1 %v5271_v50 }
  0xe7   :  { %4399 = vrcp.f32 %v396_v33  ;;  %v408_v39 = vand.u32 2147483648, %v396_v33  ;;  %vm402_vm10 = vweird.f32 %v396_v33  ;;  %v406_v28 = vand.u32 2147483647, %v396_v33  ;;  %712 = vmatpush.msrb.mxu2 %v5278_v51 }
  0xe8   :  { %842 = vmatpush.msra.mxu1 %v5278_v51 }
  0xe9   :  { %v409_v41 = vor.u32 1.1754944e-38, %v408_v39  ;;  %vm407_vm12 = vcmp.eq.f32.partialorder %v406_v28, 8.507059e+37  ;;  %713 = vmatpush.msrb.mxu2 %v5286_v52 }
  0xea   :  { %843 = vmatpush.msra.mxu1 %v5286_v52 }
  0xeb   :  { %714 = vmatpush.msrb.mxu2 %v5294_v53 }
  0xec   :  { %844 = vmatpush.msra.mxu1 %v5294_v53 }
  0xed   :  { %v4400_v34 = vpop.eup %4399  ;;  %715 = vmatpush.msrb.mxu2 %v5302_v54 }
  0xee   :  { %v398_v35 = vmul.f32 %v4400_v34, %v396_v33  ;;  %vm403_vm9 = vweird.f32 %v4400_v34  ;;  %845 = vmatpush.msra.mxu1 %v5302_v54 }
  0xef   :  { %vm404_vm11 = vmor %vm402_vm10, %vm403_vm9  ;;  %716 = vmatpush.msrb.mxu2 %v5310_v55 }
  0xf0   :  { %v399_v36 = vsub.f32 1.0, %v398_v35  ;;  %846 = vmatpush.msra.mxu1 %v5310_v55 }
  0xf1   :  { %717 = vmatpush.msrb.mxu2 %v5323_v58 }
  0xf2   :  { %v400_v37 = vmul.f32 %v4400_v34, %v399_v36  ;;  %847 = vmatpush.msra.mxu1 %v5323_v58 }
  0xf4   :  { %v401_v38 = vadd.f32 %v4400_v34, %v400_v37 }
  0xf6   :  { %v405_v40 = vsel %vm404_vm11, %v4400_v34, %v401_v38 }
  0xf7   :  { %v410_v43 = vsel %vm407_vm12, %v409_v41, %v405_v40 }
  0xf8   :  { %v413_v45 = vmul.f32 0.0, %v410_v43 }
 0x155   :  { %v416_v42 = vpop.permute.xlu0 %415 }
 0x156   :  { %v418_v44 = vmul.f32 %v416_v42, %v410_v43 }
 0x158   :  { %420 = vrot.lane.b32.xlu0 %v418_v44, %s4975_s30 }
 0x1ca   :  { %v421_v46 = vpop.permute.xlu0 %420 }
 0x1cb   :  { %v5259_v47 = vadd.f32 %v421_v46, %v413_v45 }
 0x1cd   :  { %4401 = vtanh.f32 %v5259_v47 }
 0x1d3   :  { %v4402_v48 = vpop.eup %4401 }
 0x1d4   :  { %426 = vrot.lane.b32.xlu1 %v4402_v48, %s4974_s1 }
 0x246   :  { %v427_v56 = vpop.permute.xlu1 %426 }
 0x247   :  { %v429_v57 = vmul.f32 %v427_v56, %v410_v43 }
 0x249   :  { %431 = vrot.lane.b32.xlu1 %v429_v57, %s4975_s30 }
 0x2bb   :  { %v432_v59 = vpop.permute.xlu1 %431 }
 0x2bc   :  { %4258 = vmatmul.msk.f32.vlgmr.msrb.gmra.mxu3 %vm368_vm13, %v432_v59  ;;  %v434_v60 = vsel %vm368_vm13, %v432_v59, 0.0 }
 0x2bd   :  { %4256 = vmatmul.msk.f32.vlgmr.msra.gmra.mxu2 %vm438_vm14, %v434_v60  ;;  %774 = vmatpush.msrb.mxu3 %v5147_v5 }
 0x2be   :  { %970 = vmatpush.msra.mxu2 %v5266_v49 }
 0x2bf   :  { %775 = vmatpush.msrb.mxu3 %v5151_v6 }
 0x2c0   :  { %971 = vmatpush.msra.mxu2 %v5271_v50 }
 0x2c1   :  { %776 = vmatpush.msrb.mxu3 %v5155_v7 }
 0x2c2   :  { %972 = vmatpush.msra.mxu2 %v5278_v51 }
 0x2c3   :  { %777 = vmatpush.msrb.mxu3 %v5159_v8 }
 0x2c4   :  { %973 = vmatpush.msra.mxu2 %v5286_v52 }
 0x2c6   :  { %974 = vmatpush.msra.mxu2 %v5294_v53 }
 0x2c8   :  { %975 = vmatpush.msra.mxu2 %v5302_v54 }
 0x2ca   :  { %976 = vmatpush.msra.mxu2 %v5310_v55 }
 0x2cc   :  { %977 = vmatpush.msra.mxu2 %v5323_v58 }
 0x33f   :  { %v519_v62 = vpop.f32.mrf.mxu3 }
 0x340   :  { %v522_v63 = vadd.f32 %v519_v62, %v499_v61  ;;  %v459_v1 = vpop.f32.mrf.mxu2  ;;  %v629_v62 = vld [vmem:[#allocation2 + $0x10] sm:$0xff] }
 0x341   :  { %v460_v2 = vadd.f32 %v5362_v0, %v459_v1 }
 0x342   :  { %4403 = vtanh.f32 %v522_v63  ;;  %v4259_v9 = vmul.f32 -1.442695, %v522_v63 }
 0x343   :  { %4405 = vtanh.f32 %v460_v2  ;;  %v4257_v10 = vmul.f32 -1.442695, %v460_v2 }
 0x344   :  { %4407 = vpow2.f32 %v4259_v9 }
 0x345   :  { %4409 = vpow2.f32 %v4257_v10 }
 0x348   :  { %v4404_v3 = vpop.eup %4403 }
 0x349   :  { %545 = vrot.lane.b32.xlu2 %v4404_v3, %s4974_s1  ;;  %v4406_v4 = vpop.eup %4405 }
 0x34a   :  { %v4408_v11 = vpop.eup %4407 }
 0x34b   :  { %v526_v12 = vadd.f32 1.0, %v4408_v11  ;;  %v4410_v13 = vpop.eup %4409 }
 0x34c   :  { %v465_v14 = vadd.f32 1.0, %v4410_v13 }
 0x34d   :  { %4411 = vrcp.f32 %v526_v12  ;;  %v538_v23 = vand.u32 2147483648, %v526_v12  ;;  %vm532_vm0 = vweird.f32 %v526_v12  ;;  %v536_v25 = vand.u32 2147483647, %v526_v12 }
 0x34e   :  { %4413 = vrcp.f32 %v465_v14  ;;  %v477_v33 = vand.u32 2147483648, %v465_v14  ;;  %vm471_vm4 = vweird.f32 %v465_v14  ;;  %v475_v34 = vand.u32 2147483647, %v465_v14 }
 0x34f   :  { %v539_v29 = vor.u32 1.1754944e-38, %v538_v23  ;;  %vm537_vm2 = vcmp.eq.f32.partialorder %v536_v25, 8.507059e+37 }
 0x350   :  { %v478_v36 = vor.u32 1.1754944e-38, %v477_v33  ;;  %vm476_vm6 = vcmp.eq.f32.partialorder %v475_v34, 8.507059e+37 }
 0x351   :  { %484 = vrot.lane.b32.xlu2 %v4406_v4, %s4974_s1 }
 0x353   :  { %v4412_v15 = vpop.eup %4411 }
 0x354   :  { %v528_v16 = vmul.f32 %v4412_v15, %v526_v12  ;;  %v4414_v18 = vpop.eup %4413  ;;  %vm533_vm15 = vweird.f32 %v4412_v15 }
 0x355   :  { %v467_v20 = vmul.f32 %v4414_v18, %v465_v14  ;;  %vm534_vm1 = vmor %vm532_vm0, %vm533_vm15  ;;  %vm472_vm3 = vweird.f32 %v4414_v18 }
 0x356   :  { %v529_v17 = vsub.f32 1.0, %v528_v16  ;;  %vm473_vm5 = vmor %vm471_vm4, %vm472_vm3 }
 0x357   :  { %v468_v22 = vsub.f32 1.0, %v467_v20 }
 0x358   :  { %v530_v19 = vmul.f32 %v4412_v15, %v529_v17 }
 0x359   :  { %v469_v27 = vmul.f32 %v4414_v18, %v468_v22 }
 0x35a   :  { %v531_v21 = vadd.f32 %v4412_v15, %v530_v19 }
 0x35b   :  { %v470_v32 = vadd.f32 %v4414_v18, %v469_v27 }
 0x35c   :  { %v535_v26 = vsel %vm534_vm1, %v4412_v15, %v531_v21 }
 0x35d   :  { %v540_v24 = vsel %vm537_vm2, %v539_v29, %v535_v26  ;;  %v474_v35 = vsel %vm473_vm5, %v4414_v18, %v470_v32 }
 0x35e   :  { %v479_v38 = vsel %vm476_vm6, %v478_v36, %v474_v35  ;;  %v543_v28 = vmul.f32 %v540_v24, %v5259_v47 }
 0x35f   :  { %v482_v42 = vmul.f32 0.0, %v479_v38 }
 0x3a3   :  { %v546_v30 = vpop.permute.xlu2 %545 }
 0x3a4   :  { %v548_v31 = vmul.f32 %v546_v30, %v540_v24 }
 0x3a6   :  { %550 = vrot.lane.b32.xlu0 %v548_v31, %s4975_s30 }
 0x3ab   :  { %v485_v37 = vpop.permute.xlu2 %484 }
 0x3ac   :  { %v487_v39 = vmul.f32 %v485_v37, %v479_v38 }
 0x3ae   :  { %489 = vrot.lane.b32.xlu1 %v487_v39, %s4975_s30 }
 0x418   :  { %v551_v40 = vpop.permute.xlu0 %550 }
 0x419   :  { %v5370_v41 = vadd.f32 %v551_v40, %v543_v28 }
 0x41b   :  { %4415 = vtanh.f32 %v5370_v41 }
 0x420   :  { %v490_v43 = vpop.permute.xlu1 %489 }
 0x421   :  { %v4416_v44 = vpop.eup %4415  ;;  %v5373_v45 = vadd.f32 %v490_v43, %v482_v42 }
 0x422   :  { %556 = vrot.lane.b32.xlu2 %v4416_v44, %s4974_s1 }
 0x423   :  { %4417 = vtanh.f32 %v5373_v45 }
 0x429   :  { %v4418_v46 = vpop.eup %4417 }
 0x42a   :  { %495 = vrot.lane.b32.xlu0 %v4418_v46, %s4974_s1 }
 0x47c   :  { %v557_v48 = vpop.permute.xlu2 %556 }
 0x47d   :  { %v559_v56 = vmul.f32 %v557_v48, %v540_v24 }
 0x47f   :  { %561 = vrot.lane.b32.xlu1 %v559_v56, %s4975_s30 }
 0x49c   :  { %v496_v47 = vpop.permute.xlu0 %495 }
 0x49d   :  { %v498_v57 = vmul.f32 %v496_v47, %v479_v38 }
 0x49f   :  { %565 = vrot.lane.b32.xlu2 %v498_v57, %s4974_s1 }
 0x4f1   :  { %v562_v59 = vpop.permute.xlu1 %561 }
 0x4f2   :  { %4262 = vmatmul.msk.f32.vlgmr.msra.gmra.mxu3 %vm368_vm13, %v562_v59 }
 0x4f3   :  { %904 = vmatpush.msra.mxu3 %v5147_v5 }
 0x4f5   :  { %905 = vmatpush.msra.mxu3 %v5151_v6 }
 0x4f7   :  { %906 = vmatpush.msra.mxu3 %v5155_v7 }
 0x4f9   :  { %v566_v60 = vpop.permute.xlu2 %565  ;;  %907 = vmatpush.msra.mxu3 %v5159_v8 }
 0x4fa   :  { %v568_v61 = vsel %vm368_vm13, %v562_v59, %v566_v60 }
 0x4fb   :  { %4260 = vmatmul.msk.f32.vlgmr.msrb.gmra.mxu1 %vm438_vm14, %v568_v61 }
 0x4fc   :  { %1100 = vmatpush.msrb.mxu1 %v5266_v49 }
 0x4fe   :  { %1101 = vmatpush.msrb.mxu1 %v5271_v50 }
 0x500   :  { %1102 = vmatpush.msrb.mxu1 %v5278_v51 }
 0x502   :  { %1103 = vmatpush.msrb.mxu1 %v5286_v52 }
 0x504   :  { %1104 = vmatpush.msrb.mxu1 %v5294_v53 }
 0x506   :  { %1105 = vmatpush.msrb.mxu1 %v5302_v54 }
 0x508   :  { %1106 = vmatpush.msrb.mxu1 %v5310_v55 }
 0x50a   :  { %1107 = vmatpush.msrb.mxu1 %v5323_v58 }
 0x575   :  { %v649_v63 = vpop.f32.mrf.mxu3 }
 0x576   :  { %v652_v1 = vadd.f32 %v649_v63, %v629_v62  ;;  %v759_v63 = vld [vmem:[#allocation2 + $0x18] sm:$0xff] }
 0x578   :  { %4419 = vtanh.f32 %v652_v1  ;;  %v589_v2 = vpop.f32.mrf.mxu1  ;;  %v4263_v10 = vmul.f32 -1.442695, %v652_v1 }
 0x579   :  { %v590_v3 = vadd.f32 %v5362_v0, %v589_v2 }
 0x57b   :  { %4421 = vtanh.f32 %v590_v3  ;;  %v4261_v11 = vmul.f32 -1.442695, %v590_v3 }
 0x57c   :  { %4423 = vpow2.f32 %v4263_v10 }
 0x57d   :  { %4425 = vpow2.f32 %v4261_v11 }
 0x57e   :  { %v4420_v4 = vpop.eup %4419 }
 0x57f   :  { %675 = vrot.lane.b32.xlu0 %v4420_v4, %s4974_s1 }
 0x581   :  { %v4422_v9 = vpop.eup %4421 }
 0x582   :  { %614 = vrot.lane.b32.xlu1 %v4422_v9, %s4974_s1  ;;  %v4424_v12 = vpop.eup %4423 }
 0x583   :  { %v4426_v13 = vpop.eup %4425  ;;  %v656_v14 = vadd.f32 1.0, %v4424_v12 }
 0x584   :  { %v595_v15 = vadd.f32 1.0, %v4426_v13 }
 0x585   :  { %4427 = vrcp.f32 %v656_v14  ;;  %v668_v26 = vand.u32 2147483648, %v656_v14  ;;  %vm662_vm8 = vweird.f32 %v656_v14  ;;  %v666_v27 = vand.u32 2147483647, %v656_v14 }
 0x586   :  { %4429 = vrcp.f32 %v595_v15  ;;  %v607_v24 = vand.u32 2147483648, %v595_v15  ;;  %vm601_vm11 = vweird.f32 %v595_v15  ;;  %v605_v32 = vand.u32 2147483647, %v595_v15 }
 0x587   :  { %v669_v31 = vor.u32 1.1754944e-38, %v668_v26  ;;  %vm667_vm12 = vcmp.eq.f32.partialorder %v666_v27, 8.507059e+37 }
 0x588   :  { %v608_v37 = vor.u32 1.1754944e-38, %v607_v24  ;;  %vm606_vm0 = vcmp.eq.f32.partialorder %v605_v32, 8.507059e+37 }
 0x58b   :  { %v4428_v16 = vpop.eup %4427 }
 0x58c   :  { %v4430_v17 = vpop.eup %4429  ;;  %v658_v18 = vmul.f32 %v4428_v16, %v656_v14  ;;  %vm663_vm7 = vweird.f32 %v4428_v16 }
 0x58d   :  { %v597_v19 = vmul.f32 %v4430_v17, %v595_v15  ;;  %vm664_vm9 = vmor %vm662_vm8, %vm663_vm7  ;;  %vm602_vm10 = vweird.f32 %v4430_v17 }
 0x58e   :  { %v659_v20 = vsub.f32 1.0, %v658_v18  ;;  %vm603_vm15 = vmor %vm601_vm11, %vm602_vm10 }
 0x58f   :  { %v598_v21 = vsub.f32 1.0, %v597_v19 }
 0x590   :  { %v660_v22 = vmul.f32 %v4428_v16, %v659_v20 }
 0x591   :  { %v599_v23 = vmul.f32 %v4430_v17, %v598_v21 }
 0x592   :  { %v661_v25 = vadd.f32 %v4428_v16, %v660_v22 }
 0x593   :  { %v600_v29 = vadd.f32 %v4430_v17, %v599_v23 }
 0x594   :  { %v665_v30 = vsel %vm664_vm9, %v4428_v16, %v661_v25 }
 0x595   :  { %v670_v33 = vsel %vm667_vm12, %v669_v31, %v665_v30  ;;  %v604_v35 = vsel %vm603_vm15, %v4430_v17, %v600_v29 }
 0x596   :  { %v609_v39 = vsel %vm606_vm0, %v608_v37, %v604_v35  ;;  %v673_v40 = vmul.f32 %v670_v33, %v5370_v41 }
 0x597   :  { %v612_v46 = vmul.f32 %v609_v39, %v5373_v45 }
 0x5f1   :  { %v676_v34 = vpop.permute.xlu0 %675 }
 0x5f2   :  { %v678_v36 = vmul.f32 %v676_v34, %v670_v33 }
 0x5f4   :  { %v615_v38 = vpop.permute.xlu1 %614  ;;  %680 = vrot.lane.b32.xlu2 %v678_v36, %s4975_s30 }
 0x5f5   :  { %v617_v28 = vmul.f32 %v615_v38, %v609_v39 }
 0x5f7   :  { %619 = vrot.lane.b32.xlu0 %v617_v28, %s4975_s30 }
 0x64e   :  { %v681_v42 = vpop.permute.xlu2 %680 }
 0x64f   :  { %v5401_v43 = vadd.f32 %v681_v42, %v673_v40 }
 0x651   :  { %4431 = vtanh.f32 %v5401_v43 }
 0x657   :  { %v4432_v44 = vpop.eup %4431 }
 0x658   :  { %686 = vrot.lane.b32.xlu1 %v4432_v44, %s4974_s1 }
 0x669   :  { %v620_v48 = vpop.permute.xlu0 %619 }
 0x66a   :  { %v5406_v56 = vadd.f32 %v620_v48, %v612_v46 }
 0x66c   :  { %4433 = vtanh.f32 %v5406_v56 }
 0x672   :  { %v4434_v47 = vpop.eup %4433 }
 0x673   :  { %625 = vrot.lane.b32.xlu2 %v4434_v47, %s4974_s1 }
 0x6ca   :  { %v687_v57 = vpop.permute.xlu1 %686 }
 0x6cb   :  { %v689_v41 = vmul.f32 %v687_v57, %v670_v33  ;;  %v889_v57 = vld [vmem:[#allocation2 + $0x20] sm:$0xff] }
 0x6cd   :  { %691 = vrot.lane.b32.xlu0 %v689_v41, %s4975_s30  ;;  %v626_v59 = vpop.permute.xlu2 %625 }
 0x6ce   :  { %v628_v60 = vmul.f32 %v626_v59, %v609_v39 }
 0x6d0   :  { %695 = vrot.lane.b32.xlu1 %v628_v60, %s4974_s1 }
 0x73f   :  { %v692_v61 = vpop.permute.xlu0 %691 }
 0x740   :  { %4266 = vmatmul.msk.f32.vlgmr.msrb.gmra.mxu3 %vm368_vm13, %v692_v61 }
 0x741   :  { %1034 = vmatpush.msrb.mxu3 %v5147_v5 }
 0x742   :  { %v696_v45 = vpop.permute.xlu1 %695 }
 0x743   :  { %v698_v62 = vsel %vm368_vm13, %v692_v61, %v696_v45  ;;  %1035 = vmatpush.msrb.mxu3 %v5151_v6 }
 0x744   :  { %4264 = vmatmul.msk.f32.vlgmr.msrb.gmra.mxu2 %vm438_vm14, %v698_v62 }
 0x745   :  { %1036 = vmatpush.msrb.mxu3 %v5155_v7  ;;  %1230 = vmatpush.msrb.mxu2 %v5266_v49 }
 0x747   :  { %1037 = vmatpush.msrb.mxu3 %v5159_v8  ;;  %1231 = vmatpush.msrb.mxu2 %v5271_v50 }
 0x749   :  { %1232 = vmatpush.msrb.mxu2 %v5278_v51 }
 0x74b   :  { %1233 = vmatpush.msrb.mxu2 %v5286_v52 }
 0x74d   :  { %1234 = vmatpush.msrb.mxu2 %v5294_v53 }
 0x74f   :  { %1235 = vmatpush.msrb.mxu2 %v5302_v54 }
 0x751   :  { %1236 = vmatpush.msrb.mxu2 %v5310_v55 }
 0x753   :  { %1237 = vmatpush.msrb.mxu2 %v5323_v58 }
 0x7c3   :  { %v779_v1 = vpop.f32.mrf.mxu3 }
 0x7c4   :  { %v782_v2 = vadd.f32 %v779_v1, %v759_v63 }
 0x7c6   :  { %4435 = vtanh.f32 %v782_v2  ;;  %v4267_v52 = vmul.f32 -1.442695, %v782_v2 }
 0x7c7   :  { %v719_v49 = vpop.f32.mrf.mxu2 }
 0x7c8   :  { %v720_v3 = vadd.f32 %v5362_v0, %v719_v49 }
 0x7ca   :  { %4437 = vtanh.f32 %v720_v3  ;;  %v4265_v4 = vmul.f32 -1.442695, %v720_v3 }
 0x7cb   :  { %4439 = vpow2.f32 %v4267_v52 }
 0x7cc   :  { %v4436_v50 = vpop.eup %4435 }
 0x7cd   :  { %805 = vrot.lane.b32.xlu2 %v4436_v50, %s4974_s1 }
 0x7d0   :  { %v4438_v51 = vpop.eup %4437 }
 0x7d1   :  { %744 = vrot.lane.b32.xlu0 %v4438_v51, %s4974_s1  ;;  %v4440_v53 = vpop.eup %4439 }
 0x7d2   :  { %v786_v54 = vadd.f32 1.0, %v4440_v53 }
 0x7d4   :  { %4441 = vrcp.f32 %v786_v54  ;;  %v798_v13 = vand.u32 2147483648, %v786_v54  ;;  %vm792_vm2 = vweird.f32 %v786_v54  ;;  %v796_v14 = vand.u32 2147483647, %v786_v54 }
 0x7d5   :  { %4443 = vpow2.f32 %v4265_v4 }
 0x7d6   :  { %v799_v17 = vor.u32 1.1754944e-38, %v798_v13  ;;  %vm797_vm4 = vcmp.eq.f32.partialorder %v796_v14, 8.507059e+37 }
 0x7da   :  { %v4442_v55 = vpop.eup %4441 }
 0x7db   :  { %v788_v58 = vmul.f32 %v4442_v55, %v786_v54  ;;  %v4444_v11 = vpop.eup %4443  ;;  %vm793_vm1 = vweird.f32 %v4442_v55 }
 0x7dc   :  { %v725_v15 = vadd.f32 1.0, %v4444_v11  ;;  %vm794_vm3 = vmor %vm792_vm2, %vm793_vm1 }
 0x7dd   :  { %v789_v9 = vsub.f32 1.0, %v788_v58 }
 0x7de   :  { %4445 = vrcp.f32 %v725_v15  ;;  %v737_v27 = vand.u32 2147483648, %v725_v15  ;;  %vm731_vm6 = vweird.f32 %v725_v15  ;;  %v735_v29 = vand.u32 2147483647, %v725_v15 }
 0x7df   :  { %v790_v10 = vmul.f32 %v4442_v55, %v789_v9 }
 0x7e0   :  { %v738_v24 = vor.u32 1.1754944e-38, %v737_v27  ;;  %vm736_vm8 = vcmp.eq.f32.partialorder %v735_v29, 8.507059e+37 }
 0x7e1   :  { %v791_v12 = vadd.f32 %v4442_v55, %v790_v10 }
 0x7e3   :  { %v795_v16 = vsel %vm794_vm3, %v4442_v55, %v791_v12 }
 0x7e4   :  { %v800_v19 = vsel %vm797_vm4, %v799_v17, %v795_v16  ;;  %v4446_v21 = vpop.eup %4445 }
 0x7e5   :  { %v727_v22 = vmul.f32 %v4446_v21, %v725_v15  ;;  %vm732_vm5 = vweird.f32 %v4446_v21  ;;  %v803_v34 = vmul.f32 %v800_v19, %v5401_v43 }
 0x7e6   :  { %vm733_vm7 = vmor %vm731_vm6, %vm732_vm5 }
 0x7e7   :  { %v728_v23 = vsub.f32 1.0, %v727_v22 }
 0x7e9   :  { %v729_v25 = vmul.f32 %v4446_v21, %v728_v23 }
 0x7eb   :  { %v730_v26 = vadd.f32 %v4446_v21, %v729_v25 }
 0x7ed   :  { %v734_v30 = vsel %vm733_vm7, %v4446_v21, %v730_v26 }
 0x7ee   :  { %v739_v32 = vsel %vm736_vm8, %v738_v24, %v734_v30 }
 0x7ef   :  { %v742_v37 = vmul.f32 %v739_v32, %v5406_v56 }
 0x827   :  { %v806_v18 = vpop.permute.xlu2 %805 }
 0x828   :  { %v808_v20 = vmul.f32 %v806_v18, %v800_v19 }
 0x82a   :  { %810 = vrot.lane.b32.xlu1 %v808_v20, %s4975_s30 }
 0x843   :  { %v745_v31 = vpop.permute.xlu0 %744 }
 0x844   :  { %v747_v33 = vmul.f32 %v745_v31, %v739_v32 }
 0x846   :  { %749 = vrot.lane.b32.xlu2 %v747_v33, %s4975_s30 }
 0x89c   :  { %v811_v35 = vpop.permute.xlu1 %810 }
 0x89d   :  { %v5433_v36 = vadd.f32 %v811_v35, %v803_v34 }
 0x89f   :  { %4447 = vtanh.f32 %v5433_v36 }
 0x8a0   :  { %v750_v38 = vpop.permute.xlu2 %749 }
 0x8a1   :  { %v5437_v39 = vadd.f32 %v750_v38, %v742_v37  ;;  %v4779_v38 = vld [vmem:[#allocation4 + $0x18] sm:$0xff] }
 0x8a3   :  { %4449 = vtanh.f32 %v5437_v39 }
 0x8a5   :  { %v4448_v28 = vpop.eup %4447 }
 0x8a6   :  { %816 = vrot.lane.b32.xlu0 %v4448_v28, %s4974_s1  ;;  %v4781_v28 = vld [vmem:[#allocation4 + $0x8] sm:$0xff] }
 0x8a9   :  { %v4450_v40 = vpop.eup %4449 }
 0x8aa   :  { %755 = vrot.lane.b32.xlu1 %v4450_v40, %s4974_s1  ;;  %v4782_v40 = vld [vmem:[#allocation4] sm:$0xff] }
 0x918   :  { %v817_v42 = vpop.permute.xlu0 %816 }
 0x919   :  { %v819_v43 = vmul.f32 %v817_v42, %v800_v19  ;;  %v1019_v42 = vld [vmem:[#allocation2 + $0x28] sm:$0xff] }
 0x91b   :  { %821 = vrot.lane.b32.xlu2 %v819_v43, %s4975_s30 }
 0x91c   :  { %v756_v44 = vpop.permute.xlu1 %755 }
 0x91d   :  { %v758_v46 = vmul.f32 %v756_v44, %v739_v32 }
 0x91f   :  { %825 = vrot.lane.b32.xlu0 %v758_v46, %s4974_s1 }
 0x975   :  { %v822_v48 = vpop.permute.xlu2 %821 }
 0x976   :  { %4270 = vmatmul.msk.f32.vlgmr.msra.gmra.mxu3 %vm368_vm13, %v822_v48 }
 0x977   :  { %1164 = vmatpush.msra.mxu3 %v5147_v5 }
 0x979   :  { %1165 = vmatpush.msra.mxu3 %v5151_v6 }
 0x97b   :  { %1166 = vmatpush.msra.mxu3 %v5155_v7 }
 0x97d   :  { %1167 = vmatpush.msra.mxu3 %v5159_v8 }
 0x991   :  { %v826_v56 = vpop.permute.xlu0 %825 }
 0x992   :  { %v828_v47 = vsel %vm368_vm13, %v822_v48, %v826_v56 }
 0x993   :  { %4268 = vmatmul.msk.f32.vlgmr.msra.gmra.mxu1 %vm438_vm14, %v828_v47 }
 0x9f9   :  { %v909_v41 = vpop.f32.mrf.mxu3 }
 0x9fa   :  { %v912_v59 = vadd.f32 %v909_v41, %v889_v57 }
 0x9fc   :  { %4451 = vtanh.f32 %v912_v59  ;;  %v4271_v8 = vmul.f32 -1.442695, %v912_v59 }
 0xa02   :  { %v4452_v60 = vpop.eup %4451 }
 0xa03   :  { %935 = vrot.lane.b32.xlu1 %v4452_v60, %s4974_s1 }
 0xa10   :  { %v849_v61 = vpop.f32.mrf.mxu1 }
 0xa11   :  { %v850_v5 = vadd.f32 %v5362_v0, %v849_v61 }
 0xa13   :  { %4453 = vtanh.f32 %v850_v5  ;;  %v4269_v7 = vmul.f32 -1.442695, %v850_v5 }
 0xa15   :  { %4455 = vpow2.f32 %v4269_v7 }
 0xa16   :  { %4457 = vpow2.f32 %v4271_v8 }
 0xa19   :  { %v4454_v6 = vpop.eup %4453 }
 0xa1a   :  { %874 = vrot.lane.b32.xlu2 %v4454_v6, %s4974_s1 }
 0xa1b   :  { %v4456_v45 = vpop.eup %4455 }
 0xa1c   :  { %v4458_v62 = vpop.eup %4457  ;;  %v855_v63 = vadd.f32 1.0, %v4456_v45 }
 0xa1d   :  { %v916_v1 = vadd.f32 1.0, %v4458_v62 }
 0xa1e   :  { %4459 = vrcp.f32 %v855_v63  ;;  %v867_v58 = vand.u32 2147483648, %v855_v63  ;;  %vm861_vm11 = vweird.f32 %v855_v63  ;;  %v865_v9 = vand.u32 2147483647, %v855_v63 }
 0xa1f   :  { %4461 = vrcp.f32 %v916_v1  ;;  %v928_v10 = vand.u32 2147483648, %v916_v1  ;;  %vm922_vm15 = vweird.f32 %v916_v1  ;;  %v926_v11 = vand.u32 2147483647, %v916_v1 }
 0xa20   :  { %v868_v13 = vor.u32 1.1754944e-38, %v867_v58  ;;  %vm866_vm1 = vcmp.eq.f32.partialorder %v865_v9, 8.507059e+37 }
 0xa21   :  { %v929_v15 = vor.u32 1.1754944e-38, %v928_v10  ;;  %vm927_vm2 = vcmp.eq.f32.partialorder %v926_v11, 8.507059e+37 }
 0xa24   :  { %v4460_v2 = vpop.eup %4459 }
 0xa25   :  { %v4462_v49 = vpop.eup %4461  ;;  %v857_v3 = vmul.f32 %v4460_v2, %v855_v63  ;;  %vm862_vm9 = vweird.f32 %v4460_v2 }
 0xa26   :  { %v918_v50 = vmul.f32 %v4462_v49, %v916_v1  ;;  %vm923_vm10 = vweird.f32 %v4462_v49  ;;  %vm863_vm12 = vmor %vm861_vm11, %vm862_vm9 }
 0xa27   :  { %v858_v51 = vsub.f32 1.0, %v857_v3  ;;  %vm924_vm0 = vmor %vm922_vm15, %vm923_vm10 }
 0xa28   :  { %v919_v52 = vsub.f32 1.0, %v918_v50 }
 0xa29   :  { %v859_v53 = vmul.f32 %v4460_v2, %v858_v51 }
 0xa2a   :  { %v920_v54 = vmul.f32 %v4462_v49, %v919_v52 }
 0xa2b   :  { %v860_v55 = vadd.f32 %v4460_v2, %v859_v53 }
 0xa2c   :  { %v921_v4 = vadd.f32 %v4462_v49, %v920_v54 }
 0xa2d   :  { %v864_v12 = vsel %vm863_vm12, %v4460_v2, %v860_v55 }
 0xa2e   :  { %v925_v14 = vsel %vm924_vm0, %v4462_v49, %v921_v4  ;;  %v869_v17 = vsel %vm866_vm1, %v868_v13, %v864_v12 }
 0xa2f   :  { %v930_v19 = vsel %vm927_vm2, %v929_v15, %v925_v14  ;;  %v872_v22 = vmul.f32 %v869_v17, %v5437_v39  ;;  %v4780_v39 = vld [vmem:[#allocation4 + $0x10] sm:$0xff] }
 0xa30   :  { %v933_v25 = vmul.f32 %v930_v19, %v5433_v36 }
 0xa74   :  { %v875_v16 = vpop.permute.xlu2 %874 }
 0xa75   :  { %v877_v18 = vmul.f32 %v875_v16, %v869_v17  ;;  %v936_v20 = vpop.permute.xlu1 %935 }
 0xa76   :  { %v938_v21 = vmul.f32 %v936_v20, %v930_v19 }
 0xa77   :  { %879 = vrot.lane.b32.xlu1 %v877_v18, %s4975_s30 }
 0xa78   :  { %940 = vrot.lane.b32.xlu0 %v938_v21, %s4975_s30 }
 0xae9   :  { %v880_v23 = vpop.permute.xlu1 %879 }
 0xaea   :  { %v5458_v26 = vadd.f32 %v880_v23, %v872_v22  ;;  %v941_v27 = vpop.permute.xlu0 %940 }
 0xaeb   :  { %v5460_v29 = vadd.f32 %v941_v27, %v933_v25 }
 0xaec   :  { %4463 = vtanh.f32 %v5458_v26 }
 0xaed   :  { %4465 = vtanh.f32 %v5460_v29 }
 0xaf2   :  { %v4464_v30 = vpop.eup %4463 }
 0xaf3   :  { %v4466_v24 = vpop.eup %4465  ;;  %885 = vrot.lane.b32.xlu0 %v4464_v30, %s4974_s1 }
 0xaf4   :  { %946 = vrot.lane.b32.xlu2 %v4466_v24, %s4974_s1 }
 0xb4e   :  { %v947_v31 = vpop.permute.xlu2 %946 }
 0xb4f   :  { %v949_v32 = vmul.f32 %v947_v31, %v930_v19 }
 0xb51   :  { %951 = vrot.lane.b32.xlu1 %v949_v32, %s4975_s30 }
 0xb65   :  { %v886_v33 = vpop.permute.xlu0 %885 }
 0xb66   :  { %v888_v34 = vmul.f32 %v886_v33, %v869_v17  ;;  %v1149_v33 = vld [vmem:[#allocation2 + $0x30] sm:$0xff] }
 0xb68   :  { %955 = vrot.lane.b32.xlu2 %v888_v34, %s4974_s1 }
 0xbc2   :  { %v956_v35 = vpop.permute.xlu2 %955 }
 0xbc3   :  { %v952_v36 = vpop.permute.xlu1 %951 }
 0xbc4   :  { %v958_v37 = vsel %vm368_vm13, %v952_v36, %v956_v35  ;;  %4274 = vmatmul.msk.f32.vlgmr.msrb.gmra.mxu3 %vm368_vm13, %v952_v36 }
 0xbc5   :  { %4272 = vmatmul.msk.f32.vlgmr.msra.gmra.mxu2 %vm438_vm14, %v958_v37  ;;  %1294 = vmatpush.msrb.mxu3 %v4779_v38 }
 0xbc7   :  { %1295 = vmatpush.msrb.mxu3 %v4780_v39 }
 0xbc9   :  { %1296 = vmatpush.msrb.mxu3 %v4781_v28 }
 0xbcb   :  { %1297 = vmatpush.msrb.mxu3 %v4782_v40 }
 0xc47   :  { %v1039_v43 = vpop.f32.mrf.mxu3 }
 0xc48   :  { %v1042_v44 = vadd.f32 %v1039_v43, %v1019_v42  ;;  %v979_v46 = vpop.f32.mrf.mxu2 }
 0xc49   :  { %v980_v48 = vadd.f32 %v5362_v0, %v979_v46 }
 0xc4a   :  { %4467 = vtanh.f32 %v1042_v44  ;;  %v4275_v57 = vmul.f32 -1.442695, %v1042_v44 }
 0xc4b   :  { %4469 = vtanh.f32 %v980_v48  ;;  %v4273_v41 = vmul.f32 -1.442695, %v980_v48 }
 0xc4c   :  { %4471 = vpow2.f32 %v4275_v57 }
 0xc4d   :  { %4473 = vpow2.f32 %v4273_v41 }
 0xc50   :  { %v4468_v56 = vpop.eup %4467 }
 0xc51   :  { %v4470_v47 = vpop.eup %4469  ;;  %1065 = vrot.lane.b32.xlu0 %v4468_v56, %s4974_s1 }
 0xc52   :  { %1004 = vrot.lane.b32.xlu1 %v4470_v47, %s4974_s1  ;;  %v4472_v59 = vpop.eup %4471 }
 0xc53   :  { %v4474_v60 = vpop.eup %4473  ;;  %v1046_v61 = vadd.f32 1.0, %v4472_v59 }
 0xc54   :  { %v985_v5 = vadd.f32 1.0, %v4474_v60 }
 0xc55   :  { %4475 = vrcp.f32 %v1046_v61  ;;  %v1058_v3 = vand.u32 2147483648, %v1046_v61  ;;  %vm1052_vm5 = vweird.f32 %v1046_v61  ;;  %v1056_v51 = vand.u32 2147483647, %v1046_v61 }
 0xc56   :  { %4477 = vrcp.f32 %v985_v5  ;;  %v997_v52 = vand.u32 2147483648, %v985_v5  ;;  %vm991_vm7 = vweird.f32 %v985_v5  ;;  %v995_v53 = vand.u32 2147483647, %v985_v5 }
 0xc57   :  { %v1059_v55 = vor.u32 1.1754944e-38, %v1058_v3  ;;  %vm1057_vm9 = vcmp.eq.f32.partialorder %v1056_v51, 8.507059e+37 }
 0xc58   :  { %v998_v4 = vor.u32 1.1754944e-38, %v997_v52  ;;  %vm996_vm10 = vcmp.eq.f32.partialorder %v995_v53, 8.507059e+37 }
 0xc5b   :  { %v4476_v6 = vpop.eup %4475 }
 0xc5c   :  { %v4478_v7 = vpop.eup %4477  ;;  %v1048_v8 = vmul.f32 %v4476_v6, %v1046_v61  ;;  %vm1053_vm3 = vweird.f32 %v4476_v6 }
 0xc5d   :  { %v987_v45 = vmul.f32 %v4478_v7, %v985_v5  ;;  %vm992_vm4 = vweird.f32 %v4478_v7  ;;  %vm1054_vm6 = vmor %vm1052_vm5, %vm1053_vm3 }
 0xc5e   :  { %v1049_v62 = vsub.f32 1.0, %v1048_v8  ;;  %vm993_vm8 = vmor %vm991_vm7, %vm992_vm4 }
 0xc5f   :  { %v988_v63 = vsub.f32 1.0, %v987_v45 }
 0xc60   :  { %v1050_v1 = vmul.f32 %v4476_v6, %v1049_v62 }
 0xc61   :  { %v989_v2 = vmul.f32 %v4478_v7, %v988_v63 }
 0xc62   :  { %v1051_v49 = vadd.f32 %v4476_v6, %v1050_v1 }
 0xc63   :  { %v990_v50 = vadd.f32 %v4478_v7, %v989_v2 }
 0xc64   :  { %v1055_v54 = vsel %vm1054_vm6, %v4476_v6, %v1051_v49 }
 0xc65   :  { %v994_v58 = vsel %vm993_vm8, %v4478_v7, %v990_v50  ;;  %v1060_v10 = vsel %vm1057_vm9, %v1059_v55, %v1055_v54 }
 0xc66   :  { %v999_v13 = vsel %vm996_vm10, %v998_v4, %v994_v58  ;;  %v1063_v15 = vmul.f32 %v1060_v10, %v5460_v29 }
 0xc67   :  { %v1002_v19 = vmul.f32 %v999_v13, %v5458_v26 }
 0xcc3   :  { %v1066_v9 = vpop.permute.xlu0 %1065 }
 0xcc4   :  { %v1068_v11 = vmul.f32 %v1066_v9, %v1060_v10  ;;  %v1005_v12 = vpop.permute.xlu1 %1004 }
 0xcc5   :  { %v1007_v14 = vmul.f32 %v1005_v12, %v999_v13 }
 0xcc6   :  { %1070 = vrot.lane.b32.xlu2 %v1068_v11, %s4975_s30 }
 0xcc7   :  { %1009 = vrot.lane.b32.xlu0 %v1007_v14, %s4975_s30 }
 0xd20   :  { %v1071_v16 = vpop.permute.xlu2 %1070 }
 0xd21   :  { %v5477_v17 = vadd.f32 %v1071_v16, %v1063_v15 }
 0xd23   :  { %4479 = vtanh.f32 %v5477_v17 }
 0xd29   :  { %v4480_v18 = vpop.eup %4479 }
 0xd2a   :  { %1076 = vrot.lane.b32.xlu1 %v4480_v18, %s4974_s1 }
 0xd39   :  { %v1010_v20 = vpop.permute.xlu0 %1009 }
 0xd3a   :  { %v5482_v21 = vadd.f32 %v1010_v20, %v1002_v19  ;;  %v1279_v19 = vld [vmem:[#allocation2 + $0x38] sm:$0xff] }
 0xd3c   :  { %4481 = vtanh.f32 %v5482_v21 }
 0xd42   :  { %v4482_v22 = vpop.eup %4481 }
 0xd43   :  { %1015 = vrot.lane.b32.xlu2 %v4482_v22, %s4974_s1 }
 0xd9c   :  { %v1077_v23 = vpop.permute.xlu1 %1076 }
 0xd9d   :  { %v1079_v25 = vmul.f32 %v1077_v23, %v1060_v10  ;;  %v1016_v27 = vpop.permute.xlu2 %1015 }
 0xd9e   :  { %v1018_v29 = vmul.f32 %v1016_v27, %v999_v13 }
 0xd9f   :  { %1081 = vrot.lane.b32.xlu0 %v1079_v25, %s4975_s30 }
 0xda0   :  { %1085 = vrot.lane.b32.xlu1 %v1018_v29, %s4974_s1 }
 0xe11   :  { %v1082_v30 = vpop.permute.xlu0 %1081 }
 0xe12   :  { %4278 = vmatmul.msk.f32.vlgmr.msra.gmra.mxu3 %vm368_vm13, %v1082_v30  ;;  %v1086_v26 = vpop.permute.xlu1 %1085 }
 0xe13   :  { %v1088_v24 = vsel %vm368_vm13, %v1082_v30, %v1086_v26 }
 0xe14   :  { %4276 = vmatmul.msk.f32.vlgmr.msrb.gmra.mxu1 %vm438_vm14, %v1088_v24 }
 0xe91   :  { %v1109_v31 = vpop.f32.mrf.mxu1 }
 0xe92   :  { %v1110_v32 = vadd.f32 %v5362_v0, %v1109_v31 }
 0xe94   :  { %4483 = vtanh.f32 %v1110_v32  ;;  %v4277_v38 = vmul.f32 -1.442695, %v1110_v32 }
 0xe95   :  { %v1169_v34 = vpop.f32.mrf.mxu3 }
 0xe96   :  { %v1172_v35 = vadd.f32 %v1169_v34, %v1149_v33 }
 0xe98   :  { %4485 = vtanh.f32 %v1172_v35  ;;  %v4279_v43 = vmul.f32 -1.442695, %v1172_v35 }
 0xe99   :  { %4487 = vpow2.f32 %v4277_v38 }
 0xe9a   :  { %v4484_v36 = vpop.eup %4483 }
 0xe9b   :  { %1134 = vrot.lane.b32.xlu2 %v4484_v36, %s4974_s1 }
 0xe9e   :  { %v4486_v37 = vpop.eup %4485 }
 0xe9f   :  { %1195 = vrot.lane.b32.xlu0 %v4486_v37, %s4974_s1  ;;  %v4488_v39 = vpop.eup %4487 }
 0xea0   :  { %v1115_v28 = vadd.f32 1.0, %v4488_v39 }
 0xea2   :  { %4489 = vrcp.f32 %v1115_v28  ;;  %v1127_v47 = vand.u32 2147483648, %v1115_v28  ;;  %vm1121_vm12 = vweird.f32 %v1115_v28  ;;  %v1125_v57 = vand.u32 2147483647, %v1115_v28 }
 0xea3   :  { %4491 = vpow2.f32 %v4279_v43 }
 0xea4   :  { %v1128_v60 = vor.u32 1.1754944e-38, %v1127_v47  ;;  %vm1126_vm0 = vcmp.eq.f32.partialorder %v1125_v57, 8.507059e+37 }
 0xea8   :  { %v4490_v40 = vpop.eup %4489 }
 0xea9   :  { %v1117_v42 = vmul.f32 %v4490_v40, %v1115_v28  ;;  %v4492_v48 = vpop.eup %4491  ;;  %vm1122_vm11 = vweird.f32 %v4490_v40 }
 0xeaa   :  { %v1176_v41 = vadd.f32 1.0, %v4492_v48  ;;  %vm1123_vm15 = vmor %vm1121_vm12, %vm1122_vm11 }
 0xeab   :  { %v1118_v44 = vsub.f32 1.0, %v1117_v42 }
 0xeac   :  { %4493 = vrcp.f32 %v1176_v41  ;;  %v1188_v1 = vand.u32 2147483648, %v1176_v41  ;;  %vm1182_vm2 = vweird.f32 %v1176_v41  ;;  %v1186_v2 = vand.u32 2147483647, %v1176_v41 }
 0xead   :  { %v1119_v46 = vmul.f32 %v4490_v40, %v1118_v44 }
 0xeae   :  { %v1189_v3 = vor.u32 1.1754944e-38, %v1188_v1  ;;  %vm1187_vm4 = vcmp.eq.f32.partialorder %v1186_v2, 8.507059e+37 }
 0xeaf   :  { %v1120_v56 = vadd.f32 %v4490_v40, %v1119_v46 }
 0xeb1   :  { %v1124_v59 = vsel %vm1123_vm15, %v4490_v40, %v1120_v56 }
 0xeb2   :  { %v1129_v5 = vsel %vm1126_vm0, %v1128_v60, %v1124_v59  ;;  %v4494_v7 = vpop.eup %4493 }
 0xeb3   :  { %v1178_v8 = vmul.f32 %v4494_v7, %v1176_v41  ;;  %vm1183_vm1 = vweird.f32 %v4494_v7  ;;  %v1132_v53 = vmul.f32 %v1129_v5, %v5482_v21 }
 0xeb4   :  { %vm1184_vm3 = vmor %vm1182_vm2, %vm1183_vm1 }
 0xeb5   :  { %v1179_v45 = vsub.f32 1.0, %v1178_v8 }
 0xeb7   :  { %v1180_v62 = vmul.f32 %v4494_v7, %v1179_v45 }
 0xeb9   :  { %v1181_v63 = vadd.f32 %v4494_v7, %v1180_v62 }
 0xebb   :  { %v1185_v49 = vsel %vm1184_vm3, %v4494_v7, %v1181_v63 }
 0xebc   :  { %v1190_v51 = vsel %vm1187_vm4, %v1189_v3, %v1185_v49  ;;  %v5523_v3 = vld [vmem:[#allocation9 + $0x18] sm:$0xff] }
 0xebd   :  { %v1193_v58 = vmul.f32 %v1190_v51, %v5477_v17  ;;  %1517 = vmatpush.msra.mxu3 %v5523_v3  ;;  %1653 = vmatpush.msra.mxu2 %v5523_v3 }
 0xebe   :  { %1921 = vmatpush.msra.mxu0 %v5523_v3 }
 0xef5   :  { %v1135_v61 = vpop.permute.xlu2 %1134 }
 0xef6   :  { %v1137_v6 = vmul.f32 %v1135_v61, %v1129_v5 }
 0xef8   :  { %1139 = vrot.lane.b32.xlu1 %v1137_v6, %s4975_s30 }
 0xf11   :  { %v1196_v50 = vpop.permute.xlu0 %1195 }
 0xf12   :  { %v1198_v52 = vmul.f32 %v1196_v50, %v1190_v51  ;;  %v5525_v50 = vld [vmem:[#allocation9 + $0x10] sm:$0xff] }
 0xf13   :  { %1518 = vmatpush.msra.mxu3 %v5525_v50  ;;  %1654 = vmatpush.msra.mxu2 %v5525_v50 }
 0xf14   :  { %1200 = vrot.lane.b32.xlu2 %v1198_v52, %s4975_s30  ;;  %1922 = vmatpush.msra.mxu0 %v5525_v50 }
 0xf6a   :  { %v1140_v54 = vpop.permute.xlu1 %1139 }
 0xf6b   :  { %v5497_v55 = vadd.f32 %v1140_v54, %v1132_v53 }
 0xf6d   :  { %4495 = vtanh.f32 %v5497_v55 }
 0xf6e   :  { %v1201_v4 = vpop.permute.xlu2 %1200 }
 0xf6f   :  { %v5501_v9 = vadd.f32 %v1201_v4, %v1193_v58  ;;  %v5537_v58 = vld [vmem:[#allocation9] sm:$0xff] }
 0xf71   :  { %4497 = vtanh.f32 %v5501_v9 }
 0xf73   :  { %v4496_v10 = vpop.eup %4495 }
 0xf74   :  { %1145 = vrot.lane.b32.xlu0 %v4496_v10, %s4974_s1 }
 0xf77   :  { %v4498_v11 = vpop.eup %4497 }
 0xf78   :  { %1206 = vrot.lane.b32.xlu1 %v4498_v11, %s4974_s1 }
 0xfe6   :  { %v1146_v12 = vpop.permute.xlu0 %1145 }
 0xfe7   :  { %v1148_v13 = vmul.f32 %v1146_v12, %v1129_v5  ;;  %v4783_v12 = vld [vmem:[%s6914_s0] ss:$0 sm:$0xff] }
 0xfe9   :  { %1215 = vrot.lane.b32.xlu0 %v1148_v13, %s4974_s1 }
 0xfea   :  { %v1207_v14 = vpop.permute.xlu1 %1206 }
 0xfeb   :  { %v1209_v15 = vmul.f32 %v1207_v14, %v1190_v51 }
 0xfed   :  { %1211 = vrot.lane.b32.xlu2 %v1209_v15, %s4975_s30 }
0x1047   :  { %v1212_v16 = vpop.permute.xlu2 %1211 }
0x1048   :  { %4282 = vmatmul.msk.f32.vlgmr.msrb.gmra.mxu3 %vm368_vm13, %v1212_v16 }
0x105b   :  { %v1216_v17 = vpop.permute.xlu0 %1215 }
0x105c   :  { %v1218_v18 = vsel %vm368_vm13, %v1212_v16, %v1216_v17 }
0x105d   :  { %4280 = vmatmul.msk.f32.vlgmr.msrb.gmra.mxu2 %vm438_vm14, %v1218_v18 }
0x10cb   :  { %v1299_v20 = vpop.f32.mrf.mxu3 }
0x10cc   :  { %v1302_v21 = vadd.f32 %v1299_v20, %v1279_v19 }
0x10ce   :  { %4499 = vtanh.f32 %v1302_v21  ;;  %v4283_v29 = vmul.f32 -1.442695, %v1302_v21 }
0x10d4   :  { %v4500_v22 = vpop.eup %4499 }
0x10d5   :  { %1325 = vrot.lane.b32.xlu2 %v4500_v22, %s4974_s1 }
0x10e0   :  { %v1239_v23 = vpop.f32.mrf.mxu2 }
0x10e1   :  { %v1240_v25 = vadd.f32 %v5362_v0, %v1239_v23 }
0x10e3   :  { %4501 = vtanh.f32 %v1240_v25  ;;  %v4281_v38 = vmul.f32 -1.442695, %v1240_v25 }
0x10e4   :  { %4503 = vpow2.f32 %v4283_v29 }
0x10e9   :  { %v4502_v27 = vpop.eup %4501 }
0x10ea   :  { %1264 = vrot.lane.b32.xlu1 %v4502_v27, %s4974_s1  ;;  %v4504_v30 = vpop.eup %4503 }
0x10eb   :  { %v1306_v26 = vadd.f32 1.0, %v4504_v30 }
0x10ed   :  { %4505 = vrcp.f32 %v1306_v26  ;;  %v1318_v35 = vand.u32 2147483648, %v1306_v26  ;;  %vm1312_vm6 = vweird.f32 %v1306_v26  ;;  %v1316_v36 = vand.u32 2147483647, %v1306_v26 }
0x10ee   :  { %4507 = vpow2.f32 %v4281_v38 }
0x10ef   :  { %v1319_v37 = vor.u32 1.1754944e-38, %v1318_v35  ;;  %vm1317_vm8 = vcmp.eq.f32.partialorder %v1316_v36, 8.507059e+37  ;;  %v1461_v35 = vld [vmem:[#allocation7 + $0x18] sm:$0xff]  ;;  %v1460_v36 = vld [vmem:[#allocation7 + $0x10] sm:$0xff] }
0x10f0   :  { %1482 = vmatpush.msra.mxu1 %v1461_v35 }
0x10f2   :  { %1483 = vmatpush.msra.mxu1 %v1460_v36 }
0x10f3   :  { %v4506_v24 = vpop.eup %4505 }
0x10f4   :  { %v1308_v31 = vmul.f32 %v4506_v24, %v1306_v26  ;;  %vm1313_vm5 = vweird.f32 %v4506_v24  ;;  %v4508_v42 = vpop.eup %4507 }
0x10f5   :  { %vm1314_vm7 = vmor %vm1312_vm6, %vm1313_vm5  ;;  %v1245_v43 = vadd.f32 1.0, %v4508_v42 }
0x10f6   :  { %v1309_v32 = vsub.f32 1.0, %v1308_v31 }
0x10f7   :  { %4509 = vrcp.f32 %v1245_v43  ;;  %v1257_v57 = vand.u32 2147483648, %v1245_v43  ;;  %vm1251_vm10 = vweird.f32 %v1245_v43  ;;  %v1255_v41 = vand.u32 2147483647, %v1245_v43 }
0x10f8   :  { %v1310_v33 = vmul.f32 %v4506_v24, %v1309_v32 }
0x10f9   :  { %v1258_v60 = vor.u32 1.1754944e-38, %v1257_v57  ;;  %vm1256_vm12 = vcmp.eq.f32.partialorder %v1255_v41, 8.507059e+37 }
0x10fa   :  { %v1311_v34 = vadd.f32 %v4506_v24, %v1310_v33 }
0x10fc   :  { %v1315_v0 = vsel %vm1314_vm7, %v4506_v24, %v1311_v34 }
0x10fd   :  { %v1320_v28 = vsel %vm1317_vm8, %v1319_v37, %v1315_v0  ;;  %v4510_v44 = vpop.eup %4509  ;;  %v1459_v0 = vld [vmem:[#allocation7 + $0x8] sm:$0xff]  ;;  %v1458_v37 = vld [vmem:[#allocation7] sm:$0xff] }
0x10fe   :  { %v1247_v46 = vmul.f32 %v4510_v44, %v1245_v43  ;;  %vm1252_vm9 = vweird.f32 %v4510_v44  ;;  %v1323_v7 = vmul.f32 %v1320_v28, %v5501_v9  ;;  %1484 = vmatpush.msra.mxu1 %v1459_v0 }
0x10ff   :  { %vm1253_vm11 = vmor %vm1251_vm10, %vm1252_vm9 }
0x1100   :  { %v1248_v48 = vsub.f32 1.0, %v1247_v46  ;;  %1485 = vmatpush.msra.mxu1 %v1458_v37 }
0x1102   :  { %v1249_v56 = vmul.f32 %v4510_v44, %v1248_v48 }
0x1104   :  { %v1250_v47 = vadd.f32 %v4510_v44, %v1249_v56 }
0x1106   :  { %v1254_v59 = vsel %vm1253_vm11, %v4510_v44, %v1250_v47 }
0x1107   :  { %v1259_v5 = vsel %vm1256_vm12, %v1258_v60, %v1254_v59 }
0x1108   :  { %v1262_v63 = vmul.f32 %v1259_v5, %v5497_v55  ;;  %v5535_v55 = vld [vmem:[#allocation9 + $0x8] sm:$0xff] }
0x1109   :  { %1519 = vmatpush.msra.mxu3 %v5535_v55  ;;  %1655 = vmatpush.msra.mxu2 %v5535_v55 }
0x110a   :  { %1923 = vmatpush.msra.mxu0 %v5535_v55 }
0x110b   :  { %1520 = vmatpush.msra.mxu3 %v5537_v58  ;;  %1656 = vmatpush.msra.mxu2 %v5537_v58 }
0x110c   :  { %1924 = vmatpush.msra.mxu0 %v5537_v58 }
0x112f   :  { %v1326_v39 = vpop.permute.xlu2 %1325 }
0x1130   :  { %v1328_v40 = vmul.f32 %v1326_v39, %v1320_v28 }
0x1132   :  { %1330 = vrot.lane.b32.xlu1 %v1328_v40, %s4975_s30  ;;  %v4389_v40 = vld [vmem:[%s6883_s8] ss:$0 sm:$0xff] }
0x115c   :  { %v1265_v61 = vpop.permute.xlu1 %1264 }
0x115d   :  { %v1267_v6 = vmul.f32 %v1265_v61, %v1259_v5 }
0x115f   :  { %1269 = vrot.lane.b32.xlu0 %v1267_v6, %s4975_s30 }
0x11a4   :  { %v1331_v8 = vpop.permute.xlu1 %1330 }
0x11a5   :  { %v5517_v45 = vadd.f32 %v1331_v8, %v1323_v7 }
0x11a7   :  { %4511 = vtanh.f32 %v5517_v45 }
0x11ad   :  { %v4512_v62 = vpop.eup %4511 }
0x11ae   :  { %1336 = vrot.lane.b32.xlu0 %v4512_v62, %s4974_s1 }
0x11d1   :  { %v1270_v1 = vpop.permute.xlu0 %1269 }
0x11d2   :  { %v1272_v2 = vadd.f32 %v1270_v1, %v1262_v63 }
0x11d4   :  { %4513 = vtanh.f32 %v1272_v2 }
0x11da   :  { %v4514_v49 = vpop.eup %4513 }
0x11db   :  { %1275 = vrot.lane.b32.xlu2 %v4514_v49, %s4974_s1 }
0x1220   :  { %v1337_v51 = vpop.permute.xlu0 %1336 }
0x1221   :  { %v1339_v52 = vmul.f32 %v1337_v51, %v1320_v28 }
0x1223   :  { %1341 = vrot.lane.b32.xlu1 %v1339_v52, %s4975_s30 }
0x1235   :  { %v1276_v53 = vpop.permute.xlu2 %1275 }
0x1236   :  { %v1278_v54 = vmul.f32 %v1276_v53, %v1259_v5 }
0x1238   :  { %1345 = vrot.lane.b32.xlu2 %v1278_v54, %s4974_s1  ;;  %v5583_v54 = vld [vmem:[%s6884_s9 + $0x38] sm:$0xff] }
0x1239   :  { %1585 = vmatpush.msrb.mxu1 %v5583_v54  ;;  %1718 = vmatpush.msrb.mxu3 %v5583_v54 }
0x123a   :  { %1852 = vmatpush.msrb.mxu2 %v5583_v54 }
0x1292   :  { %v1346_v4 = vpop.permute.xlu2 %1345 }
0x1295   :  { %v1342_v9 = vpop.permute.xlu1 %1341 }
0x1296   :  { %4287 = vmatmul.msk.f32.vlgmr.msra.gmra.mxu3 %vm368_vm13, %v1342_v9  ;;  %v1348_v10 = vsel %vm368_vm13, %v1342_v9, %v1346_v4  ;;  %v5588_v4 = vld [vmem:[%s6884_s9 + $0x30] sm:$0xff]  ;;  %v5604_v9 = vld [vmem:[%s6884_s9 + $0x20] sm:$0xff] }
0x1297   :  { %4284 = vmatmul.msk.f32.vlgmr.msrb.gmra.mxu0 %vm438_vm14, %v1348_v10  ;;  %1586 = vmatpush.msrb.mxu1 %v5588_v4  ;;  %v5613_v10 = vld [vmem:[%s6884_s9 + $0x18] sm:$0xff] }
0x1298   :  { %2120 = vmatpush.msrb.mxu0 %v5583_v54  ;;  %1719 = vmatpush.msrb.mxu3 %v5588_v4 }
0x1299   :  { %1853 = vmatpush.msrb.mxu2 %v5588_v4 }
0x129a   :  { %2121 = vmatpush.msrb.mxu0 %v5588_v4 }
0x1314   :  { %v1369_v11 = vpop.f32.mrf.mxu0 }
0x1315   :  { %v1370_v13 = vadd.f32 %v4783_v12, %v1369_v11  ;;  %v5622_v11 = vld [vmem:[%s6884_s9 + $0x10] sm:$0xff]  ;;  %v5631_v12 = vld [vmem:[%s6884_s9 + $0x8] sm:$0xff] }
0x1317   :  { %4515 = vtanh.f32 %v1370_v13  ;;  %v4285_v15 = vmul.f32 -1.442695, %v1370_v13 }
0x1319   :  { %4517 = vpow2.f32 %v4285_v15  ;;  %v1522_v44 = vpop.f32.mrf.mxu3  ;;  %v5647_v15 = vld [vmem:[%s6884_s9] sm:$0xff] }
0x131d   :  { %v4516_v14 = vpop.eup %4515 }
0x131e   :  { %1394 = vrot.lane.b32.xlu0 %v4516_v14, %s4974_s1 }
0x131f   :  { %v4518_v16 = vpop.eup %4517 }
0x1320   :  { %v1375_v17 = vadd.f32 1.0, %v4518_v16 }
0x1322   :  { %4519 = vrcp.f32 %v1375_v17  ;;  %v1387_v23 = vand.u32 2147483648, %v1375_v17  ;;  %vm1381_vm0 = vweird.f32 %v1375_v17  ;;  %v1385_v25 = vand.u32 2147483647, %v1375_v17 }
0x1324   :  { %v1388_v29 = vor.u32 1.1754944e-38, %v1387_v23  ;;  %vm1386_vm2 = vcmp.eq.f32.partialorder %v1385_v25, 8.507059e+37 }
0x1328   :  { %v4520_v18 = vpop.eup %4519 }
0x1329   :  { %v1377_v19 = vmul.f32 %v4520_v18, %v1375_v17  ;;  %vm1382_vm15 = vweird.f32 %v4520_v18 }
0x132a   :  { %vm1383_vm1 = vmor %vm1381_vm0, %vm1382_vm15 }
0x132b   :  { %v1378_v20 = vsub.f32 1.0, %v1377_v19  ;;  %v5679_v19 = vld [vmem:[%s6885_s10] ss:$0 sm:$0xff] }
0x132d   :  { %v1379_v21 = vmul.f32 %v4520_v18, %v1378_v20 }
0x132f   :  { %v1380_v22 = vadd.f32 %v4520_v18, %v1379_v21 }
0x1331   :  { %v1384_v27 = vsel %vm1383_vm1, %v4520_v18, %v1380_v22 }
0x1332   :  { %v1389_v26 = vsel %vm1386_vm2, %v1388_v29, %v1384_v27 }
0x1333   :  { %v1392_v31 = vmul.f32 %v1389_v26, %v1272_v2 }
0x1390   :  { %v1395_v30 = vpop.permute.xlu0 %1394 }
0x1391   :  { %v1397_v24 = vmul.f32 %v1395_v30, %v1389_v26 }
0x1393   :  { %1399 = vrot.lane.b32.xlu1 %v1397_v24, %s4975_s30 }
0x1405   :  { %v1400_v32 = vpop.permute.xlu1 %1399 }
0x1406   :  { %v5553_v33 = vadd.f32 %v1400_v32, %v1392_v31 }
0x1408   :  { %4521 = vtanh.f32 %v5553_v33 }
0x140e   :  { %v4522_v34 = vpop.eup %4521 }
0x140f   :  { %1405 = vrot.lane.b32.xlu2 %v4522_v34, %s4974_s1 }
0x1469   :  { %v1406_v38 = vpop.permute.xlu2 %1405 }
0x146a   :  { %v5557_v39 = vmul.f32 %v1406_v38, %v1389_v26 }
0x146c   :  { %1466 = vrot.lane.b32.xlu0 %v5557_v39, %s4975_s30 }
0x14de   :  { %v5561_v28 = vpop.permute.xlu0 %1466 }
0x14df   :  { %4286 = vmatmul.msk.f32.vlgmr.msra.gmra.mxu1 %vm368_vm13, %v5561_v28 }
0x155c   :  { %v1487_v42 = vpop.f32.mrf.mxu1 }
0x155d   :  { %v5568_v43 = vadd.f32 %v4389_v40, %v1487_v42 }
0x155f   :  { %v1525_v46 = vadd.f32 %v1522_v44, %v5568_v43 }
0x1561   :  { %4523 = vtanh.f32 %v1525_v46  ;;  %v4288_v56 = vmul.f32 -1.442695, %v1525_v46 }
0x1563   :  { %4525 = vpow2.f32 %v4288_v56 }
0x1567   :  { %v4524_v48 = vpop.eup %4523 }
0x1568   :  { %1548 = vrot.lane.b32.xlu1 %v4524_v48, %s4974_s1 }
0x1569   :  { %v4526_v47 = vpop.eup %4525 }
0x156a   :  { %v1529_v57 = vadd.f32 1.0, %v4526_v47 }
0x156c   :  { %4527 = vrcp.f32 %v1529_v57  ;;  %v1541_v6 = vand.u32 2147483648, %v1529_v57  ;;  %vm1535_vm4 = vweird.f32 %v1529_v57  ;;  %v1539_v7 = vand.u32 2147483647, %v1529_v57 }
0x156e   :  { %v1542_v62 = vor.u32 1.1754944e-38, %v1541_v6  ;;  %vm1540_vm6 = vcmp.eq.f32.partialorder %v1539_v7, 8.507059e+37 }
0x1572   :  { %v4528_v41 = vpop.eup %4527 }
0x1573   :  { %v1531_v59 = vmul.f32 %v4528_v41, %v1529_v57  ;;  %vm1536_vm3 = vweird.f32 %v4528_v41 }
0x1574   :  { %vm1537_vm5 = vmor %vm1535_vm4, %vm1536_vm3 }
0x1575   :  { %v1532_v60 = vsub.f32 1.0, %v1531_v59 }
0x1577   :  { %v1533_v61 = vmul.f32 %v4528_v41, %v1532_v60 }
0x1579   :  { %v1534_v5 = vadd.f32 %v4528_v41, %v1533_v61 }
0x157b   :  { %v1538_v8 = vsel %vm1537_vm5, %v4528_v41, %v1534_v5 }
0x157c   :  { %v1543_v1 = vsel %vm1540_vm6, %v1542_v62, %v1538_v8 }
0x157d   :  { %v1546_v49 = vmul.f32 %v1543_v1, %v5517_v45  ;;  %v5595_v45 = vld [vmem:[%s6884_s9 + $0x28] sm:$0xff] }
0x157e   :  { %1587 = vmatpush.msrb.mxu1 %v5595_v45  ;;  %1720 = vmatpush.msrb.mxu3 %v5595_v45 }
0x157f   :  { %1854 = vmatpush.msrb.mxu2 %v5595_v45  ;;  %2122 = vmatpush.msrb.mxu0 %v5595_v45 }
0x1580   :  { %1588 = vmatpush.msrb.mxu1 %v5604_v9  ;;  %1721 = vmatpush.msrb.mxu3 %v5604_v9 }
0x1581   :  { %1855 = vmatpush.msrb.mxu2 %v5604_v9  ;;  %2123 = vmatpush.msrb.mxu0 %v5604_v9 }
0x1582   :  { %1589 = vmatpush.msrb.mxu1 %v5613_v10  ;;  %1722 = vmatpush.msrb.mxu3 %v5613_v10 }
0x1583   :  { %1856 = vmatpush.msrb.mxu2 %v5613_v10  ;;  %2124 = vmatpush.msrb.mxu0 %v5613_v10 }
0x1584   :  { %1590 = vmatpush.msrb.mxu1 %v5622_v11  ;;  %1723 = vmatpush.msrb.mxu3 %v5622_v11 }
0x1585   :  { %1857 = vmatpush.msrb.mxu2 %v5622_v11  ;;  %2125 = vmatpush.msrb.mxu0 %v5622_v11 }
0x1586   :  { %1591 = vmatpush.msrb.mxu1 %v5631_v12  ;;  %1724 = vmatpush.msrb.mxu3 %v5631_v12 }
0x1587   :  { %1858 = vmatpush.msrb.mxu2 %v5631_v12  ;;  %2126 = vmatpush.msrb.mxu0 %v5631_v12 }
0x1588   :  { %1592 = vmatpush.msrb.mxu1 %v5647_v15  ;;  %1725 = vmatpush.msrb.mxu3 %v5647_v15 }
0x1589   :  { %1859 = vmatpush.msrb.mxu2 %v5647_v15  ;;  %2127 = vmatpush.msrb.mxu0 %v5647_v15 }
0x158a   :  { %1787 = vmatpush.msra.mxu1 %v5523_v3  ;;  %2055 = vmatpush.msra.mxu3 %v5523_v3 }
0x158c   :  { %1788 = vmatpush.msra.mxu1 %v5525_v50  ;;  %2056 = vmatpush.msra.mxu3 %v5525_v50 }
0x158e   :  { %1789 = vmatpush.msra.mxu1 %v5535_v55  ;;  %2057 = vmatpush.msra.mxu3 %v5535_v55 }
0x1590   :  { %1790 = vmatpush.msra.mxu1 %v5537_v58  ;;  %2058 = vmatpush.msra.mxu3 %v5537_v58 }
0x15da   :  { %v1549_v63 = vpop.permute.xlu1 %1548 }
0x15db   :  { %v1551_v2 = vmul.f32 %v1549_v63, %v1543_v1 }
0x15dd   :  { %1553 = vrot.lane.b32.xlu2 %v1551_v2, %s4975_s30 }
0x15e5   :  { %1567 = vrot.lane.b32.xlu2 %v5557_v39, %s4974_s1 }
0x1637   :  { %v1554_v51 = vpop.permute.xlu2 %1553 }
0x1638   :  { %v5576_v52 = vadd.f32 %v1554_v51, %v1546_v49 }
0x163a   :  { %4529 = vtanh.f32 %v5576_v52 }
0x163f   :  { %v1568_v16 = vpop.permute.xlu2 %1567 }
0x1640   :  { %v4530_v53 = vpop.eup %4529 }
0x1641   :  { %1559 = vrot.lane.b32.xlu0 %v4530_v53, %s4974_s1 }
0x16b3   :  { %v1560_v13 = vpop.permute.xlu0 %1559 }
0x16b4   :  { %v1562_v14 = vmul.f32 %v1560_v13, %v1543_v1 }
0x16b6   :  { %1564 = vrot.lane.b32.xlu1 %v1562_v14, %s4975_s30 }
0x1728   :  { %v1565_v17 = vpop.permute.xlu1 %1564 }
0x1729   :  { %v1570_v18 = vsel %vm368_vm13, %v1565_v17, %v1568_v16  ;;  %4291 = vmatmul.msk.f32.vlgmr.msra.gmra.mxu2 %vm368_vm13, %v1565_v17 }
0x172a   :  { %4289 = vmatmul.msk.f32.vlgmr.msrb.gmra.mxu1 %vm438_vm14, %v1570_v18  ;;  %2189 = vmatpush.msra.mxu2 %v5523_v3 }
0x172b   :  { %1986 = vmatpush.msrb.mxu1 %v5583_v54 }
0x172c   :  { %2190 = vmatpush.msra.mxu2 %v5525_v50 }
0x172d   :  { %1987 = vmatpush.msrb.mxu1 %v5588_v4 }
0x172e   :  { %2191 = vmatpush.msra.mxu2 %v5535_v55 }
0x172f   :  { %1988 = vmatpush.msrb.mxu1 %v5595_v45 }
0x1730   :  { %2192 = vmatpush.msra.mxu2 %v5537_v58 }
0x1731   :  { %1989 = vmatpush.msrb.mxu1 %v5604_v9 }
0x1733   :  { %1990 = vmatpush.msrb.mxu1 %v5613_v10 }
0x1735   :  { %1991 = vmatpush.msrb.mxu1 %v5622_v11 }
0x1737   :  { %1992 = vmatpush.msrb.mxu1 %v5631_v12 }
0x1739   :  { %1993 = vmatpush.msrb.mxu1 %v5647_v15 }
0x17a7   :  { %v1594_v20 = vpop.f32.mrf.mxu1 }
0x17a8   :  { %v1595_v21 = vadd.f32 %v5679_v19, %v1594_v20 }
0x17aa   :  { %4531 = vtanh.f32 %v1595_v21  ;;  %v4290_v29 = vmul.f32 -1.442695, %v1595_v21 }
0x17ac   :  { %v1658_v22 = vpop.f32.mrf.mxu2 }
0x17ad   :  { %v1661_v23 = vadd.f32 %v1658_v22, %v5568_v43 }
0x17af   :  { %4533 = vtanh.f32 %v1661_v23  ;;  %v4292_v30 = vmul.f32 -1.442695, %v1661_v23 }
0x17b0   :  { %v4532_v25 = vpop.eup %4531  ;;  %4535 = vpow2.f32 %v4290_v29 }
0x17b1   :  { %1619 = vrot.lane.b32.xlu0 %v4532_v25, %s4974_s1  ;;  %4537 = vpow2.f32 %v4292_v30 }
0x17b5   :  { %v4534_v27 = vpop.eup %4533 }
0x17b6   :  { %1684 = vrot.lane.b32.xlu1 %v4534_v27, %s4974_s1  ;;  %v4536_v26 = vpop.eup %4535 }
0x17b7   :  { %v1600_v24 = vadd.f32 1.0, %v4536_v26  ;;  %v4538_v31 = vpop.eup %4537 }
0x17b8   :  { %v1665_v32 = vadd.f32 1.0, %v4538_v31 }
0x17b9   :  { %4539 = vrcp.f32 %v1600_v24  ;;  %v1612_v44 = vand.u32 2147483648, %v1600_v24  ;;  %vm1606_vm8 = vweird.f32 %v1600_v24  ;;  %v1610_v48 = vand.u32 2147483647, %v1600_v24 }
0x17ba   :  { %4541 = vrcp.f32 %v1665_v32  ;;  %v1677_v41 = vand.u32 2147483648, %v1665_v32  ;;  %vm1671_vm12 = vweird.f32 %v1665_v32  ;;  %v1675_v61 = vand.u32 2147483647, %v1665_v32 }
0x17bb   :  { %v1613_v47 = vor.u32 1.1754944e-38, %v1612_v44  ;;  %vm1611_vm11 = vcmp.eq.f32.partialorder %v1610_v48, 8.507059e+37 }
0x17bc   :  { %v1678_v7 = vor.u32 1.1754944e-38, %v1677_v41  ;;  %vm1676_vm0 = vcmp.eq.f32.partialorder %v1675_v61, 8.507059e+37 }
0x17bf   :  { %v4540_v34 = vpop.eup %4539 }
0x17c0   :  { %v1602_v35 = vmul.f32 %v4540_v34, %v1600_v24  ;;  %v4542_v36 = vpop.eup %4541  ;;  %vm1607_vm7 = vweird.f32 %v4540_v34 }
0x17c1   :  { %v1667_v37 = vmul.f32 %v4542_v36, %v1665_v32  ;;  %vm1608_vm9 = vmor %vm1606_vm8, %vm1607_vm7  ;;  %vm1672_vm10 = vweird.f32 %v4542_v36 }
0x17c2   :  { %v1603_v0 = vsub.f32 1.0, %v1602_v35  ;;  %vm1673_vm15 = vmor %vm1671_vm12, %vm1672_vm10 }
0x17c3   :  { %v1668_v40 = vsub.f32 1.0, %v1667_v37 }
0x17c4   :  { %v1604_v38 = vmul.f32 %v4540_v34, %v1603_v0 }
0x17c5   :  { %v1669_v46 = vmul.f32 %v4542_v36, %v1668_v40 }
0x17c6   :  { %v1605_v42 = vadd.f32 %v4540_v34, %v1604_v38 }
0x17c7   :  { %v1670_v57 = vadd.f32 %v4542_v36, %v1669_v46 }
0x17c8   :  { %v1609_v56 = vsel %vm1608_vm9, %v4540_v34, %v1605_v42 }
0x17c9   :  { %v1614_v60 = vsel %vm1611_vm11, %v1613_v47, %v1609_v56  ;;  %v1674_v6 = vsel %vm1673_vm15, %v4542_v36, %v1670_v57 }
0x17ca   :  { %v1679_v62 = vsel %vm1676_vm0, %v1678_v7, %v1674_v6  ;;  %v1617_v1 = vmul.f32 %v1614_v60, %v5553_v33 }
0x17cb   :  { %v1682_v53 = vmul.f32 %v1679_v62, %v5576_v52 }
0x1823   :  { %v1620_v59 = vpop.permute.xlu0 %1619 }
0x1824   :  { %v1622_v5 = vmul.f32 %v1620_v59, %v1614_v60 }
0x1826   :  { %1624 = vrot.lane.b32.xlu2 %v1622_v5, %s4975_s30 }
0x1828   :  { %v1685_v8 = vpop.permute.xlu1 %1684 }
0x1829   :  { %v1687_v63 = vmul.f32 %v1685_v8, %v1679_v62 }
0x182b   :  { %1689 = vrot.lane.b32.xlu0 %v1687_v63, %s4975_s30 }
0x1880   :  { %v1625_v2 = vpop.permute.xlu2 %1624 }
0x1881   :  { %v5688_v49 = vadd.f32 %v1625_v2, %v1617_v1 }
0x1883   :  { %4543 = vtanh.f32 %v5688_v49 }
0x1889   :  { %v4544_v51 = vpop.eup %4543 }
0x188a   :  { %1630 = vrot.lane.b32.xlu1 %v4544_v51, %s4974_s1 }
0x189d   :  { %v1690_v13 = vpop.permute.xlu0 %1689 }
0x189e   :  { %v5693_v14 = vadd.f32 %v1690_v13, %v1682_v53 }
0x18a0   :  { %4545 = vtanh.f32 %v5693_v14 }
0x18a6   :  { %v4546_v16 = vpop.eup %4545 }
0x18a7   :  { %1695 = vrot.lane.b32.xlu2 %v4546_v16, %s4974_s1 }
0x18fc   :  { %v1631_v17 = vpop.permute.xlu1 %1630 }
0x18fd   :  { %v5697_v33 = vmul.f32 %v1631_v17, %v1614_v60 }
0x18ff   :  { %1703 = vrot.lane.b32.xlu1 %v5697_v33, %s4974_s1 }
0x1901   :  { %v1696_v18 = vpop.permute.xlu2 %1695 }
0x1902   :  { %v1698_v20 = vmul.f32 %v1696_v18, %v1679_v62 }
0x1904   :  { %1700 = vrot.lane.b32.xlu0 %v1698_v20, %s4975_s30 }
0x1971   :  { %v1704_v21 = vpop.permute.xlu1 %1703 }
0x1976   :  { %v1701_v52 = vpop.permute.xlu0 %1700 }
0x1977   :  { %v1706_v22 = vsel %vm368_vm13, %v1701_v52, %v1704_v21  ;;  %4295 = vmatmul.msk.f32.vlgmr.msra.gmra.mxu1 %vm368_vm13, %v1701_v52 }
0x1978   :  { %4293 = vmatmul.msk.f32.vlgmr.msrb.gmra.mxu3 %vm438_vm14, %v1706_v22  ;;  %2323 = vmatpush.msra.mxu1 %v5523_v3 }
0x1979   :  { %2254 = vmatpush.msrb.mxu3 %v5583_v54 }
0x197a   :  { %2324 = vmatpush.msra.mxu1 %v5525_v50 }
0x197b   :  { %2255 = vmatpush.msrb.mxu3 %v5588_v4 }
0x197c   :  { %2325 = vmatpush.msra.mxu1 %v5535_v55 }
0x197d   :  { %2256 = vmatpush.msrb.mxu3 %v5595_v45 }
0x197e   :  { %2326 = vmatpush.msra.mxu1 %v5537_v58 }
0x197f   :  { %2257 = vmatpush.msrb.mxu3 %v5604_v9 }
0x1981   :  { %2258 = vmatpush.msrb.mxu3 %v5613_v10 }
0x1983   :  { %2259 = vmatpush.msrb.mxu3 %v5622_v11 }
0x1985   :  { %2260 = vmatpush.msrb.mxu3 %v5631_v12 }
0x1987   :  { %2261 = vmatpush.msrb.mxu3 %v5647_v15 }
0x19f4   :  { %v1792_v23 = vpop.f32.mrf.mxu1 }
0x19f5   :  { %v1795_v25 = vadd.f32 %v1792_v23, %v5568_v43 }
0x19f7   :  { %4547 = vtanh.f32 %v1795_v25  ;;  %v4296_v24 = vmul.f32 -1.442695, %v1795_v25 }
0x19fb   :  { %v1727_v27 = vpop.f32.mrf.mxu3 }
0x19fc   :  { %v1728_v29 = vadd.f32 %v5679_v19, %v1727_v27 }
0x19fd   :  { %v4548_v30 = vpop.eup %4547 }
0x19fe   :  { %4549 = vtanh.f32 %v1728_v29  ;;  %1818 = vrot.lane.b32.xlu2 %v4548_v30, %s4974_s1  ;;  %v4294_v0 = vmul.f32 -1.442695, %v1728_v29 }
0x19ff   :  { %4551 = vpow2.f32 %v4296_v24 }
0x1a04   :  { %v4550_v26 = vpop.eup %4549 }
0x1a05   :  { %1752 = vrot.lane.b32.xlu0 %v4550_v26, %s4974_s1  ;;  %v4552_v31 = vpop.eup %4551 }
0x1a06   :  { %v1799_v32 = vadd.f32 1.0, %v4552_v31 }
0x1a08   :  { %4553 = vrcp.f32 %v1799_v32  ;;  %v1811_v40 = vand.u32 2147483648, %v1799_v32  ;;  %vm1805_vm2 = vweird.f32 %v1799_v32  ;;  %v1809_v42 = vand.u32 2147483647, %v1799_v32 }
0x1a09   :  { %4555 = vpow2.f32 %v4294_v0 }
0x1a0a   :  { %v1812_v48 = vor.u32 1.1754944e-38, %v1811_v40  ;;  %vm1810_vm4 = vcmp.eq.f32.partialorder %v1809_v42, 8.507059e+37 }
0x1a0e   :  { %v4554_v34 = vpop.eup %4553 }
0x1a0f   :  { %v1801_v35 = vmul.f32 %v4554_v34, %v1799_v32  ;;  %vm1806_vm1 = vweird.f32 %v4554_v34  ;;  %v4556_v44 = vpop.eup %4555 }
0x1a10   :  { %vm1807_vm3 = vmor %vm1805_vm2, %vm1806_vm1  ;;  %v1733_v56 = vadd.f32 1.0, %v4556_v44 }
0x1a11   :  { %v1802_v36 = vsub.f32 1.0, %v1801_v35 }
0x1a12   :  { %4557 = vrcp.f32 %v1733_v56  ;;  %v1745_v7 = vand.u32 2147483648, %v1733_v56  ;;  %vm1739_vm6 = vweird.f32 %v1733_v56  ;;  %v1743_v8 = vand.u32 2147483647, %v1733_v56 }
0x1a13   :  { %v1803_v37 = vmul.f32 %v4554_v34, %v1802_v36 }
0x1a14   :  { %v1746_v63 = vor.u32 1.1754944e-38, %v1745_v7  ;;  %vm1744_vm8 = vcmp.eq.f32.partialorder %v1743_v8, 8.507059e+37 }
0x1a15   :  { %v1804_v38 = vadd.f32 %v4554_v34, %v1803_v37 }
0x1a17   :  { %v1808_v46 = vsel %vm1807_vm3, %v4554_v34, %v1804_v38 }
0x1a18   :  { %v1813_v57 = vsel %vm1810_vm4, %v1812_v48, %v1808_v46  ;;  %v4558_v59 = vpop.eup %4557 }
0x1a19   :  { %v1735_v60 = vmul.f32 %v4558_v59, %v1733_v56  ;;  %vm1740_vm5 = vweird.f32 %v4558_v59  ;;  %v1816_v53 = vmul.f32 %v1813_v57, %v5693_v14 }
0x1a1a   :  { %vm1741_vm7 = vmor %vm1739_vm6, %vm1740_vm5 }
0x1a1b   :  { %v1736_v61 = vsub.f32 1.0, %v1735_v60 }
0x1a1d   :  { %v1737_v5 = vmul.f32 %v4558_v59, %v1736_v61 }
0x1a1f   :  { %v1738_v6 = vadd.f32 %v4558_v59, %v1737_v5 }
0x1a21   :  { %v1742_v62 = vsel %vm1741_vm7, %v4558_v59, %v1738_v6 }
0x1a22   :  { %v1747_v2 = vsel %vm1744_vm8, %v1746_v63, %v1742_v62 }
0x1a23   :  { %v1750_v17 = vmul.f32 %v1747_v2, %v5688_v49 }
0x1a58   :  { %v1819_v47 = vpop.permute.xlu2 %1818 }
0x1a59   :  { %v1821_v41 = vmul.f32 %v1819_v47, %v1813_v57 }
0x1a5b   :  { %1823 = vrot.lane.b32.xlu1 %v1821_v41, %s4975_s30 }
0x1a77   :  { %v1753_v1 = vpop.permute.xlu0 %1752 }
0x1a78   :  { %v1755_v51 = vmul.f32 %v1753_v1, %v1747_v2 }
0x1a7a   :  { %1757 = vrot.lane.b32.xlu2 %v1755_v51, %s4975_s30 }
0x1acd   :  { %v1824_v13 = vpop.permute.xlu1 %1823 }
0x1ace   :  { %v5724_v16 = vadd.f32 %v1824_v13, %v1816_v53 }
0x1ad0   :  { %4559 = vtanh.f32 %v5724_v16 }
0x1ad4   :  { %v1758_v18 = vpop.permute.xlu2 %1757 }
0x1ad5   :  { %v5728_v20 = vadd.f32 %v1758_v18, %v1750_v17 }
0x1ad6   :  { %v4560_v21 = vpop.eup %4559 }
0x1ad7   :  { %4561 = vtanh.f32 %v5728_v20  ;;  %1829 = vrot.lane.b32.xlu0 %v4560_v21, %s4974_s1 }
0x1add   :  { %v4562_v52 = vpop.eup %4561 }
0x1ade   :  { %1763 = vrot.lane.b32.xlu1 %v4562_v52, %s4974_s1 }
0x1b49   :  { %v1830_v22 = vpop.permute.xlu0 %1829 }
0x1b4a   :  { %v1832_v14 = vmul.f32 %v1830_v22, %v1813_v57 }
0x1b4c   :  { %1834 = vrot.lane.b32.xlu2 %v1832_v14, %s4975_s30 }
0x1b50   :  { %v1764_v23 = vpop.permute.xlu1 %1763 }
0x1b51   :  { %v5734_v25 = vmul.f32 %v1764_v23, %v1747_v2 }
0x1b53   :  { %1837 = vrot.lane.b32.xlu0 %v5734_v25, %s4974_s1 }
0x1ba6   :  { %v1835_v49 = vpop.permute.xlu2 %1834 }
0x1ba7   :  { %4299 = vmatmul.msk.f32.vlgmr.msra.gmra.mxu0 %vm368_vm13, %v1835_v49 }
0x1ba8   :  { %2457 = vmatpush.msra.mxu0 %v5523_v3 }
0x1baa   :  { %2458 = vmatpush.msra.mxu0 %v5525_v50 }
0x1bac   :  { %2459 = vmatpush.msra.mxu0 %v5535_v55 }
0x1bae   :  { %2460 = vmatpush.msra.mxu0 %v5537_v58 }
0x1bc5   :  { %v1838_v27 = vpop.permute.xlu0 %1837 }
0x1bc6   :  { %v1840_v29 = vsel %vm368_vm13, %v1835_v49, %v1838_v27 }
0x1bc7   :  { %4297 = vmatmul.msk.f32.vlgmr.msrb.gmra.mxu2 %vm438_vm14, %v1840_v29 }
0x1bc8   :  { %2388 = vmatpush.msrb.mxu2 %v5583_v54 }
0x1bca   :  { %2389 = vmatpush.msrb.mxu2 %v5588_v4 }
0x1bcc   :  { %2390 = vmatpush.msrb.mxu2 %v5595_v45 }
0x1bce   :  { %2391 = vmatpush.msrb.mxu2 %v5604_v9 }
0x1bd0   :  { %2392 = vmatpush.msrb.mxu2 %v5613_v10 }
0x1bd2   :  { %2393 = vmatpush.msrb.mxu2 %v5622_v11 }
0x1bd4   :  { %2394 = vmatpush.msrb.mxu2 %v5631_v12 }
0x1bd6   :  { %2395 = vmatpush.msrb.mxu2 %v5647_v15 }
0x1c24   :  { %v1926_v3 = vpop.f32.mrf.mxu0 }
0x1c25   :  { %v1929_v50 = vadd.f32 %v1926_v3, %v5568_v43 }
0x1c27   :  { %4563 = vtanh.f32 %v1929_v50  ;;  %v4300_v24 = vmul.f32 -1.442695, %v1929_v50 }
0x1c2d   :  { %v4564_v55 = vpop.eup %4563 }
0x1c2e   :  { %1952 = vrot.lane.b32.xlu1 %v4564_v55, %s4974_s1 }
0x1c4a   :  { %v1861_v58 = vpop.f32.mrf.mxu2 }
0x1c4b   :  { %v1862_v30 = vadd.f32 %v5679_v19, %v1861_v58 }
0x1c4d   :  { %4565 = vtanh.f32 %v1862_v30  ;;  %v4298_v34 = vmul.f32 -1.442695, %v1862_v30 }
0x1c4e   :  { %4567 = vpow2.f32 %v4300_v24 }
0x1c53   :  { %v4566_v26 = vpop.eup %4565 }
0x1c54   :  { %1886 = vrot.lane.b32.xlu2 %v4566_v26, %s4974_s1  ;;  %v4568_v31 = vpop.eup %4567 }
0x1c55   :  { %v1933_v32 = vadd.f32 1.0, %v4568_v31 }
0x1c57   :  { %4569 = vrcp.f32 %v1933_v32  ;;  %v1945_v46 = vand.u32 2147483648, %v1933_v32  ;;  %vm1939_vm10 = vweird.f32 %v1933_v32  ;;  %v1943_v48 = vand.u32 2147483647, %v1933_v32 }
0x1c58   :  { %4571 = vpow2.f32 %v4298_v34 }
0x1c59   :  { %v1946_v57 = vor.u32 1.1754944e-38, %v1945_v46  ;;  %vm1944_vm12 = vcmp.eq.f32.partialorder %v1943_v48, 8.507059e+37 }
0x1c5d   :  { %v4570_v35 = vpop.eup %4569 }
0x1c5e   :  { %v4572_v36 = vpop.eup %4571  ;;  %v1935_v0 = vmul.f32 %v4570_v35, %v1933_v32  ;;  %vm1940_vm9 = vweird.f32 %v4570_v35 }
0x1c5f   :  { %v1867_v37 = vadd.f32 1.0, %v4572_v36  ;;  %vm1941_vm11 = vmor %vm1939_vm10, %vm1940_vm9 }
0x1c60   :  { %v1936_v38 = vsub.f32 1.0, %v1935_v0 }
0x1c61   :  { %4573 = vrcp.f32 %v1867_v37  ;;  %v1879_v7 = vand.u32 2147483648, %v1867_v37  ;;  %vm1873_vm0 = vweird.f32 %v1867_v37  ;;  %v1877_v8 = vand.u32 2147483647, %v1867_v37 }
0x1c62   :  { %v1937_v40 = vmul.f32 %v4570_v35, %v1936_v38 }
0x1c63   :  { %v1880_v63 = vor.u32 1.1754944e-38, %v1879_v7  ;;  %vm1878_vm2 = vcmp.eq.f32.partialorder %v1877_v8, 8.507059e+37 }
0x1c64   :  { %v1938_v44 = vadd.f32 %v4570_v35, %v1937_v40 }
0x1c66   :  { %v1942_v47 = vsel %vm1941_vm11, %v4570_v35, %v1938_v44 }
0x1c67   :  { %v4574_v42 = vpop.eup %4573  ;;  %v1947_v59 = vsel %vm1944_vm12, %v1946_v57, %v1942_v47 }
0x1c68   :  { %v1869_v56 = vmul.f32 %v4574_v42, %v1867_v37  ;;  %vm1874_vm15 = vweird.f32 %v4574_v42  ;;  %v1950_v53 = vmul.f32 %v1947_v59, %v5724_v16 }
0x1c69   :  { %vm1875_vm1 = vmor %vm1873_vm0, %vm1874_vm15 }
0x1c6a   :  { %v1870_v41 = vsub.f32 1.0, %v1869_v56 }
0x1c6c   :  { %v1871_v5 = vmul.f32 %v4574_v42, %v1870_v41 }
0x1c6e   :  { %v1872_v6 = vadd.f32 %v4574_v42, %v1871_v5 }
0x1c70   :  { %v1876_v62 = vsel %vm1875_vm1, %v4574_v42, %v1872_v6 }
0x1c71   :  { %v1881_v2 = vsel %vm1878_vm2, %v1880_v63, %v1876_v62 }
0x1c72   :  { %v1884_v21 = vmul.f32 %v1881_v2, %v5728_v20 }
0x1ca0   :  { %v1953_v60 = vpop.permute.xlu1 %1952 }
0x1ca1   :  { %v1955_v61 = vmul.f32 %v1953_v60, %v1947_v59 }
0x1ca3   :  { %1957 = vrot.lane.b32.xlu0 %v1955_v61, %s4975_s30 }
0x1cae   :  { %v1887_v1 = vpop.permute.xlu2 %1886 }
0x1caf   :  { %v1889_v51 = vmul.f32 %v1887_v1, %v1881_v2 }
0x1cb1   :  { %1891 = vrot.lane.b32.xlu1 %v1889_v51, %s4975_s30 }
0x1d15   :  { %v1958_v13 = vpop.permute.xlu0 %1957 }
0x1d16   :  { %v5760_v17 = vadd.f32 %v1958_v13, %v1950_v53 }
0x1d18   :  { %4575 = vtanh.f32 %v5760_v17 }
0x1d1e   :  { %v4576_v18 = vpop.eup %4575 }
0x1d1f   :  { %1963 = vrot.lane.b32.xlu2 %v4576_v18, %s4974_s1 }
0x1d23   :  { %v1892_v52 = vpop.permute.xlu1 %1891 }
0x1d24   :  { %v5765_v22 = vadd.f32 %v1892_v52, %v1884_v21 }
0x1d26   :  { %4577 = vtanh.f32 %v5765_v22 }
0x1d2c   :  { %v4578_v14 = vpop.eup %4577 }
0x1d2d   :  { %1897 = vrot.lane.b32.xlu0 %v4578_v14, %s4974_s1 }
0x1d79   :  { %v1964_v23 = vpop.permute.xlu2 %1963 }
0x1d7a   :  { %v1966_v16 = vmul.f32 %v1964_v23, %v1947_v59 }
0x1d7c   :  { %1968 = vrot.lane.b32.xlu1 %v1966_v16, %s4975_s30 }
0x1d9f   :  { %v1898_v49 = vpop.permute.xlu0 %1897 }
0x1da0   :  { %v5770_v27 = vmul.f32 %v1898_v49, %v1881_v2 }
0x1da2   :  { %1971 = vrot.lane.b32.xlu2 %v5770_v27, %s4974_s1 }
0x1dee   :  { %v1969_v29 = vpop.permute.xlu1 %1968 }
0x1def   :  { %4303 = vmatmul.msk.f32.vlgmr.msra.gmra.mxu3 %vm368_vm13, %v1969_v29 }
0x1dfc   :  { %v1972_v20 = vpop.permute.xlu2 %1971 }
0x1dfd   :  { %v1974_v3 = vsel %vm368_vm13, %v1969_v29, %v1972_v20 }
0x1dfe   :  { %4301 = vmatmul.msk.f32.vlgmr.msrb.gmra.mxu1 %vm438_vm14, %v1974_v3 }
0x1dff   :  { %2522 = vmatpush.msrb.mxu1 %v5583_v54 }
0x1e01   :  { %2523 = vmatpush.msrb.mxu1 %v5588_v4 }
0x1e03   :  { %2524 = vmatpush.msrb.mxu1 %v5595_v45 }
0x1e05   :  { %2525 = vmatpush.msrb.mxu1 %v5604_v9 }
0x1e07   :  { %2526 = vmatpush.msrb.mxu1 %v5613_v10 }
0x1e09   :  { %2527 = vmatpush.msrb.mxu1 %v5622_v11 }
0x1e0b   :  { %2528 = vmatpush.msrb.mxu1 %v5631_v12 }
0x1e0d   :  { %2529 = vmatpush.msrb.mxu1 %v5647_v15 }
0x1e72   :  { %v2060_v50 = vpop.f32.mrf.mxu3 }
0x1e73   :  { %v2063_v55 = vadd.f32 %v2060_v50, %v5568_v43 }
0x1e75   :  { %4579 = vtanh.f32 %v2063_v55  ;;  %v4304_v9 = vmul.f32 -1.442695, %v2063_v55 }
0x1e7b   :  { %v4580_v58 = vpop.eup %4579  ;;  %v1995_v54 = vpop.f32.mrf.mxu1 }
0x1e7c   :  { %v1996_v4 = vadd.f32 %v5679_v19, %v1995_v54  ;;  %2086 = vrot.lane.b32.xlu0 %v4580_v58, %s4974_s1 }
0x1e7e   :  { %4581 = vtanh.f32 %v1996_v4  ;;  %v4302_v10 = vmul.f32 -1.442695, %v1996_v4 }
0x1e7f   :  { %4583 = vpow2.f32 %v4304_v9 }
0x1e80   :  { %4585 = vpow2.f32 %v4302_v10 }
0x1e84   :  { %v4582_v45 = vpop.eup %4581 }
0x1e85   :  { %2020 = vrot.lane.b32.xlu1 %v4582_v45, %s4974_s1  ;;  %v4584_v11 = vpop.eup %4583 }
0x1e86   :  { %v2067_v12 = vadd.f32 1.0, %v4584_v11  ;;  %v4586_v15 = vpop.eup %4585 }
0x1e87   :  { %v2001_v30 = vadd.f32 1.0, %v4586_v15 }
0x1e88   :  { %4587 = vrcp.f32 %v2067_v12  ;;  %v2079_v0 = vand.u32 2147483648, %v2067_v12  ;;  %vm2073_vm4 = vweird.f32 %v2067_v12  ;;  %v2077_v38 = vand.u32 2147483647, %v2067_v12 }
0x1e89   :  { %4589 = vrcp.f32 %v2001_v30  ;;  %v2013_v57 = vand.u32 2147483648, %v2001_v30  ;;  %vm2007_vm8 = vweird.f32 %v2001_v30  ;;  %v2011_v41 = vand.u32 2147483647, %v2001_v30 }
0x1e8a   :  { %v2080_v42 = vor.u32 1.1754944e-38, %v2079_v0  ;;  %vm2078_vm6 = vcmp.eq.f32.partialorder %v2077_v38, 8.507059e+37 }
0x1e8b   :  { %v2014_v60 = vor.u32 1.1754944e-38, %v2013_v57  ;;  %vm2012_vm10 = vcmp.eq.f32.partialorder %v2011_v41, 8.507059e+37 }
0x1e8e   :  { %v4588_v26 = vpop.eup %4587 }
0x1e8f   :  { %v2069_v24 = vmul.f32 %v4588_v26, %v2067_v12  ;;  %v4590_v32 = vpop.eup %4589  ;;  %vm2074_vm3 = vweird.f32 %v4588_v26 }
0x1e90   :  { %v2003_v35 = vmul.f32 %v4590_v32, %v2001_v30  ;;  %vm2075_vm5 = vmor %vm2073_vm4, %vm2074_vm3  ;;  %vm2008_vm7 = vweird.f32 %v4590_v32 }
0x1e91   :  { %v2070_v31 = vsub.f32 1.0, %v2069_v24  ;;  %vm2009_vm9 = vmor %vm2007_vm8, %vm2008_vm7 }
0x1e92   :  { %v2004_v37 = vsub.f32 1.0, %v2003_v35 }
0x1e93   :  { %v2071_v34 = vmul.f32 %v4588_v26, %v2070_v31 }
0x1e94   :  { %v2005_v44 = vmul.f32 %v4590_v32, %v2004_v37 }
0x1e95   :  { %v2072_v36 = vadd.f32 %v4588_v26, %v2071_v34 }
0x1e96   :  { %v2006_v47 = vadd.f32 %v4590_v32, %v2005_v44 }
0x1e97   :  { %v2076_v40 = vsel %vm2075_vm5, %v4588_v26, %v2072_v36 }
0x1e98   :  { %v2081_v48 = vsel %vm2078_vm6, %v2080_v42, %v2076_v40  ;;  %v2010_v59 = vsel %vm2009_vm9, %v4590_v32, %v2006_v47 }
0x1e99   :  { %v2015_v5 = vsel %vm2012_vm10, %v2014_v60, %v2010_v59  ;;  %v2084_v7 = vmul.f32 %v2081_v48, %v5760_v17 }
0x1e9a   :  { %v2018_v1 = vmul.f32 %v2015_v5, %v5765_v22 }
0x1eee   :  { %v2087_v46 = vpop.permute.xlu0 %2086 }
0x1eef   :  { %v2089_v56 = vmul.f32 %v2087_v46, %v2081_v48 }
0x1ef1   :  { %2091 = vrot.lane.b32.xlu2 %v2089_v56, %s4975_s30 }
0x1ef7   :  { %v2021_v61 = vpop.permute.xlu1 %2020 }
0x1ef8   :  { %v2023_v6 = vmul.f32 %v2021_v61, %v2015_v5 }
0x1efa   :  { %2025 = vrot.lane.b32.xlu0 %v2023_v6, %s4975_s30 }
0x1f4b   :  { %v2092_v8 = vpop.permute.xlu2 %2091 }
0x1f4c   :  { %v5792_v62 = vadd.f32 %v2092_v8, %v2084_v7 }
0x1f4e   :  { %4591 = vtanh.f32 %v5792_v62 }
0x1f54   :  { %v4592_v63 = vpop.eup %4591 }
0x1f55   :  { %2097 = vrot.lane.b32.xlu1 %v4592_v63, %s4974_s1 }
0x1f6c   :  { %v2026_v2 = vpop.permute.xlu0 %2025 }
0x1f6d   :  { %v5797_v51 = vadd.f32 %v2026_v2, %v2018_v1 }
0x1f6f   :  { %4593 = vtanh.f32 %v5797_v51 }
0x1f75   :  { %v4594_v53 = vpop.eup %4593 }
0x1f76   :  { %2031 = vrot.lane.b32.xlu2 %v4594_v53, %s4974_s1 }
0x1fc7   :  { %v2098_v13 = vpop.permute.xlu1 %2097 }
0x1fc8   :  { %v2100_v17 = vmul.f32 %v2098_v13, %v2081_v48 }
0x1fca   :  { %2102 = vrot.lane.b32.xlu0 %v2100_v17, %s4975_s30 }
0x1fd0   :  { %v2032_v18 = vpop.permute.xlu2 %2031 }
0x1fd1   :  { %v5802_v21 = vmul.f32 %v2032_v18, %v2015_v5 }
0x1fd3   :  { %2105 = vrot.lane.b32.xlu1 %v5802_v21, %s4974_s1 }
0x203c   :  { %v2103_v52 = vpop.permute.xlu0 %2102 }
0x203d   :  { %4307 = vmatmul.msk.f32.vlgmr.msra.gmra.mxu2 %vm368_vm13, %v2103_v52 }
0x2045   :  { %v2106_v22 = vpop.permute.xlu1 %2105 }
0x2046   :  { %v2108_v14 = vsel %vm368_vm13, %v2103_v52, %v2106_v22 }
0x2047   :  { %4305 = vmatmul.msk.f32.vlgmr.msrb.gmra.mxu0 %vm438_vm14, %v2108_v14 }
0x20c0   :  { %v2194_v23 = vpop.f32.mrf.mxu2 }
0x20c1   :  { %v2197_v16 = vadd.f32 %v2194_v23, %v5568_v43 }
0x20c3   :  { %4595 = vtanh.f32 %v2197_v16  ;;  %v4308_v54 = vmul.f32 -1.442695, %v2197_v16 }
0x20c4   :  { %v2129_v49 = vpop.f32.mrf.mxu0 }
0x20c5   :  { %v2130_v29 = vadd.f32 %v5679_v19, %v2129_v49 }
0x20c7   :  { %4597 = vtanh.f32 %v2130_v29  ;;  %v4306_v50 = vmul.f32 -1.442695, %v2130_v29 }
0x20c9   :  { %v4596_v20 = vpop.eup %4595  ;;  %4599 = vpow2.f32 %v4306_v50 }
0x20ca   :  { %2220 = vrot.lane.b32.xlu0 %v4596_v20, %s4974_s1 }
0x20cd   :  { %v4598_v3 = vpop.eup %4597 }
0x20ce   :  { %2154 = vrot.lane.b32.xlu2 %v4598_v3, %s4974_s1 }
0x20cf   :  { %v4600_v55 = vpop.eup %4599 }
0x20d0   :  { %v2135_v58 = vadd.f32 1.0, %v4600_v55 }
0x20d2   :  { %4601 = vrcp.f32 %v2135_v58  ;;  %v2147_v30 = vand.u32 2147483648, %v2135_v58  ;;  %vm2141_vm12 = vweird.f32 %v2135_v58  ;;  %v2145_v26 = vand.u32 2147483647, %v2135_v58 }
0x20d3   :  { %4603 = vpow2.f32 %v4308_v54 }
0x20d4   :  { %v2148_v32 = vor.u32 1.1754944e-38, %v2147_v30  ;;  %vm2146_vm0 = vcmp.eq.f32.partialorder %v2145_v26, 8.507059e+37 }
0x20d8   :  { %v4602_v4 = vpop.eup %4601 }
0x20d9   :  { %v2137_v45 = vmul.f32 %v4602_v4, %v2135_v58  ;;  %v4604_v9 = vpop.eup %4603  ;;  %vm2142_vm11 = vweird.f32 %v4602_v4 }
0x20da   :  { %v2201_v11 = vadd.f32 1.0, %v4604_v9  ;;  %vm2143_vm15 = vmor %vm2141_vm12, %vm2142_vm11 }
0x20db   :  { %v2138_v10 = vsub.f32 1.0, %v2137_v45 }
0x20dc   :  { %4605 = vrcp.f32 %v2201_v11  ;;  %v2213_v42 = vand.u32 2147483648, %v2201_v11  ;;  %vm2207_vm2 = vweird.f32 %v2201_v11  ;;  %v2211_v44 = vand.u32 2147483647, %v2201_v11 }
0x20dd   :  { %v2139_v12 = vmul.f32 %v4602_v4, %v2138_v10 }
0x20de   :  { %v2214_v48 = vor.u32 1.1754944e-38, %v2213_v42  ;;  %vm2212_vm4 = vcmp.eq.f32.partialorder %v2211_v44, 8.507059e+37 }
0x20df   :  { %v2140_v15 = vadd.f32 %v4602_v4, %v2139_v12 }
0x20e1   :  { %v2144_v24 = vsel %vm2143_vm15, %v4602_v4, %v2140_v15 }
0x20e2   :  { %v4606_v31 = vpop.eup %4605  ;;  %v2149_v35 = vsel %vm2146_vm0, %v2148_v32, %v2144_v24 }
0x20e3   :  { %v2203_v0 = vmul.f32 %v4606_v31, %v2201_v11  ;;  %vm2208_vm1 = vweird.f32 %v4606_v31  ;;  %v2152_v61 = vmul.f32 %v2149_v35, %v5797_v51 }
0x20e4   :  { %vm2209_vm3 = vmor %vm2207_vm2, %vm2208_vm1 }
0x20e5   :  { %v2204_v37 = vsub.f32 1.0, %v2203_v0 }
0x20e7   :  { %v2205_v38 = vmul.f32 %v4606_v31, %v2204_v37 }
0x20e9   :  { %v2206_v40 = vadd.f32 %v4606_v31, %v2205_v38 }
0x20eb   :  { %v2210_v46 = vsel %vm2209_vm3, %v4606_v31, %v2206_v40 }
0x20ec   :  { %v2215_v47 = vsel %vm2212_vm4, %v2214_v48, %v2210_v46 }
0x20ed   :  { %v2218_v41 = vmul.f32 %v2215_v47, %v5792_v62 }
0x2128   :  { %v2155_v34 = vpop.permute.xlu2 %2154 }
0x2129   :  { %v2157_v36 = vmul.f32 %v2155_v34, %v2149_v35 }
0x212b   :  { %2159 = vrot.lane.b32.xlu1 %v2157_v36, %s4975_s30 }
0x213c   :  { %v2221_v56 = vpop.permute.xlu0 %2220 }
0x213d   :  { %v2223_v57 = vmul.f32 %v2221_v56, %v2215_v47 }
0x213f   :  { %2225 = vrot.lane.b32.xlu2 %v2223_v57, %s4975_s30 }
0x2199   :  { %v2226_v59 = vpop.permute.xlu2 %2225 }
0x219a   :  { %v5816_v60 = vadd.f32 %v2226_v59, %v2218_v41 }
0x219c   :  { %4607 = vtanh.f32 %v5816_v60 }
0x219d   :  { %v2160_v5 = vpop.permute.xlu1 %2159 }
0x219e   :  { %v5820_v6 = vadd.f32 %v2160_v5, %v2152_v61 }
0x21a0   :  { %4609 = vtanh.f32 %v5820_v6 }
0x21a2   :  { %v4608_v7 = vpop.eup %4607 }
0x21a3   :  { %2231 = vrot.lane.b32.xlu1 %v4608_v7, %s4974_s1 }
0x21a6   :  { %v4610_v8 = vpop.eup %4609 }
0x21a7   :  { %2165 = vrot.lane.b32.xlu0 %v4610_v8, %s4974_s1 }
0x2215   :  { %v2232_v63 = vpop.permute.xlu1 %2231 }
0x2216   :  { %v2234_v62 = vmul.f32 %v2232_v63, %v2215_v47  ;;  %v2846_v63 = vld [vmem:[#allocation10 + $0x18] sm:$0xff] }
0x2217   :  { %2863 = vmatpush.msrb.mxu0 %v2846_v63 }
0x2218   :  { %2236 = vrot.lane.b32.xlu2 %v2234_v62, %s4975_s30  ;;  %v2844_v62 = vld [vmem:[#allocation10 + $0x8] sm:$0xff] }
0x2219   :  { %v2166_v1 = vpop.permute.xlu0 %2165 }
0x221a   :  { %v5826_v2 = vmul.f32 %v2166_v1, %v2149_v35  ;;  %v2843_v1 = vld [vmem:[#allocation10] sm:$0xff] }
0x221c   :  { %2239 = vrot.lane.b32.xlu0 %v5826_v2, %s4974_s1 }
0x2272   :  { %v2237_v51 = vpop.permute.xlu2 %2236 }
0x2273   :  { %4311 = vmatmul.msk.f32.vlgmr.msra.gmra.mxu1 %vm368_vm13, %v2237_v51 }
0x228e   :  { %v2240_v53 = vpop.permute.xlu0 %2239 }
0x228f   :  { %v2242_v13 = vsel %vm368_vm13, %v2237_v51, %v2240_v53 }
0x2290   :  { %4309 = vmatmul.msk.f32.vlgmr.msrb.gmra.mxu3 %vm438_vm14, %v2242_v13 }
0x22f0   :  { %v2328_v17 = vpop.f32.mrf.mxu1 }
0x22f1   :  { %v2331_v18 = vadd.f32 %v2328_v17, %v5568_v43 }
0x22f3   :  { %4611 = vtanh.f32 %v2331_v18  ;;  %v4312_v16 = vmul.f32 -1.442695, %v2331_v18 }
0x22f9   :  { %v4612_v52 = vpop.eup %4611 }
0x22fa   :  { %2354 = vrot.lane.b32.xlu2 %v4612_v52, %s4974_s1 }
0x2313   :  { %v2263_v22 = vpop.f32.mrf.mxu3 }
0x2314   :  { %v2264_v14 = vadd.f32 %v5679_v19, %v2263_v22 }
0x2316   :  { %4613 = vtanh.f32 %v2264_v14  ;;  %v4310_v15 = vmul.f32 -1.442695, %v2264_v14 }
0x2317   :  { %4615 = vpow2.f32 %v4312_v16 }
0x231c   :  { %v4614_v23 = vpop.eup %4613 }
0x231d   :  { %2288 = vrot.lane.b32.xlu1 %v4614_v23, %s4974_s1  ;;  %v4616_v49 = vpop.eup %4615 }
0x231e   :  { %v2335_v29 = vadd.f32 1.0, %v4616_v49 }
0x2320   :  { %4617 = vrcp.f32 %v2335_v29  ;;  %v2347_v54 = vand.u32 2147483648, %v2335_v29  ;;  %vm2341_vm6 = vweird.f32 %v2335_v29  ;;  %v2345_v4 = vand.u32 2147483647, %v2335_v29 }
0x2321   :  { %4619 = vpow2.f32 %v4310_v15 }
0x2322   :  { %v2348_v9 = vor.u32 1.1754944e-38, %v2347_v54  ;;  %vm2346_vm8 = vcmp.eq.f32.partialorder %v2345_v4, 8.507059e+37 }
0x2326   :  { %v4618_v20 = vpop.eup %4617 }
0x2327   :  { %v2337_v3 = vmul.f32 %v4618_v20, %v2335_v29  ;;  %vm2342_vm5 = vweird.f32 %v4618_v20  ;;  %v4620_v30 = vpop.eup %4619 }
0x2328   :  { %vm2343_vm7 = vmor %vm2341_vm6, %vm2342_vm5  ;;  %v2269_v26 = vadd.f32 1.0, %v4620_v30 }
0x2329   :  { %v2338_v50 = vsub.f32 1.0, %v2337_v3 }
0x232a   :  { %4621 = vrcp.f32 %v2269_v26  ;;  %v2281_v36 = vand.u32 2147483648, %v2269_v26  ;;  %vm2275_vm10 = vweird.f32 %v2269_v26  ;;  %v2279_v0 = vand.u32 2147483647, %v2269_v26 }
0x232b   :  { %v2339_v55 = vmul.f32 %v4618_v20, %v2338_v50 }
0x232c   :  { %v2282_v38 = vor.u32 1.1754944e-38, %v2281_v36  ;;  %vm2280_vm12 = vcmp.eq.f32.partialorder %v2279_v0, 8.507059e+37 }
0x232d   :  { %v2340_v58 = vadd.f32 %v4618_v20, %v2339_v55 }
0x232f   :  { %v2344_v45 = vsel %vm2343_vm7, %v4618_v20, %v2340_v58 }
0x2330   :  { %v2349_v11 = vsel %vm2346_vm8, %v2348_v9, %v2344_v45  ;;  %v4622_v24 = vpop.eup %4621 }
0x2331   :  { %v2271_v31 = vmul.f32 %v4622_v24, %v2269_v26  ;;  %vm2276_vm9 = vweird.f32 %v4622_v24  ;;  %v2352_v46 = vmul.f32 %v2349_v11, %v5816_v60 }
0x2332   :  { %vm2277_vm11 = vmor %vm2275_vm10, %vm2276_vm9 }
0x2333   :  { %v2272_v32 = vsub.f32 1.0, %v2271_v31 }
0x2335   :  { %v2273_v34 = vmul.f32 %v4622_v24, %v2272_v32 }
0x2337   :  { %v2274_v35 = vadd.f32 %v4622_v24, %v2273_v34 }
0x2339   :  { %v2278_v37 = vsel %vm2277_vm11, %v4622_v24, %v2274_v35 }
0x233a   :  { %v2283_v42 = vsel %vm2280_vm12, %v2282_v38, %v2278_v37 }
0x233b   :  { %v2286_v57 = vmul.f32 %v2283_v42, %v5820_v6  ;;  %v2845_v6 = vld [vmem:[#allocation10 + $0x10] sm:$0xff] }
0x233c   :  { %2864 = vmatpush.msrb.mxu0 %v2845_v6 }
0x233e   :  { %2865 = vmatpush.msrb.mxu0 %v2844_v62 }
0x2340   :  { %2866 = vmatpush.msrb.mxu0 %v2843_v1 }
0x2354   :  { %v2355_v10 = vpop.permute.xlu2 %2354 }
0x2355   :  { %v2357_v12 = vmul.f32 %v2355_v10, %v2349_v11 }
0x2357   :  { %2359 = vrot.lane.b32.xlu1 %v2357_v12, %s4975_s30 }
0x238f   :  { %v2289_v40 = vpop.permute.xlu1 %2288 }
0x2390   :  { %v2291_v44 = vmul.f32 %v2289_v40, %v2283_v42 }
0x2392   :  { %2293 = vrot.lane.b32.xlu0 %v2291_v44, %s4975_s30 }
0x23c9   :  { %v2360_v48 = vpop.permute.xlu1 %2359 }
0x23ca   :  { %v5840_v56 = vadd.f32 %v2360_v48, %v2352_v46 }
0x23cc   :  { %4623 = vtanh.f32 %v5840_v56 }
0x23d2   :  { %v4624_v47 = vpop.eup %4623 }
0x23d3   :  { %2365 = vrot.lane.b32.xlu0 %v4624_v47, %s4974_s1 }
0x2404   :  { %v2294_v41 = vpop.permute.xlu0 %2293 }
0x2405   :  { %v5845_v59 = vadd.f32 %v2294_v41, %v2286_v57 }
0x2407   :  { %4625 = vtanh.f32 %v5845_v59 }
0x240d   :  { %v4626_v61 = vpop.eup %4625 }
0x240e   :  { %2299 = vrot.lane.b32.xlu2 %v4626_v61, %s4974_s1  ;;  %v5875_v61 = vld [vmem:[#allocation12 + $0x18] sm:$0xff] }
0x240f   :  { %2898 = vmatpush.msra.mxu2 %v5875_v61  ;;  %3034 = vmatpush.msra.mxu1 %v5875_v61 }
0x2445   :  { %v2366_v5 = vpop.permute.xlu0 %2365 }
0x2446   :  { %v2368_v60 = vmul.f32 %v2366_v5, %v2349_v11  ;;  %v5881_v5 = vld [vmem:[#allocation12 + $0x8] sm:$0xff] }
0x2448   :  { %2370 = vrot.lane.b32.xlu1 %v2368_v60, %s4975_s30 }
0x2468   :  { %v2300_v7 = vpop.permute.xlu2 %2299 }
0x2469   :  { %v5850_v8 = vmul.f32 %v2300_v7, %v2283_v42 }
0x246b   :  { %2373 = vrot.lane.b32.xlu2 %v5850_v8, %s4974_s1 }
0x24ba   :  { %v2371_v51 = vpop.permute.xlu1 %2370 }
0x24bb   :  { %4315 = vmatmul.msk.f32.vlgmr.msra.gmra.mxu0 %vm368_vm13, %v2371_v51 }
0x24c3   :  { %4327 = vmatmul.msk.f32.vlgmr.msrb.gmra.mxu0 %vm368_vm13, %v5561_v28 }
0x24c5   :  { %v2374_v53 = vpop.permute.xlu2 %2373 }
0x24c6   :  { %v2376_v13 = vsel %vm368_vm13, %v2371_v51, %v2374_v53  ;;  %v4391_v53 = vld [vmem:[%s6890_s15] ss:$0 sm:$0xff] }
0x24c7   :  { %4313 = vmatmul.msk.f32.vlgmr.msrb.gmra.mxu2 %vm438_vm14, %v2376_v13 }
0x2538   :  { %v2462_v17 = vpop.f32.mrf.mxu0 }
0x2539   :  { %v2465_v18 = vadd.f32 %v2462_v17, %v5568_v43 }
0x253b   :  { %4627 = vtanh.f32 %v2465_v18  ;;  %v4316_v28 = vmul.f32 -1.442695, %v2465_v18 }
0x2540   :  { %v2868_v13 = vpop.f32.mrf.mxu0 }
0x2541   :  { %v4628_v52 = vpop.eup %4627  ;;  %v5906_v17 = vadd.f32 %v4391_v53, %v2868_v13  ;;  %v5931_v13 = vld [vmem:[#allocation13 + $0x38] sm:$0xff] }
0x2542   :  { %2488 = vrot.lane.b32.xlu0 %v4628_v52, %s4974_s1  ;;  %2966 = vmatpush.msra.mxu0 %v5931_v13 }
0x254a   :  { %v2397_v22 = vpop.f32.mrf.mxu2 }
0x254b   :  { %v2398_v14 = vadd.f32 %v5679_v19, %v2397_v22 }
0x254d   :  { %4629 = vtanh.f32 %v2398_v14  ;;  %v4314_v29 = vmul.f32 -1.442695, %v2398_v14 }
0x254e   :  { %4631 = vpow2.f32 %v4316_v28 }
0x2553   :  { %v4630_v23 = vpop.eup %4629 }
0x2554   :  { %2422 = vrot.lane.b32.xlu1 %v4630_v23, %s4974_s1  ;;  %v4632_v16 = vpop.eup %4631  ;;  %v4784_v23 = vld [vmem:[%s6885_s10] ss:$0 sm:$0xff] }
0x2555   :  { %v2469_v49 = vadd.f32 1.0, %v4632_v16 }
0x2557   :  { %4633 = vrcp.f32 %v2469_v49  ;;  %v2481_v19 = vand.u32 2147483648, %v2469_v49  ;;  %vm2475_vm0 = vweird.f32 %v2469_v49  ;;  %v2479_v4 = vand.u32 2147483647, %v2469_v49 }
0x2558   :  { %4635 = vpow2.f32 %v4314_v29 }
0x2559   :  { %v2482_v10 = vor.u32 1.1754944e-38, %v2481_v19  ;;  %vm2480_vm2 = vcmp.eq.f32.partialorder %v2479_v4, 8.507059e+37 }
0x255d   :  { %v4634_v20 = vpop.eup %4633 }
0x255e   :  { %v2471_v43 = vmul.f32 %v4634_v20, %v2469_v49  ;;  %v4636_v3 = vpop.eup %4635  ;;  %vm2476_vm15 = vweird.f32 %v4634_v20 }
0x255f   :  { %v2403_v55 = vadd.f32 1.0, %v4636_v3  ;;  %vm2477_vm1 = vmor %vm2475_vm0, %vm2476_vm15 }
0x2560   :  { %v2472_v50 = vsub.f32 1.0, %v2471_v43 }
0x2561   :  { %4637 = vrcp.f32 %v2403_v55  ;;  %v2415_v32 = vand.u32 2147483648, %v2403_v55  ;;  %vm2409_vm4 = vweird.f32 %v2403_v55  ;;  %v2413_v34 = vand.u32 2147483647, %v2403_v55 }
0x2562   :  { %v2473_v58 = vmul.f32 %v4634_v20, %v2472_v50 }
0x2563   :  { %v2416_v36 = vor.u32 1.1754944e-38, %v2415_v32  ;;  %vm2414_vm6 = vcmp.eq.f32.partialorder %v2413_v34, 8.507059e+37 }
0x2564   :  { %v2474_v54 = vadd.f32 %v4634_v20, %v2473_v58 }
0x2566   :  { %v2478_v9 = vsel %vm2477_vm1, %v4634_v20, %v2474_v54 }
0x2567   :  { %v4638_v45 = vpop.eup %4637  ;;  %v2483_v15 = vsel %vm2480_vm2, %v2482_v10, %v2478_v9 }
0x2568   :  { %v2405_v11 = vmul.f32 %v4638_v45, %v2403_v55  ;;  %vm2410_vm3 = vweird.f32 %v4638_v45  ;;  %v2486_v40 = vmul.f32 %v2483_v15, %v5840_v56  ;;  %v5877_v56 = vld [vmem:[#allocation12 + $0x10] sm:$0xff] }
0x2569   :  { %vm2411_vm5 = vmor %vm2409_vm4, %vm2410_vm3  ;;  %2899 = vmatpush.msra.mxu2 %v5877_v56  ;;  %3035 = vmatpush.msra.mxu1 %v5877_v56 }
0x256a   :  { %v2406_v26 = vsub.f32 1.0, %v2405_v11 }
0x256b   :  { %2900 = vmatpush.msra.mxu2 %v5881_v5  ;;  %3036 = vmatpush.msra.mxu1 %v5881_v5 }
0x256c   :  { %v2407_v24 = vmul.f32 %v4638_v45, %v2406_v26 }
0x256e   :  { %v2408_v31 = vadd.f32 %v4638_v45, %v2407_v24 }
0x2570   :  { %v2412_v35 = vsel %vm2411_vm5, %v4638_v45, %v2408_v31 }
0x2571   :  { %v2417_v37 = vsel %vm2414_vm6, %v2416_v36, %v2412_v35 }
0x2572   :  { %v2420_v48 = vmul.f32 %v2417_v37, %v5845_v59  ;;  %v5885_v59 = vld [vmem:[#allocation12] sm:$0xff] }
0x2573   :  { %2901 = vmatpush.msra.mxu2 %v5885_v59  ;;  %3037 = vmatpush.msra.mxu1 %v5885_v59 }
0x2575   :  { %3099 = vmatpush.msrb.mxu2 %v5931_v13 }
0x25b4   :  { %v2489_v12 = vpop.permute.xlu0 %2488 }
0x25b5   :  { %v2491_v30 = vmul.f32 %v2489_v12, %v2483_v15 }
0x25b7   :  { %2493 = vrot.lane.b32.xlu2 %v2491_v30, %s4975_s30 }
0x25c6   :  { %v2423_v0 = vpop.permute.xlu1 %2422 }
0x25c7   :  { %v2425_v38 = vmul.f32 %v2423_v0, %v2417_v37 }
0x25c9   :  { %2427 = vrot.lane.b32.xlu0 %v2425_v38, %s4975_s30 }
0x2611   :  { %v2494_v42 = vpop.permute.xlu2 %2493 }
0x2612   :  { %v5866_v44 = vadd.f32 %v2494_v42, %v2486_v40 }
0x2614   :  { %4639 = vtanh.f32 %v5866_v44 }
0x261a   :  { %v4640_v46 = vpop.eup %4639 }
0x261b   :  { %2499 = vrot.lane.b32.xlu1 %v4640_v46, %s4974_s1 }
0x263b   :  { %v2428_v47 = vpop.permute.xlu0 %2427 }
0x263c   :  { %v5871_v57 = vadd.f32 %v2428_v47, %v2420_v48 }
0x263e   :  { %4641 = vtanh.f32 %v5871_v57 }
0x2644   :  { %v4642_v41 = vpop.eup %4641 }
0x2645   :  { %2433 = vrot.lane.b32.xlu2 %v4642_v41, %s4974_s1 }
0x268d   :  { %v2500_v60 = vpop.permute.xlu1 %2499 }
0x268e   :  { %v2502_v7 = vmul.f32 %v2500_v60, %v2483_v15 }
0x2690   :  { %2504 = vrot.lane.b32.xlu0 %v2502_v7, %s4975_s30 }
0x269f   :  { %v2434_v63 = vpop.permute.xlu2 %2433 }
0x26a0   :  { %v5892_v6 = vmul.f32 %v2434_v63, %v2417_v37 }
0x26a2   :  { %2507 = vrot.lane.b32.xlu1 %v5892_v6, %s4974_s1 }
0x2702   :  { %v2505_v62 = vpop.permute.xlu0 %2504 }
0x2703   :  { %4328 = vmatmul.msk.f32.vlgmr.msra.gmra.mxu2 %vm368_vm13, %v2505_v62 }
0x2714   :  { %v2508_v1 = vpop.permute.xlu1 %2507 }
0x2715   :  { %v2510_v51 = vsel %vm368_vm13, %v2505_v62, %v2508_v1 }
0x2716   :  { %4317 = vmatmul.msk.f32.vlgmr.msrb.gmra.mxu1 %vm438_vm14, %v2510_v51 }
0x2717   :  { %3167 = vmatpush.msrb.mxu1 %v5875_v61 }
0x2719   :  { %3168 = vmatpush.msrb.mxu1 %v5877_v56 }
0x271b   :  { %3169 = vmatpush.msrb.mxu1 %v5881_v5 }
0x271d   :  { %3170 = vmatpush.msrb.mxu1 %v5885_v59 }
0x2786   :  { %v2903_v18 = vpop.f32.mrf.mxu2 }
0x2787   :  { %v2906_v52 = vadd.f32 %v2903_v18, %v5906_v17  ;;  %v5937_v18 = vld [vmem:[#allocation13 + $0x28] sm:$0xff] }
0x2789   :  { %4643 = vtanh.f32 %v2906_v52  ;;  %v4329_v20 = vmul.f32 -1.442695, %v2906_v52  ;;  %v5941_v52 = vld [vmem:[#allocation13 + $0x20] sm:$0xff] }
0x278f   :  { %v4644_v22 = vpop.eup %4643 }
0x2790   :  { %2929 = vrot.lane.b32.xlu0 %v4644_v22, %s4974_s1  ;;  %v5945_v22 = vld [vmem:[#allocation13 + $0x18] sm:$0xff] }
0x2793   :  { %v2531_v14 = vpop.f32.mrf.mxu1 }
0x2794   :  { %v2532_v28 = vadd.f32 %v4784_v23, %v2531_v14  ;;  %v5949_v14 = vld [vmem:[#allocation13 + $0x10] sm:$0xff]  ;;  %v5953_v23 = vld [vmem:[#allocation13 + $0x8] sm:$0xff] }
0x2796   :  { %4645 = vtanh.f32 %v2532_v28  ;;  %v4318_v49 = vmul.f32 -1.442695, %v2532_v28 }
0x2798   :  { %4647 = vpow2.f32 %v4318_v49 }
0x2799   :  { %4649 = vpow2.f32 %v4329_v20 }
0x279c   :  { %v4646_v16 = vpop.eup %4645 }
0x279d   :  { %2556 = vrot.lane.b32.xlu2 %v4646_v16, %s4974_s1  ;;  %v5962_v16 = vld [vmem:[#allocation13] sm:$0xff] }
0x279e   :  { %v4648_v29 = vpop.eup %4647 }
0x279f   :  { %v2537_v43 = vadd.f32 1.0, %v4648_v29  ;;  %v4650_v3 = vpop.eup %4649 }
0x27a0   :  { %v2910_v55 = vadd.f32 1.0, %v4650_v3 }
0x27a1   :  { %4651 = vrcp.f32 %v2537_v43  ;;  %v2549_v10 = vand.u32 2147483648, %v2537_v43  ;;  %vm2543_vm8 = vweird.f32 %v2537_v43  ;;  %v2547_v11 = vand.u32 2147483647, %v2537_v43 }
0x27a2   :  { %4653 = vrcp.f32 %v2910_v55  ;;  %v2922_v35 = vand.u32 2147483648, %v2910_v55  ;;  %vm2916_vm12 = vweird.f32 %v2910_v55  ;;  %v2920_v36 = vand.u32 2147483647, %v2910_v55 }
0x27a3   :  { %v2550_v30 = vor.u32 1.1754944e-38, %v2549_v10  ;;  %vm2548_vm10 = vcmp.eq.f32.partialorder %v2547_v11, 8.507059e+37 }
0x27a4   :  { %v2923_v37 = vor.u32 1.1754944e-38, %v2922_v35  ;;  %vm2921_vm0 = vcmp.eq.f32.partialorder %v2920_v36, 8.507059e+37 }
0x27a7   :  { %v4652_v50 = vpop.eup %4651 }
0x27a8   :  { %v2539_v58 = vmul.f32 %v4652_v50, %v2537_v43  ;;  %v4654_v19 = vpop.eup %4653  ;;  %vm2544_vm7 = vweird.f32 %v4652_v50 }
0x27a9   :  { %v2912_v45 = vmul.f32 %v4654_v19, %v2910_v55  ;;  %vm2545_vm9 = vmor %vm2543_vm8, %vm2544_vm7  ;;  %vm2917_vm11 = vweird.f32 %v4654_v19 }
0x27aa   :  { %v2540_v54 = vsub.f32 1.0, %v2539_v58  ;;  %vm2918_vm15 = vmor %vm2916_vm12, %vm2917_vm11 }
0x27ab   :  { %v2913_v12 = vsub.f32 1.0, %v2912_v45 }
0x27ac   :  { %v2541_v4 = vmul.f32 %v4652_v50, %v2540_v54 }
0x27ad   :  { %v2914_v31 = vmul.f32 %v4654_v19, %v2913_v12 }
0x27ae   :  { %v2542_v9 = vadd.f32 %v4652_v50, %v2541_v4 }
0x27af   :  { %v2915_v34 = vadd.f32 %v4654_v19, %v2914_v31 }
0x27b0   :  { %v2546_v15 = vsel %vm2545_vm9, %v4652_v50, %v2542_v9  ;;  %v5999_v50 = vld [vmem:[%s6892_s17] ss:$0 sm:$0xff] }
0x27b1   :  { %v2551_v24 = vsel %vm2548_vm10, %v2550_v30, %v2546_v15  ;;  %v2919_v0 = vsel %vm2918_vm15, %v4654_v19, %v2915_v34 }
0x27b2   :  { %v2924_v40 = vsel %vm2921_vm0, %v2923_v37, %v2919_v0  ;;  %v2554_v60 = vmul.f32 %v2551_v24, %v5871_v57  ;;  %v5933_v57 = vld [vmem:[#allocation13 + $0x30] sm:$0xff] }
0x27b3   :  { %v2927_v46 = vmul.f32 %v2924_v40, %v5866_v44  ;;  %2967 = vmatpush.msra.mxu0 %v5933_v57  ;;  %3100 = vmatpush.msrb.mxu2 %v5933_v57 }
0x27b5   :  { %2968 = vmatpush.msra.mxu0 %v5937_v18  ;;  %3101 = vmatpush.msrb.mxu2 %v5937_v18 }
0x27b7   :  { %2969 = vmatpush.msra.mxu0 %v5941_v52  ;;  %3102 = vmatpush.msrb.mxu2 %v5941_v52 }
0x27b9   :  { %2970 = vmatpush.msra.mxu0 %v5945_v22  ;;  %3103 = vmatpush.msrb.mxu2 %v5945_v22 }
0x27bb   :  { %2971 = vmatpush.msra.mxu0 %v5949_v14  ;;  %3104 = vmatpush.msrb.mxu2 %v5949_v14 }
0x27bd   :  { %2972 = vmatpush.msra.mxu0 %v5953_v23  ;;  %3105 = vmatpush.msrb.mxu2 %v5953_v23 }
0x27bf   :  { %2973 = vmatpush.msra.mxu0 %v5962_v16  ;;  %3106 = vmatpush.msrb.mxu2 %v5962_v16 }
0x27c1   :  { %3232 = vmatpush.msrb.mxu0 %v5931_v13  ;;  %3365 = vmatpush.msra.mxu2 %v5931_v13 }
0x27c3   :  { %3233 = vmatpush.msrb.mxu0 %v5933_v57  ;;  %3366 = vmatpush.msra.mxu2 %v5933_v57 }
0x27c5   :  { %3234 = vmatpush.msrb.mxu0 %v5937_v18  ;;  %3367 = vmatpush.msra.mxu2 %v5937_v18 }
0x27c7   :  { %3235 = vmatpush.msrb.mxu0 %v5941_v52  ;;  %3368 = vmatpush.msra.mxu2 %v5941_v52 }
0x27c9   :  { %3236 = vmatpush.msrb.mxu0 %v5945_v22  ;;  %3369 = vmatpush.msra.mxu2 %v5945_v22 }
0x27cb   :  { %3237 = vmatpush.msrb.mxu0 %v5949_v14  ;;  %3370 = vmatpush.msra.mxu2 %v5949_v14 }
0x27cd   :  { %3238 = vmatpush.msrb.mxu0 %v5953_v23  ;;  %3371 = vmatpush.msra.mxu2 %v5953_v23 }
0x27cf   :  { %3239 = vmatpush.msrb.mxu0 %v5962_v16  ;;  %3372 = vmatpush.msra.mxu2 %v5962_v16 }
0x27f7   :  { %v2557_v26 = vpop.permute.xlu2 %2556 }
0x27f8   :  { %v2559_v32 = vmul.f32 %v2557_v26, %v2551_v24 }
0x27fa   :  { %2561 = vrot.lane.b32.xlu1 %v2559_v32, %s4975_s30 }
0x2802   :  { %v2930_v38 = vpop.permute.xlu0 %2929 }
0x2803   :  { %v2932_v42 = vmul.f32 %v2930_v38, %v2924_v40 }
0x2805   :  { %2934 = vrot.lane.b32.xlu2 %v2932_v42, %s4975_s30 }
0x285f   :  { %v2935_v48 = vpop.permute.xlu2 %2934 }
0x2860   :  { %v5917_v47 = vadd.f32 %v2935_v48, %v2927_v46 }
0x2862   :  { %4655 = vtanh.f32 %v5917_v47 }
0x2868   :  { %v4656_v41 = vpop.eup %4655 }
0x2869   :  { %2940 = vrot.lane.b32.xlu1 %v4656_v41, %s4974_s1 }
0x286c   :  { %v2562_v7 = vpop.permute.xlu1 %2561 }
0x286d   :  { %v5922_v63 = vadd.f32 %v2562_v7, %v2554_v60 }
0x286f   :  { %4657 = vtanh.f32 %v5922_v63 }
0x2875   :  { %v4658_v62 = vpop.eup %4657 }
0x2876   :  { %2567 = vrot.lane.b32.xlu0 %v4658_v62, %s4974_s1 }
0x28db   :  { %v2941_v1 = vpop.permute.xlu1 %2940 }
0x28dc   :  { %v2943_v44 = vmul.f32 %v2941_v1, %v2924_v40 }
0x28de   :  { %2945 = vrot.lane.b32.xlu2 %v2943_v44, %s4975_s30 }
0x28e8   :  { %v2568_v51 = vpop.permute.xlu0 %2567 }
0x28e9   :  { %v5927_v53 = vmul.f32 %v2568_v51, %v2551_v24 }
0x28eb   :  { %2948 = vrot.lane.b32.xlu0 %v5927_v53, %s4974_s1 }
0x2938   :  { %v2946_v28 = vpop.permute.xlu2 %2945 }
0x2939   :  { %4332 = vmatmul.msk.f32.vlgmr.msra.gmra.mxu1 %vm368_vm13, %v2946_v28 }
0x293a   :  { %3300 = vmatpush.msra.mxu1 %v5875_v61 }
0x293c   :  { %3301 = vmatpush.msra.mxu1 %v5877_v56 }
0x293e   :  { %3302 = vmatpush.msra.mxu1 %v5881_v5 }
0x2940   :  { %3303 = vmatpush.msra.mxu1 %v5885_v59 }
0x295d   :  { %v2949_v49 = vpop.permute.xlu0 %2948 }
0x295e   :  { %v2951_v29 = vsel %vm368_vm13, %v2946_v28, %v2949_v49 }
0x295f   :  { %4330 = vmatmul.msk.f32.vlgmr.msra.gmra.mxu0 %vm438_vm14, %v2951_v29 }
0x2960   :  { %3498 = vmatpush.msra.mxu0 %v5931_v13 }
0x2962   :  { %3499 = vmatpush.msra.mxu0 %v5933_v57 }
0x2964   :  { %3500 = vmatpush.msra.mxu0 %v5937_v18 }
0x2966   :  { %3501 = vmatpush.msra.mxu0 %v5941_v52 }
0x2968   :  { %3502 = vmatpush.msra.mxu0 %v5945_v22 }
0x296a   :  { %3503 = vmatpush.msra.mxu0 %v5949_v14 }
0x296c   :  { %3504 = vmatpush.msra.mxu0 %v5953_v23 }
0x296e   :  { %3505 = vmatpush.msra.mxu0 %v5962_v16 }
0x29b6   :  { %v3039_v20 = vpop.f32.mrf.mxu1 }
0x29b7   :  { %v3042_v43 = vadd.f32 %v3039_v20, %v5906_v17 }
0x29b9   :  { %4659 = vtanh.f32 %v3042_v43  ;;  %v4333_v19 = vmul.f32 -1.442695, %v3042_v43 }
0x29bf   :  { %v4660_v3 = vpop.eup %4659 }
0x29c0   :  { %3065 = vrot.lane.b32.xlu2 %v4660_v3, %s4974_s1 }
0x29dc   :  { %v2975_v55 = vpop.f32.mrf.mxu0 }
0x29dd   :  { %v2976_v58 = vadd.f32 %v5999_v50, %v2975_v55 }
0x29df   :  { %4661 = vtanh.f32 %v2976_v58  ;;  %v4331_v36 = vmul.f32 -1.442695, %v2976_v58 }
0x29e0   :  { %4663 = vpow2.f32 %v4333_v19 }
0x29e5   :  { %v4662_v54 = vpop.eup %4661 }
0x29e6   :  { %3000 = vrot.lane.b32.xlu1 %v4662_v54, %s4974_s1  ;;  %v4664_v4 = vpop.eup %4663 }
0x29e7   :  { %v3046_v45 = vadd.f32 1.0, %v4664_v4 }
0x29e9   :  { %4665 = vrcp.f32 %v3046_v45  ;;  %v3058_v30 = vand.u32 2147483648, %v3046_v45  ;;  %vm3052_vm2 = vweird.f32 %v3046_v45  ;;  %v3056_v26 = vand.u32 2147483647, %v3046_v45 }
0x29ea   :  { %4667 = vpow2.f32 %v4331_v36 }
0x29eb   :  { %v3059_v31 = vor.u32 1.1754944e-38, %v3058_v30  ;;  %vm3057_vm4 = vcmp.eq.f32.partialorder %v3056_v26, 8.507059e+37 }
0x29ef   :  { %v4666_v9 = vpop.eup %4665 }
0x29f0   :  { %v3048_v10 = vmul.f32 %v4666_v9, %v3046_v45  ;;  %vm3053_vm1 = vweird.f32 %v4666_v9  ;;  %v4668_v0 = vpop.eup %4667 }
0x29f1   :  { %vm3054_vm3 = vmor %vm3052_vm2, %vm3053_vm1  ;;  %v2981_v37 = vadd.f32 1.0, %v4668_v0 }
0x29f2   :  { %v3049_v11 = vsub.f32 1.0, %v3048_v10 }
0x29f3   :  { %4669 = vrcp.f32 %v2981_v37  ;;  %v2993_v41 = vand.u32 2147483648, %v2981_v37  ;;  %vm2987_vm6 = vweird.f32 %v2981_v37  ;;  %v2991_v60 = vand.u32 2147483647, %v2981_v37 }
0x29f4   :  { %v3050_v12 = vmul.f32 %v4666_v9, %v3049_v11 }
0x29f5   :  { %v2994_v62 = vor.u32 1.1754944e-38, %v2993_v41  ;;  %vm2992_vm8 = vcmp.eq.f32.partialorder %v2991_v60, 8.507059e+37 }
0x29f6   :  { %v3051_v15 = vadd.f32 %v4666_v9, %v3050_v12 }
0x29f8   :  { %v3055_v24 = vsel %vm3054_vm3, %v4666_v9, %v3051_v15 }
0x29f9   :  { %v3060_v34 = vsel %vm3057_vm4, %v3059_v31, %v3055_v24  ;;  %v4670_v38 = vpop.eup %4669 }
0x29fa   :  { %v2983_v40 = vmul.f32 %v4670_v38, %v2981_v37  ;;  %vm2988_vm5 = vweird.f32 %v4670_v38  ;;  %v3063_v28 = vmul.f32 %v3060_v34, %v5917_v47 }
0x29fb   :  { %vm2989_vm7 = vmor %vm2987_vm6, %vm2988_vm5 }
0x29fc   :  { %v2984_v42 = vsub.f32 1.0, %v2983_v40 }
0x29fe   :  { %v2985_v46 = vmul.f32 %v4670_v38, %v2984_v42 }
0x2a00   :  { %v2986_v48 = vadd.f32 %v4670_v38, %v2985_v46 }
0x2a02   :  { %v2990_v7 = vsel %vm2989_vm7, %v4670_v38, %v2986_v48 }
0x2a03   :  { %v2995_v44 = vsel %vm2992_vm8, %v2994_v62, %v2990_v7 }
0x2a04   :  { %v2998_v43 = vmul.f32 %v2995_v44, %v5922_v63 }
0x2a1a   :  { %v3066_v32 = vpop.permute.xlu2 %3065 }
0x2a1b   :  { %v3068_v35 = vmul.f32 %v3066_v32, %v3060_v34 }
0x2a1d   :  { %3070 = vrot.lane.b32.xlu1 %v3068_v35, %s4975_s30 }
0x2a58   :  { %v3001_v1 = vpop.permute.xlu1 %3000 }
0x2a59   :  { %v3003_v51 = vmul.f32 %v3001_v1, %v2995_v44 }
0x2a5b   :  { %3005 = vrot.lane.b32.xlu0 %v3003_v51, %s4975_s30 }
0x2a8f   :  { %v3071_v49 = vpop.permute.xlu1 %3070 }
0x2a90   :  { %v6006_v29 = vadd.f32 %v3071_v49, %v3063_v28 }
0x2a92   :  { %4671 = vtanh.f32 %v6006_v29 }
0x2a98   :  { %v4672_v20 = vpop.eup %4671 }
0x2a99   :  { %3076 = vrot.lane.b32.xlu0 %v4672_v20, %s4974_s1 }
0x2acd   :  { %v3006_v3 = vpop.permute.xlu0 %3005 }
0x2ace   :  { %v6011_v55 = vadd.f32 %v3006_v3, %v2998_v43 }
0x2ad0   :  { %4673 = vtanh.f32 %v6011_v55 }
0x2ad6   :  { %v4674_v58 = vpop.eup %4673 }
0x2ad7   :  { %3011 = vrot.lane.b32.xlu2 %v4674_v58, %s4974_s1 }
0x2b0b   :  { %v3077_v54 = vpop.permute.xlu0 %3076 }
0x2b0c   :  { %v3079_v47 = vmul.f32 %v3077_v54, %v3060_v34 }
0x2b0e   :  { %3081 = vrot.lane.b32.xlu1 %v3079_v47, %s4975_s30 }
0x2b31   :  { %v3012_v19 = vpop.permute.xlu2 %3011 }
0x2b32   :  { %v6016_v4 = vmul.f32 %v3012_v19, %v2995_v44 }
0x2b34   :  { %3084 = vrot.lane.b32.xlu2 %v6016_v4, %s4974_s1 }
0x2b80   :  { %v3082_v45 = vpop.permute.xlu1 %3081 }
0x2b81   :  { %4336 = vmatmul.msk.f32.vlgmr.msrb.gmra.mxu1 %vm368_vm13, %v3082_v45 }
0x2b82   :  { %3433 = vmatpush.msrb.mxu1 %v5875_v61 }
0x2b84   :  { %3434 = vmatpush.msrb.mxu1 %v5877_v56 }
0x2b86   :  { %3435 = vmatpush.msrb.mxu1 %v5881_v5 }
0x2b88   :  { %3436 = vmatpush.msrb.mxu1 %v5885_v59 }
0x2b8e   :  { %v3085_v63 = vpop.permute.xlu2 %3084 }
0x2b8f   :  { %v3087_v9 = vsel %vm368_vm13, %v3082_v45, %v3085_v63 }
0x2b90   :  { %4334 = vmatmul.msk.f32.vlgmr.msrb.gmra.mxu2 %vm438_vm14, %v3087_v9 }
0x2b91   :  { %3631 = vmatpush.msrb.mxu2 %v5931_v13 }
0x2b93   :  { %3632 = vmatpush.msrb.mxu2 %v5933_v57 }
0x2b95   :  { %3633 = vmatpush.msrb.mxu2 %v5937_v18 }
0x2b97   :  { %3634 = vmatpush.msrb.mxu2 %v5941_v52 }
0x2b99   :  { %3635 = vmatpush.msrb.mxu2 %v5945_v22 }
0x2b9b   :  { %3636 = vmatpush.msrb.mxu2 %v5949_v14 }
0x2b9d   :  { %3637 = vmatpush.msrb.mxu2 %v5953_v23 }
0x2b9f   :  { %3638 = vmatpush.msrb.mxu2 %v5962_v16 }
0x2bfe   :  { %v3172_v10 = vpop.f32.mrf.mxu1 }
0x2bff   :  { %v3175_v11 = vadd.f32 %v3172_v10, %v5906_v17 }
0x2c01   :  { %4675 = vtanh.f32 %v3175_v11  ;;  %v4337_v24 = vmul.f32 -1.442695, %v3175_v11 }
0x2c07   :  { %v4676_v12 = vpop.eup %4675 }
0x2c08   :  { %3198 = vrot.lane.b32.xlu1 %v4676_v12, %s4974_s1 }
0x2c13   :  { %v3108_v15 = vpop.f32.mrf.mxu2 }
0x2c14   :  { %v3109_v30 = vadd.f32 %v5999_v50, %v3108_v15 }
0x2c16   :  { %4677 = vtanh.f32 %v3109_v30  ;;  %v4335_v34 = vmul.f32 -1.442695, %v3109_v30 }
0x2c17   :  { %4679 = vpow2.f32 %v4337_v24 }
0x2c1c   :  { %v4678_v26 = vpop.eup %4677 }
0x2c1d   :  { %3133 = vrot.lane.b32.xlu0 %v4678_v26, %s4974_s1  ;;  %v4680_v31 = vpop.eup %4679 }
0x2c1e   :  { %v3179_v32 = vadd.f32 1.0, %v4680_v31 }
0x2c20   :  { %4681 = vrcp.f32 %v3179_v32  ;;  %v3191_v46 = vand.u32 2147483648, %v3179_v32  ;;  %vm3185_vm10 = vweird.f32 %v3179_v32  ;;  %v3189_v48 = vand.u32 2147483647, %v3179_v32 }
0x2c21   :  { %4683 = vpow2.f32 %v4335_v34 }
0x2c22   :  { %v3192_v60 = vor.u32 1.1754944e-38, %v3191_v46  ;;  %vm3190_vm12 = vcmp.eq.f32.partialorder %v3189_v48, 8.507059e+37 }
0x2c26   :  { %v4682_v35 = vpop.eup %4681 }
0x2c27   :  { %v3181_v36 = vmul.f32 %v4682_v35, %v3179_v32  ;;  %v4684_v37 = vpop.eup %4683  ;;  %vm3186_vm9 = vweird.f32 %v4682_v35 }
0x2c28   :  { %v3114_v38 = vadd.f32 1.0, %v4684_v37  ;;  %vm3187_vm11 = vmor %vm3185_vm10, %vm3186_vm9 }
0x2c29   :  { %v3182_v0 = vsub.f32 1.0, %v3181_v36 }
0x2c2a   :  { %4685 = vrcp.f32 %v3114_v38  ;;  %v3126_v43 = vand.u32 2147483648, %v3114_v38  ;;  %vm3120_vm0 = vweird.f32 %v3114_v38  ;;  %v3124_v3 = vand.u32 2147483647, %v3114_v38 }
0x2c2b   :  { %v3183_v40 = vmul.f32 %v4682_v35, %v3182_v0 }
0x2c2c   :  { %v3127_v54 = vor.u32 1.1754944e-38, %v3126_v43  ;;  %vm3125_vm2 = vcmp.eq.f32.partialorder %v3124_v3, 8.507059e+37 }
0x2c2d   :  { %v3184_v42 = vadd.f32 %v4682_v35, %v3183_v40 }
0x2c2f   :  { %v3188_v41 = vsel %vm3187_vm11, %v4682_v35, %v3184_v42 }
0x2c30   :  { %v4686_v7 = vpop.eup %4685  ;;  %v3193_v1 = vsel %vm3190_vm12, %v3192_v60, %v3188_v41 }
0x2c31   :  { %v3116_v51 = vmul.f32 %v4686_v7, %v3114_v38  ;;  %vm3121_vm15 = vweird.f32 %v4686_v7  ;;  %v3196_v11 = vmul.f32 %v3193_v1, %v6006_v29 }
0x2c32   :  { %vm3122_vm1 = vmor %vm3120_vm0, %vm3121_vm15 }
0x2c33   :  { %v3117_v28 = vsub.f32 1.0, %v3116_v51 }
0x2c35   :  { %v3118_v49 = vmul.f32 %v4686_v7, %v3117_v28 }
0x2c37   :  { %v3119_v20 = vadd.f32 %v4686_v7, %v3118_v49 }
0x2c39   :  { %v3123_v58 = vsel %vm3122_vm1, %v4686_v7, %v3119_v20 }
0x2c3a   :  { %v3128_v19 = vsel %vm3125_vm2, %v3127_v54, %v3123_v58 }
0x2c3b   :  { %v3131_v63 = vmul.f32 %v3128_v19, %v6011_v55 }
0x2c7a   :  { %v3199_v62 = vpop.permute.xlu1 %3198 }
0x2c7b   :  { %v3201_v44 = vmul.f32 %v3199_v62, %v3193_v1 }
0x2c7d   :  { %3203 = vrot.lane.b32.xlu0 %v3201_v44, %s4975_s30 }
0x2c8f   :  { %v3134_v47 = vpop.permute.xlu0 %3133 }
0x2c90   :  { %v3136_v45 = vmul.f32 %v3134_v47, %v3128_v19 }
0x2c92   :  { %3138 = vrot.lane.b32.xlu2 %v3136_v45, %s4975_s30 }
0x2cec   :  { %v3139_v9 = vpop.permute.xlu2 %3138 }
0x2ced   :  { %v6042_v10 = vadd.f32 %v3139_v9, %v3131_v63 }
0x2cef   :  { %4687 = vtanh.f32 %v6042_v10  ;;  %v3204_v12 = vpop.permute.xlu0 %3203 }
0x2cf0   :  { %v6046_v15 = vadd.f32 %v3204_v12, %v3196_v11 }
0x2cf2   :  { %4689 = vtanh.f32 %v6046_v15 }
0x2cf5   :  { %v4688_v30 = vpop.eup %4687 }
0x2cf6   :  { %3144 = vrot.lane.b32.xlu1 %v4688_v30, %s4974_s1 }
0x2cf8   :  { %v4690_v26 = vpop.eup %4689 }
0x2cf9   :  { %3209 = vrot.lane.b32.xlu2 %v4690_v26, %s4974_s1 }
0x2d53   :  { %v3210_v24 = vpop.permute.xlu2 %3209 }
0x2d54   :  { %v3212_v55 = vmul.f32 %v3210_v24, %v3193_v1 }
0x2d56   :  { %3214 = vrot.lane.b32.xlu0 %v3212_v55, %s4975_s30 }
0x2d68   :  { %v3145_v31 = vpop.permute.xlu1 %3144 }
0x2d69   :  { %v6052_v32 = vmul.f32 %v3145_v31, %v3128_v19 }
0x2d6b   :  { %3217 = vrot.lane.b32.xlu1 %v6052_v32, %s4974_s1 }
0x2dc8   :  { %v3215_v29 = vpop.permute.xlu0 %3214 }
0x2dc9   :  { %4340 = vmatmul.msk.f32.vlgmr.msra.gmra.mxu1 %vm368_vm13, %v3215_v29 }
0x2dca   :  { %3566 = vmatpush.msra.mxu1 %v5875_v61 }
0x2dcc   :  { %3567 = vmatpush.msra.mxu1 %v5877_v56 }
0x2dce   :  { %3568 = vmatpush.msra.mxu1 %v5881_v5 }
0x2dd0   :  { %3569 = vmatpush.msra.mxu1 %v5885_v59 }
0x2ddd   :  { %v3218_v34 = vpop.permute.xlu1 %3217 }
0x2dde   :  { %v3220_v35 = vsel %vm368_vm13, %v3215_v29, %v3218_v34 }
0x2ddf   :  { %4338 = vmatmul.msk.f32.vlgmr.msrb.gmra.mxu0 %vm438_vm14, %v3220_v35 }
0x2de0   :  { %3832 = vmatpush.msrb.mxu0 %v5875_v61 }
0x2de2   :  { %3833 = vmatpush.msrb.mxu0 %v5877_v56 }
0x2de4   :  { %3834 = vmatpush.msrb.mxu0 %v5881_v5 }
0x2de6   :  { %3835 = vmatpush.msrb.mxu0 %v5885_v59 }
0x2e46   :  { %v3305_v36 = vpop.f32.mrf.mxu1 }
0x2e47   :  { %v3308_v0 = vadd.f32 %v3305_v36, %v5906_v17 }
0x2e49   :  { %4691 = vtanh.f32 %v3308_v0  ;;  %v4341_v48 = vmul.f32 -1.442695, %v3308_v0 }
0x2e4f   :  { %v4692_v37 = vpop.eup %4691 }
0x2e50   :  { %3331 = vrot.lane.b32.xlu0 %v4692_v37, %s4974_s1 }
0x2e5c   :  { %v3241_v38 = vpop.f32.mrf.mxu0 }
0x2e5d   :  { %v3242_v40 = vadd.f32 %v5999_v50, %v3241_v38 }
0x2e5f   :  { %4693 = vtanh.f32 %v3242_v40  ;;  %v4339_v46 = vmul.f32 -1.442695, %v3242_v40 }
0x2e61   :  { %4695 = vpow2.f32 %v4339_v46 }
0x2e62   :  { %4697 = vpow2.f32 %v4341_v48 }
0x2e65   :  { %v4694_v42 = vpop.eup %4693 }
0x2e66   :  { %3266 = vrot.lane.b32.xlu2 %v4694_v42, %s4974_s1 }
0x2e67   :  { %v4696_v41 = vpop.eup %4695 }
0x2e68   :  { %v4698_v60 = vpop.eup %4697  ;;  %v3247_v7 = vadd.f32 1.0, %v4696_v41 }
0x2e69   :  { %v3312_v62 = vadd.f32 1.0, %v4698_v60 }
0x2e6a   :  { %4699 = vrcp.f32 %v3247_v7  ;;  %v3259_v54 = vand.u32 2147483648, %v3247_v7  ;;  %vm3253_vm4 = vweird.f32 %v3247_v7  ;;  %v3257_v47 = vand.u32 2147483647, %v3247_v7 }
0x2e6b   :  { %4701 = vrcp.f32 %v3312_v62  ;;  %v3324_v45 = vand.u32 2147483648, %v3312_v62  ;;  %vm3318_vm7 = vweird.f32 %v3312_v62  ;;  %v3322_v9 = vand.u32 2147483647, %v3312_v62 }
0x2e6c   :  { %v3260_v11 = vor.u32 1.1754944e-38, %v3259_v54  ;;  %vm3258_vm9 = vcmp.eq.f32.partialorder %v3257_v47, 8.507059e+37 }
0x2e6d   :  { %v3325_v24 = vor.u32 1.1754944e-38, %v3324_v45  ;;  %vm3323_vm10 = vcmp.eq.f32.partialorder %v3322_v9, 8.507059e+37 }
0x2e70   :  { %v4700_v1 = vpop.eup %4699 }
0x2e71   :  { %v4702_v44 = vpop.eup %4701  ;;  %v3249_v51 = vmul.f32 %v4700_v1, %v3247_v7  ;;  %vm3254_vm3 = vweird.f32 %v4700_v1 }
0x2e72   :  { %v3314_v28 = vmul.f32 %v4702_v44, %v3312_v62  ;;  %vm3319_vm5 = vweird.f32 %v4702_v44  ;;  %vm3255_vm6 = vmor %vm3253_vm4, %vm3254_vm3 }
0x2e73   :  { %v3250_v49 = vsub.f32 1.0, %v3249_v51  ;;  %vm3320_vm8 = vmor %vm3318_vm7, %vm3319_vm5 }
0x2e74   :  { %v3315_v20 = vsub.f32 1.0, %v3314_v28 }
0x2e75   :  { %v3251_v43 = vmul.f32 %v4700_v1, %v3250_v49 }
0x2e76   :  { %v3316_v3 = vmul.f32 %v4702_v44, %v3315_v20 }
0x2e77   :  { %v3252_v58 = vadd.f32 %v4700_v1, %v3251_v43 }
0x2e78   :  { %v3317_v19 = vadd.f32 %v4702_v44, %v3316_v3 }
0x2e79   :  { %v3256_v63 = vsel %vm3255_vm6, %v4700_v1, %v3252_v58 }
0x2e7a   :  { %v3321_v12 = vsel %vm3320_vm8, %v4702_v44, %v3317_v19  ;;  %v3261_v26 = vsel %vm3258_vm9, %v3260_v11, %v3256_v63 }
0x2e7b   :  { %v3326_v29 = vsel %vm3323_vm10, %v3325_v24, %v3321_v12  ;;  %v3264_v38 = vmul.f32 %v3261_v26, %v6042_v10 }
0x2e7c   :  { %v3329_v35 = vmul.f32 %v3326_v29, %v6046_v15 }
0x2ec0   :  { %v3267_v30 = vpop.permute.xlu2 %3266 }
0x2ec1   :  { %v3269_v55 = vmul.f32 %v3267_v30, %v3261_v26 }
0x2ec2   :  { %v3332_v31 = vpop.permute.xlu0 %3331 }
0x2ec3   :  { %v3334_v34 = vmul.f32 %v3332_v31, %v3326_v29  ;;  %3271 = vrot.lane.b32.xlu1 %v3269_v55, %s4975_s30 }
0x2ec5   :  { %3336 = vrot.lane.b32.xlu2 %v3334_v34, %s4975_s30 }
0x2f1f   :  { %v3337_v36 = vpop.permute.xlu2 %3336 }
0x2f20   :  { %v6074_v0 = vadd.f32 %v3337_v36, %v3329_v35 }
0x2f22   :  { %4703 = vtanh.f32 %v6074_v0 }
0x2f28   :  { %v4704_v37 = vpop.eup %4703 }
0x2f29   :  { %3342 = vrot.lane.b32.xlu1 %v4704_v37, %s4974_s1 }
0x2f35   :  { %v3272_v40 = vpop.permute.xlu1 %3271 }
0x2f36   :  { %v6079_v42 = vadd.f32 %v3272_v40, %v3264_v38 }
0x2f38   :  { %4705 = vtanh.f32 %v6079_v42 }
0x2f3e   :  { %v4706_v46 = vpop.eup %4705 }
0x2f3f   :  { %3277 = vrot.lane.b32.xlu0 %v4706_v46, %s4974_s1 }
0x2f9b   :  { %v3343_v48 = vpop.permute.xlu1 %3342 }
0x2f9c   :  { %v3345_v15 = vmul.f32 %v3343_v48, %v3326_v29 }
0x2f9e   :  { %3347 = vrot.lane.b32.xlu2 %v3345_v15, %s4975_s30 }
0x2fb1   :  { %v3278_v41 = vpop.permute.xlu0 %3277 }
0x2fb2   :  { %v6084_v60 = vmul.f32 %v3278_v41, %v3261_v26 }
0x2fb4   :  { %3350 = vrot.lane.b32.xlu0 %v6084_v60, %s4974_s1 }
0x2ff8   :  { %v3348_v7 = vpop.permute.xlu2 %3347 }
0x2ff9   :  { %4344 = vmatmul.msk.f32.vlgmr.msrb.gmra.mxu1 %vm368_vm13, %v3348_v7 }
0x2ffa   :  { %3699 = vmatpush.msrb.mxu1 %v5875_v61 }
0x2ffc   :  { %3700 = vmatpush.msrb.mxu1 %v5877_v56 }
0x2ffe   :  { %3701 = vmatpush.msrb.mxu1 %v5881_v5 }
0x3000   :  { %3702 = vmatpush.msrb.mxu1 %v5885_v59 }
0x3026   :  { %v3351_v10 = vpop.permute.xlu0 %3350 }
0x3027   :  { %v3353_v62 = vsel %vm368_vm13, %v3348_v7, %v3351_v10 }
0x3028   :  { %4342 = vmatmul.msk.f32.vlgmr.msra.gmra.mxu2 %vm438_vm14, %v3353_v62 }
0x3076   :  { %v3438_v1 = vpop.f32.mrf.mxu1 }
0x3077   :  { %v3441_v44 = vadd.f32 %v3438_v1, %v5906_v17 }
0x3079   :  { %4707 = vtanh.f32 %v3441_v44  ;;  %v4345_v56 = vmul.f32 -1.442695, %v3441_v44 }
0x307f   :  { %v4708_v51 = vpop.eup %4707 }
0x3080   :  { %3464 = vrot.lane.b32.xlu2 %v4708_v51, %s4974_s1 }
0x30ab   :  { %v3374_v28 = vpop.f32.mrf.mxu2 }
0x30ac   :  { %v3375_v61 = vadd.f32 %v5999_v50, %v3374_v28 }
0x30ae   :  { %4709 = vtanh.f32 %v3375_v61  ;;  %v4343_v30 = vmul.f32 -1.442695, %v3375_v61 }
0x30af   :  { %4711 = vpow2.f32 %v4345_v56 }
0x30b4   :  { %v4710_v5 = vpop.eup %4709 }
0x30b5   :  { %3399 = vrot.lane.b32.xlu1 %v4710_v5, %s4974_s1  ;;  %v4712_v59 = vpop.eup %4711 }
0x30b6   :  { %v3445_v49 = vadd.f32 1.0, %v4712_v59 }
0x30b8   :  { %4713 = vrcp.f32 %v3445_v49  ;;  %v3457_v47 = vand.u32 2147483648, %v3445_v49  ;;  %vm3451_vm12 = vweird.f32 %v3445_v49  ;;  %v3455_v19 = vand.u32 2147483647, %v3445_v49 }
0x30b9   :  { %4715 = vpow2.f32 %v4343_v30 }
0x30ba   :  { %v3458_v63 = vor.u32 1.1754944e-38, %v3457_v47  ;;  %vm3456_vm0 = vcmp.eq.f32.partialorder %v3455_v19, 8.507059e+37 }
0x30be   :  { %v4714_v20 = vpop.eup %4713 }
0x30bf   :  { %v3447_v43 = vmul.f32 %v4714_v20, %v3445_v49  ;;  %vm3452_vm11 = vweird.f32 %v4714_v20  ;;  %v4716_v26 = vpop.eup %4715 }
0x30c0   :  { %vm3453_vm15 = vmor %vm3451_vm12, %vm3452_vm11  ;;  %v3380_v24 = vadd.f32 1.0, %v4716_v26 }
0x30c1   :  { %v3448_v3 = vsub.f32 1.0, %v3447_v43 }
0x30c2   :  { %4717 = vrcp.f32 %v3380_v24  ;;  %v3392_v36 = vand.u32 2147483648, %v3380_v24  ;;  %vm3386_vm2 = vweird.f32 %v3380_v24  ;;  %v3390_v37 = vand.u32 2147483647, %v3380_v24 }
0x30c3   :  { %v3449_v58 = vmul.f32 %v4714_v20, %v3448_v3 }
0x30c4   :  { %v3393_v40 = vor.u32 1.1754944e-38, %v3392_v36  ;;  %vm3391_vm4 = vcmp.eq.f32.partialorder %v3390_v37, 8.507059e+37 }
0x30c5   :  { %v3450_v54 = vadd.f32 %v4714_v20, %v3449_v58 }
0x30c7   :  { %v3454_v45 = vsel %vm3453_vm15, %v4714_v20, %v3450_v54 }
0x30c8   :  { %v3459_v11 = vsel %vm3456_vm0, %v3458_v63, %v3454_v45  ;;  %v4718_v55 = vpop.eup %4717 }
0x30c9   :  { %v3382_v31 = vmul.f32 %v4718_v55, %v3380_v24  ;;  %vm3387_vm1 = vweird.f32 %v4718_v55  ;;  %v3462_v41 = vmul.f32 %v3459_v11, %v6074_v0 }
0x30ca   :  { %vm3388_vm3 = vmor %vm3386_vm2, %vm3387_vm1 }
0x30cb   :  { %v3383_v29 = vsub.f32 1.0, %v3382_v31 }
0x30cd   :  { %v3384_v34 = vmul.f32 %v4718_v55, %v3383_v29 }
0x30cf   :  { %v3385_v35 = vadd.f32 %v4718_v55, %v3384_v34 }
0x30d1   :  { %v3389_v38 = vsel %vm3388_vm3, %v4718_v55, %v3385_v35 }
0x30d2   :  { %v3394_v48 = vsel %vm3391_vm4, %v3393_v40, %v3389_v38 }
0x30d3   :  { %v3397_v1 = vmul.f32 %v3394_v48, %v6079_v42 }
0x30da   :  { %v3465_v9 = vpop.permute.xlu2 %3464 }
0x30db   :  { %v3467_v12 = vmul.f32 %v3465_v9, %v3459_v11 }
0x30dd   :  { %3469 = vrot.lane.b32.xlu1 %v3467_v12, %s4975_s30 }
0x3127   :  { %v3400_v46 = vpop.permute.xlu1 %3399 }
0x3128   :  { %v3402_v15 = vmul.f32 %v3400_v46, %v3394_v48 }
0x312a   :  { %3404 = vrot.lane.b32.xlu0 %v3402_v15, %s4975_s30 }
0x314f   :  { %v3470_v7 = vpop.permute.xlu1 %3469 }
0x3150   :  { %v6102_v10 = vadd.f32 %v3470_v7, %v3462_v41 }
0x3152   :  { %4719 = vtanh.f32 %v6102_v10 }
0x3158   :  { %v4720_v62 = vpop.eup %4719 }
0x3159   :  { %3475 = vrot.lane.b32.xlu0 %v4720_v62, %s4974_s1 }
0x319c   :  { %v3405_v44 = vpop.permute.xlu0 %3404 }
0x319d   :  { %v6107_v51 = vadd.f32 %v3405_v44, %v3397_v1 }
0x319f   :  { %4721 = vtanh.f32 %v6107_v51 }
0x31a5   :  { %v4722_v28 = vpop.eup %4721 }
0x31a6   :  { %3410 = vrot.lane.b32.xlu2 %v4722_v28, %s4974_s1 }
0x31cb   :  { %v3476_v61 = vpop.permute.xlu0 %3475 }
0x31cc   :  { %v3478_v0 = vmul.f32 %v3476_v61, %v3459_v11 }
0x31ce   :  { %3480 = vrot.lane.b32.xlu1 %v3478_v0, %s4975_s30 }
0x3200   :  { %v3411_v56 = vpop.permute.xlu2 %3410 }
0x3201   :  { %v6112_v5 = vmul.f32 %v3411_v56, %v3394_v48 }
0x3203   :  { %3483 = vrot.lane.b32.xlu2 %v6112_v5, %s4974_s1 }
0x3240   :  { %v3481_v59 = vpop.permute.xlu1 %3480 }
0x3241   :  { %4348 = vmatmul.msk.f32.vlgmr.msra.gmra.mxu1 %vm368_vm13, %v3481_v59 }
0x3242   :  { %3897 = vmatpush.msra.mxu1 %v5931_v13 }
0x3244   :  { %3898 = vmatpush.msra.mxu1 %v5933_v57 }
0x3246   :  { %3899 = vmatpush.msra.mxu1 %v5937_v18 }
0x3248   :  { %3900 = vmatpush.msra.mxu1 %v5941_v52 }
0x324a   :  { %3901 = vmatpush.msra.mxu1 %v5945_v22 }
0x324c   :  { %3902 = vmatpush.msra.mxu1 %v5949_v14 }
0x324e   :  { %3903 = vmatpush.msra.mxu1 %v5953_v23 }
0x3250   :  { %3904 = vmatpush.msra.mxu1 %v5962_v16 }
0x325d   :  { %v3484_v42 = vpop.permute.xlu2 %3483 }
0x325e   :  { %v3486_v49 = vsel %vm368_vm13, %v3481_v59, %v3484_v42 }
0x325f   :  { %4346 = vmatmul.msk.f32.vlgmr.msra.gmra.mxu0 %vm438_vm14, %v3486_v49 }
0x32be   :  { %v3571_v20 = vpop.f32.mrf.mxu1 }
0x32bf   :  { %v3574_v43 = vadd.f32 %v3571_v20, %v5906_v17 }
0x32c1   :  { %4723 = vtanh.f32 %v3574_v43  ;;  %v4349_v23 = vmul.f32 -1.442695, %v3574_v43 }
0x32c7   :  { %v4724_v3 = vpop.eup %4723 }
0x32c8   :  { %3597 = vrot.lane.b32.xlu1 %v4724_v3, %s4974_s1 }
0x32dc   :  { %v3507_v58 = vpop.f32.mrf.mxu0 }
0x32dd   :  { %v3508_v54 = vadd.f32 %v5999_v50, %v3507_v58 }
0x32df   :  { %4725 = vtanh.f32 %v3508_v54  ;;  %v4347_v11 = vmul.f32 -1.442695, %v3508_v54 }
0x32e0   :  { %4727 = vpow2.f32 %v4349_v23 }
0x32e5   :  { %v4726_v47 = vpop.eup %4725 }
0x32e6   :  { %3532 = vrot.lane.b32.xlu0 %v4726_v47, %s4974_s1  ;;  %v4728_v19 = vpop.eup %4727 }
0x32e7   :  { %v3578_v45 = vadd.f32 1.0, %v4728_v19 }
0x32e9   :  { %4729 = vrcp.f32 %v3578_v45  ;;  %v3590_v24 = vand.u32 2147483648, %v3578_v45  ;;  %vm3584_vm6 = vweird.f32 %v3578_v45  ;;  %v3588_v31 = vand.u32 2147483647, %v3578_v45 }
0x32ea   :  { %4731 = vpow2.f32 %v4347_v11 }
0x32eb   :  { %v3591_v35 = vor.u32 1.1754944e-38, %v3590_v24  ;;  %vm3589_vm8 = vcmp.eq.f32.partialorder %v3588_v31, 8.507059e+37 }
0x32ef   :  { %v4730_v63 = vpop.eup %4729 }
0x32f0   :  { %v3580_v9 = vmul.f32 %v4730_v63, %v3578_v45  ;;  %vm3585_vm5 = vweird.f32 %v4730_v63  ;;  %v4732_v55 = vpop.eup %4731 }
0x32f1   :  { %vm3586_vm7 = vmor %vm3584_vm6, %vm3585_vm5  ;;  %v3513_v34 = vadd.f32 1.0, %v4732_v55 }
0x32f2   :  { %v3581_v12 = vsub.f32 1.0, %v3580_v9 }
0x32f3   :  { %4733 = vrcp.f32 %v3513_v34  ;;  %v3525_v7 = vand.u32 2147483648, %v3513_v34  ;;  %vm3519_vm10 = vweird.f32 %v3513_v34  ;;  %v3523_v62 = vand.u32 2147483647, %v3513_v34 }
0x32f4   :  { %v3582_v30 = vmul.f32 %v4730_v63, %v3581_v12 }
0x32f5   :  { %v3526_v44 = vor.u32 1.1754944e-38, %v3525_v7  ;;  %vm3524_vm12 = vcmp.eq.f32.partialorder %v3523_v62, 8.507059e+37  ;;  %v4785_v62 = vld [vmem:[#allocation13 + $0x8] sm:$0xff] }
0x32f6   :  { %v3583_v26 = vadd.f32 %v4730_v63, %v3582_v30 }
0x32f8   :  { %v3587_v29 = vsel %vm3586_vm7, %v4730_v63, %v3583_v26  ;;  %vm2673_vm7 = vcmask 24576  }
0x32f9   :  { %v3592_v37 = vsel %vm3589_vm8, %v3591_v35, %v3587_v29  ;;  %v4734_v40 = vpop.eup %4733  ;;  %v2586_v35 = vld [vmem:[%s6886_s11 + $0x8] sm:$0xff] }
0x32fa   :  { %v3515_v46 = vmul.f32 %v4734_v40, %v3513_v34  ;;  %vm3520_vm9 = vweird.f32 %v4734_v40  ;;  %v3595_v56 = vmul.f32 %v3592_v37, %v6102_v10 }
0x32fb   :  { %vm3521_vm11 = vmor %vm3519_vm10, %vm3520_vm9 }
0x32fc   :  { %v3516_v48 = vsub.f32 1.0, %v3515_v46 }
0x32fe   :  { %v3517_v15 = vmul.f32 %v4734_v40, %v3516_v48 }
0x3300   :  { %v3518_v41 = vadd.f32 %v4734_v40, %v3517_v15 }
0x3302   :  { %v3522_v1 = vsel %vm3521_vm11, %v4734_v40, %v3518_v41 }
0x3303   :  { %v3527_v61 = vsel %vm3524_vm12, %v3526_v44, %v3522_v1 }
0x3304   :  { %v3530_v49 = vmul.f32 %v3527_v61, %v6107_v51 }
0x333a   :  { %v3598_v36 = vpop.permute.xlu1 %3597 }
0x333b   :  { %v3600_v38 = vmul.f32 %v3598_v36, %v3592_v37  ;;  %v2585_v36 = vld [vmem:[%s6886_s11] sm:$0xff] }
0x333d   :  { %3602 = vrot.lane.b32.xlu0 %v3600_v38, %s4975_s30 }
0x3358   :  { %v3533_v28 = vpop.permute.xlu0 %3532 }
0x3359   :  { %v3535_v0 = vmul.f32 %v3533_v28, %v3527_v61 }
0x335b   :  { %3537 = vrot.lane.b32.xlu2 %v3535_v0, %s4975_s30 }
0x33af   :  { %v3603_v59 = vpop.permute.xlu0 %3602 }
0x33b0   :  { %v6134_v42 = vadd.f32 %v3603_v59, %v3595_v56 }
0x33b2   :  { %4735 = vtanh.f32 %v6134_v42 }
0x33b5   :  { %v3538_v20 = vpop.permute.xlu2 %3537 }
0x33b6   :  { %v6138_v43 = vadd.f32 %v3538_v20, %v3530_v49 }
0x33b8   :  { %v4736_v3 = vpop.eup %4735  ;;  %4737 = vtanh.f32 %v6138_v43 }
0x33b9   :  { %3608 = vrot.lane.b32.xlu2 %v4736_v3, %s4974_s1 }
0x33be   :  { %v4738_v58 = vpop.eup %4737 }
0x33bf   :  { %3543 = vrot.lane.b32.xlu1 %v4738_v58, %s4974_s1 }
0x3413   :  { %v3609_v54 = vpop.permute.xlu2 %3608 }
0x3414   :  { %v3611_v10 = vmul.f32 %v3609_v54, %v3592_v37 }
0x3416   :  { %3613 = vrot.lane.b32.xlu0 %v3611_v10, %s4975_s30 }
0x3431   :  { %v3544_v47 = vpop.permute.xlu1 %3543 }
0x3432   :  { %v6144_v23 = vmul.f32 %v3544_v47, %v3527_v61 }
0x3434   :  { %3616 = vrot.lane.b32.xlu1 %v6144_v23, %s4974_s1 }
0x3488   :  { %v3614_v51 = vpop.permute.xlu0 %3613 }
0x3489   :  { %4352 = vmatmul.msk.f32.vlgmr.msrb.gmra.mxu1 %vm368_vm13, %v3614_v51 }
0x34a6   :  { %v3617_v19 = vpop.permute.xlu1 %3616 }
0x34a7   :  { %v3619_v45 = vsel %vm368_vm13, %v3614_v51, %v3617_v19 }
0x34a8   :  { %4350 = vmatmul.msk.f32.vlgmr.msrb.gmra.mxu2 %vm438_vm14, %v3619_v45 }
0x3506   :  { %v3704_v63 = vpop.f32.mrf.mxu1 }
0x3507   :  { %v3707_v9 = vadd.f32 %v3704_v63, %v5906_v17 }
0x3509   :  { %4739 = vtanh.f32 %v3707_v9  ;;  %v4353_v24 = vmul.f32 -1.442695, %v3707_v9 }
0x350f   :  { %v4740_v11 = vpop.eup %4739 }
0x3510   :  { %3730 = vrot.lane.b32.xlu0 %v4740_v11, %s4974_s1  ;;  %v6218_v11 = vld [vmem:[%s6887_s12] ss:$0 sm:$0xff] }
0x3518   :  { %1635 = vrot.lane.b32.xlu0 %v5697_v33, %s4975_s30 }
0x3520   :  { %2036 = vrot.lane.b32.xlu0 %v5802_v21, %s4975_s30 }
0x3528   :  { %2170 = vrot.lane.b32.xlu0 %v5826_v2, %s4975_s30  ;;  %v2588_v2 = vld [vmem:[%s6886_s11 + $0x18] sm:$0xff] }
0x3529   :  { %2629 = vmatpush.msra.mxu3 %v2588_v2 }
0x352b   :  { %v3640_v12 = vpop.f32.mrf.mxu2 }
0x352c   :  { %v3641_v30 = vadd.f32 %v5999_v50, %v3640_v12 }
0x352e   :  { %4741 = vtanh.f32 %v3641_v30  ;;  %v4351_v31 = vmul.f32 -1.442695, %v3641_v30 }
0x352f   :  { %4743 = vpow2.f32 %v4353_v24 }
0x3530   :  { %2572 = vrot.lane.b32.xlu0 %v5927_v53, %s4975_s30  ;;  %v2587_v53 = vld [vmem:[%s6886_s11 + $0x10] sm:$0xff] }
0x3531   :  { %2630 = vmatpush.msra.mxu3 %v2587_v53 }
0x3533   :  { %2631 = vmatpush.msra.mxu3 %v2586_v35 }
0x3534   :  { %v4742_v26 = vpop.eup %4741 }
0x3535   :  { %3665 = vrot.lane.b32.xlu2 %v4742_v26, %s4974_s1  ;;  %v4744_v55 = vpop.eup %4743  ;;  %2632 = vmatpush.msra.mxu3 %v2585_v36 }
0x3536   :  { %v3711_v33 = vadd.f32 1.0, %v4744_v55 }
0x3537   :  { %3764 = vmatpush.msrb.mxu3 %v5931_v13 }
0x3538   :  { %4745 = vrcp.f32 %v3711_v33  ;;  %v3723_v48 = vand.u32 2147483648, %v3711_v33  ;;  %vm3717_vm0 = vweird.f32 %v3711_v33  ;;  %v3721_v41 = vand.u32 2147483647, %v3711_v33 }
0x3539   :  { %4747 = vpow2.f32 %v4351_v31  ;;  %3765 = vmatpush.msrb.mxu3 %v5933_v57 }
0x353a   :  { %v3724_v7 = vor.u32 1.1754944e-38, %v3723_v48  ;;  %vm3722_vm2 = vcmp.eq.f32.partialorder %v3721_v41, 8.507059e+37 }
0x353b   :  { %3766 = vmatpush.msrb.mxu3 %v5937_v18 }
0x353d   :  { %3767 = vmatpush.msrb.mxu3 %v5941_v52 }
0x353e   :  { %v4746_v21 = vpop.eup %4745 }
0x353f   :  { %v4748_v50 = vpop.eup %4747  ;;  %v3713_v34 = vmul.f32 %v4746_v21, %v3711_v33  ;;  %vm3718_vm15 = vweird.f32 %v4746_v21  ;;  %3768 = vmatpush.msrb.mxu3 %v5945_v22 }
0x3540   :  { %v3646_v29 = vadd.f32 1.0, %v4748_v50  ;;  %vm3719_vm1 = vmor %vm3717_vm0, %vm3718_vm15 }
0x3541   :  { %v3714_v37 = vsub.f32 1.0, %v3713_v34  ;;  %3769 = vmatpush.msrb.mxu3 %v5949_v14 }
0x3542   :  { %4749 = vrcp.f32 %v3646_v29  ;;  %v3658_v28 = vand.u32 2147483648, %v3646_v29  ;;  %vm3652_vm4 = vweird.f32 %v3646_v29  ;;  %v3656_v61 = vand.u32 2147483647, %v3646_v29 }
0x3543   :  { %v3715_v38 = vmul.f32 %v4746_v21, %v3714_v37  ;;  %3770 = vmatpush.msrb.mxu3 %v4785_v62 }
0x3544   :  { %v3659_v56 = vor.u32 1.1754944e-38, %v3658_v28  ;;  %vm3657_vm6 = vcmp.eq.f32.partialorder %v3656_v61, 8.507059e+37 }
0x3545   :  { %v3716_v46 = vadd.f32 %v4746_v21, %v3715_v38  ;;  %3771 = vmatpush.msrb.mxu3 %v5962_v16 }
0x3547   :  { %v3720_v13 = vsel %vm3719_vm1, %v4746_v21, %v3716_v46 }
0x3548   :  { %v4750_v40 = vpop.eup %4749  ;;  %v6181_v1 = vsel %vm3722_vm2, %v3724_v7, %v3720_v13 }
0x3549   :  { %v3648_v15 = vmul.f32 %v4750_v40, %v3646_v29  ;;  %vm3653_vm3 = vweird.f32 %v4750_v40  ;;  %v3728_v54 = vmul.f32 %v6181_v1, %v6134_v42 }
0x354a   :  { %vm3654_vm5 = vmor %vm3652_vm4, %vm3653_vm3 }
0x354b   :  { %v3649_v57 = vsub.f32 1.0, %v3648_v15 }
0x354d   :  { %v3650_v44 = vmul.f32 %v4750_v40, %v3649_v57 }
0x354f   :  { %v3651_v22 = vadd.f32 %v4750_v40, %v3650_v44 }
0x3551   :  { %v3655_v0 = vsel %vm3654_vm5, %v4750_v40, %v3651_v22  ;;  %vm1449_vm5 = vcmask 253952  }
0x3552   :  { %v6189_v59 = vsel %vm3657_vm6, %v3659_v56, %v3655_v0 }
0x3582   :  { %v3731_v18 = vpop.permute.xlu0 %3730 }
0x3583   :  { %v3733_v52 = vmul.f32 %v3731_v18, %v6181_v1 }
0x3585   :  { %3735 = vrot.lane.b32.xlu2 %v3733_v52, %s4975_s30 }
0x358a   :  { %v1636_v14 = vpop.permute.xlu0 %1635 }
0x358b   :  { %1638 = vst.msk [vmem:[#allocation3] sm:$0xff] %vm368_vm13, %v1636_v14 }
0x358d   :  { %1902 = vrot.lane.b32.xlu2 %v5770_v27, %s4975_s30 }
0x358f   :  { %v3666_v16 = vpop.permute.xlu2 %3665 }
0x3590   :  { %v3668_v49 = vmul.f32 %v3666_v16, %v6189_v59 }
0x3592   :  { %v2037_v20 = vpop.permute.xlu0 %2036  ;;  %3670 = vrot.lane.b32.xlu1 %v3668_v49, %s4975_s30  ;;  %v2577_v3 = vld [vmem:[#allocation3] sm:$0xff] }
0x3593   :  { %2040 = vst.msk [vmem:[#allocation3 + $0x18] sm:$0xff] %vm368_vm13, %v2037_v20  ;;  %4319 = vmatmul.msk.f32.vlgmr.msra.gmra.mxu3 %vm368_vm13, %v2577_v3 }
0x359a   :  { %v2171_v58 = vpop.permute.xlu0 %2170  ;;  %1768 = vrot.lane.b32.xlu1 %v5734_v25, %s4975_s30  ;;  %v3663_v25 = vmul.f32 %v6189_v59, %v6138_v43  ;;  %v2580_v2 = vld [vmem:[#allocation3 + $0x18] sm:$0xff] }
0x359b   :  { %2174 = vst.msk [vmem:[#allocation3 + $0x20] sm:$0xff] %vm368_vm13, %v2171_v58 }
0x35a2   :  { %v2573_v27 = vpop.permute.xlu0 %2572  ;;  %v2581_v50 = vld [vmem:[#allocation3 + $0x20] sm:$0xff] }
0x35a3   :  { %2576 = vst.msk [vmem:[#allocation3 + $0x38] sm:$0xff] %vm368_vm13, %v2573_v27 }
0x35aa   :  { %v2584_v52 = vld [vmem:[#allocation3 + $0x38] sm:$0xff] }
0x35df   :  { %v3736_v10 = vpop.permute.xlu2 %3735 }
0x35e0   :  { %v6201_v47 = vadd.f32 %v3736_v10, %v3728_v54 }
0x35e2   :  { %4751 = vtanh.f32 %v6201_v47 }
0x35e7   :  { %v1903_v51 = vpop.permute.xlu2 %1902 }
0x35e8   :  { %v4752_v19 = vpop.eup %4751  ;;  %1906 = vst.msk [vmem:[#allocation3 + $0x10] sm:$0xff] %vm368_vm13, %v1903_v51 }
0x35e9   :  { %3741 = vrot.lane.b32.xlu2 %v4752_v19, %s4974_s1 }
0x35f1   :  { %2438 = vrot.lane.b32.xlu2 %v5892_v6, %s4975_s30 }
0x3604   :  { %v3671_v45 = vpop.permute.xlu1 %3670 }
0x3605   :  { %v6210_v63 = vadd.f32 %v3671_v45, %v3663_v25 }
0x3607   :  { %4753 = vtanh.f32 %v6210_v63 }
0x360c   :  { %v1769_v42 = vpop.permute.xlu1 %1768 }
0x360d   :  { %v4754_v9 = vpop.eup %4753  ;;  %1772 = vst.msk [vmem:[#allocation3 + $0x8] sm:$0xff] %vm368_vm13, %v1769_v42 }
0x360e   :  { %3676 = vrot.lane.b32.xlu1 %v4754_v9, %s4974_s1 }
0x3614   :  { %v2578_v6 = vld [vmem:[#allocation3 + $0x8] sm:$0xff] }
0x3615   :  { %4320 = vmatmul.msk.f32.gmra.mxu3 %vm368_vm13, %v2578_v6 }
0x3616   :  { %v2634_v43 = vpop.f32.mrf.mxu3  ;;  %2304 = vrot.lane.b32.xlu1 %v5850_v8, %s4975_s30  ;;  %v2579_v8 = vld [vmem:[#allocation3 + $0x10] sm:$0xff] }
0x3617   :  { %v2635_v12 = vadd.f32 %v6218_v11, %v2634_v43 }
0x3619   :  { %v2659_v30 = vrot.slane %v2635_v12, 1  ;;  %v2660_v26 = vrot.slane %v2635_v12, 2  ;;  %v2661_v24 = vrot.slane %v2635_v12, 3  ;;  %2674 = vst.msk [vmem:[%s6896_s21] sm:$0x1] %vm2673_vm7, %v2635_v12  ;;  %v2662_v55 = vrot.slane %v2635_v12, 4 }
0x361a   :  { %v2663_v33 = vrot.slane %v2635_v12, 5  ;;  %v2664_v31 = vrot.slane %v2635_v12, 6  ;;  %v2665_v21 = vrot.slane %v2635_v12, 7 }
0x361b   :  { %2675 = vst.msk [vmem:[%s6896_s21 + $0x8] sm:$0x1] %vm2673_vm7, %v2659_v30 }
0x361c   :  { %2676 = vst.msk [vmem:[%s6896_s21 + $0x10] sm:$0x1] %vm2673_vm7, %v2660_v26 }
0x361d   :  { %2677 = vst.msk [vmem:[%s6896_s21 + $0x18] sm:$0x1] %vm2673_vm7, %v2661_v24  ;;  %4321 = vmatmul.msk.f32.gmra.mxu3 %vm368_vm13, %v2579_v8 }
0x361e   :  { %2678 = vst.msk [vmem:[%s6896_s21 + $0x20] sm:$0x1] %vm2673_vm7, %v2662_v55 }
0x361f   :  { %2679 = vst.msk [vmem:[%s6896_s21 + $0x28] sm:$0x1] %vm2673_vm7, %v2663_v33 }
0x3620   :  { %2680 = vst.msk [vmem:[%s6896_s21 + $0x30] sm:$0x1] %vm2673_vm7, %v2664_v31 }
0x3621   :  { %2681 = vst.msk [vmem:[%s6896_s21 + $0x38] sm:$0x1] %vm2673_vm7, %v2665_v21 }
0x3625   :  { %4322 = vmatmul.msk.f32.gmra.mxu3 %vm368_vm13, %v2580_v2 }
0x362d   :  { %4323 = vmatmul.msk.f32.gmra.mxu3 %vm368_vm13, %v2581_v50 }
0x3643   :  { %v3742_v53 = vpop.permute.xlu2 %3741 }
0x3644   :  { %v3744_v29 = vmul.f32 %v3742_v53, %v6181_v1 }
0x3646   :  { %3746 = vrot.lane.b32.xlu1 %v3744_v29, %s4975_s30 }
0x364b   :  { %v2439_v34 = vpop.permute.xlu2 %2438 }
0x364c   :  { %2442 = vst.msk [vmem:[#allocation3 + $0x30] sm:$0xff] %vm368_vm13, %v2439_v34 }
0x3653   :  { %v2583_v46 = vld [vmem:[#allocation3 + $0x30] sm:$0xff] }
0x3680   :  { %v3677_v35 = vpop.permute.xlu1 %3676 }
0x3681   :  { %v6263_v36 = vmul.f32 %v3677_v35, %v6189_v59 }
0x3683   :  { %3749 = vrot.lane.b32.xlu2 %v6263_v36, %s4974_s1 }
0x3688   :  { %v2305_v37 = vpop.permute.xlu1 %2304 }
0x3689   :  { %2308 = vst.msk [vmem:[#allocation3 + $0x28] sm:$0xff] %vm368_vm13, %v2305_v37 }
0x3690   :  { %v2582_v38 = vld [vmem:[#allocation3 + $0x28] sm:$0xff] }
0x3691   :  { %4324 = vmatmul.msk.f32.gmra.mxu3 %vm368_vm13, %v2582_v38 }
0x3698   :  { %v2637_v40 = vpop.f32.mrf.mxu3 }
0x3699   :  { %v2638_v48 = vadd.f32 %v6218_v11, %v2637_v40  ;;  %4325 = vmatmul.msk.f32.gmra.mxu3 %vm368_vm13, %v2583_v46 }
0x369b   :  { %v2683_v15 = vrot.slane %v2638_v48, 1  ;;  %v2684_v41 = vrot.slane %v2638_v48, 2  ;;  %v2685_v13 = vrot.slane %v2638_v48, 3  ;;  %2697 = vst.msk [vmem:[%s6896_s21 + $0x1] sm:$0x1] %vm2673_vm7, %v2638_v48  ;;  %v2686_v7 = vrot.slane %v2638_v48, 4 }
0x369c   :  { %v2687_v57 = vrot.slane %v2638_v48, 5  ;;  %v2688_v62 = vrot.slane %v2638_v48, 6  ;;  %v2689_v18 = vrot.slane %v2638_v48, 7 }
0x369d   :  { %2698 = vst.msk [vmem:[%s6896_s21 + $0x9] sm:$0x1] %vm2673_vm7, %v2683_v15 }
0x369e   :  { %2699 = vst.msk [vmem:[%s6896_s21 + $0x11] sm:$0x1] %vm2673_vm7, %v2684_v41 }
0x369f   :  { %2700 = vst.msk [vmem:[%s6896_s21 + $0x19] sm:$0x1] %vm2673_vm7, %v2685_v13 }
0x36a0   :  { %2701 = vst.msk [vmem:[%s6896_s21 + $0x21] sm:$0x1] %vm2673_vm7, %v2686_v7  ;;  %v2640_v1 = vpop.f32.mrf.mxu3 }
0x36a1   :  { %2702 = vst.msk [vmem:[%s6896_s21 + $0x29] sm:$0x1] %vm2673_vm7, %v2687_v57  ;;  %v2641_v44 = vadd.f32 %v6218_v11, %v2640_v1  ;;  %4326 = vmatmul.msk.f32.gmra.mxu3 %vm368_vm13, %v2584_v52 }
0x36a2   :  { %2703 = vst.msk [vmem:[%s6896_s21 + $0x31] sm:$0x1] %vm2673_vm7, %v2688_v62 }
0x36a3   :  { %2704 = vst.msk [vmem:[%s6896_s21 + $0x39] sm:$0x1] %vm2673_vm7, %v2689_v18  ;;  %v2706_v22 = vrot.slane %v2641_v44, 1  ;;  %v2707_v28 = vrot.slane %v2641_v44, 2  ;;  %v2708_v14 = vrot.slane %v2641_v44, 3  ;;  %v2709_v61 = vrot.slane %v2641_v44, 4 }
0x36a4   :  { %2720 = vst.msk [vmem:[%s6896_s21 + $0x2] sm:$0x1] %vm2673_vm7, %v2641_v44  ;;  %v2710_v0 = vrot.slane %v2641_v44, 5  ;;  %v2711_v56 = vrot.slane %v2641_v44, 6  ;;  %v2712_v16 = vrot.slane %v2641_v44, 7 }
0x36a5   :  { %2721 = vst.msk [vmem:[%s6896_s21 + $0xa] sm:$0x1] %vm2673_vm7, %v2706_v22 }
0x36a6   :  { %2722 = vst.msk [vmem:[%s6896_s21 + $0x12] sm:$0x1] %vm2673_vm7, %v2707_v28 }
0x36a7   :  { %2723 = vst.msk [vmem:[%s6896_s21 + $0x1a] sm:$0x1] %vm2673_vm7, %v2708_v14 }
0x36a8   :  { %2724 = vst.msk [vmem:[%s6896_s21 + $0x22] sm:$0x1] %vm2673_vm7, %v2709_v61  ;;  %v2643_v59 = vpop.f32.mrf.mxu3 }
0x36a9   :  { %2725 = vst.msk [vmem:[%s6896_s21 + $0x2a] sm:$0x1] %vm2673_vm7, %v2710_v0  ;;  %v2644_v49 = vadd.f32 %v6218_v11, %v2643_v59 }
0x36aa   :  { %2726 = vst.msk [vmem:[%s6896_s21 + $0x32] sm:$0x1] %vm2673_vm7, %v2711_v56  ;;  %v6510_v56 = vld [vmem:[%s6892_s17] ss:$0 sm:$0xff] }
0x36ab   :  { %2727 = vst.msk [vmem:[%s6896_s21 + $0x3a] sm:$0x1] %vm2673_vm7, %v2712_v16  ;;  %v2729_v20 = vrot.slane %v2644_v49, 1  ;;  %v2730_v3 = vrot.slane %v2644_v49, 2  ;;  %v2731_v58 = vrot.slane %v2644_v49, 3  ;;  %v2732_v27 = vrot.slane %v2644_v49, 4 }
0x36ac   :  { %2743 = vst.msk [vmem:[%s6896_s21 + $0x3] sm:$0x1] %vm2673_vm7, %v2644_v49  ;;  %v2733_v54 = vrot.slane %v2644_v49, 5  ;;  %v2734_v10 = vrot.slane %v2644_v49, 6  ;;  %v2735_v51 = vrot.slane %v2644_v49, 7 }
0x36ad   :  { %2744 = vst.msk [vmem:[%s6896_s21 + $0xb] sm:$0x1] %vm2673_vm7, %v2729_v20 }
0x36ae   :  { %2745 = vst.msk [vmem:[%s6896_s21 + $0x13] sm:$0x1] %vm2673_vm7, %v2730_v3 }
0x36af   :  { %2746 = vst.msk [vmem:[%s6896_s21 + $0x1b] sm:$0x1] %vm2673_vm7, %v2731_v58 }
0x36b0   :  { %2747 = vst.msk [vmem:[%s6896_s21 + $0x23] sm:$0x1] %vm2673_vm7, %v2732_v27  ;;  %v2646_v19 = vpop.f32.mrf.mxu3 }
0x36b1   :  { %2748 = vst.msk [vmem:[%s6896_s21 + $0x2b] sm:$0x1] %vm2673_vm7, %v2733_v54  ;;  %v2647_v25 = vadd.f32 %v6218_v11, %v2646_v19 }
0x36b2   :  { %2749 = vst.msk [vmem:[%s6896_s21 + $0x33] sm:$0x1] %vm2673_vm7, %v2734_v10 }
0x36b3   :  { %2750 = vst.msk [vmem:[%s6896_s21 + $0x3b] sm:$0x1] %vm2673_vm7, %v2735_v51  ;;  %v2752_v45 = vrot.slane %v2647_v25, 1  ;;  %v2753_v42 = vrot.slane %v2647_v25, 2  ;;  %v2754_v9 = vrot.slane %v2647_v25, 3  ;;  %v2755_v6 = vrot.slane %v2647_v25, 4 }
0x36b4   :  { %2766 = vst.msk [vmem:[%s6896_s21 + $0x4] sm:$0x1] %vm2673_vm7, %v2647_v25  ;;  %v2756_v43 = vrot.slane %v2647_v25, 5  ;;  %v2757_v12 = vrot.slane %v2647_v25, 6  ;;  %v2758_v30 = vrot.slane %v2647_v25, 7 }
0x36b5   :  { %2767 = vst.msk [vmem:[%s6896_s21 + $0xc] sm:$0x1] %vm2673_vm7, %v2752_v45 }
0x36b6   :  { %2768 = vst.msk [vmem:[%s6896_s21 + $0x14] sm:$0x1] %vm2673_vm7, %v2753_v42 }
0x36b7   :  { %2769 = vst.msk [vmem:[%s6896_s21 + $0x1c] sm:$0x1] %vm2673_vm7, %v2754_v9 }
0x36b8   :  { %2770 = vst.msk [vmem:[%s6896_s21 + $0x24] sm:$0x1] %vm2673_vm7, %v2755_v6  ;;  %v3747_v26 = vpop.permute.xlu1 %3746 }
0x36b9   :  { %2771 = vst.msk [vmem:[%s6896_s21 + $0x2c] sm:$0x1] %vm2673_vm7, %v2756_v43  ;;  %4356 = vmatmul.msk.f32.vlgmr.msrb.gmra.mxu0 %vm368_vm13, %v3747_v26 }
0x36ba   :  { %2772 = vst.msk [vmem:[%s6896_s21 + $0x34] sm:$0x1] %vm2673_vm7, %v2757_v12 }
0x36bb   :  { %2773 = vst.msk [vmem:[%s6896_s21 + $0x3c] sm:$0x1] %vm2673_vm7, %v2758_v30 }
0x36dd   :  { %v3750_v24 = vpop.permute.xlu2 %3749 }
0x36de   :  { %v3752_v55 = vsel %vm368_vm13, %v3747_v26, %v3750_v24 }
0x36df   :  { %4354 = vmatmul.msk.f32.vlgmr.msrb.gmra.mxu3 %vm438_vm14, %v3752_v55 }
0x3714   :  { %v2649_v33 = vpop.f32.mrf.mxu3 }
0x3715   :  { %v2650_v31 = vadd.f32 %v6218_v11, %v2649_v33 }
0x3717   :  { %v2775_v8 = vrot.slane %v2650_v31, 1  ;;  %v2776_v21 = vrot.slane %v2650_v31, 2  ;;  %v2777_v2 = vrot.slane %v2650_v31, 3  ;;  %2789 = vst.msk [vmem:[%s6896_s21 + $0x5] sm:$0x1] %vm2673_vm7, %v2650_v31  ;;  %v2778_v50 = vrot.slane %v2650_v31, 4 }
0x3718   :  { %v2779_v53 = vrot.slane %v2650_v31, 5  ;;  %v2780_v29 = vrot.slane %v2650_v31, 6  ;;  %v2781_v34 = vrot.slane %v2650_v31, 7 }
0x3719   :  { %2790 = vst.msk [vmem:[%s6896_s21 + $0xd] sm:$0x1] %vm2673_vm7, %v2775_v8 }
0x371a   :  { %2791 = vst.msk [vmem:[%s6896_s21 + $0x15] sm:$0x1] %vm2673_vm7, %v2776_v21 }
0x371b   :  { %2792 = vst.msk [vmem:[%s6896_s21 + $0x1d] sm:$0x1] %vm2673_vm7, %v2777_v2 }
0x371c   :  { %2793 = vst.msk [vmem:[%s6896_s21 + $0x25] sm:$0x1] %vm2673_vm7, %v2778_v50  ;;  %v2652_v35 = vpop.f32.mrf.mxu3 }
0x371d   :  { %2794 = vst.msk [vmem:[%s6896_s21 + $0x2d] sm:$0x1] %vm2673_vm7, %v2779_v53  ;;  %v2653_v37 = vadd.f32 %v6218_v11, %v2652_v35 }
0x371e   :  { %2795 = vst.msk [vmem:[%s6896_s21 + $0x35] sm:$0x1] %vm2673_vm7, %v2780_v29 }
0x371f   :  { %2796 = vst.msk [vmem:[%s6896_s21 + $0x3d] sm:$0x1] %vm2673_vm7, %v2781_v34  ;;  %v2798_v38 = vrot.slane %v2653_v37, 1  ;;  %v2799_v40 = vrot.slane %v2653_v37, 2  ;;  %v2800_v46 = vrot.slane %v2653_v37, 3  ;;  %v2801_v48 = vrot.slane %v2653_v37, 4 }
0x3720   :  { %2812 = vst.msk [vmem:[%s6896_s21 + $0x6] sm:$0x1] %vm2673_vm7, %v2653_v37  ;;  %v2802_v15 = vrot.slane %v2653_v37, 5  ;;  %v2803_v41 = vrot.slane %v2653_v37, 6  ;;  %v2804_v13 = vrot.slane %v2653_v37, 7 }
0x3721   :  { %2813 = vst.msk [vmem:[%s6896_s21 + $0xe] sm:$0x1] %vm2673_vm7, %v2798_v38 }
0x3722   :  { %2814 = vst.msk [vmem:[%s6896_s21 + $0x16] sm:$0x1] %vm2673_vm7, %v2799_v40 }
0x3723   :  { %2815 = vst.msk [vmem:[%s6896_s21 + $0x1e] sm:$0x1] %vm2673_vm7, %v2800_v46 }
0x3724   :  { %2816 = vst.msk [vmem:[%s6896_s21 + $0x26] sm:$0x1] %vm2673_vm7, %v2801_v48  ;;  %v2655_v7 = vpop.f32.mrf.mxu3 }
0x3725   :  { %2817 = vst.msk [vmem:[%s6896_s21 + $0x2e] sm:$0x1] %vm2673_vm7, %v2802_v15  ;;  %v2656_v57 = vadd.f32 %v6218_v11, %v2655_v7 }
0x3726   :  { %2818 = vst.msk [vmem:[%s6896_s21 + $0x36] sm:$0x1] %vm2673_vm7, %v2803_v41 }
0x3727   :  { %2819 = vst.msk [vmem:[%s6896_s21 + $0x3e] sm:$0x1] %vm2673_vm7, %v2804_v13  ;;  %v2821_v62 = vrot.slane %v2656_v57, 1  ;;  %v2822_v18 = vrot.slane %v2656_v57, 2  ;;  %v2823_v1 = vrot.slane %v2656_v57, 3  ;;  %v2824_v52 = vrot.slane %v2656_v57, 4 }
0x3728   :  { %2835 = vst.msk [vmem:[%s6896_s21 + $0x7] sm:$0x1] %vm2673_vm7, %v2656_v57  ;;  %v2825_v11 = vrot.slane %v2656_v57, 5  ;;  %v2826_v44 = vrot.slane %v2656_v57, 6  ;;  %v2827_v22 = vrot.slane %v2656_v57, 7 }
0x3729   :  { %2836 = vst.msk [vmem:[%s6896_s21 + $0xf] sm:$0x1] %vm2673_vm7, %v2821_v62 }
0x372a   :  { %2837 = vst.msk [vmem:[%s6896_s21 + $0x17] sm:$0x1] %vm2673_vm7, %v2822_v18 }
0x372b   :  { %2838 = vst.msk [vmem:[%s6896_s21 + $0x1f] sm:$0x1] %vm2673_vm7, %v2823_v1 }
0x372c   :  { %2839 = vst.msk [vmem:[%s6896_s21 + $0x27] sm:$0x1] %vm2673_vm7, %v2824_v52 }
0x372d   :  { %2840 = vst.msk [vmem:[%s6896_s21 + $0x2f] sm:$0x1] %vm2673_vm7, %v2825_v11 }
0x372e   :  { %2841 = vst.msk [vmem:[%s6896_s21 + $0x37] sm:$0x1] %vm2673_vm7, %v2826_v44 }
0x372f   :  { %2842 = vst.msk [vmem:[%s6896_s21 + $0x3f] sm:$0x1] %vm2673_vm7, %v2827_v22 }
0x3736   :  { %v3837_v28 = vpop.f32.mrf.mxu0 }
0x3737   :  { %v3840_v14 = vadd.f32 %v3837_v28, %v5906_v17 }
0x3739   :  { %4755 = vtanh.f32 %v3840_v14  ;;  %v4357_v49 = vmul.f32 -1.442695, %v3840_v14  ;;  %v3962_v14 = vld [vmem:[%s6893_s18 + $0x18] sm:$0xff] }
0x373a   :  { %4003 = vmatpush.msra.mxu0 %v3962_v14  ;;  %4369 = vmatpush.msra.mxu2 %v3962_v14  ;;  %v1416_v14 = vrot.slane %v5557_v39, 7 }
0x373f   :  { %v4756_v61 = vpop.eup %4755 }
0x3740   :  { %3863 = vrot.lane.b32.xlu1 %v4756_v61, %s4974_s1 }
0x3762   :  { %v3773_v0 = vpop.f32.mrf.mxu3 }
0x3763   :  { %v3774_v16 = vadd.f32 %v6510_v56, %v3773_v0  ;;  %v3961_v0 = vld [vmem:[%s6893_s18 + $0x10] sm:$0xff] }
0x3764   :  { %4004 = vmatpush.msra.mxu0 %v3961_v0  ;;  %4370 = vmatpush.msra.mxu2 %v3961_v0 }
0x3765   :  { %4757 = vtanh.f32 %v3774_v16  ;;  %v4355_v42 = vmul.f32 -1.442695, %v3774_v16 }
0x3766   :  { %4759 = vpow2.f32 %v4357_v49 }
0x376b   :  { %v4758_v59 = vpop.eup %4757 }
0x376c   :  { %3798 = vrot.lane.b32.xlu0 %v4758_v59, %s4974_s1  ;;  %v4760_v20 = vpop.eup %4759 }
0x376d   :  { %v3844_v17 = vadd.f32 1.0, %v4760_v20 }
0x376f   :  { %4761 = vrcp.f32 %v3844_v17  ;;  %v3856_v51 = vand.u32 2147483648, %v3844_v17  ;;  %vm3850_vm9 = vweird.f32 %v3844_v17  ;;  %v3854_v19 = vand.u32 2147483647, %v3844_v17 }
0x3770   :  { %4763 = vpow2.f32 %v4355_v42 }
0x3771   :  { %v3857_v45 = vor.u32 1.1754944e-38, %v3856_v51  ;;  %vm3855_vm11 = vcmp.eq.f32.partialorder %v3854_v19, 8.507059e+37 }
0x3775   :  { %v4762_v3 = vpop.eup %4761 }
0x3776   :  { %v3846_v58 = vmul.f32 %v4762_v3, %v3844_v17  ;;  %vm3851_vm8 = vweird.f32 %v4762_v3  ;;  %v4764_v12 = vpop.eup %4763 }
0x3777   :  { %vm3852_vm10 = vmor %vm3850_vm9, %vm3851_vm8  ;;  %v3779_v30 = vadd.f32 1.0, %v4764_v12 }
0x3778   :  { %v3847_v27 = vsub.f32 1.0, %v3846_v58 }
0x3779   :  { %4765 = vrcp.f32 %v3779_v30  ;;  %v3791_v8 = vand.u32 2147483648, %v3779_v30  ;;  %vm3785_vm15 = vweird.f32 %v3779_v30  ;;  %v3789_v21 = vand.u32 2147483647, %v3779_v30 }
0x377a   :  { %v3848_v54 = vmul.f32 %v4762_v3, %v3847_v27 }
0x377b   :  { %v3792_v50 = vor.u32 1.1754944e-38, %v3791_v8  ;;  %vm3790_vm1 = vcmp.eq.f32.partialorder %v3789_v21, 8.507059e+37 }
0x377c   :  { %v3849_v10 = vadd.f32 %v4762_v3, %v3848_v54 }
0x377e   :  { %v3853_v25 = vsel %vm3852_vm10, %v4762_v3, %v3849_v10 }
0x377f   :  { %v3858_v6 = vsel %vm3855_vm11, %v3857_v45, %v3853_v25  ;;  %v4766_v26 = vpop.eup %4765  ;;  %v1411_v45 = vrot.slane %v5557_v39, 2 }
0x3780   :  { %v3781_v24 = vmul.f32 %v4766_v26, %v3779_v30  ;;  %vm3786_vm12 = vweird.f32 %v4766_v26  ;;  %v3861_v35 = vmul.f32 %v3858_v6, %v6201_v47 }
0x3781   :  { %vm3787_vm0 = vmor %vm3785_vm15, %vm3786_vm12  ;;  %v1419_v42 = vperm.slane %v1411_v45, 0 }
0x3782   :  { %v3782_v55 = vsub.f32 1.0, %v3781_v24 }
0x3784   :  { %v3783_v33 = vmul.f32 %v4766_v26, %v3782_v55  ;;  %v6572_v55 = vld [vmem:[%s6894_s19] ss:$0 sm:$0xff] }
0x3786   :  { %v3784_v31 = vadd.f32 %v4766_v26, %v3783_v33 }
0x3788   :  { %v3788_v2 = vsel %vm3787_vm0, %v4766_v26, %v3784_v31 }
0x3789   :  { %v3793_v29 = vsel %vm3790_vm1, %v3792_v50, %v3788_v2 }
0x378a   :  { %v3796_v46 = vmul.f32 %v3793_v29, %v6210_v63 }
0x37b2   :  { %v3864_v9 = vpop.permute.xlu1 %3863 }
0x37b3   :  { %v3866_v43 = vmul.f32 %v3864_v9, %v3858_v6  ;;  %v1414_v9 = vrot.slane %v5557_v39, 5 }
0x37b5   :  { %3868 = vrot.lane.b32.xlu0 %v3866_v43, %s4975_s30 }
0x37de   :  { %v3799_v53 = vpop.permute.xlu0 %3798 }
0x37df   :  { %v3801_v34 = vmul.f32 %v3799_v53, %v3793_v29 }
0x37e1   :  { %3803 = vrot.lane.b32.xlu2 %v3801_v34, %s4975_s30 }
0x3827   :  { %v3869_v37 = vpop.permute.xlu0 %3868 }
0x3828   :  { %v3871_v38 = vadd.f32 %v3869_v37, %v3861_v35  ;;  %v1417_v37 = vperm.slane %v5557_v39, 0 }
0x382a   :  { %4767 = vtanh.f32 %v3871_v38  ;;  %v1412_v38 = vrot.slane %v5557_v39, 3 }
0x3830   :  { %v4768_v40 = vpop.eup %4767 }
0x3831   :  { %3874 = vrot.lane.b32.xlu2 %v4768_v40, %s4974_s1 }
0x383b   :  { %v3804_v48 = vpop.permute.xlu2 %3803 }
0x383c   :  { %v6519_v15 = vadd.f32 %v3804_v48, %v3796_v46  ;;  %v1420_v46 = vperm.slane %v1412_v38, 0  ;;  %v1415_v48 = vrot.slane %v5557_v39, 6 }
0x383e   :  { %4769 = vtanh.f32 %v6519_v15 }
0x3844   :  { %v4770_v41 = vpop.eup %4769 }
0x3845   :  { %3809 = vrot.lane.b32.xlu1 %v4770_v41, %s4974_s1 }
0x388b   :  { %v3875_v13 = vpop.permute.xlu2 %3874 }
0x388c   :  { %v3877_v7 = vmul.f32 %v3875_v13, %v3858_v6  ;;  %v1422_v6 = vperm.slane %v1414_v9, 0 }
0x388e   :  { %3879 = vrot.lane.b32.xlu0 %v3877_v7, %s4975_s30  ;;  %v1410_v7 = vrot.slane %v5557_v39, 1 }
0x38b7   :  { %v3810_v47 = vpop.permute.xlu1 %3809 }
0x38b8   :  { %v3812_v57 = vmul.f32 %v3810_v47, %v3793_v29 }
0x38ba   :  { %3882 = vrot.lane.b32.xlu1 %v3812_v57, %s4974_s1 }
0x3900   :  { %v3880_v62 = vpop.permute.xlu0 %3879 }
0x392c   :  { %v3883_v18 = vpop.permute.xlu1 %3882 }
0x392d   :  { %v3885_v63 = vsel %vm368_vm13, %v3880_v62, %v3883_v18  ;;  %v1413_v62 = vrot.slane %v5557_v39, 4  ;;  %v1424_v39 = vperm.slane %v1416_v14, 0 }
0x392e   :  { %4358 = vmatmul.msk.f32.vlgmr.msra.gmra.mxu1 %vm438_vm14, %v3885_v63 }
0x39ab   :  { %v3906_v1 = vpop.f32.mrf.mxu1 }
0x39ac   :  { %v3907_v52 = vadd.f32 %v6510_v56, %v3906_v1  ;;  %v3959_v56 = vld [vmem:[%s6893_s18] sm:$0xff]  ;;  %v1421_v1 = vperm.slane %v1413_v62, 0 }
0x39ae   :  { %4771 = vtanh.f32 %v3907_v52  ;;  %v4359_v44 = vmul.f32 -1.442695, %v3907_v52 }
0x39b0   :  { %4773 = vpow2.f32 %v4359_v44 }
0x39b4   :  { %v4772_v11 = vpop.eup %4771 }
0x39b5   :  { %3931 = vrot.lane.b32.xlu2 %v4772_v11, %s4974_s1 }
0x39b6   :  { %v4774_v22 = vpop.eup %4773 }
0x39b7   :  { %v3912_v28 = vadd.f32 1.0, %v4774_v22 }
0x39b9   :  { %4775 = vrcp.f32 %v3912_v28  ;;  %v3924_v20 = vand.u32 2147483648, %v3912_v28  ;;  %vm3918_vm2 = vweird.f32 %v3912_v28  ;;  %v3922_v17 = vand.u32 2147483647, %v3912_v28 }
0x39bb   :  { %v3925_v58 = vor.u32 1.1754944e-38, %v3924_v20  ;;  %vm3923_vm4 = vcmp.eq.f32.partialorder %v3922_v17, 8.507059e+37 }
0x39bd   :  { %3016 = vrot.lane.b32.xlu2 %v6016_v4, %s4975_s30  ;;  %v3960_v4 = vld [vmem:[%s6893_s18 + $0x8] sm:$0xff] }
0x39be   :  { %4005 = vmatpush.msra.mxu0 %v3960_v4  ;;  %4371 = vmatpush.msra.mxu2 %v3960_v4 }
0x39bf   :  { %v4776_v61 = vpop.eup %4775 }
0x39c0   :  { %4006 = vmatpush.msra.mxu0 %v3959_v56  ;;  %4372 = vmatpush.msra.mxu2 %v3959_v56  ;;  %vm3919_vm14 = vweird.f32 %v4776_v61 }
0x39c1   :  { %vm3920_vm3 = vmor %vm3918_vm2, %vm3919_vm14 }
0x39c5   :  { %3282 = vrot.lane.b32.xlu2 %v6084_v60, %s4975_s30  ;;  %v3914_v60 = vmul.f32 %v4776_v61, %v3912_v28 }
0x39c7   :  { %v3915_v16 = vsub.f32 1.0, %v3914_v60 }
0x39c9   :  { %v3916_v59 = vmul.f32 %v4776_v61, %v3915_v16 }
0x39cb   :  { %v3917_v49 = vadd.f32 %v4776_v61, %v3916_v59 }
0x39cd   :  { %v3921_v3 = vsel %vm3920_vm3, %v4776_v61, %v3917_v49 }
0x39ce   :  { %v6545_v54 = vsel %vm3923_vm4, %v3925_v58, %v3921_v3 }
0x3a0f   :  { %v3932_v27 = vpop.permute.xlu2 %3931 }
0x3a10   :  { %v3934_v10 = vmul.f32 %v3932_v27, %v6545_v54 }
0x3a12   :  { %3936 = vrot.lane.b32.xlu0 %v3934_v10, %s4975_s30 }
0x3a17   :  { %v3017_v51 = vpop.permute.xlu2 %3016 }
0x3a18   :  { %3019 = vst.msk [vmem:[#allocation3] sm:$0xff] %vm368_vm13, %v3017_v51 }
0x3a1a   :  { %3149 = vrot.lane.b32.xlu0 %v6052_v32, %s4975_s30  ;;  %v3929_v32 = vmul.f32 %v6545_v54, %v6519_v15  ;;  %v1423_v15 = vperm.slane %v1415_v48, 0 }
0x3a1f   :  { %v3283_v19 = vpop.permute.xlu2 %3282  ;;  %v3951_v25 = vld [vmem:[#allocation3] sm:$0xff] }
0x3a20   :  { %3285 = vst.msk [vmem:[#allocation3 + $0x10] sm:$0xff] %vm368_vm13, %v3283_v19  ;;  %4360 = vmatmul.msk.f32.vlgmr.msra.gmra.mxu0 %vm368_vm13, %v3951_v25 }
0x3a22   :  { %3814 = vrot.lane.b32.xlu0 %v3812_v57, %s4975_s30  ;;  %v1418_v57 = vperm.slane %v1410_v7, 0 }
0x3a27   :  { %v3953_v31 = vld [vmem:[#allocation3 + $0x10] sm:$0xff] }
0x3a2a   :  { %3548 = vrot.lane.b32.xlu0 %v6144_v23, %s4975_s30 }
0x3a32   :  { %1429 = vrot.lane.b32.xlu0 %v1419_v42, %s4975_s30 }
0x3a3a   :  { %1435 = vrot.lane.b32.xlu0 %v1422_v6, %s4975_s30 }
0x3a84   :  { %v3937_v43 = vpop.permute.xlu0 %3936 }
0x3a85   :  { %v3939_v12 = vadd.f32 %v3937_v43, %v3929_v32 }
0x3a87   :  { %4777 = vtanh.f32 %v3939_v12 }
0x3a8c   :  { %v3150_v30 = vpop.permute.xlu0 %3149 }
0x3a8d   :  { %v4778_v26 = vpop.eup %4777  ;;  %3152 = vst.msk [vmem:[#allocation3 + $0x8] sm:$0xff] %vm368_vm13, %v3150_v30 }
0x3a8e   :  { %3942 = vrot.lane.b32.xlu1 %v4778_v26, %s4974_s1 }
0x3a94   :  { %v3815_v23 = vpop.permute.xlu0 %3814  ;;  %v3952_v24 = vld [vmem:[#allocation3 + $0x8] sm:$0xff] }
0x3a95   :  { %3817 = vst.msk [vmem:[#allocation3 + $0x30] sm:$0xff] %vm368_vm13, %v3815_v23  ;;  %4361 = vmatmul.msk.f32.gmra.mxu0 %vm368_vm13, %v3952_v24 }
0x3a96   :  { %3681 = vrot.lane.b32.xlu1 %v6263_v36, %s4975_s30 }
0x3a9c   :  { %v3549_v33 = vpop.permute.xlu0 %3548  ;;  %v3957_v16 = vld [vmem:[#allocation3 + $0x30] sm:$0xff] }
0x3a9d   :  { %3551 = vst.msk [vmem:[#allocation3 + $0x20] sm:$0xff] %vm368_vm13, %v3549_v33  ;;  %v4008_v8 = vpop.f32.mrf.mxu0  ;;  %4362 = vmatmul.msk.f32.gmra.mxu0 %vm368_vm13, %v3953_v31 }
0x3a9e   :  { %v4009_v21 = vadd.f32 %v6572_v55, %v4008_v8  ;;  %3415 = vrot.lane.b32.xlu1 %v6112_v5, %s4975_s30 }
0x3aa0   :  { %v4033_v2 = vrot.slane %v4009_v21, 1  ;;  %v4034_v50 = vrot.slane %v4009_v21, 2  ;;  %v4035_v36 = vrot.slane %v4009_v21, 3  ;;  %4047 = vst.msk [vmem:[%s6897_s22] sm:$0x1] %vm2673_vm7, %v4009_v21  ;;  %v4036_v53 = vrot.slane %v4009_v21, 4 }
0x3aa1   :  { %v4037_v29 = vrot.slane %v4009_v21, 5  ;;  %v4038_v34 = vrot.slane %v4009_v21, 6  ;;  %v4039_v5 = vrot.slane %v4009_v21, 7 }
0x3aa2   :  { %4048 = vst.msk [vmem:[%s6897_s22 + $0x8] sm:$0x1] %vm2673_vm7, %v4033_v2 }
0x3aa3   :  { %4049 = vst.msk [vmem:[%s6897_s22 + $0x10] sm:$0x1] %vm2673_vm7, %v4034_v50 }
0x3aa4   :  { %4050 = vst.msk [vmem:[%s6897_s22 + $0x18] sm:$0x1] %vm2673_vm7, %v4035_v36  ;;  %v1430_v35 = vpop.permute.xlu0 %1429  ;;  %v3955_v51 = vld [vmem:[#allocation3 + $0x20] sm:$0xff] }
0x3aa5   :  { %4051 = vst.msk [vmem:[%s6897_s22 + $0x20] sm:$0x1] %vm2673_vm7, %v4036_v53 }
0x3aa6   :  { %4052 = vst.msk [vmem:[%s6897_s22 + $0x28] sm:$0x1] %vm2673_vm7, %v4037_v29  ;;  %1425 = vrot.lane.b32.xlu1 %v1417_v37, %s4975_s30 }
0x3aa7   :  { %4053 = vst.msk [vmem:[%s6897_s22 + $0x30] sm:$0x1] %vm2673_vm7, %v4038_v34 }
0x3aa8   :  { %4054 = vst.msk [vmem:[%s6897_s22 + $0x38] sm:$0x1] %vm2673_vm7, %v4039_v5 }
0x3aa9   :  { %1452 = vst.msk [vmem:[#allocation15 + $0x2] sm:$0x1] %vm1449_vm5, %v1430_v35 }
0x3aac   :  { %v1436_v40 = vpop.permute.xlu0 %1435 }
0x3aad   :  { %1455 = vst.msk [vmem:[#allocation15 + $0x5] sm:$0x1] %vm1449_vm5, %v1436_v40 }
0x3aae   :  { %1431 = vrot.lane.b32.xlu1 %v1420_v46, %s4975_s30 }
0x3ab6   :  { %1437 = vrot.lane.b32.xlu1 %v1423_v15, %s4975_s30 }
0x3b00   :  { %v3943_v41 = vpop.permute.xlu1 %3942 }
0x3b01   :  { %v3945_v13 = vmul.f32 %v3943_v41, %v6545_v54 }
0x3b03   :  { %3947 = vrot.lane.b32.xlu2 %v3945_v13, %s4975_s30 }
0x3b08   :  { %v3682_v47 = vpop.permute.xlu1 %3681 }
0x3b09   :  { %3684 = vst.msk [vmem:[#allocation3 + $0x28] sm:$0xff] %vm368_vm13, %v3682_v47 }
0x3b0b   :  { %1427 = vrot.lane.b32.xlu2 %v1418_v57, %s4975_s30 }
0x3b10   :  { %v3416_v18 = vpop.permute.xlu1 %3415  ;;  %v3956_v63 = vld [vmem:[#allocation3 + $0x28] sm:$0xff] }
0x3b11   :  { %3418 = vst.msk [vmem:[#allocation3 + $0x18] sm:$0xff] %vm368_vm13, %v3416_v18  ;;  %4365 = vmatmul.msk.f32.vlgmr.msra.gmra.mxu2 %vm368_vm13, %v3956_v63 }
0x3b12   :  { %v4011_v52 = vpop.f32.mrf.mxu0 }
0x3b13   :  { %v4012_v11 = vadd.f32 %v6572_v55, %v4011_v52  ;;  %1433 = vrot.lane.b32.xlu2 %v1421_v1, %s4975_s30 }
0x3b15   :  { %v4056_v44 = vrot.slane %v4012_v11, 1  ;;  %v4057_v22 = vrot.slane %v4012_v11, 2  ;;  %v4058_v28 = vrot.slane %v4012_v11, 3  ;;  %4070 = vst.msk [vmem:[%s6897_s22 + $0x1] sm:$0x1] %vm2673_vm7, %v4012_v11  ;;  %v4059_v61 = vrot.slane %v4012_v11, 4 }
0x3b16   :  { %v4060_v0 = vrot.slane %v4012_v11, 5  ;;  %v4061_v4 = vrot.slane %v4012_v11, 6  ;;  %v4062_v59 = vrot.slane %v4012_v11, 7 }
0x3b17   :  { %4071 = vst.msk [vmem:[%s6897_s22 + $0x9] sm:$0x1] %vm2673_vm7, %v4056_v44 }
0x3b18   :  { %4072 = vst.msk [vmem:[%s6897_s22 + $0x11] sm:$0x1] %vm2673_vm7, %v4057_v22  ;;  %v1426_v60 = vpop.permute.xlu1 %1425  ;;  %v3954_v56 = vld [vmem:[#allocation3 + $0x18] sm:$0xff] }
0x3b19   :  { %4073 = vst.msk [vmem:[%s6897_s22 + $0x19] sm:$0x1] %vm2673_vm7, %v4058_v28  ;;  %4363 = vmatmul.msk.f32.gmra.mxu0 %vm368_vm13, %v3954_v56  ;;  %4366 = vmatmul.msk.f32.gmra.mxu2 %vm368_vm13, %v3957_v16 }
0x3b1a   :  { %4074 = vst.msk [vmem:[%s6897_s22 + $0x21] sm:$0x1] %vm2673_vm7, %v4059_v61  ;;  %v4014_v49 = vpop.f32.mrf.mxu0 }
0x3b1b   :  { %4075 = vst.msk [vmem:[%s6897_s22 + $0x29] sm:$0x1] %vm2673_vm7, %v4060_v0  ;;  %v4015_v20 = vadd.f32 %v6572_v55, %v4014_v49  ;;  %1439 = vrot.lane.b32.xlu2 %v1424_v39, %s4975_s30 }
0x3b1c   :  { %4076 = vst.msk [vmem:[%s6897_s22 + $0x31] sm:$0x1] %vm2673_vm7, %v4061_v4 }
0x3b1d   :  { %4077 = vst.msk [vmem:[%s6897_s22 + $0x39] sm:$0x1] %vm2673_vm7, %v4062_v59  ;;  %v4079_v17 = vrot.slane %v4015_v20, 1  ;;  %v4080_v3 = vrot.slane %v4015_v20, 2  ;;  %v4081_v58 = vrot.slane %v4015_v20, 3  ;;  %v4082_v27 = vrot.slane %v4015_v20, 4 }
0x3b1e   :  { %1450 = vst.msk [vmem:[#allocation15] sm:$0x1] %vm1449_vm5, %v1426_v60  ;;  %v4083_v54 = vrot.slane %v4015_v20, 5  ;;  %v4084_v19 = vrot.slane %v4015_v20, 6  ;;  %v4085_v25 = vrot.slane %v4015_v20, 7 }
0x3b1f   :  { %4093 = vst.msk [vmem:[%s6897_s22 + $0x2] sm:$0x1] %vm2673_vm7, %v4015_v20 }
0x3b20   :  { %4094 = vst.msk [vmem:[%s6897_s22 + $0xa] sm:$0x1] %vm2673_vm7, %v4079_v17  ;;  %v1432_v10 = vpop.permute.xlu1 %1431 }
0x3b21   :  { %4095 = vst.msk [vmem:[%s6897_s22 + $0x12] sm:$0x1] %vm2673_vm7, %v4080_v3  ;;  %4364 = vmatmul.msk.f32.gmra.mxu0 %vm368_vm13, %v3955_v51 }
0x3b22   :  { %4096 = vst.msk [vmem:[%s6897_s22 + $0x1a] sm:$0x1] %vm2673_vm7, %v4081_v58 }
0x3b23   :  { %4097 = vst.msk [vmem:[%s6897_s22 + $0x22] sm:$0x1] %vm2673_vm7, %v4082_v27 }
0x3b24   :  { %4098 = vst.msk [vmem:[%s6897_s22 + $0x2a] sm:$0x1] %vm2673_vm7, %v4083_v54 }
0x3b25   :  { %4099 = vst.msk [vmem:[%s6897_s22 + $0x32] sm:$0x1] %vm2673_vm7, %v4084_v19 }
0x3b26   :  { %4100 = vst.msk [vmem:[%s6897_s22 + $0x3a] sm:$0x1] %vm2673_vm7, %v4085_v25 }
0x3b27   :  { %1453 = vst.msk [vmem:[#allocation15 + $0x3] sm:$0x1] %vm1449_vm5, %v1432_v10 }
0x3b28   :  { %v1438_v45 = vpop.permute.xlu1 %1437 }
0x3b29   :  { %1456 = vst.msk [vmem:[#allocation15 + $0x6] sm:$0x1] %vm1449_vm5, %v1438_v45 }
0x3b5d   :  { %v3948_v42 = vpop.permute.xlu2 %3947 }
0x3b5e   :  { %3950 = vst.msk [vmem:[#allocation3 + $0x38] sm:$0xff] %vm368_vm13, %v3948_v42 }
0x3b65   :  { %v1428_v9 = vpop.permute.xlu2 %1427  ;;  %v3958_v6 = vld [vmem:[#allocation3 + $0x38] sm:$0xff] }
0x3b66   :  { %1451 = vst.msk [vmem:[#allocation15 + $0x1] sm:$0x1] %vm1449_vm5, %v1428_v9  ;;  %4367 = vmatmul.msk.f32.gmra.mxu2 %vm368_vm13, %v3958_v6 }
0x3b6d   :  { %v1434_v32 = vpop.permute.xlu2 %1433 }
0x3b6e   :  { %1454 = vst.msk [vmem:[#allocation15 + $0x4] sm:$0x1] %vm1449_vm5, %v1434_v32 }
0x3b75   :  { %v1440_v43 = vpop.permute.xlu2 %1439 }
0x3b76   :  { %1457 = vst.msk [vmem:[#allocation15 + $0x7] sm:$0x1] %vm1449_vm5, %v1440_v43 }
0x3b77   :  { %4228 = dma.vmem_to_hbm [thread:$0]  %s4221_s29, 128, %s4223_s14, [#allocation6], %s4977_s4, %s4977_s4, %s4978_s23  }
0x3b94   :  { %v4023_v12 = vpop.f32.mrf.mxu2 }
0x3b95   :  { %v4024_v30 = vadd.f32 %v6572_v55, %v4023_v12 }
0x3b96   :  { %v4017_v26 = vpop.f32.mrf.mxu0 }
0x3b97   :  { %v4148_v23 = vrot.slane %v4024_v30, 1  ;;  %v4149_v24 = vrot.slane %v4024_v30, 2  ;;  %v4150_v33 = vrot.slane %v4024_v30, 3  ;;  %4162 = vst.msk [vmem:[%s6897_s22 + $0x5] sm:$0x1] %vm2673_vm7, %v4024_v30  ;;  %v4151_v31 = vrot.slane %v4024_v30, 4 }
0x3b98   :  { %v4152_v8 = vrot.slane %v4024_v30, 5  ;;  %v4018_v21 = vadd.f32 %v6572_v55, %v4017_v26  ;;  %v4153_v2 = vrot.slane %v4024_v30, 6  ;;  %v4154_v50 = vrot.slane %v4024_v30, 7 }
0x3b99   :  { %4163 = vst.msk [vmem:[%s6897_s22 + $0xd] sm:$0x1] %vm2673_vm7, %v4148_v23 }
0x3b9a   :  { %4164 = vst.msk [vmem:[%s6897_s22 + $0x15] sm:$0x1] %vm2673_vm7, %v4149_v24  ;;  %v4102_v36 = vrot.slane %v4018_v21, 1  ;;  %v4103_v53 = vrot.slane %v4018_v21, 2  ;;  %v4104_v34 = vrot.slane %v4018_v21, 3  ;;  %v4105_v5 = vrot.slane %v4018_v21, 4 }
0x3b9b   :  { %4165 = vst.msk [vmem:[%s6897_s22 + $0x1d] sm:$0x1] %vm2673_vm7, %v4150_v33  ;;  %v4106_v35 = vrot.slane %v4018_v21, 5  ;;  %v4107_v38 = vrot.slane %v4018_v21, 6  ;;  %v4108_v40 = vrot.slane %v4018_v21, 7 }
0x3b9c   :  { %4166 = vst.msk [vmem:[%s6897_s22 + $0x25] sm:$0x1] %vm2673_vm7, %v4151_v31  ;;  %v4026_v29 = vpop.f32.mrf.mxu2 }
0x3b9d   :  { %4167 = vst.msk [vmem:[%s6897_s22 + $0x2d] sm:$0x1] %vm2673_vm7, %v4152_v8  ;;  %v4027_v37 = vadd.f32 %v6572_v55, %v4026_v29 }
0x3b9e   :  { %4168 = vst.msk [vmem:[%s6897_s22 + $0x35] sm:$0x1] %vm2673_vm7, %v4153_v2  ;;  %v4020_v15 = vpop.f32.mrf.mxu0 }
0x3b9f   :  { %4169 = vst.msk [vmem:[%s6897_s22 + $0x3d] sm:$0x1] %vm2673_vm7, %v4154_v50  ;;  %v4171_v46 = vrot.slane %v4027_v37, 1  ;;  %v4172_v48 = vrot.slane %v4027_v37, 2  ;;  %v4173_v41 = vrot.slane %v4027_v37, 3  ;;  %v4174_v13 = vrot.slane %v4027_v37, 4 }
0x3ba0   :  { %4116 = vst.msk [vmem:[%s6897_s22 + $0x3] sm:$0x1] %vm2673_vm7, %v4018_v21  ;;  %v4175_v7 = vrot.slane %v4027_v37, 5  ;;  %v4021_v47 = vadd.f32 %v6572_v55, %v4020_v15  ;;  %v4176_v57 = vrot.slane %v4027_v37, 6  ;;  %v4177_v62 = vrot.slane %v4027_v37, 7 }
0x3ba1   :  { %4117 = vst.msk [vmem:[%s6897_s22 + $0xb] sm:$0x1] %vm2673_vm7, %v4102_v36 }
0x3ba2   :  { %4118 = vst.msk [vmem:[%s6897_s22 + $0x13] sm:$0x1] %vm2673_vm7, %v4103_v53  ;;  %v4125_v18 = vrot.slane %v4021_v47, 1  ;;  %v4126_v63 = vrot.slane %v4021_v47, 2  ;;  %v4127_v1 = vrot.slane %v4021_v47, 3  ;;  %v4128_v52 = vrot.slane %v4021_v47, 4 }
0x3ba3   :  { %4119 = vst.msk [vmem:[%s6897_s22 + $0x1b] sm:$0x1] %vm2673_vm7, %v4104_v34  ;;  %v4129_v11 = vrot.slane %v4021_v47, 5  ;;  %v4130_v44 = vrot.slane %v4021_v47, 6  ;;  %v4131_v22 = vrot.slane %v4021_v47, 7 }
0x3ba4   :  { %4120 = vst.msk [vmem:[%s6897_s22 + $0x23] sm:$0x1] %vm2673_vm7, %v4105_v5 }
0x3ba5   :  { %4121 = vst.msk [vmem:[%s6897_s22 + $0x2b] sm:$0x1] %vm2673_vm7, %v4106_v35 }
0x3ba6   :  { %4122 = vst.msk [vmem:[%s6897_s22 + $0x33] sm:$0x1] %vm2673_vm7, %v4107_v38 }
0x3ba7   :  { %4123 = vst.msk [vmem:[%s6897_s22 + $0x3b] sm:$0x1] %vm2673_vm7, %v4108_v40 }
0x3ba8   :  { %4185 = vst.msk [vmem:[%s6897_s22 + $0x6] sm:$0x1] %vm2673_vm7, %v4027_v37 }
0x3ba9   :  { %4186 = vst.msk [vmem:[%s6897_s22 + $0xe] sm:$0x1] %vm2673_vm7, %v4171_v46 }
0x3baa   :  { %4187 = vst.msk [vmem:[%s6897_s22 + $0x16] sm:$0x1] %vm2673_vm7, %v4172_v48 }
0x3bab   :  { %4188 = vst.msk [vmem:[%s6897_s22 + $0x1e] sm:$0x1] %vm2673_vm7, %v4173_v41 }
0x3bac   :  { %4189 = vst.msk [vmem:[%s6897_s22 + $0x26] sm:$0x1] %vm2673_vm7, %v4174_v13 }
0x3bad   :  { %4190 = vst.msk [vmem:[%s6897_s22 + $0x2e] sm:$0x1] %vm2673_vm7, %v4175_v7 }
0x3bae   :  { %4191 = vst.msk [vmem:[%s6897_s22 + $0x36] sm:$0x1] %vm2673_vm7, %v4176_v57 }
0x3baf   :  { %4192 = vst.msk [vmem:[%s6897_s22 + $0x3e] sm:$0x1] %vm2673_vm7, %v4177_v62 }
0x3bb0   :  { %4139 = vst.msk [vmem:[%s6897_s22 + $0x4] sm:$0x1] %vm2673_vm7, %v4021_v47 }
0x3bb1   :  { %4140 = vst.msk [vmem:[%s6897_s22 + $0xc] sm:$0x1] %vm2673_vm7, %v4125_v18 }
0x3bb2   :  { %4141 = vst.msk [vmem:[%s6897_s22 + $0x14] sm:$0x1] %vm2673_vm7, %v4126_v63 }
0x3bb3   :  { %4142 = vst.msk [vmem:[%s6897_s22 + $0x1c] sm:$0x1] %vm2673_vm7, %v4127_v1 }
0x3bb4   :  { %4143 = vst.msk [vmem:[%s6897_s22 + $0x24] sm:$0x1] %vm2673_vm7, %v4128_v52 }
0x3bb5   :  { %4144 = vst.msk [vmem:[%s6897_s22 + $0x2c] sm:$0x1] %vm2673_vm7, %v4129_v11 }
0x3bb6   :  { %4145 = vst.msk [vmem:[%s6897_s22 + $0x34] sm:$0x1] %vm2673_vm7, %v4130_v44 }
0x3bb7   :  { %4146 = vst.msk [vmem:[%s6897_s22 + $0x3c] sm:$0x1] %vm2673_vm7, %v4131_v22 }
0x3be9   :  { %v4029_v28 = vpop.f32.mrf.mxu2 }
0x3bea   :  { %v4030_v14 = vadd.f32 %v6572_v55, %v4029_v28 }
0x3bec   :  { %v4194_v61 = vrot.slane %v4030_v14, 1  ;;  %v4195_v0 = vrot.slane %v4030_v14, 2  ;;  %v4196_v4 = vrot.slane %v4030_v14, 3  ;;  %4208 = vst.msk [vmem:[%s6897_s22 + $0x7] sm:$0x1] %vm2673_vm7, %v4030_v14  ;;  %v4197_v60 = vrot.slane %v4030_v14, 4 }
0x3bed   :  { %v4198_v56 = vrot.slane %v4030_v14, 5  ;;  %v4199_v16 = vrot.slane %v4030_v14, 6  ;;  %v4200_v55 = vrot.slane %v4030_v14, 7 }
0x3bee   :  { %4209 = vst.msk [vmem:[%s6897_s22 + $0xf] sm:$0x1] %vm2673_vm7, %v4194_v61 }
0x3bef   :  { %4210 = vst.msk [vmem:[%s6897_s22 + $0x17] sm:$0x1] %vm2673_vm7, %v4195_v0 }
0x3bf0   :  { %4211 = vst.msk [vmem:[%s6897_s22 + $0x1f] sm:$0x1] %vm2673_vm7, %v4196_v4 }
0x3bf1   :  { %4212 = vst.msk [vmem:[%s6897_s22 + $0x27] sm:$0x1] %vm2673_vm7, %v4197_v60 }
0x3bf2   :  { %4213 = vst.msk [vmem:[%s6897_s22 + $0x2f] sm:$0x1] %vm2673_vm7, %v4198_v56 }
0x3bf3   :  { %4214 = vst.msk [vmem:[%s6897_s22 + $0x37] sm:$0x1] %vm2673_vm7, %v4199_v16 }
0x3bf4   :  { %4215 = vst.msk [vmem:[%s6897_s22 + $0x3f] sm:$0x1] %vm2673_vm7, %v4200_v55 }
0x3bf5   :  { %4963 = dma.done.wait [#allocation6], 128  }
0x3bf6   :  { %4964 = vsyncadd [#allocation6], 4294967168 }
0x3bf7   :  { %4241 = vsyncpa [#allocation5], 1 }
0x3bf8   :  { %4242 = vsyncpa [#allocation8], 1 }
0x3bf9   :  { %4243 = vsyncpa [#allocation11], 1 }
0x3bfa   :  { %4244 = vsyncpa [#allocation14], 1 }
0x3bfb   :  { %4245 = vsyncpa [#allocation6], 1 }

</bundles_post_ra>
